<compile_context>
chip_gen: v7x
topology: tpu7x:2x2x1
jax: 0.10.0
libtpu: 0.0.40
codegen_flags: <defaults>
</compile_context>

<pallas_src>
import functools

import jax
import jax.numpy as jnp
from jax.experimental import pallas as pl
from jax.experimental.pallas import tpu as pltpu


# ----------------------------------------------------------------------------
# Pallas kernels (each is a single grid step: one/two MXU matmuls + epilogue)
# ----------------------------------------------------------------------------
def _conv_bn_kernel(x_ref, w_ref, scale_ref, bias_ref, out_ref, *, relu):
    """Folded-K conv matmul + BN affine (+ ReLU)."""
    y = jnp.dot(x_ref[...], w_ref[...], preferred_element_type=jnp.float32)
    y = y * scale_ref[...] + bias_ref[...]
    if relu:
        y = jnp.maximum(y, 0.0)
    out_ref[...] = y.astype(out_ref.dtype)


def _conv_bn_res_kernel(x_ref, w_ref, scale_ref, bias_ref, res_ref, out_ref,
                        *, relu):
    """Folded-K conv matmul + BN affine + identity residual (+ ReLU)."""
    y = jnp.dot(x_ref[...], w_ref[...], preferred_element_type=jnp.float32)
    y = y * scale_ref[...] + bias_ref[...] + res_ref[...]
    if relu:
        y = jnp.maximum(y, 0.0)
    out_ref[...] = y.astype(out_ref.dtype)


def _conv_bn_proj_kernel(x_ref, w_ref, scale_ref, bias_ref,
                         xs_ref, ws_ref, sscale_ref, sbias_ref, out_ref,
                         *, relu):
    """conv2 matmul + BN, fused with the 1x1 projection-shortcut matmul + BN."""
    main = jnp.dot(x_ref[...], w_ref[...], preferred_element_type=jnp.float32)
    main = main * scale_ref[...] + bias_ref[...]
    proj = jnp.dot(xs_ref[...], ws_ref[...], preferred_element_type=jnp.float32)
    proj = proj * sscale_ref[...] + sbias_ref[...]
    y = main + proj
    if relu:
        y = jnp.maximum(y, 0.0)
    out_ref[...] = y.astype(out_ref.dtype)


def _pool_linear_kernel(x_ref, w_ref, b_ref, out_ref):
    """avg_pool2d(4) (== mean over the 16 spatial positions) + Linear (lane-padded)."""
    pooled = jnp.mean(x_ref[...], axis=1)  # (N, C) f32
    y = jnp.dot(pooled.astype(w_ref.dtype), w_ref[...],
                preferred_element_type=jnp.float32) + b_ref[...]
    out_ref[...] = y.astype(out_ref.dtype)


# ----------------------------------------------------------------------------
# Wrapper glue (padding / shifted-view slicing / folding stay in XLA)
# ----------------------------------------------------------------------------
def _full_spec(shape):
    """Whole-array block (block == full dims, so the (8,128) rule is satisfied)."""
    zeros = (0,) * len(shape)
    return pl.BlockSpec(shape, lambda i, _z=zeros: _z)


def _nbytes(*arrays):
    return int(sum(a.size * a.dtype.itemsize for a in arrays))


def _im2col(x, ksize, stride):
    """Folded-K im2col: returns (N*Ho*Wo, k*k*Cin) and the output spatial shape."""
    n, h, w, c = x.shape
    pad = (ksize - 1) // 2
    ho = (h + 2 * pad - ksize) // stride + 1
    wo = (w + 2 * pad - ksize) // stride + 1
    xp = jnp.pad(x, ((0, 0), (pad, pad), (pad, pad), (0, 0))) if pad else x
    cols = []
    for dy in range(ksize):
        for dx in range(ksize):
            v = xp[:, dy:dy + stride * ho:stride, dx:dx + stride * wo:stride, :]
            cols.append(v.reshape(n * ho * wo, c))
    return jnp.concatenate(cols, axis=1), (n, ho, wo)


def fold_conv_weight(w_oihw):
    """PyTorch (Cout, Cin, kH, kW) -> (kH*kW*Cin, Cout), matching _im2col order."""
    cout, cin, kh, kw = w_oihw.shape
    return jnp.transpose(w_oihw, (2, 3, 1, 0)).reshape(kh * kw * cin, cout)


def conv_bn(x_nhwc, w, scale, bias, *, ksize, stride, relu, residual=None):
    """Conv(kxk, stride, pad=k//2, no bias) + folded BN [+ residual] [+ ReLU]."""
    a, (n, ho, wo) = _im2col(x_nhwc, ksize, stride)
    a = a.astype(w.dtype)
    m, kk = a.shape
    cout = w.shape[-1]
    scale2 = scale.reshape(1, cout)
    bias2 = bias.reshape(1, cout)

    in_specs = [_full_spec((m, kk)), _full_spec((kk, cout)),
                _full_spec((1, cout)), _full_spec((1, cout))]
    args = [a, w, scale2, bias2]
    if residual is not None:
        res = residual.reshape(m, cout).astype(jnp.float32)
        in_specs.append(_full_spec((m, cout)))
        args.append(res)
        kernel = functools.partial(_conv_bn_res_kernel, relu=relu)
    else:
        kernel = functools.partial(_conv_bn_kernel, relu=relu)

    flops = 2 * m * kk * cout
    bytes_acc = _nbytes(*args) + m * cout * 4
    out = pl.pallas_call(
        kernel,
        out_shape=jax.ShapeDtypeStruct((m, cout), jnp.float32),
        grid=(1,),
        in_specs=in_specs,
        out_specs=_full_spec((m, cout)),
        compiler_params=pltpu.CompilerParams(dimension_semantics=("arbitrary",)),
        cost_estimate=pl.CostEstimate(flops=flops, transcendentals=0,
                                      bytes_accessed=bytes_acc),
    )(*args)
    return out.reshape(n, ho, wo, cout)


def conv_bn_proj(h_nhwc, w2, s2, b2, x_nhwc, ws, ss, bs, *, proj_stride):
    """relu( bn2(conv2(h)) + bn_s(1x1conv_s(x)) ), fused in one pallas_call."""
    a2, (n, ho, wo) = _im2col(h_nhwc, 3, 1)
    xs, _ = _im2col(x_nhwc, 1, proj_stride)
    a2 = a2.astype(w2.dtype)
    xs = xs.astype(ws.dtype)
    m, k2 = a2.shape
    cin = xs.shape[1]
    cout = w2.shape[-1]
    s2r, b2r = s2.reshape(1, cout), b2.reshape(1, cout)
    ssr, bsr = ss.reshape(1, cout), bs.reshape(1, cout)

    args = [a2, w2, s2r, b2r, xs, ws, ssr, bsr]
    flops = 2 * m * k2 * cout + 2 * m * cin * cout
    bytes_acc = _nbytes(*args) + m * cout * 4
    out = pl.pallas_call(
        functools.partial(_conv_bn_proj_kernel, relu=True),
        out_shape=jax.ShapeDtypeStruct((m, cout), jnp.float32),
        grid=(1,),
        in_specs=[_full_spec((m, k2)), _full_spec((k2, cout)),
                  _full_spec((1, cout)), _full_spec((1, cout)),
                  _full_spec((m, cin)), _full_spec((cin, cout)),
                  _full_spec((1, cout)), _full_spec((1, cout))],
        out_specs=_full_spec((m, cout)),
        compiler_params=pltpu.CompilerParams(dimension_semantics=("arbitrary",)),
        cost_estimate=pl.CostEstimate(flops=flops, transcendentals=0,
                                      bytes_accessed=bytes_acc),
    )(*args)
    return out.reshape(n, ho, wo, cout)


def pool_linear(x_nhwc, w, b):
    """F.avg_pool2d(x, 4) -> flatten -> Linear, fused; output lane-padded to 128."""
    n, h, ww, c = x_nhwc.shape  # expects h == ww == 4
    x = x_nhwc.reshape(n, h * ww, c)
    kpad = w.shape[1]
    b2 = b.reshape(1, kpad)
    flops = 2 * n * c * kpad
    bytes_acc = _nbytes(x, w, b2) + n * kpad * 4
    return pl.pallas_call(
        _pool_linear_kernel,
        out_shape=jax.ShapeDtypeStruct((n, kpad), jnp.float32),
        grid=(1,),
        in_specs=[_full_spec((n, h * ww, c)), _full_spec((c, kpad)),
                  _full_spec((1, kpad))],
        out_specs=_full_spec((n, kpad)),
        compiler_params=pltpu.CompilerParams(dimension_semantics=("arbitrary",)),
        cost_estimate=pl.CostEstimate(flops=flops, transcendentals=0,
                                      bytes_accessed=bytes_acc),
    )(x, w, b2)


# ----------------------------------------------------------------------------
# Decoder (BasicBlock, expansion = 1, num_blocks = [2, 2, 2, 2])
# ----------------------------------------------------------------------------
def basic_block(x, bp):
    stride = bp["stride"]
    h = conv_bn(x, bp["w1"], bp["s1"], bp["b1"], ksize=3, stride=stride, relu=True)
    if "ws" in bp:  # projection shortcut fused with conv2
        return conv_bn_proj(h, bp["w2"], bp["s2"], bp["b2"],
                            x, bp["ws"], bp["ss"], bp["bs"], proj_stride=stride)
    # identity shortcut: out = relu(bn2(conv2(h)) + x)
    return conv_bn(h, bp["w2"], bp["s2"], bp["b2"], ksize=3, stride=1,
                   relu=True, residual=x)


def init_decoder_params(key, hidden_size, num_classes=100):
    keys = jax.random.split(key, 32)
    ki = iter(keys)

    def conv_w(cout, cin, k):
        w = jax.random.normal(next(ki), (cout, cin, k, k), jnp.float32)
        w = w * jnp.sqrt(2.0 / (cin * k * k))
        return fold_conv_weight(w).astype(jnp.bfloat16)   # (k*k*Cin, Cout), bf16

    def bn(cout):  # folded (eval-mode) BatchNorm -> per-channel scale & bias, f32
        s = 1.0 + 0.05 * jax.random.normal(next(ki), (cout,), jnp.float32)
        b = 0.05 * jax.random.normal(next(ki), (cout,), jnp.float32)
        return s, b

    def make_block(cin, cout, stride):
        bp = {"stride": stride}
        bp["w1"] = conv_w(cout, cin, 3)
        bp["s1"], bp["b1"] = bn(cout)
        bp["w2"] = conv_w(cout, cout, 3)
        bp["s2"], bp["b2"] = bn(cout)
        if stride != 1 or cin != cout:
            bp["ws"] = conv_w(cout, cin, 1)
            bp["ss"], bp["bs"] = bn(cout)
        return bp

    p = {}
    p["conv2_w"] = conv_w(128, hidden_size, 3)               # conv2 (no BN, no ReLU)
    p["layer3_2"] = [make_block(128, 128, 1)]                 # _make_layer(128, 1, stride=1)
    p["layer4"] = [make_block(128, 256, 2),                   # _make_layer(256, 2, stride=2)
                   make_block(256, 256, 1)]

    lw = jax.random.normal(next(ki), (num_classes, 256), jnp.float32) / jnp.sqrt(256.0)
    lb = 0.01 * jax.random.normal(next(ki), (num_classes,), jnp.float32)
    kpad = ((num_classes + 127) // 128) * 128                 # lane-pad 100 -> 128
    lw_pad = jnp.zeros((256, kpad), jnp.float32).at[:, :num_classes].set(lw.T)
    lb_pad = jnp.zeros((kpad,), jnp.float32).at[:num_classes].set(lb)
    p["lin_w"] = lw_pad.astype(jnp.bfloat16)
    p["lin_b"] = lb_pad
    return p


def decoder_forward(params, x_nchw, num_classes=100):
    x = jnp.transpose(x_nchw, (0, 2, 3, 1))  # NCHW (PyTorch) -> NHWC (kernel layout)
    ones = jnp.ones((128,), jnp.float32)
    zeros = jnp.zeros((128,), jnp.float32)
    out = conv_bn(x, params["conv2_w"], ones, zeros, ksize=3, stride=1, relu=False)
    for bp in params["layer3_2"] + params["layer4"]:
        out = basic_block(out, bp)
    logits = pool_linear(out, params["lin_w"], params["lin_b"])
    return logits[:, :num_classes]                            # drop lane padding


if __name__ == "__main__":
    key = jax.random.PRNGKey(0)
    pkey, xkey = jax.random.split(key)

    hidden_size = 64
    num_classes = 100
    params = init_decoder_params(pkey, hidden_size, num_classes)

    # Input like the PyTorch module: NCHW, spatial 8x8 so layer4 -> 4x4 -> avg_pool(4).
    x = jax.random.normal(xkey, (2, hidden_size, 8, 8), jnp.float32)

    fwd = jax.jit(lambda inp: decoder_forward(params, inp, num_classes=num_classes))
    out = jax.block_until_ready(fwd(x))
    assert out.shape == (2, num_classes), out.shape
    assert bool(jnp.all(jnp.isfinite(out)))
    print("KERNEL_OK")
</pallas_src>

<mosaic_0001>
module attributes {stable_mosaic.version = 11 : i64} {
  func.func @_conv_bn_kernel(%arg0: i32, %arg1: memref<128x576xbf16, #tpu.memory_space<vmem>>, %arg2: memref<576x128xbf16, #tpu.memory_space<vmem>>, %arg3: memref<1x128xf32, #tpu.memory_space<vmem>>, %arg4: memref<1x128xf32, #tpu.memory_space<vmem>>, %arg5: memref<128x128xf32, #tpu.memory_space<vmem>>) attributes {dimension_semantics = [#tpu.dimension_semantics<arbitrary>], iteration_bounds = array<i64: 1>, scalar_prefetch = 0 : i64, scratch_operands = 0 : i64, tpu.core_type = #tpu.core_type<tc>, window_params = [{pipeline_mode = #tpu.pipeline_mode<synchronous>, transform_indices = @transform_0, window_bounds = array<i64: 128, 576>}, {pipeline_mode = #tpu.pipeline_mode<synchronous>, transform_indices = @transform_1, window_bounds = array<i64: 576, 128>}, {pipeline_mode = #tpu.pipeline_mode<synchronous>, transform_indices = @transform_2, window_bounds = array<i64: 1, 128>}, {pipeline_mode = #tpu.pipeline_mode<synchronous>, transform_indices = @transform_3, window_bounds = array<i64: 1, 128>}, {pipeline_mode = #tpu.pipeline_mode<synchronous>, transform_indices = @transform_4, window_bounds = array<i64: 128, 128>}]} {
    %c0 = arith.constant 0 : index
    %c0_0 = arith.constant 0 : index
    %0 = vector.load %arg1[%c0, %c0_0] : memref<128x576xbf16, #tpu.memory_space<vmem>>, vector<128x576xbf16>
    %c0_1 = arith.constant 0 : index
    %c0_2 = arith.constant 0 : index
    %1 = vector.load %arg2[%c0_1, %c0_2] : memref<576x128xbf16, #tpu.memory_space<vmem>>, vector<576x128xbf16>
    %cst = arith.constant dense<0.000000e+00> : vector<128x128xf32>
    %2 = tpu.matmul %0, %1, %cst {dimension_numbers = #tpu.dot_dimension_numbers<[1], [0], [0], [1], [0, 0, 1, 1], [], []>} : vector<128x576xbf16>, vector<576x128xbf16>, vector<128x128xf32> -> vector<128x128xf32>
    %c0_3 = arith.constant 0 : index
    %c0_4 = arith.constant 0 : index
    %3 = vector.load %arg3[%c0_3, %c0_4] : memref<1x128xf32, #tpu.memory_space<vmem>>, vector<1x128xf32>
    %4 = vector.broadcast %3 : vector<1x128xf32> to vector<128x128xf32>
    %5 = arith.mulf %2, %4 : vector<128x128xf32>
    %c0_5 = arith.constant 0 : index
    %c0_6 = arith.constant 0 : index
    %6 = vector.load %arg4[%c0_5, %c0_6] : memref<1x128xf32, #tpu.memory_space<vmem>>, vector<1x128xf32>
    %7 = vector.broadcast %6 : vector<1x128xf32> to vector<128x128xf32>
    %8 = arith.addf %5, %7 : vector<128x128xf32>
    %c0_7 = arith.constant 0 : index
    %c0_8 = arith.constant 0 : index
    %9 = vector.load %arg5[%c0_7, %c0_8] : memref<128x128xf32, #tpu.memory_space<vmem>>, vector<128x128xf32>
    tpu.vector_store %arg5[%c0_7, %c0_8], %8 {strides = array<i32>} : memref<128x128xf32, #tpu.memory_space<vmem>>, vector<128x128xf32>,
    return
  }
  func.func @transform_0(%arg0: i32) -> (i32, i32) {
    %c0_i32 = arith.constant 0 : i32
    %c0_i32_0 = arith.constant 0 : i32
    %c0_i32_1 = arith.constant 0 : i32
    return %c0_i32, %c0_i32_0 : i32, i32
  }
  func.func @transform_1(%arg0: i32) -> (i32, i32) {
    %c0_i32 = arith.constant 0 : i32
    %c0_i32_0 = arith.constant 0 : i32
    %c0_i32_1 = arith.constant 0 : i32
    return %c0_i32, %c0_i32_0 : i32, i32
  }
  func.func @transform_2(%arg0: i32) -> (i32, i32) {
    %c0_i32 = arith.constant 0 : i32
    %c0_i32_0 = arith.constant 0 : i32
    %c0_i32_1 = arith.constant 0 : i32
    return %c0_i32, %c0_i32_0 : i32, i32
  }
  func.func @transform_3(%arg0: i32) -> (i32, i32) {
    %c0_i32 = arith.constant 0 : i32
    %c0_i32_0 = arith.constant 0 : i32
    %c0_i32_1 = arith.constant 0 : i32
    return %c0_i32, %c0_i32_0 : i32, i32
  }
  func.func @transform_4(%arg0: i32) -> (i32, i32) {
    %c0_i32 = arith.constant 0 : i32
    %c0_i32_0 = arith.constant 0 : i32
    %c0_i32_1 = arith.constant 0 : i32
    return %c0_i32, %c0_i32_0 : i32, i32
  }
}

module attributes {stable_mosaic.version = 11 : i64} {
  func.func @_conv_bn_res_kernel(%arg0: i32, %arg1: memref<128x1152xbf16, #tpu.memory_space<vmem>>, %arg2: memref<1152x128xbf16, #tpu.memory_space<vmem>>, %arg3: memref<1x128xf32, #tpu.memory_space<vmem>>, %arg4: memref<1x128xf32, #tpu.memory_space<vmem>>, %arg5: memref<128x128xf32, #tpu.memory_space<vmem>>, %arg6: memref<128x128xf32, #tpu.memory_space<vmem>>) attributes {dimension_semantics = [#tpu.dimension_semantics<arbitrary>], iteration_bounds = array<i64: 1>, scalar_prefetch = 0 : i64, scratch_operands = 0 : i64, tpu.core_type = #tpu.core_type<tc>, window_params = [{pipeline_mode = #tpu.pipeline_mode<synchronous>, transform_indices = @transform_0, window_bounds = array<i64: 128, 1152>}, {pipeline_mode = #tpu.pipeline_mode<synchronous>, transform_indices = @transform_1, window_bounds = array<i64: 1152, 128>}, {pipeline_mode = #tpu.pipeline_mode<synchronous>, transform_indices = @transform_2, window_bounds = array<i64: 1, 128>}, {pipeline_mode = #tpu.pipeline_mode<synchronous>, transform_indices = @transform_3, window_bounds = array<i64: 1, 128>}, {pipeline_mode = #tpu.pipeline_mode<synchronous>, transform_indices = @transform_4, window_bounds = array<i64: 128, 128>}, {pipeline_mode = #tpu.pipeline_mode<synchronous>, transform_indices = @transform_5, window_bounds = array<i64: 128, 128>}]} {
    %c0 = arith.constant 0 : index
    %c0_0 = arith.constant 0 : index
    %0 = vector.load %arg1[%c0, %c0_0] : memref<128x1152xbf16, #tpu.memory_space<vmem>>, vector<128x1152xbf16>
    %c0_1 = arith.constant 0 : index
    %c0_2 = arith.constant 0 : index
    %1 = vector.load %arg2[%c0_1, %c0_2] : memref<1152x128xbf16, #tpu.memory_space<vmem>>, vector<1152x128xbf16>
    %cst = arith.constant dense<0.000000e+00> : vector<128x128xf32>
    %2 = tpu.matmul %0, %1, %cst {dimension_numbers = #tpu.dot_dimension_numbers<[1], [0], [0], [1], [0, 0, 1, 1], [], []>} : vector<128x1152xbf16>, vector<1152x128xbf16>, vector<128x128xf32> -> vector<128x128xf32>
    %c0_3 = arith.constant 0 : index
    %c0_4 = arith.constant 0 : index
    %3 = vector.load %arg3[%c0_3, %c0_4] : memref<1x128xf32, #tpu.memory_space<vmem>>, vector<1x128xf32>
    %4 = vector.broadcast %3 : vector<1x128xf32> to vector<128x128xf32>
    %5 = arith.mulf %2, %4 : vector<128x128xf32>
    %c0_5 = arith.constant 0 : index
    %c0_6 = arith.constant 0 : index
    %6 = vector.load %arg4[%c0_5, %c0_6] : memref<1x128xf32, #tpu.memory_space<vmem>>, vector<1x128xf32>
    %7 = vector.broadcast %6 : vector<1x128xf32> to vector<128x128xf32>
    %8 = arith.addf %5, %7 : vector<128x128xf32>
    %c0_7 = arith.constant 0 : index
    %c0_8 = arith.constant 0 : index
    %9 = vector.load %arg5[%c0_7, %c0_8] : memref<128x128xf32, #tpu.memory_space<vmem>>, vector<128x128xf32>
    %10 = arith.addf %8, %9 : vector<128x128xf32>
    %cst_9 = arith.constant 0.000000e+00 : f32
    %11 = vector.broadcast %cst_9 : f32 to vector<128x128xf32>
    %12 = arith.maximumf %10, %11 : vector<128x128xf32>
    %c0_10 = arith.constant 0 : index
    %c0_11 = arith.constant 0 : index
    %13 = vector.load %arg6[%c0_10, %c0_11] : memref<128x128xf32, #tpu.memory_space<vmem>>, vector<128x128xf32>
    tpu.vector_store %arg6[%c0_10, %c0_11], %12 {strides = array<i32>} : memref<128x128xf32, #tpu.memory_space<vmem>>, vector<128x128xf32>,
    return
  }
  func.func @transform_0(%arg0: i32) -> (i32, i32) {
    %c0_i32 = arith.constant 0 : i32
    %c0_i32_0 = arith.constant 0 : i32
    %c0_i32_1 = arith.constant 0 : i32
    return %c0_i32, %c0_i32_0 : i32, i32
  }
  func.func @transform_1(%arg0: i32) -> (i32, i32) {
    %c0_i32 = arith.constant 0 : i32
    %c0_i32_0 = arith.constant 0 : i32
    %c0_i32_1 = arith.constant 0 : i32
    return %c0_i32, %c0_i32_0 : i32, i32
  }
  func.func @transform_2(%arg0: i32) -> (i32, i32) {
    %c0_i32 = arith.constant 0 : i32
    %c0_i32_0 = arith.constant 0 : i32
    %c0_i32_1 = arith.constant 0 : i32
    return %c0_i32, %c0_i32_0 : i32, i32
  }
  func.func @transform_3(%arg0: i32) -> (i32, i32) {
    %c0_i32 = arith.constant 0 : i32
    %c0_i32_0 = arith.constant 0 : i32
    %c0_i32_1 = arith.constant 0 : i32
    return %c0_i32, %c0_i32_0 : i32, i32
  }
  func.func @transform_4(%arg0: i32) -> (i32, i32) {
    %c0_i32 = arith.constant 0 : i32
    %c0_i32_0 = arith.constant 0 : i32
    %c0_i32_1 = arith.constant 0 : i32
    return %c0_i32, %c0_i32_0 : i32, i32
  }
  func.func @transform_5(%arg0: i32) -> (i32, i32) {
    %c0_i32 = arith.constant 0 : i32
    %c0_i32_0 = arith.constant 0 : i32
    %c0_i32_1 = arith.constant 0 : i32
    return %c0_i32, %c0_i32_0 : i32, i32
  }
}

module attributes {stable_mosaic.version = 11 : i64} {
  func.func @_conv_bn_kernel(%arg0: i32, %arg1: memref<128x1152xbf16, #tpu.memory_space<vmem>>, %arg2: memref<1152x128xbf16, #tpu.memory_space<vmem>>, %arg3: memref<1x128xf32, #tpu.memory_space<vmem>>, %arg4: memref<1x128xf32, #tpu.memory_space<vmem>>, %arg5: memref<128x128xf32, #tpu.memory_space<vmem>>) attributes {dimension_semantics = [#tpu.dimension_semantics<arbitrary>], iteration_bounds = array<i64: 1>, scalar_prefetch = 0 : i64, scratch_operands = 0 : i64, tpu.core_type = #tpu.core_type<tc>, window_params = [{pipeline_mode = #tpu.pipeline_mode<synchronous>, transform_indices = @transform_0, window_bounds = array<i64: 128, 1152>}, {pipeline_mode = #tpu.pipeline_mode<synchronous>, transform_indices = @transform_1, window_bounds = array<i64: 1152, 128>}, {pipeline_mode = #tpu.pipeline_mode<synchronous>, transform_indices = @transform_2, window_bounds = array<i64: 1, 128>}, {pipeline_mode = #tpu.pipeline_mode<synchronous>, transform_indices = @transform_3, window_bounds = array<i64: 1, 128>}, {pipeline_mode = #tpu.pipeline_mode<synchronous>, transform_indices = @transform_4, window_bounds = array<i64: 128, 128>}]} {
    %c0 = arith.constant 0 : index
    %c0_0 = arith.constant 0 : index
    %0 = vector.load %arg1[%c0, %c0_0] : memref<128x1152xbf16, #tpu.memory_space<vmem>>, vector<128x1152xbf16>
    %c0_1 = arith.constant 0 : index
    %c0_2 = arith.constant 0 : index
    %1 = vector.load %arg2[%c0_1, %c0_2] : memref<1152x128xbf16, #tpu.memory_space<vmem>>, vector<1152x128xbf16>
    %cst = arith.constant dense<0.000000e+00> : vector<128x128xf32>
    %2 = tpu.matmul %0, %1, %cst {dimension_numbers = #tpu.dot_dimension_numbers<[1], [0], [0], [1], [0, 0, 1, 1], [], []>} : vector<128x1152xbf16>, vector<1152x128xbf16>, vector<128x128xf32> -> vector<128x128xf32>
    %c0_3 = arith.constant 0 : index
    %c0_4 = arith.constant 0 : index
    %3 = vector.load %arg3[%c0_3, %c0_4] : memref<1x128xf32, #tpu.memory_space<vmem>>, vector<1x128xf32>
    %4 = vector.broadcast %3 : vector<1x128xf32> to vector<128x128xf32>
    %5 = arith.mulf %2, %4 : vector<128x128xf32>
    %c0_5 = arith.constant 0 : index
    %c0_6 = arith.constant 0 : index
    %6 = vector.load %arg4[%c0_5, %c0_6] : memref<1x128xf32, #tpu.memory_space<vmem>>, vector<1x128xf32>
    %7 = vector.broadcast %6 : vector<1x128xf32> to vector<128x128xf32>
    %8 = arith.addf %5, %7 : vector<128x128xf32>
    %cst_7 = arith.constant 0.000000e+00 : f32
    %9 = vector.broadcast %cst_7 : f32 to vector<128x128xf32>
    %10 = arith.maximumf %8, %9 : vector<128x128xf32>
    %c0_8 = arith.constant 0 : index
    %c0_9 = arith.constant 0 : index
    %11 = vector.load %arg5[%c0_8, %c0_9] : memref<128x128xf32, #tpu.memory_space<vmem>>, vector<128x128xf32>
    tpu.vector_store %arg5[%c0_8, %c0_9], %10 {strides = array<i32>} : memref<128x128xf32, #tpu.memory_space<vmem>>, vector<128x128xf32>,
    return
  }
  func.func @transform_0(%arg0: i32) -> (i32, i32) {
    %c0_i32 = arith.constant 0 : i32
    %c0_i32_0 = arith.constant 0 : i32
    %c0_i32_1 = arith.constant 0 : i32
    return %c0_i32, %c0_i32_0 : i32, i32
  }
  func.func @transform_1(%arg0: i32) -> (i32, i32) {
    %c0_i32 = arith.constant 0 : i32
    %c0_i32_0 = arith.constant 0 : i32
    %c0_i32_1 = arith.constant 0 : i32
    return %c0_i32, %c0_i32_0 : i32, i32
  }
  func.func @transform_2(%arg0: i32) -> (i32, i32) {
    %c0_i32 = arith.constant 0 : i32
    %c0_i32_0 = arith.constant 0 : i32
    %c0_i32_1 = arith.constant 0 : i32
    return %c0_i32, %c0_i32_0 : i32, i32
  }
  func.func @transform_3(%arg0: i32) -> (i32, i32) {
    %c0_i32 = arith.constant 0 : i32
    %c0_i32_0 = arith.constant 0 : i32
    %c0_i32_1 = arith.constant 0 : i32
    return %c0_i32, %c0_i32_0 : i32, i32
  }
  func.func @transform_4(%arg0: i32) -> (i32, i32) {
    %c0_i32 = arith.constant 0 : i32
    %c0_i32_0 = arith.constant 0 : i32
    %c0_i32_1 = arith.constant 0 : i32
    return %c0_i32, %c0_i32_0 : i32, i32
  }
}

module attributes {stable_mosaic.version = 11 : i64} {
  func.func @_conv_bn_kernel(%arg0: i32, %arg1: memref<32x1152xbf16, #tpu.memory_space<vmem>>, %arg2: memref<1152x256xbf16, #tpu.memory_space<vmem>>, %arg3: memref<1x256xf32, #tpu.memory_space<vmem>>, %arg4: memref<1x256xf32, #tpu.memory_space<vmem>>, %arg5: memref<32x256xf32, #tpu.memory_space<vmem>>) attributes {dimension_semantics = [#tpu.dimension_semantics<arbitrary>], iteration_bounds = array<i64: 1>, scalar_prefetch = 0 : i64, scratch_operands = 0 : i64, tpu.core_type = #tpu.core_type<tc>, window_params = [{pipeline_mode = #tpu.pipeline_mode<synchronous>, transform_indices = @transform_0, window_bounds = array<i64: 32, 1152>}, {pipeline_mode = #tpu.pipeline_mode<synchronous>, transform_indices = @transform_1, window_bounds = array<i64: 1152, 256>}, {pipeline_mode = #tpu.pipeline_mode<synchronous>, transform_indices = @transform_2, window_bounds = array<i64: 1, 256>}, {pipeline_mode = #tpu.pipeline_mode<synchronous>, transform_indices = @transform_3, window_bounds = array<i64: 1, 256>}, {pipeline_mode = #tpu.pipeline_mode<synchronous>, transform_indices = @transform_4, window_bounds = array<i64: 32, 256>}]} {
    %c0 = arith.constant 0 : index
    %c0_0 = arith.constant 0 : index
    %0 = vector.load %arg1[%c0, %c0_0] : memref<32x1152xbf16, #tpu.memory_space<vmem>>, vector<32x1152xbf16>
    %c0_1 = arith.constant 0 : index
    %c0_2 = arith.constant 0 : index
    %1 = vector.load %arg2[%c0_1, %c0_2] : memref<1152x256xbf16, #tpu.memory_space<vmem>>, vector<1152x256xbf16>
    %cst = arith.constant dense<0.000000e+00> : vector<32x256xf32>
    %2 = tpu.matmul %0, %1, %cst {dimension_numbers = #tpu.dot_dimension_numbers<[1], [0], [0], [1], [0, 0, 1, 1], [], []>} : vector<32x1152xbf16>, vector<1152x256xbf16>, vector<32x256xf32> -> vector<32x256xf32>
    %c0_3 = arith.constant 0 : index
    %c0_4 = arith.constant 0 : index
    %3 = vector.load %arg3[%c0_3, %c0_4] : memref<1x256xf32, #tpu.memory_space<vmem>>, vector<1x256xf32>
    %4 = vector.broadcast %3 : vector<1x256xf32> to vector<32x256xf32>
    %5 = arith.mulf %2, %4 : vector<32x256xf32>
    %c0_5 = arith.constant 0 : index
    %c0_6 = arith.constant 0 : index
    %6 = vector.load %arg4[%c0_5, %c0_6] : memref<1x256xf32, #tpu.memory_space<vmem>>, vector<1x256xf32>
    %7 = vector.broadcast %6 : vector<1x256xf32> to vector<32x256xf32>
    %8 = arith.addf %5, %7 : vector<32x256xf32>
    %cst_7 = arith.constant 0.000000e+00 : f32
    %9 = vector.broadcast %cst_7 : f32 to vector<32x256xf32>
    %10 = arith.maximumf %8, %9 : vector<32x256xf32>
    %c0_8 = arith.constant 0 : index
    %c0_9 = arith.constant 0 : index
    %11 = vector.load %arg5[%c0_8, %c0_9] : memref<32x256xf32, #tpu.memory_space<vmem>>, vector<32x256xf32>
    tpu.vector_store %arg5[%c0_8, %c0_9], %10 {strides = array<i32>} : memref<32x256xf32, #tpu.memory_space<vmem>>, vector<32x256xf32>,
    return
  }
  func.func @transform_0(%arg0: i32) -> (i32, i32) {
    %c0_i32 = arith.constant 0 : i32
    %c0_i32_0 = arith.constant 0 : i32
    %c0_i32_1 = arith.constant 0 : i32
    return %c0_i32, %c0_i32_0 : i32, i32
  }
  func.func @transform_1(%arg0: i32) -> (i32, i32) {
    %c0_i32 = arith.constant 0 : i32
    %c0_i32_0 = arith.constant 0 : i32
    %c0_i32_1 = arith.constant 0 : i32
    return %c0_i32, %c0_i32_0 : i32, i32
  }
  func.func @transform_2(%arg0: i32) -> (i32, i32) {
    %c0_i32 = arith.constant 0 : i32
    %c0_i32_0 = arith.constant 0 : i32
    %c0_i32_1 = arith.constant 0 : i32
    return %c0_i32, %c0_i32_0 : i32, i32
  }
  func.func @transform_3(%arg0: i32) -> (i32, i32) {
    %c0_i32 = arith.constant 0 : i32
    %c0_i32_0 = arith.constant 0 : i32
    %c0_i32_1 = arith.constant 0 : i32
    return %c0_i32, %c0_i32_0 : i32, i32
  }
  func.func @transform_4(%arg0: i32) -> (i32, i32) {
    %c0_i32 = arith.constant 0 : i32
    %c0_i32_0 = arith.constant 0 : i32
    %c0_i32_1 = arith.constant 0 : i32
    return %c0_i32, %c0_i32_0 : i32, i32
  }
}

module attributes {stable_mosaic.version = 11 : i64} {
  func.func @_conv_bn_kernel(%arg0: i32, %arg1: memref<32x2304xbf16, #tpu.memory_space<vmem>>, %arg2: memref<2304x256xbf16, #tpu.memory_space<vmem>>, %arg3: memref<1x256xf32, #tpu.memory_space<vmem>>, %arg4: memref<1x256xf32, #tpu.memory_space<vmem>>, %arg5: memref<32x256xf32, #tpu.memory_space<vmem>>) attributes {dimension_semantics = [#tpu.dimension_semantics<arbitrary>], iteration_bounds = array<i64: 1>, scalar_prefetch = 0 : i64, scratch_operands = 0 : i64, tpu.core_type = #tpu.core_type<tc>, window_params = [{pipeline_mode = #tpu.pipeline_mode<synchronous>, transform_indices = @transform_0, window_bounds = array<i64: 32, 2304>}, {pipeline_mode = #tpu.pipeline_mode<synchronous>, transform_indices = @transform_1, window_bounds = array<i64: 2304, 256>}, {pipeline_mode = #tpu.pipeline_mode<synchronous>, transform_indices = @transform_2, window_bounds = array<i64: 1, 256>}, {pipeline_mode = #tpu.pipeline_mode<synchronous>, transform_indices = @transform_3, window_bounds = array<i64: 1, 256>}, {pipeline_mode = #tpu.pipeline_mode<synchronous>, transform_indices = @transform_4, window_bounds = array<i64: 32, 256>}]} {
    %c0 = arith.constant 0 : index
    %c0_0 = arith.constant 0 : index
    %0 = vector.load %arg1[%c0, %c0_0] : memref<32x2304xbf16, #tpu.memory_space<vmem>>, vector<32x2304xbf16>
    %c0_1 = arith.constant 0 : index
    %c0_2 = arith.constant 0 : index
    %1 = vector.load %arg2[%c0_1, %c0_2] : memref<2304x256xbf16, #tpu.memory_space<vmem>>, vector<2304x256xbf16>
    %cst = arith.constant dense<0.000000e+00> : vector<32x256xf32>
    %2 = tpu.matmul %0, %1, %cst {dimension_numbers = #tpu.dot_dimension_numbers<[1], [0], [0], [1], [0, 0, 1, 1], [], []>} : vector<32x2304xbf16>, vector<2304x256xbf16>, vector<32x256xf32> -> vector<32x256xf32>
    %c0_3 = arith.constant 0 : index
    %c0_4 = arith.constant 0 : index
    %3 = vector.load %arg3[%c0_3, %c0_4] : memref<1x256xf32, #tpu.memory_space<vmem>>, vector<1x256xf32>
    %4 = vector.broadcast %3 : vector<1x256xf32> to vector<32x256xf32>
    %5 = arith.mulf %2, %4 : vector<32x256xf32>
    %c0_5 = arith.constant 0 : index
    %c0_6 = arith.constant 0 : index
    %6 = vector.load %arg4[%c0_5, %c0_6] : memref<1x256xf32, #tpu.memory_space<vmem>>, vector<1x256xf32>
    %7 = vector.broadcast %6 : vector<1x256xf32> to vector<32x256xf32>
    %8 = arith.addf %5, %7 : vector<32x256xf32>
    %cst_7 = arith.constant 0.000000e+00 : f32
    %9 = vector.broadcast %cst_7 : f32 to vector<32x256xf32>
    %10 = arith.maximumf %8, %9 : vector<32x256xf32>
    %c0_8 = arith.constant 0 : index
    %c0_9 = arith.constant 0 : index
    %11 = vector.load %arg5[%c0_8, %c0_9] : memref<32x256xf32, #tpu.memory_space<vmem>>, vector<32x256xf32>
    tpu.vector_store %arg5[%c0_8, %c0_9], %10 {strides = array<i32>} : memref<32x256xf32, #tpu.memory_space<vmem>>, vector<32x256xf32>,
    return
  }
  func.func @transform_0(%arg0: i32) -> (i32, i32) {
    %c0_i32 = arith.constant 0 : i32
    %c0_i32_0 = arith.constant 0 : i32
    %c0_i32_1 = arith.constant 0 : i32
    return %c0_i32, %c0_i32_0 : i32, i32
  }
  func.func @transform_1(%arg0: i32) -> (i32, i32) {
    %c0_i32 = arith.constant 0 : i32
    %c0_i32_0 = arith.constant 0 : i32
    %c0_i32_1 = arith.constant 0 : i32
    return %c0_i32, %c0_i32_0 : i32, i32
  }
  func.func @transform_2(%arg0: i32) -> (i32, i32) {
    %c0_i32 = arith.constant 0 : i32
    %c0_i32_0 = arith.constant 0 : i32
    %c0_i32_1 = arith.constant 0 : i32
    return %c0_i32, %c0_i32_0 : i32, i32
  }
  func.func @transform_3(%arg0: i32) -> (i32, i32) {
    %c0_i32 = arith.constant 0 : i32
    %c0_i32_0 = arith.constant 0 : i32
    %c0_i32_1 = arith.constant 0 : i32
    return %c0_i32, %c0_i32_0 : i32, i32
  }
  func.func @transform_4(%arg0: i32) -> (i32, i32) {
    %c0_i32 = arith.constant 0 : i32
    %c0_i32_0 = arith.constant 0 : i32
    %c0_i32_1 = arith.constant 0 : i32
    return %c0_i32, %c0_i32_0 : i32, i32
  }
}

module attributes {stable_mosaic.version = 11 : i64} {
  func.func @_conv_bn_proj_kernel(%arg0: i32, %arg1: memref<32x2304xbf16, #tpu.memory_space<vmem>>, %arg2: memref<2304x256xbf16, #tpu.memory_space<vmem>>, %arg3: memref<1x256xf32, #tpu.memory_space<vmem>>, %arg4: memref<1x256xf32, #tpu.memory_space<vmem>>, %arg5: memref<32x128xbf16, #tpu.memory_space<vmem>>, %arg6: memref<128x256xbf16, #tpu.memory_space<vmem>>, %arg7: memref<1x256xf32, #tpu.memory_space<vmem>>, %arg8: memref<1x256xf32, #tpu.memory_space<vmem>>, %arg9: memref<32x256xf32, #tpu.memory_space<vmem>>) attributes {dimension_semantics = [#tpu.dimension_semantics<arbitrary>], iteration_bounds = array<i64: 1>, scalar_prefetch = 0 : i64, scratch_operands = 0 : i64, tpu.core_type = #tpu.core_type<tc>, window_params = [{pipeline_mode = #tpu.pipeline_mode<synchronous>, transform_indices = @transform_0, window_bounds = array<i64: 32, 2304>}, {pipeline_mode = #tpu.pipeline_mode<synchronous>, transform_indices = @transform_1, window_bounds = array<i64: 2304, 256>}, {pipeline_mode = #tpu.pipeline_mode<synchronous>, transform_indices = @transform_2, window_bounds = array<i64: 1, 256>}, {pipeline_mode = #tpu.pipeline_mode<synchronous>, transform_indices = @transform_3, window_bounds = array<i64: 1, 256>}, {pipeline_mode = #tpu.pipeline_mode<synchronous>, transform_indices = @transform_4, window_bounds = array<i64: 32, 128>}, {pipeline_mode = #tpu.pipeline_mode<synchronous>, transform_indices = @transform_5, window_bounds = array<i64: 128, 256>}, {pipeline_mode = #tpu.pipeline_mode<synchronous>, transform_indices = @transform_6, window_bounds = array<i64: 1, 256>}, {pipeline_mode = #tpu.pipeline_mode<synchronous>, transform_indices = @transform_7, window_bounds = array<i64: 1, 256>}, {pipeline_mode = #tpu.pipeline_mode<synchronous>, transform_indices = @transform_8, window_bounds = array<i64: 32, 256>}]} {
    %c0 = arith.constant 0 : index
    %c0_0 = arith.constant 0 : index
    %0 = vector.load %arg1[%c0, %c0_0] : memref<32x2304xbf16, #tpu.memory_space<vmem>>, vector<32x2304xbf16>
    %c0_1 = arith.constant 0 : index
    %c0_2 = arith.constant 0 : index
    %1 = vector.load %arg2[%c0_1, %c0_2] : memref<2304x256xbf16, #tpu.memory_space<vmem>>, vector<2304x256xbf16>
    %cst = arith.constant dense<0.000000e+00> : vector<32x256xf32>
    %2 = tpu.matmul %0, %1, %cst {dimension_numbers = #tpu.dot_dimension_numbers<[1], [0], [0], [1], [0, 0, 1, 1], [], []>} : vector<32x2304xbf16>, vector<2304x256xbf16>, vector<32x256xf32> -> vector<32x256xf32>
    %c0_3 = arith.constant 0 : index
    %c0_4 = arith.constant 0 : index
    %3 = vector.load %arg3[%c0_3, %c0_4] : memref<1x256xf32, #tpu.memory_space<vmem>>, vector<1x256xf32>
    %4 = vector.broadcast %3 : vector<1x256xf32> to vector<32x256xf32>
    %5 = arith.mulf %2, %4 : vector<32x256xf32>
    %c0_5 = arith.constant 0 : index
    %c0_6 = arith.constant 0 : index
    %6 = vector.load %arg4[%c0_5, %c0_6] : memref<1x256xf32, #tpu.memory_space<vmem>>, vector<1x256xf32>
    %7 = vector.broadcast %6 : vector<1x256xf32> to vector<32x256xf32>
    %8 = arith.addf %5, %7 : vector<32x256xf32>
    %c0_7 = arith.constant 0 : index
    %c0_8 = arith.constant 0 : index
    %9 = vector.load %arg5[%c0_7, %c0_8] : memref<32x128xbf16, #tpu.memory_space<vmem>>, vector<32x128xbf16>
    %c0_9 = arith.constant 0 : index
    %c0_10 = arith.constant 0 : index
    %10 = vector.load %arg6[%c0_9, %c0_10] : memref<128x256xbf16, #tpu.memory_space<vmem>>, vector<128x256xbf16>
    %cst_11 = arith.constant dense<0.000000e+00> : vector<32x256xf32>
    %11 = tpu.matmul %9, %10, %cst_11 {dimension_numbers = #tpu.dot_dimension_numbers<[1], [0], [0], [1], [0, 0, 1, 1], [], []>} : vector<32x128xbf16>, vector<128x256xbf16>, vector<32x256xf32> -> vector<32x256xf32>
    %c0_12 = arith.constant 0 : index
    %c0_13 = arith.constant 0 : index
    %12 = vector.load %arg7[%c0_12, %c0_13] : memref<1x256xf32, #tpu.memory_space<vmem>>, vector<1x256xf32>
    %13 = vector.broadcast %12 : vector<1x256xf32> to vector<32x256xf32>
    %14 = arith.mulf %11, %13 : vector<32x256xf32>
    %c0_14 = arith.constant 0 : index
    %c0_15 = arith.constant 0 : index
    %15 = vector.load %arg8[%c0_14, %c0_15] : memref<1x256xf32, #tpu.memory_space<vmem>>, vector<1x256xf32>
    %16 = vector.broadcast %15 : vector<1x256xf32> to vector<32x256xf32>
    %17 = arith.addf %14, %16 : vector<32x256xf32>
    %18 = arith.addf %8, %17 : vector<32x256xf32>
    %cst_16 = arith.constant 0.000000e+00 : f32
    %19 = vector.broadcast %cst_16 : f32 to vector<32x256xf32>
    %20 = arith.maximumf %18, %19 : vector<32x256xf32>
    %c0_17 = arith.constant 0 : index
    %c0_18 = arith.constant 0 : index
    %21 = vector.load %arg9[%c0_17, %c0_18] : memref<32x256xf32, #tpu.memory_space<vmem>>, vector<32x256xf32>
    tpu.vector_store %arg9[%c0_17, %c0_18], %20 {strides = array<i32>} : memref<32x256xf32, #tpu.memory_space<vmem>>, vector<32x256xf32>,
    return
  }
  func.func @transform_0(%arg0: i32) -> (i32, i32) {
    %c0_i32 = arith.constant 0 : i32
    %c0_i32_0 = arith.constant 0 : i32
    %c0_i32_1 = arith.constant 0 : i32
    return %c0_i32, %c0_i32_0 : i32, i32
  }
  func.func @transform_1(%arg0: i32) -> (i32, i32) {
    %c0_i32 = arith.constant 0 : i32
    %c0_i32_0 = arith.constant 0 : i32
    %c0_i32_1 = arith.constant 0 : i32
    return %c0_i32, %c0_i32_0 : i32, i32
  }
  func.func @transform_2(%arg0: i32) -> (i32, i32) {
    %c0_i32 = arith.constant 0 : i32
    %c0_i32_0 = arith.constant 0 : i32
    %c0_i32_1 = arith.constant 0 : i32
    return %c0_i32, %c0_i32_0 : i32, i32
  }
  func.func @transform_3(%arg0: i32) -> (i32, i32) {
    %c0_i32 = arith.constant 0 : i32
    %c0_i32_0 = arith.constant 0 : i32
    %c0_i32_1 = arith.constant 0 : i32
    return %c0_i32, %c0_i32_0 : i32, i32
  }
  func.func @transform_4(%arg0: i32) -> (i32, i32) {
    %c0_i32 = arith.constant 0 : i32
    %c0_i32_0 = arith.constant 0 : i32
    %c0_i32_1 = arith.constant 0 : i32
    return %c0_i32, %c0_i32_0 : i32, i32
  }
  func.func @transform_5(%arg0: i32) -> (i32, i32) {
    %c0_i32 = arith.constant 0 : i32
    %c0_i32_0 = arith.constant 0 : i32
    %c0_i32_1 = arith.constant 0 : i32
    return %c0_i32, %c0_i32_0 : i32, i32
  }
  func.func @transform_6(%arg0: i32) -> (i32, i32) {
    %c0_i32 = arith.constant 0 : i32
    %c0_i32_0 = arith.constant 0 : i32
    %c0_i32_1 = arith.constant 0 : i32
    return %c0_i32, %c0_i32_0 : i32, i32
  }
  func.func @transform_7(%arg0: i32) -> (i32, i32) {
    %c0_i32 = arith.constant 0 : i32
    %c0_i32_0 = arith.constant 0 : i32
    %c0_i32_1 = arith.constant 0 : i32
    return %c0_i32, %c0_i32_0 : i32, i32
  }
  func.func @transform_8(%arg0: i32) -> (i32, i32) {
    %c0_i32 = arith.constant 0 : i32
    %c0_i32_0 = arith.constant 0 : i32
    %c0_i32_1 = arith.constant 0 : i32
    return %c0_i32, %c0_i32_0 : i32, i32
  }
}

module attributes {stable_mosaic.version = 11 : i64} {
  func.func @_conv_bn_res_kernel(%arg0: i32, %arg1: memref<32x2304xbf16, #tpu.memory_space<vmem>>, %arg2: memref<2304x256xbf16, #tpu.memory_space<vmem>>, %arg3: memref<1x256xf32, #tpu.memory_space<vmem>>, %arg4: memref<1x256xf32, #tpu.memory_space<vmem>>, %arg5: memref<32x256xf32, #tpu.memory_space<vmem>>, %arg6: memref<32x256xf32, #tpu.memory_space<vmem>>) attributes {dimension_semantics = [#tpu.dimension_semantics<arbitrary>], iteration_bounds = array<i64: 1>, scalar_prefetch = 0 : i64, scratch_operands = 0 : i64, tpu.core_type = #tpu.core_type<tc>, window_params = [{pipeline_mode = #tpu.pipeline_mode<synchronous>, transform_indices = @transform_0, window_bounds = array<i64: 32, 2304>}, {pipeline_mode = #tpu.pipeline_mode<synchronous>, transform_indices = @transform_1, window_bounds = array<i64: 2304, 256>}, {pipeline_mode = #tpu.pipeline_mode<synchronous>, transform_indices = @transform_2, window_bounds = array<i64: 1, 256>}, {pipeline_mode = #tpu.pipeline_mode<synchronous>, transform_indices = @transform_3, window_bounds = array<i64: 1, 256>}, {pipeline_mode = #tpu.pipeline_mode<synchronous>, transform_indices = @transform_4, window_bounds = array<i64: 32, 256>}, {pipeline_mode = #tpu.pipeline_mode<synchronous>, transform_indices = @transform_5, window_bounds = array<i64: 32, 256>}]} {
    %c0 = arith.constant 0 : index
    %c0_0 = arith.constant 0 : index
    %0 = vector.load %arg1[%c0, %c0_0] : memref<32x2304xbf16, #tpu.memory_space<vmem>>, vector<32x2304xbf16>
    %c0_1 = arith.constant 0 : index
    %c0_2 = arith.constant 0 : index
    %1 = vector.load %arg2[%c0_1, %c0_2] : memref<2304x256xbf16, #tpu.memory_space<vmem>>, vector<2304x256xbf16>
    %cst = arith.constant dense<0.000000e+00> : vector<32x256xf32>
    %2 = tpu.matmul %0, %1, %cst {dimension_numbers = #tpu.dot_dimension_numbers<[1], [0], [0], [1], [0, 0, 1, 1], [], []>} : vector<32x2304xbf16>, vector<2304x256xbf16>, vector<32x256xf32> -> vector<32x256xf32>
    %c0_3 = arith.constant 0 : index
    %c0_4 = arith.constant 0 : index
    %3 = vector.load %arg3[%c0_3, %c0_4] : memref<1x256xf32, #tpu.memory_space<vmem>>, vector<1x256xf32>
    %4 = vector.broadcast %3 : vector<1x256xf32> to vector<32x256xf32>
    %5 = arith.mulf %2, %4 : vector<32x256xf32>
    %c0_5 = arith.constant 0 : index
    %c0_6 = arith.constant 0 : index
    %6 = vector.load %arg4[%c0_5, %c0_6] : memref<1x256xf32, #tpu.memory_space<vmem>>, vector<1x256xf32>
    %7 = vector.broadcast %6 : vector<1x256xf32> to vector<32x256xf32>
    %8 = arith.addf %5, %7 : vector<32x256xf32>
    %c0_7 = arith.constant 0 : index
    %c0_8 = arith.constant 0 : index
    %9 = vector.load %arg5[%c0_7, %c0_8] : memref<32x256xf32, #tpu.memory_space<vmem>>, vector<32x256xf32>
    %10 = arith.addf %8, %9 : vector<32x256xf32>
    %cst_9 = arith.constant 0.000000e+00 : f32
    %11 = vector.broadcast %cst_9 : f32 to vector<32x256xf32>
    %12 = arith.maximumf %10, %11 : vector<32x256xf32>
    %c0_10 = arith.constant 0 : index
    %c0_11 = arith.constant 0 : index
    %13 = vector.load %arg6[%c0_10, %c0_11] : memref<32x256xf32, #tpu.memory_space<vmem>>, vector<32x256xf32>
    tpu.vector_store %arg6[%c0_10, %c0_11], %12 {strides = array<i32>} : memref<32x256xf32, #tpu.memory_space<vmem>>, vector<32x256xf32>,
    return
  }
  func.func @transform_0(%arg0: i32) -> (i32, i32) {
    %c0_i32 = arith.constant 0 : i32
    %c0_i32_0 = arith.constant 0 : i32
    %c0_i32_1 = arith.constant 0 : i32
    return %c0_i32, %c0_i32_0 : i32, i32
  }
  func.func @transform_1(%arg0: i32) -> (i32, i32) {
    %c0_i32 = arith.constant 0 : i32
    %c0_i32_0 = arith.constant 0 : i32
    %c0_i32_1 = arith.constant 0 : i32
    return %c0_i32, %c0_i32_0 : i32, i32
  }
  func.func @transform_2(%arg0: i32) -> (i32, i32) {
    %c0_i32 = arith.constant 0 : i32
    %c0_i32_0 = arith.constant 0 : i32
    %c0_i32_1 = arith.constant 0 : i32
    return %c0_i32, %c0_i32_0 : i32, i32
  }
  func.func @transform_3(%arg0: i32) -> (i32, i32) {
    %c0_i32 = arith.constant 0 : i32
    %c0_i32_0 = arith.constant 0 : i32
    %c0_i32_1 = arith.constant 0 : i32
    return %c0_i32, %c0_i32_0 : i32, i32
  }
  func.func @transform_4(%arg0: i32) -> (i32, i32) {
    %c0_i32 = arith.constant 0 : i32
    %c0_i32_0 = arith.constant 0 : i32
    %c0_i32_1 = arith.constant 0 : i32
    return %c0_i32, %c0_i32_0 : i32, i32
  }
  func.func @transform_5(%arg0: i32) -> (i32, i32) {
    %c0_i32 = arith.constant 0 : i32
    %c0_i32_0 = arith.constant 0 : i32
    %c0_i32_1 = arith.constant 0 : i32
    return %c0_i32, %c0_i32_0 : i32, i32
  }
}

module attributes {stable_mosaic.version = 11 : i64} {
  func.func @_pool_linear_kernel(%arg0: i32, %arg1: memref<2x16x256xf32, #tpu.memory_space<vmem>>, %arg2: memref<256x128xbf16, #tpu.memory_space<vmem>>, %arg3: memref<1x128xf32, #tpu.memory_space<vmem>>, %arg4: memref<2x128xf32, #tpu.memory_space<vmem>>) attributes {dimension_semantics = [#tpu.dimension_semantics<arbitrary>], iteration_bounds = array<i64: 1>, scalar_prefetch = 0 : i64, scratch_operands = 0 : i64, tpu.core_type = #tpu.core_type<tc>, window_params = [{pipeline_mode = #tpu.pipeline_mode<synchronous>, transform_indices = @transform_0, window_bounds = array<i64: 2, 16, 256>}, {pipeline_mode = #tpu.pipeline_mode<synchronous>, transform_indices = @transform_1, window_bounds = array<i64: 256, 128>}, {pipeline_mode = #tpu.pipeline_mode<synchronous>, transform_indices = @transform_2, window_bounds = array<i64: 1, 128>}, {pipeline_mode = #tpu.pipeline_mode<synchronous>, transform_indices = @transform_3, window_bounds = array<i64: 2, 128>}]} {
    %c0 = arith.constant 0 : index
    %c0_0 = arith.constant 0 : index
    %c0_1 = arith.constant 0 : index
    %0 = vector.load %arg1[%c0, %c0_0, %c0_1] : memref<2x16x256xf32, #tpu.memory_space<vmem>>, vector<2x16x256xf32>
    %cst = arith.constant dense<0.000000e+00> : vector<2x256xf32>
    %1 = vector.multi_reduction <add>, %0, %cst [1] : vector<2x16x256xf32> to vector<2x256xf32>
    %cst_2 = arith.constant 1.600000e+01 : f32
    %2 = vector.broadcast %cst_2 : f32 to vector<2x256xf32>
    %3 = arith.divf %1, %2 : vector<2x256xf32>
    %4 = arith.truncf %3 : vector<2x256xf32> to vector<2x256xbf16>
    %c0_3 = arith.constant 0 : index
    %c0_4 = arith.constant 0 : index
    %5 = vector.load %arg2[%c0_3, %c0_4] : memref<256x128xbf16, #tpu.memory_space<vmem>>, vector<256x128xbf16>
    %cst_5 = arith.constant dense<0.000000e+00> : vector<2x128xf32>
    %6 = tpu.matmul %4, %5, %cst_5 {dimension_numbers = #tpu.dot_dimension_numbers<[1], [0], [0], [1], [0, 0, 1, 1], [], []>} : vector<2x256xbf16>, vector<256x128xbf16>, vector<2x128xf32> -> vector<2x128xf32>
    %c0_6 = arith.constant 0 : index
    %c0_7 = arith.constant 0 : index
    %7 = vector.load %arg3[%c0_6, %c0_7] : memref<1x128xf32, #tpu.memory_space<vmem>>, vector<1x128xf32>
    %8 = vector.broadcast %7 : vector<1x128xf32> to vector<2x128xf32>
    %9 = arith.addf %6, %8 : vector<2x128xf32>
    %c0_8 = arith.constant 0 : index
    %c0_9 = arith.constant 0 : index
    %10 = vector.load %arg4[%c0_8, %c0_9] : memref<2x128xf32, #tpu.memory_space<vmem>>, vector<2x128xf32>
    tpu.vector_store %arg4[%c0_8, %c0_9], %9 {strides = array<i32>} : memref<2x128xf32, #tpu.memory_space<vmem>>, vector<2x128xf32>,
    return
  }
  func.func @transform_0(%arg0: i32) -> (i32, i32, i32) {
    %c0_i32 = arith.constant 0 : i32
    %c0_i32_0 = arith.constant 0 : i32
    %c0_i32_1 = arith.constant 0 : i32
    %c0_i32_2 = arith.constant 0 : i32
    return %c0_i32, %c0_i32_0, %c0_i32_1 : i32, i32, i32
  }
  func.func @transform_1(%arg0: i32) -> (i32, i32) {
    %c0_i32 = arith.constant 0 : i32
    %c0_i32_0 = arith.constant 0 : i32
    %c0_i32_1 = arith.constant 0 : i32
    return %c0_i32, %c0_i32_0 : i32, i32
  }
  func.func @transform_2(%arg0: i32) -> (i32, i32) {
    %c0_i32 = arith.constant 0 : i32
    %c0_i32_0 = arith.constant 0 : i32
    %c0_i32_1 = arith.constant 0 : i32
    return %c0_i32, %c0_i32_0 : i32, i32
  }
  func.func @transform_3(%arg0: i32) -> (i32, i32) {
    %c0_i32 = arith.constant 0 : i32
    %c0_i32_0 = arith.constant 0 : i32
    %c0_i32_1 = arith.constant 0 : i32
    return %c0_i32, %c0_i32_0 : i32, i32
  }
}

</mosaic_0001>

<bundles_post_ra>
// kernel: _lambda_.10
= control target key start
LH: loop header
LB: loop body
LE: loop exit
PB: predicated region body
PF: predicated region fallthrough
CT: control target
= control target key end

     0   :  { %s2976_s1 = inlined_call_operand.vmem [shape: bf16[1152,128], index: 1, kind: input, shape index: {}]   ;;  %s2977_s0 = inlined_call_operand.vmem [shape: bf16[128,1152], index: 0, kind: input, shape index: {}]   ;;  %s2978_s2 = inlined_call_operand.vmem [shape: f32[1,128], index: 2, kind: input, shape index: {}]   ;;  %s2979_s3 = inlined_call_operand.vmem [shape: f32[1,128], index: 3, kind: input, shape index: {}]   ;;  %s2980_s4 = inlined_call_operand.vmem [shape: f32[128,128], index: 4, kind: input, shape index: {}]   ;;  %s2981_s5 = inlined_call_operand.vmem [shape: f32[128,128], index: 5, kind: output, shape index: {}]  }
   0x1   :  { %v2110_v0 = vld [vmem:[%s2976_s1 + $0x40] sm:$0xff]   ;;  %v2114_v4 = vld [vmem:[%s2976_s1 + $0x48] sm:$0xff]   ;;  %v2118_v8 = vld [vmem:[%s2976_s1 + $0x50] sm:$0xff]  }
   0x2   :  { %v2111_v1 = vld [vmem:[%s2976_s1 + $0xc0] sm:$0xff]   ;;  %1790 = vmatprep.subr.bf16.mxu0 %v2110_v0  ;;  %v2115_v5 = vld [vmem:[%s2976_s1 + $0xc8] sm:$0xff]   ;;  %v2119_v9 = vld [vmem:[%s2976_s1 + $0xd0] sm:$0xff]  }
   0x3   :  { %v2112_v2 = vld [vmem:[%s2976_s1] sm:$0xff]   ;;  %1854 = vmatprep.subr.bf16.mxu1 %v2111_v1  ;;  %v2116_v6 = vld [vmem:[%s2976_s1 + $0x8] sm:$0xff]   ;;  %v2120_v10 = vld [vmem:[%s2976_s1 + $0x10] sm:$0xff]  }
   0x4   :  { %v2113_v3 = vld [vmem:[%s2976_s1 + $0x80] sm:$0xff]   ;;  %1791 = vmatpush3.bf16.msra.mxu0 %v2112_v2  ;;  %v2117_v7 = vld [vmem:[%s2976_s1 + $0x88] sm:$0xff]   ;;  %v2121_v11 = vld [vmem:[%s2976_s1 + $0x90] sm:$0xff]  }
   0x5   :  { %1855 = vmatpush3.bf16.msra.mxu1 %v2113_v3  ;;  %1792 = vmatprep.subr.bf16.mxu0 %v2114_v4  ;;  %v2122_v12 = vld [vmem:[%s2976_s1 + $0x58] sm:$0xff]   ;;  %v2126_v16 = vld [vmem:[%s2976_s1 + $0x60] sm:$0xff]   ;;  %v2130_v20 = vld [vmem:[%s2976_s1 + $0x68] sm:$0xff]  }
   0x6   :  { %1856 = vmatprep.subr.bf16.mxu1 %v2115_v5  ;;  %v2123_v13 = vld [vmem:[%s2976_s1 + $0xd8] sm:$0xff]   ;;  %v2127_v17 = vld [vmem:[%s2976_s1 + $0xe0] sm:$0xff]   ;;  %v2131_v21 = vld [vmem:[%s2976_s1 + $0xe8] sm:$0xff]  }
   0x7   :  { %v2124_v14 = vld [vmem:[%s2976_s1 + $0x18] sm:$0xff]   ;;  %v2128_v18 = vld [vmem:[%s2976_s1 + $0x20] sm:$0xff]   ;;  %v2132_v22 = vld [vmem:[%s2976_s1 + $0x28] sm:$0xff]  }
   0x8   :  { %1793 = vmatpush3.bf16.msra.mxu0 %v2116_v6  ;;  %v2125_v15 = vld [vmem:[%s2976_s1 + $0x98] sm:$0xff]   ;;  %v2129_v19 = vld [vmem:[%s2976_s1 + $0xa0] sm:$0xff]   ;;  %v2133_v23 = vld [vmem:[%s2976_s1 + $0xa8] sm:$0xff]  }
   0x9   :  { %1857 = vmatpush3.bf16.msra.mxu1 %v2117_v7  ;;  %1794 = vmatprep.subr.bf16.mxu0 %v2118_v8  ;;  %v2134_v24 = vld [vmem:[%s2976_s1 + $0x70] sm:$0xff]   ;;  %v2138_v28 = vld [vmem:[%s2976_s1 + $0x78] sm:$0xff]   ;;  %v2142_v32 = vld [vmem:[%s2977_s0] ss:$36 sps:$4 sm:$0xff]  }
   0xa   :  { %1858 = vmatprep.subr.bf16.mxu1 %v2119_v9  ;;  %v2135_v25 = vld [vmem:[%s2976_s1 + $0xf0] sm:$0xff]   ;;  %v2139_v29 = vld [vmem:[%s2976_s1 + $0xf8] sm:$0xff]   ;;  %v2144_v33 = vld [vmem:[%s2977_s0 + $0x4] ss:$36 sps:$4 sm:$0xff]  }
   0xb   :  { %v2136_v26 = vld [vmem:[%s2976_s1 + $0x30] sm:$0xff]   ;;  %v2140_v30 = vld [vmem:[%s2976_s1 + $0x38] sm:$0xff]   ;;  %v2145_v34 = vld [vmem:[%s2977_s0 + $0x8] ss:$36 sps:$4 sm:$0xff]   ;;  %1077 = vmatprep.mubr.bf16.mxu0 %v2144_v33 }
   0xc   :  { %1795 = vmatpush3.bf16.msra.mxu0 %v2120_v10  ;;  %v2137_v27 = vld [vmem:[%s2976_s1 + $0xb0] sm:$0xff]   ;;  %v2141_v31 = vld [vmem:[%s2976_s1 + $0xb8] sm:$0xff]   ;;  %v2148_v36 = vld [vmem:[%s2976_s1 + $0x140] sm:$0xff]  }
   0xd   :  { %1859 = vmatpush3.bf16.msra.mxu1 %v2121_v11  ;;  %1796 = vmatprep.subr.bf16.mxu0 %v2122_v12  ;;  %v2147_v35 = vld [vmem:[%s2977_s0 + $0xc] ss:$36 sps:$4 sm:$0xff]   ;;  %v2149_v37 = vld [vmem:[%s2976_s1 + $0x1c0] sm:$0xff]   ;;  %v2154_v41 = vld [vmem:[%s2977_s0 + $0x54] ss:$36 sps:$4 sm:$0xff]  }
   0xe   :  { %1860 = vmatprep.subr.bf16.mxu1 %v2123_v13  ;;  %1174 = vmatprep.mubr.bf16.mxu1 %v2147_v35  ;;  %v2150_v38 = vld [vmem:[%s2976_s1 + $0x100] sm:$0xff]   ;;  %v2152_v40 = vld [vmem:[%s2977_s0 + $0x4c] ss:$36 sps:$4 sm:$0xff]   ;;  %v2162_v48 = vld [vmem:[%s2977_s0 + $0x94] ss:$36 sps:$4 sm:$0xff]  }
   0xf   :  { %v2151_v39 = vld [vmem:[%s2976_s1 + $0x180] sm:$0xff]   ;;  %v2156_v42 = vld [vmem:[%s2977_s0 + $0x48] ss:$36 sps:$4 sm:$0xff]   ;;  %v2157_v43 = vld [vmem:[%s2977_s0 + $0x50] ss:$36 sps:$4 sm:$0xff]  }
  0x10   :  { %1797 = vmatpush3.bf16.msra.mxu0 %v2124_v14  ;;  %v2158_v44 = vld [vmem:[%s2976_s1 + $0x148] sm:$0xff]   ;;  %v2164_v49 = vld [vmem:[%s2977_s0 + $0x9c] ss:$36 sps:$4 sm:$0xff]   ;;  %v2166_v50 = vld [vmem:[%s2977_s0 + $0x90] ss:$36 sps:$4 sm:$0xff]  }
  0x11   :  { %1861 = vmatpush3.bf16.msra.mxu1 %v2125_v15  ;;  %1798 = vmatprep.subr.bf16.mxu0 %v2126_v16  ;;  %v2159_v45 = vld [vmem:[%s2976_s1 + $0x1c8] sm:$0xff]   ;;  %v2167_v51 = vld [vmem:[%s2977_s0 + $0x98] ss:$36 sps:$4 sm:$0xff]   ;;  %v2168_v52 = vld [vmem:[%s2976_s1 + $0x150] sm:$0xff]  }
  0x12   :  { %1862 = vmatprep.subr.bf16.mxu1 %v2127_v17  ;;  %v2160_v46 = vld [vmem:[%s2976_s1 + $0x108] sm:$0xff]   ;;  %v2169_v53 = vld [vmem:[%s2976_s1 + $0x1d0] sm:$0xff]   ;;  %v2172_v56 = vld [vmem:[%s2977_s0 + $0xdc] ss:$36 sps:$4 sm:$0xff]  }
  0x13   :  { %v2161_v47 = vld [vmem:[%s2976_s1 + $0x188] sm:$0xff]   ;;  %v2170_v54 = vld [vmem:[%s2976_s1 + $0x110] sm:$0xff]   ;;  %v2176_v58 = vld [vmem:[%s2977_s0 + $0xd8] ss:$36 sps:$4 sm:$0xff]  }
  0x14   :  { %1799 = vmatpush3.bf16.msra.mxu0 %v2128_v18  ;;  %v2171_v55 = vld [vmem:[%s2976_s1 + $0x190] sm:$0xff]   ;;  %v2174_v57 = vld [vmem:[%s2977_s0 + $0xe4] ss:$36 sps:$4 sm:$0xff]   ;;  %v2178_v60 = vld [vmem:[%s2976_s1 + $0x158] sm:$0xff]  }
  0x15   :  { %1863 = vmatpush3.bf16.msra.mxu1 %v2129_v19  ;;  %1800 = vmatprep.subr.bf16.mxu0 %v2130_v20  ;;  %v2177_v59 = vld [vmem:[%s2977_s0 + $0xe0] ss:$36 sps:$4 sm:$0xff]   ;;  %v2179_v61 = vld [vmem:[%s2976_s1 + $0x1d8] sm:$0xff]   ;;  %v2184_v1 = vld [vmem:[%s2977_s0 + $0x12c] ss:$36 sps:$4 sm:$0xff]  }
  0x16   :  { %1864 = vmatprep.subr.bf16.mxu1 %v2131_v21  ;;  %v2180_v62 = vld [vmem:[%s2976_s1 + $0x118] sm:$0xff]   ;;  %v2182_v0 = vld [vmem:[%s2977_s0 + $0x124] ss:$36 sps:$4 sm:$0xff]   ;;  %v2192_v8 = vld [vmem:[%s2977_s0 + $0x16c] ss:$36 sps:$4 sm:$0xff]  }
  0x17   :  { %v2181_v63 = vld [vmem:[%s2976_s1 + $0x198] sm:$0xff]   ;;  %v2186_v2 = vld [vmem:[%s2977_s0 + $0x120] ss:$36 sps:$4 sm:$0xff]   ;;  %v2187_v4 = vld [vmem:[%s2977_s0 + $0x128] ss:$36 sps:$4 sm:$0xff]  }
  0x18   :  { %1801 = vmatpush3.bf16.msra.mxu0 %v2132_v22  ;;  %v2188_v3 = vld [vmem:[%s2976_s1 + $0x160] sm:$0xff]   ;;  %v2194_v9 = vld [vmem:[%s2977_s0 + $0x174] ss:$36 sps:$4 sm:$0xff]   ;;  %v2198_v10 = vld [vmem:[%s2976_s1 + $0x168] sm:$0xff]  }
  0x19   :  { %1865 = vmatpush3.bf16.msra.mxu1 %v2133_v23  ;;  %1802 = vmatprep.subr.bf16.mxu0 %v2134_v24  ;;  %v2189_v5 = vld [vmem:[%s2976_s1 + $0x1e0] sm:$0xff]   ;;  %v2199_v11 = vld [vmem:[%s2976_s1 + $0x1e8] sm:$0xff]   ;;  %v2197_v15 = vld [vmem:[%s2977_s0 + $0x170] ss:$36 sps:$4 sm:$0xff]  }
  0x1a   :  { %1866 = vmatprep.subr.bf16.mxu1 %v2135_v25  ;;  %v2190_v6 = vld [vmem:[%s2976_s1 + $0x120] sm:$0xff]   ;;  %v2196_v12 = vld [vmem:[%s2977_s0 + $0x168] ss:$36 sps:$4 sm:$0xff]   ;;  %v2202_v16 = vld [vmem:[%s2977_s0 + $0x1b4] ss:$36 sps:$4 sm:$0xff]  }
  0x1b   :  { %v2191_v7 = vld [vmem:[%s2976_s1 + $0x1a0] sm:$0xff]   ;;  %v2200_v13 = vld [vmem:[%s2976_s1 + $0x128] sm:$0xff]   ;;  %v2208_v18 = vld [vmem:[%s2976_s1 + $0x170] sm:$0xff]  }
  0x1c   :  { %1803 = vmatpush3.bf16.msra.mxu0 %v2136_v26  ;;  %v2201_v14 = vld [vmem:[%s2976_s1 + $0x1a8] sm:$0xff]   ;;  %v2204_v17 = vld [vmem:[%s2977_s0 + $0x1bc] ss:$36 sps:$4 sm:$0xff]   ;;  %v2209_v19 = vld [vmem:[%s2976_s1 + $0x1f0] sm:$0xff]  }
  0x1d   :  { %1867 = vmatpush3.bf16.msra.mxu1 %v2137_v27  ;;  %1804 = vmatprep.subr.bf16.mxu0 %v2138_v28  ;;  %v2210_v20 = vld [vmem:[%s2976_s1 + $0x130] sm:$0xff]   ;;  %v2207_v23 = vld [vmem:[%s2977_s0 + $0x1b8] ss:$36 sps:$4 sm:$0xff]   ;;  %v2214_v25 = vld [vmem:[%s2977_s0 + $0x204] ss:$36 sps:$4 sm:$0xff]  }
  0x1e   :  { %1868 = vmatprep.subr.bf16.mxu1 %v2139_v29  ;;  %v2211_v21 = vld [vmem:[%s2976_s1 + $0x1b0] sm:$0xff]   ;;  %v2212_v24 = vld [vmem:[%s2977_s0 + $0x1fc] ss:$36 sps:$4 sm:$0xff]  }
  0x1f   :  { %v2206_v22 = vld [vmem:[%s2977_s0 + $0x1b0] ss:$36 sps:$4 sm:$0xff]   ;;  %v2218_v26 = vld [vmem:[%s2976_s1 + $0x178] sm:$0xff]  }
  0x20   :  { %1805 = vmatpush3.bf16.msra.mxu0 %v2140_v30  ;;  %v2219_v27 = vld [vmem:[%s2976_s1 + $0x1f8] sm:$0xff]   ;;  %v2222_v35 = vld [vmem:[%s2977_s0 + $0x10] ss:$36 sps:$4 sm:$0xff]  }
  0x21   :  { %1869 = vmatpush3.bf16.msra.mxu1 %v2141_v31  ;;  %1918 = vmatprep.subr.bf16.mxu0 %v2148_v36  ;;  %v2220_v28 = vld [vmem:[%s2976_s1 + $0x138] sm:$0xff]   ;;  %v2217_v31 = vld [vmem:[%s2977_s0 + $0x200] ss:$36 sps:$4 sm:$0xff]  }
  0x22   :  { %1982 = vmatprep.subr.bf16.mxu1 %v2149_v37  ;;  %v2221_v29 = vld [vmem:[%s2976_s1 + $0x1b8] sm:$0xff]  }
  0x23   :  { %1078 = vmatmul.mubr.bf16.vlgmr.msra.gmra.mrb[0].mxu0 %v2142_v32  ;;  %v2216_v30 = vld [vmem:[%s2977_s0 + $0x1f8] ss:$36 sps:$4 sm:$0xff]   ;;  %v2228_v32 = vld [vmem:[%s2976_s1 + $0x200] sm:$0xff]  }
  0x24   :  { %1175 = vmatmul.mubr.bf16.vlgmr.msra.gmra.mrb[0].mxu1 %v2145_v34  ;;  %1919 = vmatpush3.bf16.msra.mxu0 %v2150_v38  ;;  %v2224_v33 = vld [vmem:[%s2977_s0 + $0x14] ss:$36 sps:$4 sm:$0xff]   ;;  %v2227_v34 = vld [vmem:[%s2977_s0 + $0x1c] ss:$36 sps:$4 sm:$0xff]   ;;  %v2231_v38 = vld [vmem:[%s2977_s0 + $0x64] ss:$36 sps:$4 sm:$0xff]  }
  0x25   :  { %1983 = vmatpush3.bf16.msra.mxu1 %v2151_v39  ;;  %1085 = vmatprep.mubr.bf16.mxu0 %v2152_v40  ;;  %v2225_v36 = vld [vmem:[%s2977_s0 + $0x18] ss:$36 sps:$4 sm:$0xff]   ;;  %v2235_v39 = vld [vmem:[%s2976_s1 + $0x208] sm:$0xff]   ;;  %v2242_v40 = vld [vmem:[%s2976_s1 + $0x210] sm:$0xff]  }
  0x26   :  { %1182 = vmatprep.mubr.bf16.mxu1 %v2154_v41  ;;  %1920 = vmatprep.subr.bf16.mxu0 %v2158_v44  ;;  %v2229_v37 = vld [vmem:[%s2977_s0 + $0x5c] ss:$36 sps:$4 sm:$0xff]   ;;  %v2238_v44 = vld [vmem:[%s2977_s0 + $0xac] ss:$36 sps:$4 sm:$0xff]  }
  0x27   :  { %1984 = vmatprep.subr.bf16.mxu1 %v2159_v45  ;;  %v2233_v41 = vld [vmem:[%s2977_s0 + $0x58] ss:$36 sps:$4 sm:$0xff]  }
  0x28   :  { %1921 = vmatpush3.bf16.msra.mxu0 %v2160_v46  ;;  %v2249_v45 = vld [vmem:[%s2976_s1 + $0x218] sm:$0xff]   ;;  %v2256_v46 = vld [vmem:[%s2976_s1 + $0x220] sm:$0xff]  }
  0x29   :  { %1985 = vmatpush3.bf16.msra.mxu1 %v2161_v47  ;;  %1922 = vmatprep.subr.bf16.mxu0 %v2168_v52  ;;  %v2240_v47 = vld [vmem:[%s2977_s0 + $0xa0] ss:$36 sps:$4 sm:$0xff]   ;;  %v2247_v52 = vld [vmem:[%s2977_s0 + $0xe8] ss:$36 sps:$4 sm:$0xff]  }
  0x2a   :  { %1986 = vmatprep.subr.bf16.mxu1 %v2169_v53  ;;  %v2270_v53 = vld [vmem:[%s2976_s1 + $0x230] sm:$0xff]  }
  0x2b   :  { %1086 = vmatmul.mubr.bf16.gmra.mrb[4].mxu0 %v2156_v42  ;;  %v2234_v42 = vld [vmem:[%s2977_s0 + $0x60] ss:$36 sps:$4 sm:$0xff]  }
  0x2c   :  { %1183 = vmatmul.mubr.bf16.gmra.mrb[4].mxu1 %v2157_v43  ;;  %1093 = vmatprep.mubr.bf16.mxu0 %v2162_v48  ;;  %v2236_v43 = vld [vmem:[%s2977_s0 + $0xa4] ss:$36 sps:$4 sm:$0xff]  }
  0x2d   :  { %1190 = vmatprep.mubr.bf16.mxu1 %v2164_v49  ;;  %1923 = vmatpush3.bf16.msra.mxu0 %v2170_v54  ;;  %v2241_v48 = vld [vmem:[%s2977_s0 + $0xa8] ss:$36 sps:$4 sm:$0xff]   ;;  %v2248_v54 = vld [vmem:[%s2977_s0 + $0xf0] ss:$36 sps:$4 sm:$0xff]  }
  0x2e   :  { %1987 = vmatpush3.bf16.msra.mxu1 %v2171_v55  ;;  %1924 = vmatprep.subr.bf16.mxu0 %v2178_v60  ;;  %v2243_v49 = vld [vmem:[%s2977_s0 + $0xec] ss:$36 sps:$4 sm:$0xff]   ;;  %v2250_v55 = vld [vmem:[%s2977_s0 + $0x134] ss:$36 sps:$4 sm:$0xff]   ;;  %v2257_v60 = vld [vmem:[%s2977_s0 + $0x17c] ss:$36 sps:$4 sm:$0xff]  }
  0x2f   :  { %1988 = vmatprep.subr.bf16.mxu1 %v2179_v61  ;;  %v2259_v61 = vld [vmem:[%s2977_s0 + $0x184] ss:$36 sps:$4 sm:$0xff]  }
  0x31   :  { %1925 = vmatpush3.bf16.msra.mxu0 %v2180_v62  ;;  %v2261_v62 = vld [vmem:[%s2977_s0 + $0x178] ss:$36 sps:$4 sm:$0xff]  }
  0x32   :  { %1989 = vmatpush3.bf16.msra.mxu1 %v2181_v63  ;;  %1926 = vmatprep.subr.bf16.mxu0 %v2188_v3  ;;  %v2262_v63 = vld [vmem:[%s2977_s0 + $0x180] ss:$36 sps:$4 sm:$0xff]   ;;  %v2269_v3 = vld [vmem:[%s2977_s0 + $0x1c8] ss:$36 sps:$4 sm:$0xff]  }
  0x33   :  { %1094 = vmatmul.mubr.bf16.gmra.mrb[8].mxu0 %v2166_v50  ;;  %1990 = vmatprep.subr.bf16.mxu1 %v2189_v5  ;;  %v2245_v50 = vld [vmem:[%s2977_s0 + $0xf4] ss:$36 sps:$4 sm:$0xff]  }
  0x34   :  { %1191 = vmatmul.mubr.bf16.gmra.mrb[8].mxu1 %v2167_v51  ;;  %1101 = vmatprep.mubr.bf16.mxu0 %v2172_v56  ;;  %v2263_v51 = vld [vmem:[%s2976_s1 + $0x228] sm:$0xff]   ;;  %v2252_v56 = vld [vmem:[%s2977_s0 + $0x13c] ss:$36 sps:$4 sm:$0xff]   ;;  %v2273_v5 = vld [vmem:[%s2977_s0 + $0x214] ss:$36 sps:$4 sm:$0xff]  }
  0x35   :  { %1198 = vmatprep.mubr.bf16.mxu1 %v2174_v57  ;;  %1927 = vmatpush3.bf16.msra.mxu0 %v2190_v6  ;;  %v2277_v57 = vld [vmem:[%s2976_s1 + $0x238] sm:$0xff]   ;;  %v2275_v6 = vld [vmem:[%s2977_s0 + $0x208] ss:$36 sps:$4 sm:$0xff]  }
  0x36   :  { %1991 = vmatpush3.bf16.msra.mxu1 %v2191_v7  ;;  %1928 = vmatprep.subr.bf16.mxu0 %v2198_v10  ;;  %v2276_v7 = vld [vmem:[%s2977_s0 + $0x210] ss:$36 sps:$4 sm:$0xff]   ;;  %v2280_v10 = vld [vmem:[%s2977_s0 + $0x68] ss:$36 sps:$4 sm:$0xff]  }
  0x37   :  { %1992 = vmatprep.subr.bf16.mxu1 %v2199_v11  ;;  %v2281_v11 = vld [vmem:[%s2977_s0 + $0x188] ss:$36 sps:$4 sm:$0xff]  }
  0x39   :  { %1929 = vmatpush3.bf16.msra.mxu0 %v2200_v13  ;;  %v2283_v13 = vld [vmem:[%s2977_s0 + $0x1d0] ss:$36 sps:$4 sm:$0xff]  }
  0x3a   :  { %1993 = vmatpush3.bf16.msra.mxu1 %v2201_v14  ;;  %1930 = vmatprep.subr.bf16.mxu0 %v2208_v18  ;;  %v2284_v14 = vld [vmem:[%s2977_s0 + $0xf8] ss:$36 sps:$4 sm:$0xff]  }
  0x3b   :  { %1102 = vmatmul.mubr.bf16.gmra.mrb[12].mxu0 %v2176_v58  ;;  %1994 = vmatprep.subr.bf16.mxu1 %v2209_v19  ;;  %v2254_v58 = vld [vmem:[%s2977_s0 + $0x130] ss:$36 sps:$4 sm:$0xff]  }
  0x3c   :  { %1199 = vmatmul.mubr.bf16.gmra.mrb[12].mxu1 %v2177_v59  ;;  %1109 = vmatprep.mubr.bf16.mxu0 %v2182_v0  ;;  %v2255_v59 = vld [vmem:[%s2977_s0 + $0x138] ss:$36 sps:$4 sm:$0xff]   ;;  %v2264_v0 = vld [vmem:[%s2977_s0 + $0x1c4] ss:$36 sps:$4 sm:$0xff]  }
  0x3d   :  { %1206 = vmatprep.mubr.bf16.mxu1 %v2184_v1  ;;  %1931 = vmatpush3.bf16.msra.mxu0 %v2210_v20  ;;  %v2266_v1 = vld [vmem:[%s2977_s0 + $0x1cc] ss:$36 sps:$4 sm:$0xff]  }
  0x3e   :  { %1995 = vmatpush3.bf16.msra.mxu1 %v2211_v21  ;;  %1932 = vmatprep.subr.bf16.mxu0 %v2218_v26 }
  0x3f   :  { %1996 = vmatprep.subr.bf16.mxu1 %v2219_v27 }
  0x41   :  { %1933 = vmatpush3.bf16.msra.mxu0 %v2220_v28 }
  0x42   :  { %1997 = vmatpush3.bf16.msra.mxu1 %v2221_v29  ;;  %2062 = vmatprep.subr.bf16.mxu0 %v2228_v32 }
  0x43   :  { %1110 = vmatmul.mubr.bf16.gmra.mrb[16].mxu0 %v2186_v2  ;;  %2094 = vmatprep.subr.bf16.mxu1 %v2228_v32  ;;  %v2268_v2 = vld [vmem:[%s2977_s0 + $0x1c0] ss:$36 sps:$4 sm:$0xff]  }
  0x44   :  { %1207 = vmatmul.mubr.bf16.gmra.mrb[16].mxu1 %v2187_v4  ;;  %1117 = vmatprep.mubr.bf16.mxu0 %v2192_v8  ;;  %v2271_v4 = vld [vmem:[%s2977_s0 + $0x20c] ss:$36 sps:$4 sm:$0xff]   ;;  %v2278_v8 = vld [vmem:[%s2977_s0 + $0x20] ss:$36 sps:$4 sm:$0xff]  }
  0x45   :  { %1214 = vmatprep.mubr.bf16.mxu1 %v2194_v9  ;;  %v2279_v9 = vld [vmem:[%s2977_s0 + $0x140] ss:$36 sps:$4 sm:$0xff]  }
  0x4b   :  { %1118 = vmatmul.mubr.bf16.gmra.mrb[20].mxu0 %v2196_v12  ;;  %v2282_v12 = vld [vmem:[%s2977_s0 + $0xb0] ss:$36 sps:$4 sm:$0xff]  }
  0x4c   :  { %1215 = vmatmul.mubr.bf16.gmra.mrb[20].mxu1 %v2197_v15  ;;  %1125 = vmatprep.mubr.bf16.mxu0 %v2202_v16  ;;  %v2285_v15 = vld [vmem:[%s2977_s0 + $0x218] ss:$36 sps:$4 sm:$0xff]  }
  0x4d   :  { %1222 = vmatprep.mubr.bf16.mxu1 %v2204_v17 }
  0x53   :  { %1126 = vmatmul.mubr.bf16.gmra.mrb[24].mxu0 %v2206_v22 }
  0x54   :  { %1223 = vmatmul.mubr.bf16.gmra.mrb[24].mxu1 %v2207_v23  ;;  %1133 = vmatprep.mubr.bf16.mxu0 %v2212_v24 }
  0x55   :  { %1230 = vmatprep.mubr.bf16.mxu1 %v2214_v25 }
  0x5b   :  { %1134 = vmatmul.mubr.bf16.gmra.mrb[28].mxu0 %v2216_v30 }
  0x5c   :  { %1231 = vmatmul.mubr.bf16.gmra.mrb[28].mxu1 %v2217_v31  ;;  %1271 = vmatprep.mubr.bf16.mxu0 %v2224_v33 }
  0x5d   :  { %1368 = vmatprep.mubr.bf16.mxu1 %v2227_v34 }
  0x63   :  { %1272 = vmatmul.mubr.bf16.vlgmr.msra.gmra.mrb[32].mxu0 %v2222_v35 }
  0x64   :  { %1369 = vmatmul.mubr.bf16.vlgmr.msra.gmra.mrb[32].mxu1 %v2225_v36  ;;  %2063 = vmatpush3.bf16.msra.mxu0 %v2228_v32 }
  0x65   :  { %2102 = vmatpush3.bf16.msra.mxu1 %v2228_v32  ;;  %1279 = vmatprep.mubr.bf16.mxu0 %v2229_v37 }
  0x66   :  { %1376 = vmatprep.mubr.bf16.mxu1 %v2231_v38  ;;  %2064 = vmatprep.subr.bf16.mxu0 %v2235_v39 }
  0x67   :  { %2095 = vmatprep.subr.bf16.mxu1 %v2235_v39 }
  0x68   :  { %2065 = vmatpush3.bf16.msra.mxu0 %v2235_v39 }
  0x69   :  { %2103 = vmatpush3.bf16.msra.mxu1 %v2235_v39  ;;  %2066 = vmatprep.subr.bf16.mxu0 %v2242_v40 }
  0x6a   :  { %2096 = vmatprep.subr.bf16.mxu1 %v2242_v40 }
  0x6b   :  { %1280 = vmatmul.mubr.bf16.gmra.mrb[36].mxu0 %v2233_v41 }
  0x6c   :  { %1377 = vmatmul.mubr.bf16.gmra.mrb[36].mxu1 %v2234_v42  ;;  %1287 = vmatprep.mubr.bf16.mxu0 %v2236_v43 }
  0x6d   :  { %1384 = vmatprep.mubr.bf16.mxu1 %v2238_v44  ;;  %2067 = vmatpush3.bf16.msra.mxu0 %v2242_v40 }
  0x6e   :  { %2104 = vmatpush3.bf16.msra.mxu1 %v2242_v40  ;;  %2068 = vmatprep.subr.bf16.mxu0 %v2249_v45 }
  0x6f   :  { %2097 = vmatprep.subr.bf16.mxu1 %v2249_v45 }
  0x71   :  { %2069 = vmatpush3.bf16.msra.mxu0 %v2249_v45 }
  0x72   :  { %2105 = vmatpush3.bf16.msra.mxu1 %v2249_v45  ;;  %2070 = vmatprep.subr.bf16.mxu0 %v2256_v46 }
  0x73   :  { %1288 = vmatmul.mubr.bf16.gmra.mrb[40].mxu0 %v2240_v47  ;;  %2098 = vmatprep.subr.bf16.mxu1 %v2256_v46 }
  0x74   :  { %1385 = vmatmul.mubr.bf16.gmra.mrb[40].mxu1 %v2241_v48  ;;  %1295 = vmatprep.mubr.bf16.mxu0 %v2243_v49 }
  0x75   :  { %1392 = vmatprep.mubr.bf16.mxu1 %v2245_v50  ;;  %2071 = vmatpush3.bf16.msra.mxu0 %v2256_v46 }
  0x76   :  { %2106 = vmatpush3.bf16.msra.mxu1 %v2256_v46  ;;  %2072 = vmatprep.subr.bf16.mxu0 %v2263_v51 }
  0x77   :  { %2099 = vmatprep.subr.bf16.mxu1 %v2263_v51 }
  0x79   :  { %2073 = vmatpush3.bf16.msra.mxu0 %v2263_v51 }
  0x7a   :  { %2107 = vmatpush3.bf16.msra.mxu1 %v2263_v51  ;;  %2074 = vmatprep.subr.bf16.mxu0 %v2270_v53 }
  0x7b   :  { %1296 = vmatmul.mubr.bf16.gmra.mrb[44].mxu0 %v2247_v52  ;;  %2100 = vmatprep.subr.bf16.mxu1 %v2270_v53 }
  0x7c   :  { %1393 = vmatmul.mubr.bf16.gmra.mrb[44].mxu1 %v2248_v54  ;;  %1303 = vmatprep.mubr.bf16.mxu0 %v2250_v55 }
  0x7d   :  { %1400 = vmatprep.mubr.bf16.mxu1 %v2252_v56  ;;  %2075 = vmatpush3.bf16.msra.mxu0 %v2270_v53 }
  0x7e   :  { %2108 = vmatpush3.bf16.msra.mxu1 %v2270_v53  ;;  %2076 = vmatprep.subr.bf16.mxu0 %v2277_v57 }
  0x7f   :  { %2101 = vmatprep.subr.bf16.mxu1 %v2277_v57 }
  0x81   :  { %2077 = vmatpush3.bf16.msra.mxu0 %v2277_v57 }
  0x82   :  { %2109 = vmatpush3.bf16.msra.mxu1 %v2277_v57 }
  0x83   :  { %1304 = vmatmul.mubr.bf16.gmra.mrb[48].mxu0 %v2254_v58 }
  0x84   :  { %1401 = vmatmul.mubr.bf16.gmra.mrb[48].mxu1 %v2255_v59  ;;  %1311 = vmatprep.mubr.bf16.mxu0 %v2257_v60 }
  0x85   :  { %1408 = vmatprep.mubr.bf16.mxu1 %v2259_v61 }
  0x8b   :  { %1312 = vmatmul.mubr.bf16.gmra.mrb[52].mxu0 %v2261_v62 }
  0x8c   :  { %1409 = vmatmul.mubr.bf16.gmra.mrb[52].mxu1 %v2262_v63  ;;  %1319 = vmatprep.mubr.bf16.mxu0 %v2264_v0 }
  0x8d   :  { %1416 = vmatprep.mubr.bf16.mxu1 %v2266_v1 }
  0x93   :  { %1320 = vmatmul.mubr.bf16.gmra.mrb[56].mxu0 %v2268_v2 }
  0x94   :  { %1417 = vmatmul.mubr.bf16.gmra.mrb[56].mxu1 %v2269_v3  ;;  %1327 = vmatprep.mubr.bf16.mxu0 %v2271_v4 }
  0x95   :  { %1424 = vmatprep.mubr.bf16.mxu1 %v2273_v5 }
  0x9b   :  { %1328 = vmatmul.mubr.bf16.gmra.mrb[60].mxu0 %v2275_v6 }
  0x9c   :  { %1425 = vmatmul.mubr.bf16.gmra.mrb[60].mxu1 %v2276_v7  ;;  %2078 = vmatprep.mubr.bf16.mxu0 %v2278_v8 }
  0x9d   :  { %2086 = vmatprep.mubr.bf16.mxu1 %v2279_v9 }
  0xa3   :  { %2079 = vmatmul.mubr.bf16.vlgmr.msra.gmra.mrb[64].mxu0 %v2280_v10 }
  0xa4   :  { %2087 = vmatmul.mubr.bf16.vlgmr.msra.gmra.mrb[64].mxu1 %v2281_v11  ;;  %2082 = vmatprep.mubr.bf16.mxu0 %v2282_v12 }
  0xa5   :  { %2090 = vmatprep.mubr.bf16.mxu1 %v2283_v13 }
  0xab   :  { %2083 = vmatmul.mubr.bf16.gmra.mrb[68].mxu0 %v2284_v14 }
  0xac   :  { %2091 = vmatmul.mubr.bf16.gmra.mrb[68].mxu1 %v2285_v15 }
  0xf6   :  { %v1806_v16 = vpop.f32.mrb[0].mxu0 }
  0xf7   :  { %v1870_v17 = vpop.f32.mrb[0].mxu1  ;;  %v1807_v18 = vpop.f32.mrb[1].mxu0 }
  0xf8   :  { %v1808_v19 = vadd.f32 %v1807_v18, %v1806_v16  ;;  %v1871_v20 = vpop.f32.mrb[1].mxu1  ;;  %v1809_v21 = vpop.f32.mrb[2].mxu0 }
  0xf9   :  { %v1872_v22 = vadd.f32 %v1871_v20, %v1870_v17  ;;  %v1873_v23 = vpop.f32.mrb[2].mxu1  ;;  %v1810_v24 = vpop.f32.mrb[3].mxu0 }
  0xfa   :  { %v1811_v25 = vadd.f32 %v1810_v24, %v1809_v21  ;;  %v1874_v26 = vpop.f32.mrb[3].mxu1 }
  0xfb   :  { %v2748_v27 = vadd.f32 %v1872_v22, %v1808_v19  ;;  %v1875_v28 = vadd.f32 %v1874_v26, %v1873_v23 }
  0xfd   :  { %v2750_v29 = vadd.f32 %v1875_v28, %v1811_v25 }
  0xfe   :  { %v1812_v30 = vpop.f32.mrb[4].mxu0 }
  0xff   :  { %v1876_v31 = vpop.f32.mrb[4].mxu1  ;;  %v1813_v32 = vpop.f32.mrb[5].mxu0 }
 0x100   :  { %v1814_v33 = vadd.f32 %v1813_v32, %v1812_v30  ;;  %v1877_v34 = vpop.f32.mrb[5].mxu1  ;;  %v1815_v35 = vpop.f32.mrb[6].mxu0 }
 0x101   :  { %v1878_v36 = vadd.f32 %v1877_v34, %v1876_v31  ;;  %v1879_v37 = vpop.f32.mrb[6].mxu1  ;;  %v1816_v38 = vpop.f32.mrb[7].mxu0 }
 0x102   :  { %v1817_v39 = vadd.f32 %v1816_v38, %v1815_v35  ;;  %v1880_v40 = vpop.f32.mrb[7].mxu1 }
 0x103   :  { %v2752_v41 = vadd.f32 %v1878_v36, %v1814_v33  ;;  %v1881_v42 = vadd.f32 %v1880_v40, %v1879_v37 }
 0x105   :  { %v2754_v43 = vadd.f32 %v1881_v42, %v1817_v39 }
 0x106   :  { %v1818_v44 = vpop.f32.mrb[8].mxu0 }
 0x107   :  { %v1882_v45 = vpop.f32.mrb[8].mxu1  ;;  %v1819_v46 = vpop.f32.mrb[9].mxu0 }
 0x108   :  { %v1820_v47 = vadd.f32 %v1819_v46, %v1818_v44  ;;  %v1883_v48 = vpop.f32.mrb[9].mxu1  ;;  %v1821_v49 = vpop.f32.mrb[10].mxu0 }
 0x109   :  { %v1884_v50 = vadd.f32 %v1883_v48, %v1882_v45  ;;  %v1885_v51 = vpop.f32.mrb[10].mxu1  ;;  %v1822_v52 = vpop.f32.mrb[11].mxu0 }
 0x10a   :  { %v1823_v53 = vadd.f32 %v1822_v52, %v1821_v49  ;;  %v1886_v54 = vpop.f32.mrb[11].mxu1 }
 0x10b   :  { %v2756_v55 = vadd.f32 %v1884_v50, %v1820_v47  ;;  %v1887_v56 = vadd.f32 %v1886_v54, %v1885_v51 }
 0x10d   :  { %v2758_v57 = vadd.f32 %v1887_v56, %v1823_v53 }
 0x10e   :  { %v1824_v58 = vpop.f32.mrb[12].mxu0 }
 0x10f   :  { %v1888_v59 = vpop.f32.mrb[12].mxu1  ;;  %v1825_v60 = vpop.f32.mrb[13].mxu0 }
 0x110   :  { %v1826_v61 = vadd.f32 %v1825_v60, %v1824_v58  ;;  %v1889_v62 = vpop.f32.mrb[13].mxu1  ;;  %v1827_v63 = vpop.f32.mrb[14].mxu0 }
 0x111   :  { %v1890_v0 = vadd.f32 %v1889_v62, %v1888_v59  ;;  %v1891_v1 = vpop.f32.mrb[14].mxu1  ;;  %v1828_v2 = vpop.f32.mrb[15].mxu0 }
 0x112   :  { %v1829_v3 = vadd.f32 %v1828_v2, %v1827_v63  ;;  %v1892_v4 = vpop.f32.mrb[15].mxu1 }
 0x113   :  { %v2760_v5 = vadd.f32 %v1890_v0, %v1826_v61  ;;  %v1893_v6 = vadd.f32 %v1892_v4, %v1891_v1 }
 0x115   :  { %v2762_v7 = vadd.f32 %v1893_v6, %v1829_v3 }
 0x116   :  { %v1830_v8 = vpop.f32.mrb[16].mxu0 }
 0x117   :  { %v1894_v9 = vpop.f32.mrb[16].mxu1  ;;  %v1831_v10 = vpop.f32.mrb[17].mxu0 }
 0x118   :  { %v1832_v11 = vadd.f32 %v1831_v10, %v1830_v8  ;;  %v1895_v12 = vpop.f32.mrb[17].mxu1  ;;  %v1833_v13 = vpop.f32.mrb[18].mxu0 }
 0x119   :  { %v1896_v14 = vadd.f32 %v1895_v12, %v1894_v9  ;;  %v1897_v15 = vpop.f32.mrb[18].mxu1  ;;  %v1834_v16 = vpop.f32.mrb[19].mxu0 }
 0x11a   :  { %v1835_v17 = vadd.f32 %v1834_v16, %v1833_v13  ;;  %v1898_v18 = vpop.f32.mrb[19].mxu1 }
 0x11b   :  { %v2764_v19 = vadd.f32 %v1896_v14, %v1832_v11  ;;  %v1899_v20 = vadd.f32 %v1898_v18, %v1897_v15 }
 0x11d   :  { %v2766_v21 = vadd.f32 %v1899_v20, %v1835_v17 }
 0x11e   :  { %v1836_v22 = vpop.f32.mrb[20].mxu0 }
 0x11f   :  { %v1900_v23 = vpop.f32.mrb[20].mxu1  ;;  %v1837_v24 = vpop.f32.mrb[21].mxu0 }
 0x120   :  { %v1838_v25 = vadd.f32 %v1837_v24, %v1836_v22  ;;  %v1901_v26 = vpop.f32.mrb[21].mxu1  ;;  %v1839_v28 = vpop.f32.mrb[22].mxu0 }
 0x121   :  { %v1902_v30 = vadd.f32 %v1901_v26, %v1900_v23  ;;  %v1903_v31 = vpop.f32.mrb[22].mxu1  ;;  %v1840_v32 = vpop.f32.mrb[23].mxu0 }
 0x122   :  { %v1841_v33 = vadd.f32 %v1840_v32, %v1839_v28  ;;  %v1904_v34 = vpop.f32.mrb[23].mxu1 }
 0x123   :  { %v2768_v35 = vadd.f32 %v1902_v30, %v1838_v25  ;;  %v1905_v36 = vadd.f32 %v1904_v34, %v1903_v31 }
 0x125   :  { %v2770_v37 = vadd.f32 %v1905_v36, %v1841_v33 }
 0x126   :  { %v1842_v38 = vpop.f32.mrb[24].mxu0 }
 0x127   :  { %v1906_v39 = vpop.f32.mrb[24].mxu1  ;;  %v1843_v40 = vpop.f32.mrb[25].mxu0 }
 0x128   :  { %v1844_v42 = vadd.f32 %v1843_v40, %v1842_v38  ;;  %v1907_v44 = vpop.f32.mrb[25].mxu1  ;;  %v1845_v45 = vpop.f32.mrb[26].mxu0 }
 0x129   :  { %v1908_v46 = vadd.f32 %v1907_v44, %v1906_v39  ;;  %v1909_v47 = vpop.f32.mrb[26].mxu1  ;;  %v1846_v48 = vpop.f32.mrb[27].mxu0 }
 0x12a   :  { %v1847_v49 = vadd.f32 %v1846_v48, %v1845_v45  ;;  %v1910_v50 = vpop.f32.mrb[27].mxu1 }
 0x12b   :  { %v2772_v51 = vadd.f32 %v1908_v46, %v1844_v42  ;;  %v1911_v52 = vadd.f32 %v1910_v50, %v1909_v47 }
 0x12d   :  { %v2774_v53 = vadd.f32 %v1911_v52, %v1847_v49 }
 0x12e   :  { %v1848_v54 = vpop.f32.mrb[28].mxu0 }
 0x12f   :  { %v1912_v56 = vpop.f32.mrb[28].mxu1  ;;  %v1849_v58 = vpop.f32.mrb[29].mxu0 }
 0x130   :  { %v1850_v59 = vadd.f32 %v1849_v58, %v1848_v54  ;;  %v1913_v60 = vpop.f32.mrb[29].mxu1  ;;  %v1851_v61 = vpop.f32.mrb[30].mxu0 }
 0x131   :  { %v1914_v62 = vadd.f32 %v1913_v60, %v1912_v56  ;;  %v1915_v63 = vpop.f32.mrb[30].mxu1  ;;  %v1852_v0 = vpop.f32.mrb[31].mxu0 }
 0x132   :  { %v1853_v1 = vadd.f32 %v1852_v0, %v1851_v61  ;;  %v1916_v2 = vpop.f32.mrb[31].mxu1 }
 0x133   :  { %v2776_v3 = vadd.f32 %v1914_v62, %v1850_v59  ;;  %v1917_v4 = vadd.f32 %v1916_v2, %v1915_v63 }
 0x135   :  { %v2778_v6 = vadd.f32 %v1917_v4, %v1853_v1 }
 0x136   :  { %v1934_v8 = vpop.f32.mrb[32].mxu0 }
 0x137   :  { %v1998_v9 = vpop.f32.mrb[32].mxu1  ;;  %v1935_v10 = vpop.f32.mrb[33].mxu0 }
 0x138   :  { %v1936_v11 = vadd.f32 %v1935_v10, %v1934_v8  ;;  %v1999_v12 = vpop.f32.mrb[33].mxu1  ;;  %v1937_v13 = vpop.f32.mrb[34].mxu0 }
 0x139   :  { %v2000_v14 = vadd.f32 %v1999_v12, %v1998_v9  ;;  %v2001_v15 = vpop.f32.mrb[34].mxu1  ;;  %v1938_v16 = vpop.f32.mrb[35].mxu0 }
 0x13a   :  { %v1274_v17 = vadd.f32 %v1936_v11, %v2748_v27  ;;  %v1939_v18 = vadd.f32 %v1938_v16, %v1937_v13  ;;  %v2002_v20 = vpop.f32.mrb[35].mxu1 }
 0x13b   :  { %v2003_v22 = vadd.f32 %v2002_v20, %v2001_v15 }
 0x13c   :  { %v1277_v23 = vadd.f32 %v1939_v18, %v2750_v29  ;;  %v2782_v24 = vadd.f32 %v2000_v14, %v1274_v17 }
 0x13e   :  { %v1940_v25 = vpop.f32.mrb[36].mxu0  ;;  %v2784_v26 = vadd.f32 %v2003_v22, %v1277_v23 }
 0x13f   :  { %v2004_v28 = vpop.f32.mrb[36].mxu1  ;;  %v1941_v30 = vpop.f32.mrb[37].mxu0 }
 0x140   :  { %v1942_v31 = vadd.f32 %v1941_v30, %v1940_v25  ;;  %v2005_v32 = vpop.f32.mrb[37].mxu1  ;;  %v1943_v33 = vpop.f32.mrb[38].mxu0 }
 0x141   :  { %v2006_v34 = vadd.f32 %v2005_v32, %v2004_v28  ;;  %v2007_v36 = vpop.f32.mrb[38].mxu1  ;;  %v1944_v38 = vpop.f32.mrb[39].mxu0 }
 0x142   :  { %v1282_v27 = vadd.f32 %v1942_v31, %v2752_v41  ;;  %v1945_v39 = vadd.f32 %v1944_v38, %v1943_v33  ;;  %v2008_v40 = vpop.f32.mrb[39].mxu1 }
 0x143   :  { %v2009_v42 = vadd.f32 %v2008_v40, %v2007_v36 }
 0x144   :  { %v1285_v29 = vadd.f32 %v1945_v39, %v2754_v43  ;;  %v2788_v44 = vadd.f32 %v2006_v34, %v1282_v27 }
 0x146   :  { %v1946_v45 = vpop.f32.mrb[40].mxu0  ;;  %v2790_v46 = vadd.f32 %v2009_v42, %v1285_v29 }
 0x147   :  { %v2010_v47 = vpop.f32.mrb[40].mxu1  ;;  %v1947_v48 = vpop.f32.mrb[41].mxu0 }
 0x148   :  { %v1948_v49 = vadd.f32 %v1947_v48, %v1946_v45  ;;  %v2011_v50 = vpop.f32.mrb[41].mxu1  ;;  %v1949_v52 = vpop.f32.mrb[42].mxu0 }
 0x149   :  { %v2012_v54 = vadd.f32 %v2011_v50, %v2010_v47  ;;  %v2013_v56 = vpop.f32.mrb[42].mxu1  ;;  %v1950_v58 = vpop.f32.mrb[43].mxu0 }
 0x14a   :  { %v1290_v41 = vadd.f32 %v1948_v49, %v2756_v55  ;;  %v1951_v59 = vadd.f32 %v1950_v58, %v1949_v52  ;;  %v2014_v60 = vpop.f32.mrb[43].mxu1 }
 0x14b   :  { %v2015_v61 = vadd.f32 %v2014_v60, %v2013_v56 }
 0x14c   :  { %v1293_v43 = vadd.f32 %v1951_v59, %v2758_v57  ;;  %v2794_v62 = vadd.f32 %v2012_v54, %v1290_v41 }
 0x14e   :  { %v1952_v63 = vpop.f32.mrb[44].mxu0  ;;  %v2796_v0 = vadd.f32 %v2015_v61, %v1293_v43 }
 0x14f   :  { %v2016_v1 = vpop.f32.mrb[44].mxu1  ;;  %v1953_v2 = vpop.f32.mrb[45].mxu0 }
 0x150   :  { %v1954_v4 = vadd.f32 %v1953_v2, %v1952_v63  ;;  %v2017_v8 = vpop.f32.mrb[45].mxu1  ;;  %v1955_v9 = vpop.f32.mrb[46].mxu0 }
 0x151   :  { %v2018_v10 = vadd.f32 %v2017_v8, %v2016_v1  ;;  %v2019_v11 = vpop.f32.mrb[46].mxu1  ;;  %v1956_v12 = vpop.f32.mrb[47].mxu0 }
 0x152   :  { %v1298_v55 = vadd.f32 %v1954_v4, %v2760_v5  ;;  %v1957_v13 = vadd.f32 %v1956_v12, %v1955_v9  ;;  %v2020_v14 = vpop.f32.mrb[47].mxu1 }
 0x153   :  { %v2021_v15 = vadd.f32 %v2020_v14, %v2019_v11 }
 0x154   :  { %v1301_v57 = vadd.f32 %v1957_v13, %v2762_v7  ;;  %v2800_v16 = vadd.f32 %v2018_v10, %v1298_v55 }
 0x156   :  { %v1958_v17 = vpop.f32.mrb[48].mxu0  ;;  %v2802_v18 = vadd.f32 %v2021_v15, %v1301_v57 }
 0x157   :  { %v2022_v20 = vpop.f32.mrb[48].mxu1  ;;  %v1959_v22 = vpop.f32.mrb[49].mxu0 }
 0x158   :  { %v1960_v23 = vadd.f32 %v1959_v22, %v1958_v17  ;;  %v2023_v25 = vpop.f32.mrb[49].mxu1  ;;  %v1961_v28 = vpop.f32.mrb[50].mxu0 }
 0x159   :  { %v2024_v30 = vadd.f32 %v2023_v25, %v2022_v20  ;;  %v2025_v31 = vpop.f32.mrb[50].mxu1  ;;  %v1962_v32 = vpop.f32.mrb[51].mxu0 }
 0x15a   :  { %v1306_v5 = vadd.f32 %v1960_v23, %v2764_v19  ;;  %v1963_v33 = vadd.f32 %v1962_v32, %v1961_v28  ;;  %v2026_v34 = vpop.f32.mrb[51].mxu1 }
 0x15b   :  { %v2027_v36 = vadd.f32 %v2026_v34, %v2025_v31 }
 0x15c   :  { %v1309_v7 = vadd.f32 %v1963_v33, %v2766_v21  ;;  %v2806_v38 = vadd.f32 %v2024_v30, %v1306_v5  ;;  %v2825_v33 = vld [vmem:[%s2978_s2] ss:$0 sm:$0xff] }
 0x15e   :  { %v1964_v27 = vpop.f32.mrb[52].mxu0  ;;  %v2808_v39 = vadd.f32 %v2027_v36, %v1309_v7 }
 0x15f   :  { %v2028_v40 = vpop.f32.mrb[52].mxu1  ;;  %v1965_v42 = vpop.f32.mrb[53].mxu0 }
 0x160   :  { %v1966_v29 = vadd.f32 %v1965_v42, %v1964_v27  ;;  %v2029_v45 = vpop.f32.mrb[53].mxu1  ;;  %v1967_v47 = vpop.f32.mrb[54].mxu0 }
 0x161   :  { %v2030_v48 = vadd.f32 %v2029_v45, %v2028_v40  ;;  %v2031_v49 = vpop.f32.mrb[54].mxu1  ;;  %v1968_v50 = vpop.f32.mrb[55].mxu0 }
 0x162   :  { %v1314_v19 = vadd.f32 %v1966_v29, %v2768_v35  ;;  %v1969_v52 = vadd.f32 %v1968_v50, %v1967_v47  ;;  %v2032_v54 = vpop.f32.mrb[55].mxu1  ;;  %v1578_v50 = vld [vmem:[%s2980_s4 + $0x10] sm:$0xff] }
 0x163   :  { %v2033_v56 = vadd.f32 %v2032_v54, %v2031_v49 }
 0x164   :  { %v1317_v21 = vadd.f32 %v1969_v52, %v2770_v37  ;;  %v1411_v58 = vadd.f32 %v2030_v48, %v1314_v19 }
 0x166   :  { %v1970_v41 = vpop.f32.mrb[56].mxu0  ;;  %v1414_v59 = vadd.f32 %v2033_v56, %v1317_v21 }
 0x167   :  { %v2034_v60 = vpop.f32.mrb[56].mxu1  ;;  %v1971_v61 = vpop.f32.mrb[57].mxu0 }
 0x168   :  { %v1972_v43 = vadd.f32 %v1971_v61, %v1970_v41  ;;  %v2035_v63 = vpop.f32.mrb[57].mxu1  ;;  %v1973_v1 = vpop.f32.mrb[58].mxu0  ;;  %v1584_v61 = vld [vmem:[%s2980_s4 + $0x40] sm:$0xff] }
 0x169   :  { %v2036_v2 = vadd.f32 %v2035_v63, %v2034_v60  ;;  %v2037_v4 = vpop.f32.mrb[58].mxu1  ;;  %v1974_v8 = vpop.f32.mrb[59].mxu0 }
 0x16a   :  { %v1322_v9 = vadd.f32 %v1972_v43, %v2772_v51  ;;  %v1975_v10 = vadd.f32 %v1974_v8, %v1973_v1  ;;  %v2038_v35 = vpop.f32.mrb[59].mxu1  ;;  %v1579_v43 = vld [vmem:[%s2980_s4 + $0x18] sm:$0xff] }
 0x16b   :  { %v2039_v11 = vadd.f32 %v2038_v35, %v2037_v4  ;;  %v1587_v8 = vld [vmem:[%s2980_s4 + $0x58] sm:$0xff] }
 0x16c   :  { %v1325_v12 = vadd.f32 %v1975_v10, %v2774_v53  ;;  %v2814_v55 = vadd.f32 %v2036_v2, %v1322_v9  ;;  %v1577_v9 = vld [vmem:[%s2980_s4 + $0x8] sm:$0xff] }
 0x16e   :  { %v1976_v37 = vpop.f32.mrb[60].mxu0  ;;  %v2816_v13 = vadd.f32 %v2039_v11, %v1325_v12 }
 0x16f   :  { %v2040_v14 = vpop.f32.mrb[60].mxu1  ;;  %v1977_v15 = vpop.f32.mrb[61].mxu0 }
 0x170   :  { %v1978_v57 = vadd.f32 %v1977_v15, %v1976_v37  ;;  %v2041_v17 = vpop.f32.mrb[61].mxu1  ;;  %v1979_v20 = vpop.f32.mrb[62].mxu0 }
 0x171   :  { %v2042_v22 = vadd.f32 %v2041_v17, %v2040_v14  ;;  %v2043_v23 = vpop.f32.mrb[62].mxu1  ;;  %v1980_v25 = vpop.f32.mrb[63].mxu0  ;;  %v1585_v14 = vld [vmem:[%s2980_s4 + $0x48] sm:$0xff] }
 0x172   :  { %v1330_v51 = vadd.f32 %v1978_v57, %v2776_v3  ;;  %v1981_v28 = vadd.f32 %v1980_v25, %v1979_v20  ;;  %v2044_v30 = vpop.f32.mrb[63].mxu1  ;;  %v2833_v3 = vld [vmem:[%s2979_s3] ss:$0 sm:$0xff] }
 0x173   :  { %v2045_v31 = vadd.f32 %v2044_v30, %v2043_v23 }
 0x174   :  { %v1333_v53 = vadd.f32 %v1981_v28, %v2778_v6  ;;  %v2820_v32 = vadd.f32 %v2042_v22, %v1330_v51 }
 0x176   :  { %v2080_v5 = vpop.f32.mrb[64].mxu0  ;;  %v2827_v34 = vadd.f32 %v2045_v31, %v1333_v53 }
 0x177   :  { %v1476_v36 = vadd.f32 %v2080_v5, %v2788_v44  ;;  %v2088_v7 = vpop.f32.mrb[64].mxu1  ;;  %v1467_v27 = vpop.f32.mrb[65].mxu0 }
 0x178   :  { %v1508_v6 = vadd.f32 %v2088_v7, %v1411_v58  ;;  %v1468_v40 = vadd.f32 %v1467_v27, %v2782_v24  ;;  %v1499_v42 = vpop.f32.mrb[65].mxu1  ;;  %v2081_v29 = vpop.f32.mrb[66].mxu0 }
 0x179   :  { %v1539_v45 = vmul.f32 %v2825_v33, %v1476_v36  ;;  %v1500_v47 = vadd.f32 %v1499_v42, %v2806_v38  ;;  %v1479_v48 = vadd.f32 %v2081_v29, %v2790_v46  ;;  %v2089_v49 = vpop.f32.mrb[66].mxu1  ;;  %v1470_v44 = vpop.f32.mrb[67].mxu0  ;;  %v1586_v46 = vld [vmem:[%s2980_s4 + $0x50] sm:$0xff]  ;;  %v1576_v38 = vld [vmem:[%s2980_s4] sm:$0xff] }
 0x17a   :  { %v1547_v19 = vmul.f32 %v2825_v33, %v1508_v6  ;;  %v1537_v52 = vmul.f32 %v2825_v33, %v1468_v40  ;;  %v1511_v54 = vadd.f32 %v2089_v49, %v1414_v59  ;;  %v1471_v24 = vadd.f32 %v1470_v44, %v2784_v26  ;;  %v1502_v56 = vpop.f32.mrb[67].mxu1 }
 0x17b   :  { %v1562_v21 = vadd.f32 %v2833_v3, %v1539_v45  ;;  %v1545_v58 = vmul.f32 %v2825_v33, %v1500_v47  ;;  %v1540_v41 = vmul.f32 %v2825_v33, %v1479_v48  ;;  %v1503_v60 = vadd.f32 %v1502_v56, %v2808_v39  ;;  %v1580_v56 = vld [vmem:[%s2980_s4 + $0x20] sm:$0xff] }
 0x17c   :  { %v1570_v59 = vadd.f32 %v2833_v3, %v1547_v19  ;;  %v1560_v26 = vadd.f32 %v2833_v3, %v1537_v52  ;;  %v1548_v63 = vmul.f32 %v2825_v33, %v1511_v54  ;;  %v1538_v1 = vmul.f32 %v2825_v33, %v1471_v24  ;;  %v1590_v24 = vld [vmem:[%s2980_s4 + $0x70] sm:$0xff] }
 0x17d   :  { %v1594_v2 = vadd.f32 %v1578_v50, %v1562_v21  ;;  %v1568_v4 = vadd.f32 %v2833_v3, %v1545_v58  ;;  %v1563_v39 = vadd.f32 %v2833_v3, %v1540_v41  ;;  %v1546_v10 = vmul.f32 %v2825_v33, %v1503_v60  ;;  %v1588_v58 = vld [vmem:[%s2980_s4 + $0x60] sm:$0xff]  ;;  %v1583_v41 = vld [vmem:[%s2980_s4 + $0x38] sm:$0xff] }
 0x17e   :  { %v1602_v35 = vadd.f32 %v1586_v46, %v1570_v59  ;;  %v1592_v11 = vadd.f32 %v1576_v38, %v1560_v26  ;;  %v1571_v12 = vadd.f32 %v2833_v3, %v1548_v63  ;;  %v1561_v37 = vadd.f32 %v2833_v3, %v1538_v1  ;;  %v2084_v15 = vpop.f32.mrb[68].mxu0  ;;  %v1581_v63 = vld [vmem:[%s2980_s4 + $0x28] sm:$0xff] }
 0x17f   :  { %v1610_v57 = vmax.f32 %v1594_v2, 0.0  ;;  %v1600_v17 = vadd.f32 %v1584_v61, %v1568_v4  ;;  %v1595_v20 = vadd.f32 %v1579_v43, %v1563_v39  ;;  %v1569_v22 = vadd.f32 %v2833_v3, %v1546_v10  ;;  %v2092_v23 = vpop.f32.mrb[68].mxu1  ;;  %v1483_v25 = vpop.f32.mrb[69].mxu0  ;;  %v1591_v43 = vld [vmem:[%s2980_s4 + $0x78] sm:$0xff] }
 0x180   :  { %v1618_v51 = vmax.f32 %v1602_v35, 0.0  ;;  %v1608_v28 = vmax.f32 %v1592_v11, 0.0  ;;  %v1603_v30 = vadd.f32 %v1587_v8, %v1571_v12  ;;  %v1593_v31 = vadd.f32 %v1577_v9, %v1561_v37  ;;  %v1515_v53 = vpop.f32.mrb[69].mxu1  ;;  %v2085_v5 = vpop.f32.mrb[70].mxu0  ;;  %v1589_v9 = vld [vmem:[%s2980_s4 + $0x68] sm:$0xff] }
 0x181   :  { %1626 = vst [vmem:[%s2981_s5 + $0x10] sm:$0xff] %v1610_v57  ;;  %v1616_v36 = vmax.f32 %v1600_v17, 0.0  ;;  %v1611_v7 = vmax.f32 %v1595_v20, 0.0  ;;  %v1601_v27 = vadd.f32 %v1585_v14, %v1569_v22  ;;  %v1492_v6 = vadd.f32 %v2084_v15, %v2800_v16  ;;  %v2093_v40 = vpop.f32.mrb[70].mxu1  ;;  %v1486_v42 = vpop.f32.mrb[71].mxu0 }
 0x182   :  { %1634 = vst [vmem:[%s2981_s5 + $0x50] sm:$0xff] %v1618_v51  ;;  %1624 = vst [vmem:[%s2981_s5] sm:$0xff] %v1608_v28  ;;  %v1619_v29 = vmax.f32 %v1603_v30, 0.0  ;;  %v1609_v45 = vmax.f32 %v1593_v31, 0.0  ;;  %v1524_v47 = vadd.f32 %v2092_v23, %v2820_v32  ;;  %v1484_v48 = vadd.f32 %v1483_v25, %v2794_v62  ;;  %v1518_v49 = vpop.f32.mrb[71].mxu1  ;;  %v1582_v62 = vld [vmem:[%s2980_s4 + $0x30] sm:$0xff] }
 0x183   :  { %1632 = vst [vmem:[%s2981_s5 + $0x40] sm:$0xff] %v1616_v36  ;;  %1627 = vst [vmem:[%s2981_s5 + $0x18] sm:$0xff] %v1611_v7  ;;  %v1617_v16 = vmax.f32 %v1601_v27, 0.0  ;;  %v1543_v44 = vmul.f32 %v2825_v33, %v1492_v6  ;;  %v1516_v50 = vadd.f32 %v1515_v53, %v2814_v55  ;;  %v1495_v19 = vadd.f32 %v2085_v5, %v2802_v18 }
 0x184   :  { %1635 = vst [vmem:[%s2981_s5 + $0x58] sm:$0xff] %v1619_v29  ;;  %1625 = vst [vmem:[%s2981_s5 + $0x8] sm:$0xff] %v1609_v45  ;;  %v1551_v32 = vmul.f32 %v2825_v33, %v1524_v47  ;;  %v1541_v52 = vmul.f32 %v2825_v33, %v1484_v48  ;;  %v1527_v55 = vadd.f32 %v2093_v40, %v2827_v34 }
 0x185   :  { %v1487_v18 = vadd.f32 %v1486_v42, %v2796_v0  ;;  %1633 = vst [vmem:[%s2981_s5 + $0x48] sm:$0xff] %v1617_v16  ;;  %v1566_v54 = vadd.f32 %v2833_v3, %v1543_v44  ;;  %v1549_v21 = vmul.f32 %v2825_v33, %v1516_v50  ;;  %v1544_v34 = vmul.f32 %v2825_v33, %v1495_v19 }
 0x186   :  { %v1519_v0 = vadd.f32 %v1518_v49, %v2816_v13  ;;  %v1574_v46 = vadd.f32 %v2833_v3, %v1551_v32  ;;  %v1564_v38 = vadd.f32 %v2833_v3, %v1541_v52  ;;  %v1552_v60 = vmul.f32 %v2825_v33, %v1527_v55 }
 0x187   :  { %v1542_v59 = vmul.f32 %v2825_v33, %v1487_v18  ;;  %v1598_v26 = vadd.f32 %v1582_v62, %v1566_v54  ;;  %v1572_v61 = vadd.f32 %v2833_v3, %v1549_v21  ;;  %v1567_v13 = vadd.f32 %v2833_v3, %v1544_v34 }
 0x188   :  { %v1550_v1 = vmul.f32 %v2825_v33, %v1519_v0  ;;  %v1606_v2 = vadd.f32 %v1590_v24, %v1574_v46  ;;  %v1596_v4 = vadd.f32 %v1580_v56, %v1564_v38  ;;  %v1575_v39 = vadd.f32 %v2833_v3, %v1552_v60 }
 0x189   :  { %v1565_v8 = vadd.f32 %v2833_v3, %v1542_v59  ;;  %v1614_v10 = vmax.f32 %v1598_v26, 0.0  ;;  %v1604_v35 = vadd.f32 %v1588_v58, %v1572_v61  ;;  %v1599_v11 = vadd.f32 %v1583_v41, %v1567_v13 }
 0x18a   :  { %v1573_v12 = vadd.f32 %v2833_v3, %v1550_v1  ;;  %v1622_v37 = vmax.f32 %v1606_v2, 0.0  ;;  %v1612_v14 = vmax.f32 %v1596_v4, 0.0  ;;  %v1607_v15 = vadd.f32 %v1591_v43, %v1575_v39 }
 0x18b   :  { %v1597_v57 = vadd.f32 %v1581_v63, %v1565_v8  ;;  %1630 = vst [vmem:[%s2981_s5 + $0x30] sm:$0xff] %v1614_v10  ;;  %v1620_v33 = vmax.f32 %v1604_v35, 0.0  ;;  %v1615_v17 = vmax.f32 %v1599_v11, 0.0 }
 0x18c   :  { %v1605_v20 = vadd.f32 %v1589_v9, %v1573_v12  ;;  %1638 = vst [vmem:[%s2981_s5 + $0x70] sm:$0xff] %v1622_v37  ;;  %1628 = vst [vmem:[%s2981_s5 + $0x20] sm:$0xff] %v1612_v14  ;;  %v1623_v3 = vmax.f32 %v1607_v15, 0.0 }
 0x18d   :  { %v1613_v22 = vmax.f32 %v1597_v57, 0.0  ;;  %1636 = vst [vmem:[%s2981_s5 + $0x60] sm:$0xff] %v1620_v33  ;;  %1631 = vst [vmem:[%s2981_s5 + $0x38] sm:$0xff] %v1615_v17 }
 0x18e   :  { %v1621_v23 = vmax.f32 %v1605_v20, 0.0  ;;  %1639 = vst [vmem:[%s2981_s5 + $0x78] sm:$0xff] %v1623_v3 }
 0x18f   :  { %1629 = vst [vmem:[%s2981_s5 + $0x28] sm:$0xff] %v1613_v22 }
 0x190   :  { %1637 = vst [vmem:[%s2981_s5 + $0x68] sm:$0xff] %v1621_v23 }

// kernel: _lambda_.8
= control target key start
LH: loop header
LB: loop body
LE: loop exit
PB: predicated region body
PF: predicated region fallthrough
CT: control target
= control target key end

     0   :  { %vm554_vm0 = vcmask 523264   ;;  %s1670_s1 = inlined_call_operand.vmem [shape: bf16[576,128], index: 1, kind: input, shape index: {}]   ;;  %s1671_s0 = inlined_call_operand.vmem [shape: bf16[128,576], index: 0, kind: input, shape index: {}]   ;;  %s1672_s2 = inlined_call_operand.vmem [shape: f32[1,128], index: 2, kind: input, shape index: {}]   ;;  %s1673_s3 = inlined_call_operand.vmem [shape: f32[1,128], index: 3, kind: input, shape index: {}]   ;;  %s1674_s4 = inlined_call_operand.vmem [shape: f32[128,128], index: 4, kind: output, shape index: {}]  }
   0x1   :  { %v1194_v0 = vld [vmem:[%s1670_s1 + $0x40] sm:$0xff]   ;;  %v1198_v4 = vld [vmem:[%s1670_s1 + $0x48] sm:$0xff]   ;;  %v1202_v8 = vld [vmem:[%s1670_s1 + $0x50] sm:$0xff]  }
   0x2   :  { %v1195_v1 = vld [vmem:[%s1670_s1 + $0xc0] sm:$0xff]   ;;  %1022 = vmatprep.subr.bf16.mxu0 %v1194_v0  ;;  %v1199_v5 = vld [vmem:[%s1670_s1 + $0xc8] sm:$0xff]   ;;  %v1203_v9 = vld [vmem:[%s1670_s1 + $0xd0] sm:$0xff]  }
   0x3   :  { %v1196_v2 = vld [vmem:[%s1670_s1] sm:$0xff]   ;;  %1086 = vmatprep.subr.bf16.mxu1 %v1195_v1  ;;  %v1200_v6 = vld [vmem:[%s1670_s1 + $0x8] sm:$0xff]   ;;  %v1204_v10 = vld [vmem:[%s1670_s1 + $0x10] sm:$0xff]  }
   0x4   :  { %v1197_v3 = vld [vmem:[%s1670_s1 + $0x80] sm:$0xff]   ;;  %1023 = vmatpush3.bf16.msra.mxu0 %v1196_v2  ;;  %v1201_v7 = vld [vmem:[%s1670_s1 + $0x88] sm:$0xff]   ;;  %v1205_v11 = vld [vmem:[%s1670_s1 + $0x90] sm:$0xff]  }
   0x5   :  { %1087 = vmatpush3.bf16.msra.mxu1 %v1197_v3  ;;  %1024 = vmatprep.subr.bf16.mxu0 %v1198_v4  ;;  %v1206_v12 = vld [vmem:[%s1670_s1 + $0x58] sm:$0xff]   ;;  %v1210_v16 = vld [vmem:[%s1670_s1 + $0x60] sm:$0xff]   ;;  %v1214_v20 = vld [vmem:[%s1670_s1 + $0x68] sm:$0xff]  }
   0x6   :  { %1088 = vmatprep.subr.bf16.mxu1 %v1199_v5  ;;  %v1207_v13 = vld [vmem:[%s1670_s1 + $0xd8] sm:$0xff]   ;;  %v1211_v17 = vld [vmem:[%s1670_s1 + $0xe0] sm:$0xff]   ;;  %v1215_v21 = vld [vmem:[%s1670_s1 + $0xe8] sm:$0xff]  }
   0x7   :  { %v1208_v14 = vld [vmem:[%s1670_s1 + $0x18] sm:$0xff]   ;;  %v1212_v18 = vld [vmem:[%s1670_s1 + $0x20] sm:$0xff]   ;;  %v1216_v22 = vld [vmem:[%s1670_s1 + $0x28] sm:$0xff]  }
   0x8   :  { %1025 = vmatpush3.bf16.msra.mxu0 %v1200_v6  ;;  %v1209_v15 = vld [vmem:[%s1670_s1 + $0x98] sm:$0xff]   ;;  %v1213_v19 = vld [vmem:[%s1670_s1 + $0xa0] sm:$0xff]   ;;  %v1217_v23 = vld [vmem:[%s1670_s1 + $0xa8] sm:$0xff]  }
   0x9   :  { %1089 = vmatpush3.bf16.msra.mxu1 %v1201_v7  ;;  %1026 = vmatprep.subr.bf16.mxu0 %v1202_v8  ;;  %v1218_v24 = vld [vmem:[%s1670_s1 + $0x70] sm:$0xff]   ;;  %v1222_v28 = vld [vmem:[%s1670_s1 + $0x78] sm:$0xff]   ;;  %v1231_v35 = vld [vmem:[%s1671_s0 + $0xc] ss:$20 sps:$4 sm:$0xff]  }
   0xa   :  { %1090 = vmatprep.subr.bf16.mxu1 %v1203_v9  ;;  %v1219_v25 = vld [vmem:[%s1670_s1 + $0xf0] sm:$0xff]   ;;  %v1223_v29 = vld [vmem:[%s1670_s1 + $0xf8] sm:$0xff]   ;;  %v1232_v36 = vld [vmem:[%s1670_s1 + $0x100] sm:$0xff]   ;;  %708 = vmatprep.mubr.bf16.mxu1 %v1231_v35 }
   0xb   :  { %v1220_v26 = vld [vmem:[%s1670_s1 + $0x30] sm:$0xff]   ;;  %v1224_v30 = vld [vmem:[%s1670_s1 + $0x38] sm:$0xff]   ;;  %v1233_v37 = vld [vmem:[%s1671_s0 + $0x2c] ss:$20 sps:$4 sm:$0xff]  }
   0xc   :  { %1027 = vmatpush3.bf16.msra.mxu0 %v1204_v10  ;;  %v1221_v27 = vld [vmem:[%s1670_s1 + $0xb0] sm:$0xff]   ;;  %v1225_v31 = vld [vmem:[%s1670_s1 + $0xb8] sm:$0xff]   ;;  %v1245_v42 = vld [vmem:[%s1670_s1 + $0x108] sm:$0xff]  }
   0xd   :  { %1091 = vmatpush3.bf16.msra.mxu1 %v1205_v11  ;;  %1028 = vmatprep.subr.bf16.mxu0 %v1206_v12  ;;  %v1226_v32 = vld [vmem:[%s1671_s0] ss:$20 sps:$4 sm:$0xff]   ;;  %v1228_v33 = vld [vmem:[%s1671_s0 + $0x4] ss:$20 sps:$4 sm:$0xff]   ;;  %v1229_v34 = vld [vmem:[%s1671_s0 + $0x8] ss:$20 sps:$4 sm:$0xff]  }
   0xe   :  { %1092 = vmatprep.subr.bf16.mxu1 %v1207_v13  ;;  %611 = vmatprep.mubr.bf16.mxu0 %v1228_v33  ;;  %v1235_v38 = vld [vmem:[%s1671_s0 + $0x34] ss:$20 sps:$4 sm:$0xff]   ;;  %v1238_v40 = vld [vmem:[%s1671_s0 + $0x30] ss:$20 sps:$4 sm:$0xff]   ;;  %v1244_v45 = vld [vmem:[%s1671_s0 + $0x58] ss:$20 sps:$4 sm:$0xff]  }
   0xf   :  { %v1237_v39 = vld [vmem:[%s1671_s0 + $0x28] ss:$20 sps:$4 sm:$0xff]   ;;  %v1243_v44 = vld [vmem:[%s1671_s0 + $0x50] ss:$20 sps:$4 sm:$0xff]   ;;  %v1250_v50 = vld [vmem:[%s1671_s0 + $0x78] ss:$20 sps:$4 sm:$0xff]  }
  0x10   :  { %1029 = vmatpush3.bf16.msra.mxu0 %v1208_v14  ;;  %v1239_v41 = vld [vmem:[%s1671_s0 + $0x54] ss:$20 sps:$4 sm:$0xff]   ;;  %v1241_v43 = vld [vmem:[%s1671_s0 + $0x5c] ss:$20 sps:$4 sm:$0xff]   ;;  %v1248_v48 = vld [vmem:[%s1671_s0 + $0x84] ss:$20 sps:$4 sm:$0xff]  }
  0x11   :  { %1093 = vmatpush3.bf16.msra.mxu1 %v1209_v15  ;;  %1030 = vmatprep.subr.bf16.mxu0 %v1210_v16  ;;  %v1258_v46 = vld [vmem:[%s1670_s1 + $0x110] sm:$0xff]   ;;  %v1271_v49 = vld [vmem:[%s1670_s1 + $0x118] sm:$0xff]   ;;  %v1254_v53 = vld [vmem:[%s1671_s0 + $0xac] ss:$20 sps:$4 sm:$0xff]  }
  0x12   :  { %1094 = vmatprep.subr.bf16.mxu1 %v1211_v17  ;;  %v1246_v47 = vld [vmem:[%s1671_s0 + $0x7c] ss:$20 sps:$4 sm:$0xff]   ;;  %v1251_v51 = vld [vmem:[%s1671_s0 + $0x80] ss:$20 sps:$4 sm:$0xff]   ;;  %v1252_v52 = vld [vmem:[%s1671_s0 + $0xa4] ss:$20 sps:$4 sm:$0xff]  }
  0x13   :  { %v1256_v54 = vld [vmem:[%s1671_s0 + $0xa0] ss:$20 sps:$4 sm:$0xff]   ;;  %v1257_v55 = vld [vmem:[%s1671_s0 + $0xa8] ss:$20 sps:$4 sm:$0xff]   ;;  %v1264_v59 = vld [vmem:[%s1671_s0 + $0xd0] ss:$20 sps:$4 sm:$0xff]  }
  0x14   :  { %1031 = vmatpush3.bf16.msra.mxu0 %v1212_v18  ;;  %v1259_v56 = vld [vmem:[%s1671_s0 + $0xcc] ss:$20 sps:$4 sm:$0xff]   ;;  %v1261_v57 = vld [vmem:[%s1671_s0 + $0xd4] ss:$20 sps:$4 sm:$0xff]   ;;  %v1267_v61 = vld [vmem:[%s1671_s0 + $0xfc] ss:$20 sps:$4 sm:$0xff]  }
  0x15   :  { %1095 = vmatpush3.bf16.msra.mxu1 %v1213_v19  ;;  %1032 = vmatprep.subr.bf16.mxu0 %v1214_v20  ;;  %v1263_v58 = vld [vmem:[%s1671_s0 + $0xc8] ss:$20 sps:$4 sm:$0xff]   ;;  %v1269_v62 = vld [vmem:[%s1671_s0 + $0xf0] ss:$20 sps:$4 sm:$0xff]   ;;  %v1270_v63 = vld [vmem:[%s1671_s0 + $0xf8] ss:$20 sps:$4 sm:$0xff]  }
  0x16   :  { %1096 = vmatprep.subr.bf16.mxu1 %v1215_v21  ;;  %v1265_v60 = vld [vmem:[%s1671_s0 + $0xf4] ss:$20 sps:$4 sm:$0xff]   ;;  %v1272_v0 = vld [vmem:[%s1671_s0 + $0x11c] ss:$20 sps:$4 sm:$0xff]   ;;  %v1274_v1 = vld [vmem:[%s1671_s0 + $0x124] ss:$20 sps:$4 sm:$0xff]  }
  0x17   :  { %v1276_v2 = vld [vmem:[%s1671_s0 + $0x118] ss:$20 sps:$4 sm:$0xff]   ;;  %v1277_v3 = vld [vmem:[%s1671_s0 + $0x120] ss:$20 sps:$4 sm:$0xff]   ;;  %v1278_v4 = vld [vmem:[%s1671_s0 + $0x10] ss:$20 sps:$4 sm:$0xff]  }
  0x18   :  { %1033 = vmatpush3.bf16.msra.mxu0 %v1216_v22  ;;  %v1279_v5 = vld [vmem:[%s1671_s0 + $0xb0] ss:$20 sps:$4 sm:$0xff]   ;;  %v1280_v6 = vld [vmem:[%s1671_s0 + $0x38] ss:$20 sps:$4 sm:$0xff]   ;;  %v1282_v8 = vld [vmem:[%s1671_s0 + $0x60] ss:$20 sps:$4 sm:$0xff]  }
  0x19   :  { %1097 = vmatpush3.bf16.msra.mxu1 %v1217_v23  ;;  %1034 = vmatprep.subr.bf16.mxu0 %v1218_v24  ;;  %v1281_v7 = vld [vmem:[%s1671_s0 + $0xd8] ss:$20 sps:$4 sm:$0xff]   ;;  %v1283_v9 = vld [vmem:[%s1671_s0 + $0x100] ss:$20 sps:$4 sm:$0xff]   ;;  %v1284_v10 = vld [vmem:[%s1671_s0 + $0x88] ss:$20 sps:$4 sm:$0xff]  }
  0x1a   :  { %1098 = vmatprep.subr.bf16.mxu1 %v1219_v25  ;;  %v1285_v11 = vld [vmem:[%s1671_s0 + $0x128] ss:$20 sps:$4 sm:$0xff]  }
  0x1c   :  { %1035 = vmatpush3.bf16.msra.mxu0 %v1220_v26 }
  0x1d   :  { %1099 = vmatpush3.bf16.msra.mxu1 %v1221_v27  ;;  %1036 = vmatprep.subr.bf16.mxu0 %v1222_v28 }
  0x1e   :  { %1100 = vmatprep.subr.bf16.mxu1 %v1223_v29 }
  0x20   :  { %1037 = vmatpush3.bf16.msra.mxu0 %v1224_v30 }
  0x21   :  { %1101 = vmatpush3.bf16.msra.mxu1 %v1225_v31  ;;  %1162 = vmatprep.subr.bf16.mxu0 %v1232_v36 }
  0x22   :  { %1186 = vmatprep.subr.bf16.mxu1 %v1232_v36 }
  0x23   :  { %612 = vmatmul.mubr.bf16.vlgmr.msra.gmra.mrb[0].mxu0 %v1226_v32 }
  0x24   :  { %709 = vmatmul.mubr.bf16.vlgmr.msra.gmra.mrb[0].mxu1 %v1229_v34  ;;  %1163 = vmatpush3.bf16.msra.mxu0 %v1232_v36 }
  0x25   :  { %1190 = vmatpush3.bf16.msra.mxu1 %v1232_v36  ;;  %619 = vmatprep.mubr.bf16.mxu0 %v1233_v37 }
  0x26   :  { %716 = vmatprep.mubr.bf16.mxu1 %v1235_v38  ;;  %1164 = vmatprep.subr.bf16.mxu0 %v1245_v42 }
  0x27   :  { %1187 = vmatprep.subr.bf16.mxu1 %v1245_v42 }
  0x28   :  { %1165 = vmatpush3.bf16.msra.mxu0 %v1245_v42 }
  0x29   :  { %1191 = vmatpush3.bf16.msra.mxu1 %v1245_v42  ;;  %1166 = vmatprep.subr.bf16.mxu0 %v1258_v46 }
  0x2a   :  { %1188 = vmatprep.subr.bf16.mxu1 %v1258_v46 }
  0x2b   :  { %620 = vmatmul.mubr.bf16.gmra.mrb[4].mxu0 %v1237_v39 }
  0x2c   :  { %717 = vmatmul.mubr.bf16.gmra.mrb[4].mxu1 %v1238_v40  ;;  %627 = vmatprep.mubr.bf16.mxu0 %v1239_v41 }
  0x2d   :  { %724 = vmatprep.mubr.bf16.mxu1 %v1241_v43  ;;  %1167 = vmatpush3.bf16.msra.mxu0 %v1258_v46 }
  0x2e   :  { %1192 = vmatpush3.bf16.msra.mxu1 %v1258_v46  ;;  %1168 = vmatprep.subr.bf16.mxu0 %v1271_v49 }
  0x2f   :  { %1189 = vmatprep.subr.bf16.mxu1 %v1271_v49 }
  0x31   :  { %1169 = vmatpush3.bf16.msra.mxu0 %v1271_v49 }
  0x32   :  { %1193 = vmatpush3.bf16.msra.mxu1 %v1271_v49 }
  0x33   :  { %628 = vmatmul.mubr.bf16.gmra.mrb[8].mxu0 %v1243_v44 }
  0x34   :  { %725 = vmatmul.mubr.bf16.gmra.mrb[8].mxu1 %v1244_v45  ;;  %635 = vmatprep.mubr.bf16.mxu0 %v1246_v47 }
  0x35   :  { %732 = vmatprep.mubr.bf16.mxu1 %v1248_v48 }
  0x3b   :  { %636 = vmatmul.mubr.bf16.gmra.mrb[12].mxu0 %v1250_v50 }
  0x3c   :  { %733 = vmatmul.mubr.bf16.gmra.mrb[12].mxu1 %v1251_v51  ;;  %643 = vmatprep.mubr.bf16.mxu0 %v1252_v52 }
  0x3d   :  { %740 = vmatprep.mubr.bf16.mxu1 %v1254_v53 }
  0x43   :  { %644 = vmatmul.mubr.bf16.gmra.mrb[16].mxu0 %v1256_v54 }
  0x44   :  { %741 = vmatmul.mubr.bf16.gmra.mrb[16].mxu1 %v1257_v55  ;;  %651 = vmatprep.mubr.bf16.mxu0 %v1259_v56 }
  0x45   :  { %748 = vmatprep.mubr.bf16.mxu1 %v1261_v57 }
  0x4b   :  { %652 = vmatmul.mubr.bf16.gmra.mrb[20].mxu0 %v1263_v58 }
  0x4c   :  { %749 = vmatmul.mubr.bf16.gmra.mrb[20].mxu1 %v1264_v59  ;;  %659 = vmatprep.mubr.bf16.mxu0 %v1265_v60 }
  0x4d   :  { %756 = vmatprep.mubr.bf16.mxu1 %v1267_v61 }
  0x53   :  { %660 = vmatmul.mubr.bf16.gmra.mrb[24].mxu0 %v1269_v62 }
  0x54   :  { %757 = vmatmul.mubr.bf16.gmra.mrb[24].mxu1 %v1270_v63  ;;  %667 = vmatprep.mubr.bf16.mxu0 %v1272_v0 }
  0x55   :  { %764 = vmatprep.mubr.bf16.mxu1 %v1274_v1 }
  0x5b   :  { %668 = vmatmul.mubr.bf16.gmra.mrb[28].mxu0 %v1276_v2 }
  0x5c   :  { %765 = vmatmul.mubr.bf16.gmra.mrb[28].mxu1 %v1277_v3  ;;  %1170 = vmatprep.mubr.msk.bf16.mxu0 %vm554_vm0, %v1278_v4 }
  0x5d   :  { %1178 = vmatprep.mubr.msk.bf16.mxu1 %vm554_vm0, %v1279_v5 }
  0x63   :  { %1171 = vmatmul.mubr.msk.bf16.vlgmr.msra.gmra.mrb[32].mxu0 %vm554_vm0, %v1280_v6 }
  0x64   :  { %1179 = vmatmul.mubr.msk.bf16.vlgmr.msra.gmra.mrb[32].mxu1 %vm554_vm0, %v1281_v7  ;;  %1174 = vmatprep.mubr.msk.bf16.mxu0 %vm554_vm0, %v1282_v8 }
  0x65   :  { %1182 = vmatprep.mubr.msk.bf16.mxu1 %vm554_vm0, %v1283_v9 }
  0x6b   :  { %1175 = vmatmul.mubr.msk.bf16.gmra.mrb[36].mxu0 %vm554_vm0, %v1284_v10 }
  0x6c   :  { %1183 = vmatmul.mubr.msk.bf16.gmra.mrb[36].mxu1 %vm554_vm0, %v1285_v11 }
  0xf6   :  { %v1038_v12 = vpop.f32.mrb[0].mxu0 }
  0xf7   :  { %v1102_v13 = vpop.f32.mrb[0].mxu1  ;;  %v1039_v14 = vpop.f32.mrb[1].mxu0 }
  0xf8   :  { %v1040_v15 = vadd.f32 %v1039_v14, %v1038_v12  ;;  %v1103_v16 = vpop.f32.mrb[1].mxu1  ;;  %v1041_v17 = vpop.f32.mrb[2].mxu0 }
  0xf9   :  { %v1104_v18 = vadd.f32 %v1103_v16, %v1102_v13  ;;  %v1105_v19 = vpop.f32.mrb[2].mxu1  ;;  %v1042_v20 = vpop.f32.mrb[3].mxu0 }
  0xfa   :  { %v1043_v21 = vadd.f32 %v1042_v20, %v1041_v17  ;;  %v1106_v22 = vpop.f32.mrb[3].mxu1 }
  0xfb   :  { %v1107_v23 = vadd.f32 %v1106_v22, %v1105_v19  ;;  %v1547_v24 = vadd.f32 %v1104_v18, %v1040_v15 }
  0xfd   :  { %v1549_v25 = vadd.f32 %v1107_v23, %v1043_v21 }
  0xfe   :  { %v1044_v26 = vpop.f32.mrb[4].mxu0 }
  0xff   :  { %v1108_v27 = vpop.f32.mrb[4].mxu1  ;;  %v1045_v28 = vpop.f32.mrb[5].mxu0 }
 0x100   :  { %v1046_v29 = vadd.f32 %v1045_v28, %v1044_v26  ;;  %v1109_v30 = vpop.f32.mrb[5].mxu1  ;;  %v1047_v31 = vpop.f32.mrb[6].mxu0 }
 0x101   :  { %v1110_v32 = vadd.f32 %v1109_v30, %v1108_v27  ;;  %v1111_v33 = vpop.f32.mrb[6].mxu1  ;;  %v1048_v34 = vpop.f32.mrb[7].mxu0 }
 0x102   :  { %v1049_v35 = vadd.f32 %v1048_v34, %v1047_v31  ;;  %v1112_v36 = vpop.f32.mrb[7].mxu1 }
 0x103   :  { %v1113_v37 = vadd.f32 %v1112_v36, %v1111_v33  ;;  %v1551_v38 = vadd.f32 %v1110_v32, %v1046_v29 }
 0x105   :  { %v1553_v39 = vadd.f32 %v1113_v37, %v1049_v35 }
 0x106   :  { %v1050_v40 = vpop.f32.mrb[8].mxu0 }
 0x107   :  { %v1114_v41 = vpop.f32.mrb[8].mxu1  ;;  %v1051_v42 = vpop.f32.mrb[9].mxu0 }
 0x108   :  { %v1052_v43 = vadd.f32 %v1051_v42, %v1050_v40  ;;  %v1115_v44 = vpop.f32.mrb[9].mxu1  ;;  %v1053_v45 = vpop.f32.mrb[10].mxu0 }
 0x109   :  { %v1116_v46 = vadd.f32 %v1115_v44, %v1114_v41  ;;  %v1117_v47 = vpop.f32.mrb[10].mxu1  ;;  %v1054_v48 = vpop.f32.mrb[11].mxu0 }
 0x10a   :  { %v1055_v49 = vadd.f32 %v1054_v48, %v1053_v45  ;;  %v1118_v50 = vpop.f32.mrb[11].mxu1 }
 0x10b   :  { %v1119_v51 = vadd.f32 %v1118_v50, %v1117_v47  ;;  %v1555_v52 = vadd.f32 %v1116_v46, %v1052_v43 }
 0x10d   :  { %v1557_v53 = vadd.f32 %v1119_v51, %v1055_v49 }
 0x10e   :  { %v1056_v54 = vpop.f32.mrb[12].mxu0 }
 0x10f   :  { %v1120_v55 = vpop.f32.mrb[12].mxu1  ;;  %v1057_v56 = vpop.f32.mrb[13].mxu0 }
 0x110   :  { %v1058_v57 = vadd.f32 %v1057_v56, %v1056_v54  ;;  %v1121_v58 = vpop.f32.mrb[13].mxu1  ;;  %v1059_v59 = vpop.f32.mrb[14].mxu0 }
 0x111   :  { %v1122_v60 = vadd.f32 %v1121_v58, %v1120_v55  ;;  %v1123_v61 = vpop.f32.mrb[14].mxu1  ;;  %v1060_v62 = vpop.f32.mrb[15].mxu0 }
 0x112   :  { %v1061_v63 = vadd.f32 %v1060_v62, %v1059_v59  ;;  %v1124_v0 = vpop.f32.mrb[15].mxu1 }
 0x113   :  { %v1125_v1 = vadd.f32 %v1124_v0, %v1123_v61  ;;  %v1559_v2 = vadd.f32 %v1122_v60, %v1058_v57 }
 0x115   :  { %v1561_v3 = vadd.f32 %v1125_v1, %v1061_v63 }
 0x116   :  { %v1062_v4 = vpop.f32.mrb[16].mxu0 }
 0x117   :  { %v1126_v5 = vpop.f32.mrb[16].mxu1  ;;  %v1063_v6 = vpop.f32.mrb[17].mxu0 }
 0x118   :  { %v1064_v7 = vadd.f32 %v1063_v6, %v1062_v4  ;;  %v1127_v8 = vpop.f32.mrb[17].mxu1  ;;  %v1065_v9 = vpop.f32.mrb[18].mxu0 }
 0x119   :  { %v1128_v10 = vadd.f32 %v1127_v8, %v1126_v5  ;;  %v1129_v11 = vpop.f32.mrb[18].mxu1  ;;  %v1066_v12 = vpop.f32.mrb[19].mxu0  ;;  %v1572_v5 = vld [vmem:[%s1672_s2] ss:$0 sm:$0xff] }
 0x11a   :  { %v1067_v13 = vadd.f32 %v1066_v12, %v1065_v9  ;;  %v1130_v14 = vpop.f32.mrb[19].mxu1  ;;  %v1578_v9 = vld [vmem:[%s1673_s3] ss:$0 sm:$0xff] }
 0x11b   :  { %v1131_v15 = vadd.f32 %v1130_v14, %v1129_v11  ;;  %v743_v16 = vadd.f32 %v1128_v10, %v1064_v7 }
 0x11d   :  { %v1563_v17 = vadd.f32 %v1131_v15, %v1067_v13 }
 0x11e   :  { %v1068_v18 = vpop.f32.mrb[20].mxu0 }
 0x11f   :  { %v1132_v19 = vpop.f32.mrb[20].mxu1  ;;  %v1069_v20 = vpop.f32.mrb[21].mxu0 }
 0x120   :  { %v1070_v21 = vadd.f32 %v1069_v20, %v1068_v18  ;;  %v1133_v22 = vpop.f32.mrb[21].mxu1  ;;  %v1071_v23 = vpop.f32.mrb[22].mxu0 }
 0x121   :  { %v1134_v26 = vadd.f32 %v1133_v22, %v1132_v19  ;;  %v1135_v27 = vpop.f32.mrb[22].mxu1  ;;  %v1072_v28 = vpop.f32.mrb[23].mxu0 }
 0x122   :  { %v1073_v29 = vadd.f32 %v1072_v28, %v1071_v23  ;;  %v1136_v30 = vpop.f32.mrb[23].mxu1 }
 0x123   :  { %v1137_v31 = vadd.f32 %v1136_v30, %v1135_v27  ;;  %v751_v32 = vadd.f32 %v1134_v26, %v1070_v21 }
 0x125   :  { %v754_v33 = vadd.f32 %v1137_v31, %v1073_v29 }
 0x126   :  { %v1074_v34 = vpop.f32.mrb[24].mxu0 }
 0x127   :  { %v1138_v35 = vpop.f32.mrb[24].mxu1  ;;  %v1075_v36 = vpop.f32.mrb[25].mxu0 }
 0x128   :  { %v1076_v37 = vadd.f32 %v1075_v36, %v1074_v34  ;;  %v1139_v40 = vpop.f32.mrb[25].mxu1  ;;  %v1077_v41 = vpop.f32.mrb[26].mxu0 }
 0x129   :  { %v1140_v42 = vadd.f32 %v1139_v40, %v1138_v35  ;;  %v1141_v43 = vpop.f32.mrb[26].mxu1  ;;  %v1078_v44 = vpop.f32.mrb[27].mxu0 }
 0x12a   :  { %v1079_v45 = vadd.f32 %v1078_v44, %v1077_v41  ;;  %v1142_v46 = vpop.f32.mrb[27].mxu1 }
 0x12b   :  { %v1143_v47 = vadd.f32 %v1142_v46, %v1141_v43  ;;  %v1565_v48 = vadd.f32 %v1140_v42, %v1076_v37 }
 0x12d   :  { %v1567_v49 = vadd.f32 %v1143_v47, %v1079_v45 }
 0x12e   :  { %v1080_v50 = vpop.f32.mrb[28].mxu0 }
 0x12f   :  { %v1144_v51 = vpop.f32.mrb[28].mxu1  ;;  %v1081_v54 = vpop.f32.mrb[29].mxu0 }
 0x130   :  { %v1082_v55 = vadd.f32 %v1081_v54, %v1080_v50  ;;  %v1145_v56 = vpop.f32.mrb[29].mxu1  ;;  %v1083_v57 = vpop.f32.mrb[30].mxu0 }
 0x131   :  { %v1146_v58 = vadd.f32 %v1145_v56, %v1144_v51  ;;  %v1147_v59 = vpop.f32.mrb[30].mxu1  ;;  %v1084_v60 = vpop.f32.mrb[31].mxu0 }
 0x132   :  { %v1085_v61 = vadd.f32 %v1084_v60, %v1083_v57  ;;  %v1148_v62 = vpop.f32.mrb[31].mxu1 }
 0x133   :  { %v1149_v63 = vadd.f32 %v1148_v62, %v1147_v59  ;;  %v767_v0 = vadd.f32 %v1146_v58, %v1082_v55 }
 0x135   :  { %v770_v1 = vadd.f32 %v1149_v63, %v1085_v61 }
 0x136   :  { %v1172_v4 = vpop.f32.mrb[32].mxu0 }
 0x137   :  { %v816_v6 = vadd.f32 %v1172_v4, %v1551_v38  ;;  %v1180_v7 = vpop.f32.mrb[32].mxu1  ;;  %v807_v8 = vpop.f32.mrb[33].mxu0 }
 0x138   :  { %v848_v10 = vadd.f32 %v1180_v7, %v751_v32  ;;  %v808_v11 = vadd.f32 %v807_v8, %v1547_v24  ;;  %v839_v12 = vpop.f32.mrb[33].mxu1  ;;  %v1173_v13 = vpop.f32.mrb[34].mxu0 }
 0x139   :  { %v879_v14 = vmul.f32 %v1572_v5, %v816_v6  ;;  %v840_v15 = vadd.f32 %v839_v12, %v743_v16  ;;  %v819_v18 = vadd.f32 %v1173_v13, %v1553_v39  ;;  %v1181_v19 = vpop.f32.mrb[34].mxu1  ;;  %v810_v20 = vpop.f32.mrb[35].mxu0 }
 0x13a   :  { %v887_v38 = vmul.f32 %v1572_v5, %v848_v10  ;;  %v877_v21 = vmul.f32 %v1572_v5, %v808_v11  ;;  %v851_v22 = vadd.f32 %v1181_v19, %v754_v33  ;;  %v811_v23 = vadd.f32 %v810_v20, %v1549_v25  ;;  %v842_v26 = vpop.f32.mrb[35].mxu1 }
 0x13b   :  { %v902_v27 = vadd.f32 %v1578_v9, %v879_v14  ;;  %v885_v24 = vmul.f32 %v1572_v5, %v840_v15  ;;  %v880_v28 = vmul.f32 %v1572_v5, %v819_v18  ;;  %v843_v16 = vadd.f32 %v842_v26, %v1563_v17 }
 0x13c   :  { %v910_v39 = vadd.f32 %v1578_v9, %v887_v38  ;;  %v900_v29 = vadd.f32 %v1578_v9, %v877_v21  ;;  %v888_v30 = vmul.f32 %v1572_v5, %v851_v22  ;;  %v878_v31 = vmul.f32 %v1572_v5, %v811_v23 }
 0x13d   :  { %918 = vst [vmem:[%s1674_s4 + $0x10] sm:$0xff] %v902_v27  ;;  %v908_v25 = vadd.f32 %v1578_v9, %v885_v24  ;;  %v903_v32 = vadd.f32 %v1578_v9, %v880_v28  ;;  %v886_v33 = vmul.f32 %v1572_v5, %v843_v16 }
 0x13e   :  { %926 = vst [vmem:[%s1674_s4 + $0x50] sm:$0xff] %v910_v39  ;;  %916 = vst [vmem:[%s1674_s4] sm:$0xff] %v900_v29  ;;  %v911_v17 = vadd.f32 %v1578_v9, %v888_v30  ;;  %v901_v34 = vadd.f32 %v1578_v9, %v878_v31  ;;  %v1176_v35 = vpop.f32.mrb[36].mxu0 }
 0x13f   :  { %924 = vst [vmem:[%s1674_s4 + $0x40] sm:$0xff] %v908_v25  ;;  %919 = vst [vmem:[%s1674_s4 + $0x18] sm:$0xff] %v903_v32  ;;  %v909_v36 = vadd.f32 %v1578_v9, %v886_v33  ;;  %v832_v37 = vadd.f32 %v1176_v35, %v1559_v2  ;;  %v1184_v40 = vpop.f32.mrb[36].mxu1  ;;  %v823_v41 = vpop.f32.mrb[37].mxu0 }
 0x140   :  { %927 = vst [vmem:[%s1674_s4 + $0x58] sm:$0xff] %v911_v17  ;;  %917 = vst [vmem:[%s1674_s4 + $0x8] sm:$0xff] %v901_v34  ;;  %v864_v42 = vadd.f32 %v1184_v40, %v767_v0  ;;  %v824_v43 = vadd.f32 %v823_v41, %v1555_v52  ;;  %v855_v44 = vpop.f32.mrb[37].mxu1  ;;  %v1177_v45 = vpop.f32.mrb[38].mxu0 }
 0x141   :  { %925 = vst [vmem:[%s1674_s4 + $0x48] sm:$0xff] %v909_v36  ;;  %v883_v2 = vmul.f32 %v1572_v5, %v832_v37  ;;  %v856_v46 = vadd.f32 %v855_v44, %v1565_v48  ;;  %v835_v47 = vadd.f32 %v1177_v45, %v1561_v3  ;;  %v1185_v50 = vpop.f32.mrb[38].mxu1  ;;  %v826_v51 = vpop.f32.mrb[39].mxu0 }
 0x142   :  { %v891_v54 = vmul.f32 %v1572_v5, %v864_v42  ;;  %v881_v55 = vmul.f32 %v1572_v5, %v824_v43  ;;  %v867_v56 = vadd.f32 %v1185_v50, %v770_v1  ;;  %v827_v52 = vadd.f32 %v826_v51, %v1557_v53  ;;  %v858_v57 = vpop.f32.mrb[39].mxu1 }
 0x143   :  { %v906_v58 = vadd.f32 %v1578_v9, %v883_v2  ;;  %v889_v59 = vmul.f32 %v1572_v5, %v856_v46  ;;  %v884_v60 = vmul.f32 %v1572_v5, %v835_v47  ;;  %v859_v48 = vadd.f32 %v858_v57, %v1567_v49 }
 0x144   :  { %v914_v3 = vadd.f32 %v1578_v9, %v891_v54  ;;  %v904_v61 = vadd.f32 %v1578_v9, %v881_v55  ;;  %v892_v62 = vmul.f32 %v1572_v5, %v867_v56  ;;  %v882_v63 = vmul.f32 %v1572_v5, %v827_v52 }
 0x145   :  { %922 = vst [vmem:[%s1674_s4 + $0x30] sm:$0xff] %v906_v58  ;;  %v912_v53 = vadd.f32 %v1578_v9, %v889_v59  ;;  %v907_v0 = vadd.f32 %v1578_v9, %v884_v60  ;;  %v890_v1 = vmul.f32 %v1572_v5, %v859_v48 }
 0x146   :  { %930 = vst [vmem:[%s1674_s4 + $0x70] sm:$0xff] %v914_v3  ;;  %920 = vst [vmem:[%s1674_s4 + $0x20] sm:$0xff] %v904_v61  ;;  %v915_v49 = vadd.f32 %v1578_v9, %v892_v62  ;;  %v905_v4 = vadd.f32 %v1578_v9, %v882_v63 }
 0x147   :  { %928 = vst [vmem:[%s1674_s4 + $0x60] sm:$0xff] %v912_v53  ;;  %923 = vst [vmem:[%s1674_s4 + $0x38] sm:$0xff] %v907_v0  ;;  %v913_v5 = vadd.f32 %v1578_v9, %v890_v1 }
 0x148   :  { %931 = vst [vmem:[%s1674_s4 + $0x78] sm:$0xff] %v915_v49  ;;  %921 = vst [vmem:[%s1674_s4 + $0x28] sm:$0xff] %v905_v4 }
 0x149   :  { %929 = vst [vmem:[%s1674_s4 + $0x68] sm:$0xff] %v913_v5 }

// kernel: _lambda_.9
= control target key start
LH: loop header
LB: loop body
LE: loop exit
PB: predicated region body
PF: predicated region fallthrough
CT: control target
= control target key end

     0   :  { %s2885_s1 = inlined_call_operand.vmem [shape: bf16[1152,128], index: 1, kind: input, shape index: {}]   ;;  %s2886_s0 = inlined_call_operand.vmem [shape: bf16[128,1152], index: 0, kind: input, shape index: {}]   ;;  %s2887_s2 = inlined_call_operand.vmem [shape: f32[1,128], index: 2, kind: input, shape index: {}]   ;;  %s2888_s3 = inlined_call_operand.vmem [shape: f32[1,128], index: 3, kind: input, shape index: {}]   ;;  %s2889_s4 = inlined_call_operand.vmem [shape: f32[128,128], index: 4, kind: output, shape index: {}]  }
   0x1   :  { %v2075_v0 = vld [vmem:[%s2885_s1 + $0x40] sm:$0xff]   ;;  %v2079_v4 = vld [vmem:[%s2885_s1 + $0x48] sm:$0xff]   ;;  %v2083_v8 = vld [vmem:[%s2885_s1 + $0x50] sm:$0xff]  }
   0x2   :  { %v2076_v1 = vld [vmem:[%s2885_s1 + $0xc0] sm:$0xff]   ;;  %1755 = vmatprep.subr.bf16.mxu0 %v2075_v0  ;;  %v2080_v5 = vld [vmem:[%s2885_s1 + $0xc8] sm:$0xff]   ;;  %v2084_v9 = vld [vmem:[%s2885_s1 + $0xd0] sm:$0xff]  }
   0x3   :  { %v2077_v2 = vld [vmem:[%s2885_s1] sm:$0xff]   ;;  %1819 = vmatprep.subr.bf16.mxu1 %v2076_v1  ;;  %v2081_v6 = vld [vmem:[%s2885_s1 + $0x8] sm:$0xff]   ;;  %v2085_v10 = vld [vmem:[%s2885_s1 + $0x10] sm:$0xff]  }
   0x4   :  { %v2078_v3 = vld [vmem:[%s2885_s1 + $0x80] sm:$0xff]   ;;  %1756 = vmatpush3.bf16.msra.mxu0 %v2077_v2  ;;  %v2082_v7 = vld [vmem:[%s2885_s1 + $0x88] sm:$0xff]   ;;  %v2086_v11 = vld [vmem:[%s2885_s1 + $0x90] sm:$0xff]  }
   0x5   :  { %1820 = vmatpush3.bf16.msra.mxu1 %v2078_v3  ;;  %1757 = vmatprep.subr.bf16.mxu0 %v2079_v4  ;;  %v2087_v12 = vld [vmem:[%s2885_s1 + $0x58] sm:$0xff]   ;;  %v2091_v16 = vld [vmem:[%s2885_s1 + $0x60] sm:$0xff]   ;;  %v2095_v20 = vld [vmem:[%s2885_s1 + $0x68] sm:$0xff]  }
   0x6   :  { %1821 = vmatprep.subr.bf16.mxu1 %v2080_v5  ;;  %v2088_v13 = vld [vmem:[%s2885_s1 + $0xd8] sm:$0xff]   ;;  %v2092_v17 = vld [vmem:[%s2885_s1 + $0xe0] sm:$0xff]   ;;  %v2096_v21 = vld [vmem:[%s2885_s1 + $0xe8] sm:$0xff]  }
   0x7   :  { %v2089_v14 = vld [vmem:[%s2885_s1 + $0x18] sm:$0xff]   ;;  %v2093_v18 = vld [vmem:[%s2885_s1 + $0x20] sm:$0xff]   ;;  %v2097_v22 = vld [vmem:[%s2885_s1 + $0x28] sm:$0xff]  }
   0x8   :  { %1758 = vmatpush3.bf16.msra.mxu0 %v2081_v6  ;;  %v2090_v15 = vld [vmem:[%s2885_s1 + $0x98] sm:$0xff]   ;;  %v2094_v19 = vld [vmem:[%s2885_s1 + $0xa0] sm:$0xff]   ;;  %v2098_v23 = vld [vmem:[%s2885_s1 + $0xa8] sm:$0xff]  }
   0x9   :  { %1822 = vmatpush3.bf16.msra.mxu1 %v2082_v7  ;;  %1759 = vmatprep.subr.bf16.mxu0 %v2083_v8  ;;  %v2099_v24 = vld [vmem:[%s2885_s1 + $0x70] sm:$0xff]   ;;  %v2103_v28 = vld [vmem:[%s2885_s1 + $0x78] sm:$0xff]   ;;  %v2107_v32 = vld [vmem:[%s2886_s0] ss:$36 sps:$4 sm:$0xff]  }
   0xa   :  { %1823 = vmatprep.subr.bf16.mxu1 %v2084_v9  ;;  %v2100_v25 = vld [vmem:[%s2885_s1 + $0xf0] sm:$0xff]   ;;  %v2104_v29 = vld [vmem:[%s2885_s1 + $0xf8] sm:$0xff]   ;;  %v2109_v33 = vld [vmem:[%s2886_s0 + $0x4] ss:$36 sps:$4 sm:$0xff]  }
   0xb   :  { %v2101_v26 = vld [vmem:[%s2885_s1 + $0x30] sm:$0xff]   ;;  %v2105_v30 = vld [vmem:[%s2885_s1 + $0x38] sm:$0xff]   ;;  %v2110_v34 = vld [vmem:[%s2886_s0 + $0x8] ss:$36 sps:$4 sm:$0xff]   ;;  %1074 = vmatprep.mubr.bf16.mxu0 %v2109_v33 }
   0xc   :  { %1760 = vmatpush3.bf16.msra.mxu0 %v2085_v10  ;;  %v2102_v27 = vld [vmem:[%s2885_s1 + $0xb0] sm:$0xff]   ;;  %v2106_v31 = vld [vmem:[%s2885_s1 + $0xb8] sm:$0xff]   ;;  %v2113_v36 = vld [vmem:[%s2885_s1 + $0x140] sm:$0xff]  }
   0xd   :  { %1824 = vmatpush3.bf16.msra.mxu1 %v2086_v11  ;;  %1761 = vmatprep.subr.bf16.mxu0 %v2087_v12  ;;  %v2112_v35 = vld [vmem:[%s2886_s0 + $0xc] ss:$36 sps:$4 sm:$0xff]   ;;  %v2114_v37 = vld [vmem:[%s2885_s1 + $0x1c0] sm:$0xff]   ;;  %v2119_v41 = vld [vmem:[%s2886_s0 + $0x54] ss:$36 sps:$4 sm:$0xff]  }
   0xe   :  { %1825 = vmatprep.subr.bf16.mxu1 %v2088_v13  ;;  %1171 = vmatprep.mubr.bf16.mxu1 %v2112_v35  ;;  %v2115_v38 = vld [vmem:[%s2885_s1 + $0x100] sm:$0xff]   ;;  %v2117_v40 = vld [vmem:[%s2886_s0 + $0x4c] ss:$36 sps:$4 sm:$0xff]   ;;  %v2127_v48 = vld [vmem:[%s2886_s0 + $0x94] ss:$36 sps:$4 sm:$0xff]  }
   0xf   :  { %v2116_v39 = vld [vmem:[%s2885_s1 + $0x180] sm:$0xff]   ;;  %v2121_v42 = vld [vmem:[%s2886_s0 + $0x48] ss:$36 sps:$4 sm:$0xff]   ;;  %v2122_v43 = vld [vmem:[%s2886_s0 + $0x50] ss:$36 sps:$4 sm:$0xff]  }
  0x10   :  { %1762 = vmatpush3.bf16.msra.mxu0 %v2089_v14  ;;  %v2123_v44 = vld [vmem:[%s2885_s1 + $0x148] sm:$0xff]   ;;  %v2129_v49 = vld [vmem:[%s2886_s0 + $0x9c] ss:$36 sps:$4 sm:$0xff]   ;;  %v2131_v50 = vld [vmem:[%s2886_s0 + $0x90] ss:$36 sps:$4 sm:$0xff]  }
  0x11   :  { %1826 = vmatpush3.bf16.msra.mxu1 %v2090_v15  ;;  %1763 = vmatprep.subr.bf16.mxu0 %v2091_v16  ;;  %v2124_v45 = vld [vmem:[%s2885_s1 + $0x1c8] sm:$0xff]   ;;  %v2132_v51 = vld [vmem:[%s2886_s0 + $0x98] ss:$36 sps:$4 sm:$0xff]   ;;  %v2133_v52 = vld [vmem:[%s2885_s1 + $0x150] sm:$0xff]  }
  0x12   :  { %1827 = vmatprep.subr.bf16.mxu1 %v2092_v17  ;;  %v2125_v46 = vld [vmem:[%s2885_s1 + $0x108] sm:$0xff]   ;;  %v2134_v53 = vld [vmem:[%s2885_s1 + $0x1d0] sm:$0xff]   ;;  %v2137_v56 = vld [vmem:[%s2886_s0 + $0xdc] ss:$36 sps:$4 sm:$0xff]  }
  0x13   :  { %v2126_v47 = vld [vmem:[%s2885_s1 + $0x188] sm:$0xff]   ;;  %v2135_v54 = vld [vmem:[%s2885_s1 + $0x110] sm:$0xff]   ;;  %v2141_v58 = vld [vmem:[%s2886_s0 + $0xd8] ss:$36 sps:$4 sm:$0xff]  }
  0x14   :  { %1764 = vmatpush3.bf16.msra.mxu0 %v2093_v18  ;;  %v2136_v55 = vld [vmem:[%s2885_s1 + $0x190] sm:$0xff]   ;;  %v2139_v57 = vld [vmem:[%s2886_s0 + $0xe4] ss:$36 sps:$4 sm:$0xff]   ;;  %v2143_v60 = vld [vmem:[%s2885_s1 + $0x158] sm:$0xff]  }
  0x15   :  { %1828 = vmatpush3.bf16.msra.mxu1 %v2094_v19  ;;  %1765 = vmatprep.subr.bf16.mxu0 %v2095_v20  ;;  %v2142_v59 = vld [vmem:[%s2886_s0 + $0xe0] ss:$36 sps:$4 sm:$0xff]   ;;  %v2144_v61 = vld [vmem:[%s2885_s1 + $0x1d8] sm:$0xff]   ;;  %v2149_v1 = vld [vmem:[%s2886_s0 + $0x12c] ss:$36 sps:$4 sm:$0xff]  }
  0x16   :  { %1829 = vmatprep.subr.bf16.mxu1 %v2096_v21  ;;  %v2145_v62 = vld [vmem:[%s2885_s1 + $0x118] sm:$0xff]   ;;  %v2147_v0 = vld [vmem:[%s2886_s0 + $0x124] ss:$36 sps:$4 sm:$0xff]   ;;  %v2157_v8 = vld [vmem:[%s2886_s0 + $0x16c] ss:$36 sps:$4 sm:$0xff]  }
  0x17   :  { %v2146_v63 = vld [vmem:[%s2885_s1 + $0x198] sm:$0xff]   ;;  %v2151_v2 = vld [vmem:[%s2886_s0 + $0x120] ss:$36 sps:$4 sm:$0xff]   ;;  %v2152_v4 = vld [vmem:[%s2886_s0 + $0x128] ss:$36 sps:$4 sm:$0xff]  }
  0x18   :  { %1766 = vmatpush3.bf16.msra.mxu0 %v2097_v22  ;;  %v2153_v3 = vld [vmem:[%s2885_s1 + $0x160] sm:$0xff]   ;;  %v2159_v9 = vld [vmem:[%s2886_s0 + $0x174] ss:$36 sps:$4 sm:$0xff]   ;;  %v2163_v10 = vld [vmem:[%s2885_s1 + $0x168] sm:$0xff]  }
  0x19   :  { %1830 = vmatpush3.bf16.msra.mxu1 %v2098_v23  ;;  %1767 = vmatprep.subr.bf16.mxu0 %v2099_v24  ;;  %v2154_v5 = vld [vmem:[%s2885_s1 + $0x1e0] sm:$0xff]   ;;  %v2164_v11 = vld [vmem:[%s2885_s1 + $0x1e8] sm:$0xff]   ;;  %v2162_v15 = vld [vmem:[%s2886_s0 + $0x170] ss:$36 sps:$4 sm:$0xff]  }
  0x1a   :  { %1831 = vmatprep.subr.bf16.mxu1 %v2100_v25  ;;  %v2155_v6 = vld [vmem:[%s2885_s1 + $0x120] sm:$0xff]   ;;  %v2161_v12 = vld [vmem:[%s2886_s0 + $0x168] ss:$36 sps:$4 sm:$0xff]   ;;  %v2167_v16 = vld [vmem:[%s2886_s0 + $0x1b4] ss:$36 sps:$4 sm:$0xff]  }
  0x1b   :  { %v2156_v7 = vld [vmem:[%s2885_s1 + $0x1a0] sm:$0xff]   ;;  %v2165_v13 = vld [vmem:[%s2885_s1 + $0x128] sm:$0xff]   ;;  %v2173_v18 = vld [vmem:[%s2885_s1 + $0x170] sm:$0xff]  }
  0x1c   :  { %1768 = vmatpush3.bf16.msra.mxu0 %v2101_v26  ;;  %v2166_v14 = vld [vmem:[%s2885_s1 + $0x1a8] sm:$0xff]   ;;  %v2169_v17 = vld [vmem:[%s2886_s0 + $0x1bc] ss:$36 sps:$4 sm:$0xff]   ;;  %v2174_v19 = vld [vmem:[%s2885_s1 + $0x1f0] sm:$0xff]  }
  0x1d   :  { %1832 = vmatpush3.bf16.msra.mxu1 %v2102_v27  ;;  %1769 = vmatprep.subr.bf16.mxu0 %v2103_v28  ;;  %v2175_v20 = vld [vmem:[%s2885_s1 + $0x130] sm:$0xff]   ;;  %v2172_v23 = vld [vmem:[%s2886_s0 + $0x1b8] ss:$36 sps:$4 sm:$0xff]   ;;  %v2179_v25 = vld [vmem:[%s2886_s0 + $0x204] ss:$36 sps:$4 sm:$0xff]  }
  0x1e   :  { %1833 = vmatprep.subr.bf16.mxu1 %v2104_v29  ;;  %v2176_v21 = vld [vmem:[%s2885_s1 + $0x1b0] sm:$0xff]   ;;  %v2177_v24 = vld [vmem:[%s2886_s0 + $0x1fc] ss:$36 sps:$4 sm:$0xff]  }
  0x1f   :  { %v2171_v22 = vld [vmem:[%s2886_s0 + $0x1b0] ss:$36 sps:$4 sm:$0xff]   ;;  %v2183_v26 = vld [vmem:[%s2885_s1 + $0x178] sm:$0xff]  }
  0x20   :  { %1770 = vmatpush3.bf16.msra.mxu0 %v2105_v30  ;;  %v2184_v27 = vld [vmem:[%s2885_s1 + $0x1f8] sm:$0xff]   ;;  %v2187_v35 = vld [vmem:[%s2886_s0 + $0x10] ss:$36 sps:$4 sm:$0xff]  }
  0x21   :  { %1834 = vmatpush3.bf16.msra.mxu1 %v2106_v31  ;;  %1883 = vmatprep.subr.bf16.mxu0 %v2113_v36  ;;  %v2185_v28 = vld [vmem:[%s2885_s1 + $0x138] sm:$0xff]   ;;  %v2182_v31 = vld [vmem:[%s2886_s0 + $0x200] ss:$36 sps:$4 sm:$0xff]  }
  0x22   :  { %1947 = vmatprep.subr.bf16.mxu1 %v2114_v37  ;;  %v2186_v29 = vld [vmem:[%s2885_s1 + $0x1b8] sm:$0xff]  }
  0x23   :  { %1075 = vmatmul.mubr.bf16.vlgmr.msra.gmra.mrb[0].mxu0 %v2107_v32  ;;  %v2181_v30 = vld [vmem:[%s2886_s0 + $0x1f8] ss:$36 sps:$4 sm:$0xff]   ;;  %v2193_v32 = vld [vmem:[%s2885_s1 + $0x200] sm:$0xff]  }
  0x24   :  { %1172 = vmatmul.mubr.bf16.vlgmr.msra.gmra.mrb[0].mxu1 %v2110_v34  ;;  %1884 = vmatpush3.bf16.msra.mxu0 %v2115_v38  ;;  %v2189_v33 = vld [vmem:[%s2886_s0 + $0x14] ss:$36 sps:$4 sm:$0xff]   ;;  %v2192_v34 = vld [vmem:[%s2886_s0 + $0x1c] ss:$36 sps:$4 sm:$0xff]   ;;  %v2196_v38 = vld [vmem:[%s2886_s0 + $0x64] ss:$36 sps:$4 sm:$0xff]  }
  0x25   :  { %1948 = vmatpush3.bf16.msra.mxu1 %v2116_v39  ;;  %1082 = vmatprep.mubr.bf16.mxu0 %v2117_v40  ;;  %v2190_v36 = vld [vmem:[%s2886_s0 + $0x18] ss:$36 sps:$4 sm:$0xff]   ;;  %v2200_v39 = vld [vmem:[%s2885_s1 + $0x208] sm:$0xff]   ;;  %v2207_v40 = vld [vmem:[%s2885_s1 + $0x210] sm:$0xff]  }
  0x26   :  { %1179 = vmatprep.mubr.bf16.mxu1 %v2119_v41  ;;  %1885 = vmatprep.subr.bf16.mxu0 %v2123_v44  ;;  %v2194_v37 = vld [vmem:[%s2886_s0 + $0x5c] ss:$36 sps:$4 sm:$0xff]   ;;  %v2203_v44 = vld [vmem:[%s2886_s0 + $0xac] ss:$36 sps:$4 sm:$0xff]  }
  0x27   :  { %1949 = vmatprep.subr.bf16.mxu1 %v2124_v45  ;;  %v2198_v41 = vld [vmem:[%s2886_s0 + $0x58] ss:$36 sps:$4 sm:$0xff]  }
  0x28   :  { %1886 = vmatpush3.bf16.msra.mxu0 %v2125_v46  ;;  %v2214_v45 = vld [vmem:[%s2885_s1 + $0x218] sm:$0xff]   ;;  %v2221_v46 = vld [vmem:[%s2885_s1 + $0x220] sm:$0xff]  }
  0x29   :  { %1950 = vmatpush3.bf16.msra.mxu1 %v2126_v47  ;;  %1887 = vmatprep.subr.bf16.mxu0 %v2133_v52  ;;  %v2205_v47 = vld [vmem:[%s2886_s0 + $0xa0] ss:$36 sps:$4 sm:$0xff]   ;;  %v2212_v52 = vld [vmem:[%s2886_s0 + $0xe8] ss:$36 sps:$4 sm:$0xff]  }
  0x2a   :  { %1951 = vmatprep.subr.bf16.mxu1 %v2134_v53  ;;  %v2235_v53 = vld [vmem:[%s2885_s1 + $0x230] sm:$0xff]  }
  0x2b   :  { %1083 = vmatmul.mubr.bf16.gmra.mrb[4].mxu0 %v2121_v42  ;;  %v2199_v42 = vld [vmem:[%s2886_s0 + $0x60] ss:$36 sps:$4 sm:$0xff]  }
  0x2c   :  { %1180 = vmatmul.mubr.bf16.gmra.mrb[4].mxu1 %v2122_v43  ;;  %1090 = vmatprep.mubr.bf16.mxu0 %v2127_v48  ;;  %v2201_v43 = vld [vmem:[%s2886_s0 + $0xa4] ss:$36 sps:$4 sm:$0xff]  }
  0x2d   :  { %1187 = vmatprep.mubr.bf16.mxu1 %v2129_v49  ;;  %1888 = vmatpush3.bf16.msra.mxu0 %v2135_v54  ;;  %v2206_v48 = vld [vmem:[%s2886_s0 + $0xa8] ss:$36 sps:$4 sm:$0xff]   ;;  %v2213_v54 = vld [vmem:[%s2886_s0 + $0xf0] ss:$36 sps:$4 sm:$0xff]  }
  0x2e   :  { %1952 = vmatpush3.bf16.msra.mxu1 %v2136_v55  ;;  %1889 = vmatprep.subr.bf16.mxu0 %v2143_v60  ;;  %v2208_v49 = vld [vmem:[%s2886_s0 + $0xec] ss:$36 sps:$4 sm:$0xff]   ;;  %v2215_v55 = vld [vmem:[%s2886_s0 + $0x134] ss:$36 sps:$4 sm:$0xff]   ;;  %v2222_v60 = vld [vmem:[%s2886_s0 + $0x17c] ss:$36 sps:$4 sm:$0xff]  }
  0x2f   :  { %1953 = vmatprep.subr.bf16.mxu1 %v2144_v61  ;;  %v2224_v61 = vld [vmem:[%s2886_s0 + $0x184] ss:$36 sps:$4 sm:$0xff]  }
  0x31   :  { %1890 = vmatpush3.bf16.msra.mxu0 %v2145_v62  ;;  %v2226_v62 = vld [vmem:[%s2886_s0 + $0x178] ss:$36 sps:$4 sm:$0xff]  }
  0x32   :  { %1954 = vmatpush3.bf16.msra.mxu1 %v2146_v63  ;;  %1891 = vmatprep.subr.bf16.mxu0 %v2153_v3  ;;  %v2227_v63 = vld [vmem:[%s2886_s0 + $0x180] ss:$36 sps:$4 sm:$0xff]   ;;  %v2234_v3 = vld [vmem:[%s2886_s0 + $0x1c8] ss:$36 sps:$4 sm:$0xff]  }
  0x33   :  { %1091 = vmatmul.mubr.bf16.gmra.mrb[8].mxu0 %v2131_v50  ;;  %1955 = vmatprep.subr.bf16.mxu1 %v2154_v5  ;;  %v2210_v50 = vld [vmem:[%s2886_s0 + $0xf4] ss:$36 sps:$4 sm:$0xff]  }
  0x34   :  { %1188 = vmatmul.mubr.bf16.gmra.mrb[8].mxu1 %v2132_v51  ;;  %1098 = vmatprep.mubr.bf16.mxu0 %v2137_v56  ;;  %v2228_v51 = vld [vmem:[%s2885_s1 + $0x228] sm:$0xff]   ;;  %v2217_v56 = vld [vmem:[%s2886_s0 + $0x13c] ss:$36 sps:$4 sm:$0xff]   ;;  %v2238_v5 = vld [vmem:[%s2886_s0 + $0x214] ss:$36 sps:$4 sm:$0xff]  }
  0x35   :  { %1195 = vmatprep.mubr.bf16.mxu1 %v2139_v57  ;;  %1892 = vmatpush3.bf16.msra.mxu0 %v2155_v6  ;;  %v2242_v57 = vld [vmem:[%s2885_s1 + $0x238] sm:$0xff]   ;;  %v2240_v6 = vld [vmem:[%s2886_s0 + $0x208] ss:$36 sps:$4 sm:$0xff]  }
  0x36   :  { %1956 = vmatpush3.bf16.msra.mxu1 %v2156_v7  ;;  %1893 = vmatprep.subr.bf16.mxu0 %v2163_v10  ;;  %v2241_v7 = vld [vmem:[%s2886_s0 + $0x210] ss:$36 sps:$4 sm:$0xff]   ;;  %v2245_v10 = vld [vmem:[%s2886_s0 + $0x68] ss:$36 sps:$4 sm:$0xff]  }
  0x37   :  { %1957 = vmatprep.subr.bf16.mxu1 %v2164_v11  ;;  %v2246_v11 = vld [vmem:[%s2886_s0 + $0x188] ss:$36 sps:$4 sm:$0xff]  }
  0x39   :  { %1894 = vmatpush3.bf16.msra.mxu0 %v2165_v13  ;;  %v2248_v13 = vld [vmem:[%s2886_s0 + $0x1d0] ss:$36 sps:$4 sm:$0xff]  }
  0x3a   :  { %1958 = vmatpush3.bf16.msra.mxu1 %v2166_v14  ;;  %1895 = vmatprep.subr.bf16.mxu0 %v2173_v18  ;;  %v2249_v14 = vld [vmem:[%s2886_s0 + $0xf8] ss:$36 sps:$4 sm:$0xff]  }
  0x3b   :  { %1099 = vmatmul.mubr.bf16.gmra.mrb[12].mxu0 %v2141_v58  ;;  %1959 = vmatprep.subr.bf16.mxu1 %v2174_v19  ;;  %v2219_v58 = vld [vmem:[%s2886_s0 + $0x130] ss:$36 sps:$4 sm:$0xff]  }
  0x3c   :  { %1196 = vmatmul.mubr.bf16.gmra.mrb[12].mxu1 %v2142_v59  ;;  %1106 = vmatprep.mubr.bf16.mxu0 %v2147_v0  ;;  %v2220_v59 = vld [vmem:[%s2886_s0 + $0x138] ss:$36 sps:$4 sm:$0xff]   ;;  %v2229_v0 = vld [vmem:[%s2886_s0 + $0x1c4] ss:$36 sps:$4 sm:$0xff]  }
  0x3d   :  { %1203 = vmatprep.mubr.bf16.mxu1 %v2149_v1  ;;  %1896 = vmatpush3.bf16.msra.mxu0 %v2175_v20  ;;  %v2231_v1 = vld [vmem:[%s2886_s0 + $0x1cc] ss:$36 sps:$4 sm:$0xff]  }
  0x3e   :  { %1960 = vmatpush3.bf16.msra.mxu1 %v2176_v21  ;;  %1897 = vmatprep.subr.bf16.mxu0 %v2183_v26 }
  0x3f   :  { %1961 = vmatprep.subr.bf16.mxu1 %v2184_v27 }
  0x41   :  { %1898 = vmatpush3.bf16.msra.mxu0 %v2185_v28 }
  0x42   :  { %1962 = vmatpush3.bf16.msra.mxu1 %v2186_v29  ;;  %2027 = vmatprep.subr.bf16.mxu0 %v2193_v32 }
  0x43   :  { %1107 = vmatmul.mubr.bf16.gmra.mrb[16].mxu0 %v2151_v2  ;;  %2059 = vmatprep.subr.bf16.mxu1 %v2193_v32  ;;  %v2233_v2 = vld [vmem:[%s2886_s0 + $0x1c0] ss:$36 sps:$4 sm:$0xff]  }
  0x44   :  { %1204 = vmatmul.mubr.bf16.gmra.mrb[16].mxu1 %v2152_v4  ;;  %1114 = vmatprep.mubr.bf16.mxu0 %v2157_v8  ;;  %v2236_v4 = vld [vmem:[%s2886_s0 + $0x20c] ss:$36 sps:$4 sm:$0xff]   ;;  %v2243_v8 = vld [vmem:[%s2886_s0 + $0x20] ss:$36 sps:$4 sm:$0xff]  }
  0x45   :  { %1211 = vmatprep.mubr.bf16.mxu1 %v2159_v9  ;;  %v2244_v9 = vld [vmem:[%s2886_s0 + $0x140] ss:$36 sps:$4 sm:$0xff]  }
  0x4b   :  { %1115 = vmatmul.mubr.bf16.gmra.mrb[20].mxu0 %v2161_v12  ;;  %v2247_v12 = vld [vmem:[%s2886_s0 + $0xb0] ss:$36 sps:$4 sm:$0xff]  }
  0x4c   :  { %1212 = vmatmul.mubr.bf16.gmra.mrb[20].mxu1 %v2162_v15  ;;  %1122 = vmatprep.mubr.bf16.mxu0 %v2167_v16  ;;  %v2250_v15 = vld [vmem:[%s2886_s0 + $0x218] ss:$36 sps:$4 sm:$0xff]  }
  0x4d   :  { %1219 = vmatprep.mubr.bf16.mxu1 %v2169_v17 }
  0x53   :  { %1123 = vmatmul.mubr.bf16.gmra.mrb[24].mxu0 %v2171_v22 }
  0x54   :  { %1220 = vmatmul.mubr.bf16.gmra.mrb[24].mxu1 %v2172_v23  ;;  %1130 = vmatprep.mubr.bf16.mxu0 %v2177_v24 }
  0x55   :  { %1227 = vmatprep.mubr.bf16.mxu1 %v2179_v25 }
  0x5b   :  { %1131 = vmatmul.mubr.bf16.gmra.mrb[28].mxu0 %v2181_v30 }
  0x5c   :  { %1228 = vmatmul.mubr.bf16.gmra.mrb[28].mxu1 %v2182_v31  ;;  %1268 = vmatprep.mubr.bf16.mxu0 %v2189_v33 }
  0x5d   :  { %1365 = vmatprep.mubr.bf16.mxu1 %v2192_v34 }
  0x63   :  { %1269 = vmatmul.mubr.bf16.vlgmr.msra.gmra.mrb[32].mxu0 %v2187_v35 }
  0x64   :  { %1366 = vmatmul.mubr.bf16.vlgmr.msra.gmra.mrb[32].mxu1 %v2190_v36  ;;  %2028 = vmatpush3.bf16.msra.mxu0 %v2193_v32 }
  0x65   :  { %2067 = vmatpush3.bf16.msra.mxu1 %v2193_v32  ;;  %1276 = vmatprep.mubr.bf16.mxu0 %v2194_v37 }
  0x66   :  { %1373 = vmatprep.mubr.bf16.mxu1 %v2196_v38  ;;  %2029 = vmatprep.subr.bf16.mxu0 %v2200_v39 }
  0x67   :  { %2060 = vmatprep.subr.bf16.mxu1 %v2200_v39 }
  0x68   :  { %2030 = vmatpush3.bf16.msra.mxu0 %v2200_v39 }
  0x69   :  { %2068 = vmatpush3.bf16.msra.mxu1 %v2200_v39  ;;  %2031 = vmatprep.subr.bf16.mxu0 %v2207_v40 }
  0x6a   :  { %2061 = vmatprep.subr.bf16.mxu1 %v2207_v40 }
  0x6b   :  { %1277 = vmatmul.mubr.bf16.gmra.mrb[36].mxu0 %v2198_v41 }
  0x6c   :  { %1374 = vmatmul.mubr.bf16.gmra.mrb[36].mxu1 %v2199_v42  ;;  %1284 = vmatprep.mubr.bf16.mxu0 %v2201_v43 }
  0x6d   :  { %1381 = vmatprep.mubr.bf16.mxu1 %v2203_v44  ;;  %2032 = vmatpush3.bf16.msra.mxu0 %v2207_v40 }
  0x6e   :  { %2069 = vmatpush3.bf16.msra.mxu1 %v2207_v40  ;;  %2033 = vmatprep.subr.bf16.mxu0 %v2214_v45 }
  0x6f   :  { %2062 = vmatprep.subr.bf16.mxu1 %v2214_v45 }
  0x71   :  { %2034 = vmatpush3.bf16.msra.mxu0 %v2214_v45 }
  0x72   :  { %2070 = vmatpush3.bf16.msra.mxu1 %v2214_v45  ;;  %2035 = vmatprep.subr.bf16.mxu0 %v2221_v46 }
  0x73   :  { %1285 = vmatmul.mubr.bf16.gmra.mrb[40].mxu0 %v2205_v47  ;;  %2063 = vmatprep.subr.bf16.mxu1 %v2221_v46 }
  0x74   :  { %1382 = vmatmul.mubr.bf16.gmra.mrb[40].mxu1 %v2206_v48  ;;  %1292 = vmatprep.mubr.bf16.mxu0 %v2208_v49 }
  0x75   :  { %1389 = vmatprep.mubr.bf16.mxu1 %v2210_v50  ;;  %2036 = vmatpush3.bf16.msra.mxu0 %v2221_v46 }
  0x76   :  { %2071 = vmatpush3.bf16.msra.mxu1 %v2221_v46  ;;  %2037 = vmatprep.subr.bf16.mxu0 %v2228_v51 }
  0x77   :  { %2064 = vmatprep.subr.bf16.mxu1 %v2228_v51 }
  0x79   :  { %2038 = vmatpush3.bf16.msra.mxu0 %v2228_v51 }
  0x7a   :  { %2072 = vmatpush3.bf16.msra.mxu1 %v2228_v51  ;;  %2039 = vmatprep.subr.bf16.mxu0 %v2235_v53 }
  0x7b   :  { %1293 = vmatmul.mubr.bf16.gmra.mrb[44].mxu0 %v2212_v52  ;;  %2065 = vmatprep.subr.bf16.mxu1 %v2235_v53 }
  0x7c   :  { %1390 = vmatmul.mubr.bf16.gmra.mrb[44].mxu1 %v2213_v54  ;;  %1300 = vmatprep.mubr.bf16.mxu0 %v2215_v55 }
  0x7d   :  { %1397 = vmatprep.mubr.bf16.mxu1 %v2217_v56  ;;  %2040 = vmatpush3.bf16.msra.mxu0 %v2235_v53 }
  0x7e   :  { %2073 = vmatpush3.bf16.msra.mxu1 %v2235_v53  ;;  %2041 = vmatprep.subr.bf16.mxu0 %v2242_v57 }
  0x7f   :  { %2066 = vmatprep.subr.bf16.mxu1 %v2242_v57 }
  0x81   :  { %2042 = vmatpush3.bf16.msra.mxu0 %v2242_v57 }
  0x82   :  { %2074 = vmatpush3.bf16.msra.mxu1 %v2242_v57 }
  0x83   :  { %1301 = vmatmul.mubr.bf16.gmra.mrb[48].mxu0 %v2219_v58 }
  0x84   :  { %1398 = vmatmul.mubr.bf16.gmra.mrb[48].mxu1 %v2220_v59  ;;  %1308 = vmatprep.mubr.bf16.mxu0 %v2222_v60 }
  0x85   :  { %1405 = vmatprep.mubr.bf16.mxu1 %v2224_v61 }
  0x8b   :  { %1309 = vmatmul.mubr.bf16.gmra.mrb[52].mxu0 %v2226_v62 }
  0x8c   :  { %1406 = vmatmul.mubr.bf16.gmra.mrb[52].mxu1 %v2227_v63  ;;  %1316 = vmatprep.mubr.bf16.mxu0 %v2229_v0 }
  0x8d   :  { %1413 = vmatprep.mubr.bf16.mxu1 %v2231_v1 }
  0x93   :  { %1317 = vmatmul.mubr.bf16.gmra.mrb[56].mxu0 %v2233_v2 }
  0x94   :  { %1414 = vmatmul.mubr.bf16.gmra.mrb[56].mxu1 %v2234_v3  ;;  %1324 = vmatprep.mubr.bf16.mxu0 %v2236_v4 }
  0x95   :  { %1421 = vmatprep.mubr.bf16.mxu1 %v2238_v5 }
  0x9b   :  { %1325 = vmatmul.mubr.bf16.gmra.mrb[60].mxu0 %v2240_v6 }
  0x9c   :  { %1422 = vmatmul.mubr.bf16.gmra.mrb[60].mxu1 %v2241_v7  ;;  %2043 = vmatprep.mubr.bf16.mxu0 %v2243_v8 }
  0x9d   :  { %2051 = vmatprep.mubr.bf16.mxu1 %v2244_v9 }
  0xa3   :  { %2044 = vmatmul.mubr.bf16.vlgmr.msra.gmra.mrb[64].mxu0 %v2245_v10 }
  0xa4   :  { %2052 = vmatmul.mubr.bf16.vlgmr.msra.gmra.mrb[64].mxu1 %v2246_v11  ;;  %2047 = vmatprep.mubr.bf16.mxu0 %v2247_v12 }
  0xa5   :  { %2055 = vmatprep.mubr.bf16.mxu1 %v2248_v13 }
  0xab   :  { %2048 = vmatmul.mubr.bf16.gmra.mrb[68].mxu0 %v2249_v14 }
  0xac   :  { %2056 = vmatmul.mubr.bf16.gmra.mrb[68].mxu1 %v2250_v15 }
  0xf6   :  { %v1771_v16 = vpop.f32.mrb[0].mxu0 }
  0xf7   :  { %v1835_v17 = vpop.f32.mrb[0].mxu1  ;;  %v1772_v18 = vpop.f32.mrb[1].mxu0 }
  0xf8   :  { %v1773_v19 = vadd.f32 %v1772_v18, %v1771_v16  ;;  %v1836_v20 = vpop.f32.mrb[1].mxu1  ;;  %v1774_v21 = vpop.f32.mrb[2].mxu0 }
  0xf9   :  { %v1837_v22 = vadd.f32 %v1836_v20, %v1835_v17  ;;  %v1838_v23 = vpop.f32.mrb[2].mxu1  ;;  %v1775_v24 = vpop.f32.mrb[3].mxu0 }
  0xfa   :  { %v1776_v25 = vadd.f32 %v1775_v24, %v1774_v21  ;;  %v1839_v26 = vpop.f32.mrb[3].mxu1 }
  0xfb   :  { %v2708_v27 = vadd.f32 %v1837_v22, %v1773_v19  ;;  %v1840_v28 = vadd.f32 %v1839_v26, %v1838_v23 }
  0xfd   :  { %v2710_v29 = vadd.f32 %v1840_v28, %v1776_v25 }
  0xfe   :  { %v1777_v30 = vpop.f32.mrb[4].mxu0 }
  0xff   :  { %v1841_v31 = vpop.f32.mrb[4].mxu1  ;;  %v1778_v32 = vpop.f32.mrb[5].mxu0 }
 0x100   :  { %v1779_v33 = vadd.f32 %v1778_v32, %v1777_v30  ;;  %v1842_v34 = vpop.f32.mrb[5].mxu1  ;;  %v1780_v35 = vpop.f32.mrb[6].mxu0 }
 0x101   :  { %v1843_v36 = vadd.f32 %v1842_v34, %v1841_v31  ;;  %v1844_v37 = vpop.f32.mrb[6].mxu1  ;;  %v1781_v38 = vpop.f32.mrb[7].mxu0 }
 0x102   :  { %v1782_v39 = vadd.f32 %v1781_v38, %v1780_v35  ;;  %v1845_v40 = vpop.f32.mrb[7].mxu1 }
 0x103   :  { %v2712_v41 = vadd.f32 %v1843_v36, %v1779_v33  ;;  %v1846_v42 = vadd.f32 %v1845_v40, %v1844_v37 }
 0x105   :  { %v2714_v43 = vadd.f32 %v1846_v42, %v1782_v39 }
 0x106   :  { %v1783_v44 = vpop.f32.mrb[8].mxu0 }
 0x107   :  { %v1847_v45 = vpop.f32.mrb[8].mxu1  ;;  %v1784_v46 = vpop.f32.mrb[9].mxu0 }
 0x108   :  { %v1785_v47 = vadd.f32 %v1784_v46, %v1783_v44  ;;  %v1848_v48 = vpop.f32.mrb[9].mxu1  ;;  %v1786_v49 = vpop.f32.mrb[10].mxu0 }
 0x109   :  { %v1849_v50 = vadd.f32 %v1848_v48, %v1847_v45  ;;  %v1850_v51 = vpop.f32.mrb[10].mxu1  ;;  %v1787_v52 = vpop.f32.mrb[11].mxu0 }
 0x10a   :  { %v1788_v53 = vadd.f32 %v1787_v52, %v1786_v49  ;;  %v1851_v54 = vpop.f32.mrb[11].mxu1 }
 0x10b   :  { %v2716_v55 = vadd.f32 %v1849_v50, %v1785_v47  ;;  %v1852_v56 = vadd.f32 %v1851_v54, %v1850_v51 }
 0x10d   :  { %v2718_v57 = vadd.f32 %v1852_v56, %v1788_v53 }
 0x10e   :  { %v1789_v58 = vpop.f32.mrb[12].mxu0 }
 0x10f   :  { %v1853_v59 = vpop.f32.mrb[12].mxu1  ;;  %v1790_v60 = vpop.f32.mrb[13].mxu0 }
 0x110   :  { %v1791_v61 = vadd.f32 %v1790_v60, %v1789_v58  ;;  %v1854_v62 = vpop.f32.mrb[13].mxu1  ;;  %v1792_v63 = vpop.f32.mrb[14].mxu0 }
 0x111   :  { %v1855_v0 = vadd.f32 %v1854_v62, %v1853_v59  ;;  %v1856_v1 = vpop.f32.mrb[14].mxu1  ;;  %v1793_v2 = vpop.f32.mrb[15].mxu0 }
 0x112   :  { %v1794_v3 = vadd.f32 %v1793_v2, %v1792_v63  ;;  %v1857_v4 = vpop.f32.mrb[15].mxu1 }
 0x113   :  { %v2720_v5 = vadd.f32 %v1855_v0, %v1791_v61  ;;  %v1858_v6 = vadd.f32 %v1857_v4, %v1856_v1 }
 0x115   :  { %v2722_v7 = vadd.f32 %v1858_v6, %v1794_v3 }
 0x116   :  { %v1795_v8 = vpop.f32.mrb[16].mxu0 }
 0x117   :  { %v1859_v9 = vpop.f32.mrb[16].mxu1  ;;  %v1796_v10 = vpop.f32.mrb[17].mxu0 }
 0x118   :  { %v1797_v11 = vadd.f32 %v1796_v10, %v1795_v8  ;;  %v1860_v12 = vpop.f32.mrb[17].mxu1  ;;  %v1798_v13 = vpop.f32.mrb[18].mxu0 }
 0x119   :  { %v1861_v14 = vadd.f32 %v1860_v12, %v1859_v9  ;;  %v1862_v15 = vpop.f32.mrb[18].mxu1  ;;  %v1799_v16 = vpop.f32.mrb[19].mxu0 }
 0x11a   :  { %v1800_v17 = vadd.f32 %v1799_v16, %v1798_v13  ;;  %v1863_v18 = vpop.f32.mrb[19].mxu1 }
 0x11b   :  { %v2724_v19 = vadd.f32 %v1861_v14, %v1797_v11  ;;  %v1864_v20 = vadd.f32 %v1863_v18, %v1862_v15 }
 0x11d   :  { %v2726_v21 = vadd.f32 %v1864_v20, %v1800_v17 }
 0x11e   :  { %v1801_v22 = vpop.f32.mrb[20].mxu0 }
 0x11f   :  { %v1865_v23 = vpop.f32.mrb[20].mxu1  ;;  %v1802_v24 = vpop.f32.mrb[21].mxu0 }
 0x120   :  { %v1803_v25 = vadd.f32 %v1802_v24, %v1801_v22  ;;  %v1866_v26 = vpop.f32.mrb[21].mxu1  ;;  %v1804_v28 = vpop.f32.mrb[22].mxu0 }
 0x121   :  { %v1867_v30 = vadd.f32 %v1866_v26, %v1865_v23  ;;  %v1868_v31 = vpop.f32.mrb[22].mxu1  ;;  %v1805_v32 = vpop.f32.mrb[23].mxu0 }
 0x122   :  { %v1806_v33 = vadd.f32 %v1805_v32, %v1804_v28  ;;  %v1869_v34 = vpop.f32.mrb[23].mxu1 }
 0x123   :  { %v2728_v35 = vadd.f32 %v1867_v30, %v1803_v25  ;;  %v1870_v36 = vadd.f32 %v1869_v34, %v1868_v31 }
 0x125   :  { %v2730_v37 = vadd.f32 %v1870_v36, %v1806_v33 }
 0x126   :  { %v1807_v38 = vpop.f32.mrb[24].mxu0 }
 0x127   :  { %v1871_v39 = vpop.f32.mrb[24].mxu1  ;;  %v1808_v40 = vpop.f32.mrb[25].mxu0 }
 0x128   :  { %v1809_v42 = vadd.f32 %v1808_v40, %v1807_v38  ;;  %v1872_v44 = vpop.f32.mrb[25].mxu1  ;;  %v1810_v45 = vpop.f32.mrb[26].mxu0 }
 0x129   :  { %v1873_v46 = vadd.f32 %v1872_v44, %v1871_v39  ;;  %v1874_v47 = vpop.f32.mrb[26].mxu1  ;;  %v1811_v48 = vpop.f32.mrb[27].mxu0 }
 0x12a   :  { %v1812_v49 = vadd.f32 %v1811_v48, %v1810_v45  ;;  %v1875_v50 = vpop.f32.mrb[27].mxu1 }
 0x12b   :  { %v2732_v51 = vadd.f32 %v1873_v46, %v1809_v42  ;;  %v1876_v52 = vadd.f32 %v1875_v50, %v1874_v47 }
 0x12d   :  { %v2734_v53 = vadd.f32 %v1876_v52, %v1812_v49 }
 0x12e   :  { %v1813_v54 = vpop.f32.mrb[28].mxu0 }
 0x12f   :  { %v1877_v56 = vpop.f32.mrb[28].mxu1  ;;  %v1814_v58 = vpop.f32.mrb[29].mxu0 }
 0x130   :  { %v1815_v59 = vadd.f32 %v1814_v58, %v1813_v54  ;;  %v1878_v60 = vpop.f32.mrb[29].mxu1  ;;  %v1816_v61 = vpop.f32.mrb[30].mxu0 }
 0x131   :  { %v1879_v62 = vadd.f32 %v1878_v60, %v1877_v56  ;;  %v1880_v63 = vpop.f32.mrb[30].mxu1  ;;  %v1817_v0 = vpop.f32.mrb[31].mxu0 }
 0x132   :  { %v1818_v1 = vadd.f32 %v1817_v0, %v1816_v61  ;;  %v1881_v2 = vpop.f32.mrb[31].mxu1 }
 0x133   :  { %v2736_v3 = vadd.f32 %v1879_v62, %v1815_v59  ;;  %v1882_v4 = vadd.f32 %v1881_v2, %v1880_v63 }
 0x135   :  { %v2738_v6 = vadd.f32 %v1882_v4, %v1818_v1 }
 0x136   :  { %v1899_v8 = vpop.f32.mrb[32].mxu0 }
 0x137   :  { %v1963_v9 = vpop.f32.mrb[32].mxu1  ;;  %v1900_v10 = vpop.f32.mrb[33].mxu0 }
 0x138   :  { %v1901_v11 = vadd.f32 %v1900_v10, %v1899_v8  ;;  %v1964_v12 = vpop.f32.mrb[33].mxu1  ;;  %v1902_v13 = vpop.f32.mrb[34].mxu0 }
 0x139   :  { %v1965_v14 = vadd.f32 %v1964_v12, %v1963_v9  ;;  %v1966_v15 = vpop.f32.mrb[34].mxu1  ;;  %v1903_v16 = vpop.f32.mrb[35].mxu0 }
 0x13a   :  { %v1271_v17 = vadd.f32 %v1901_v11, %v2708_v27  ;;  %v1904_v18 = vadd.f32 %v1903_v16, %v1902_v13  ;;  %v1967_v20 = vpop.f32.mrb[35].mxu1 }
 0x13b   :  { %v1968_v22 = vadd.f32 %v1967_v20, %v1966_v15 }
 0x13c   :  { %v1274_v23 = vadd.f32 %v1904_v18, %v2710_v29  ;;  %v2742_v24 = vadd.f32 %v1965_v14, %v1271_v17 }
 0x13e   :  { %v1905_v25 = vpop.f32.mrb[36].mxu0  ;;  %v2744_v26 = vadd.f32 %v1968_v22, %v1274_v23 }
 0x13f   :  { %v1969_v28 = vpop.f32.mrb[36].mxu1  ;;  %v1906_v30 = vpop.f32.mrb[37].mxu0 }
 0x140   :  { %v1907_v31 = vadd.f32 %v1906_v30, %v1905_v25  ;;  %v1970_v32 = vpop.f32.mrb[37].mxu1  ;;  %v1908_v33 = vpop.f32.mrb[38].mxu0 }
 0x141   :  { %v1971_v34 = vadd.f32 %v1970_v32, %v1969_v28  ;;  %v1972_v36 = vpop.f32.mrb[38].mxu1  ;;  %v1909_v38 = vpop.f32.mrb[39].mxu0 }
 0x142   :  { %v1279_v27 = vadd.f32 %v1907_v31, %v2712_v41  ;;  %v1910_v39 = vadd.f32 %v1909_v38, %v1908_v33  ;;  %v1973_v40 = vpop.f32.mrb[39].mxu1 }
 0x143   :  { %v1974_v42 = vadd.f32 %v1973_v40, %v1972_v36 }
 0x144   :  { %v1282_v29 = vadd.f32 %v1910_v39, %v2714_v43  ;;  %v2748_v44 = vadd.f32 %v1971_v34, %v1279_v27 }
 0x146   :  { %v1911_v45 = vpop.f32.mrb[40].mxu0  ;;  %v2750_v46 = vadd.f32 %v1974_v42, %v1282_v29 }
 0x147   :  { %v1975_v47 = vpop.f32.mrb[40].mxu1  ;;  %v1912_v48 = vpop.f32.mrb[41].mxu0 }
 0x148   :  { %v1913_v49 = vadd.f32 %v1912_v48, %v1911_v45  ;;  %v1976_v50 = vpop.f32.mrb[41].mxu1  ;;  %v1914_v52 = vpop.f32.mrb[42].mxu0 }
 0x149   :  { %v1977_v54 = vadd.f32 %v1976_v50, %v1975_v47  ;;  %v1978_v56 = vpop.f32.mrb[42].mxu1  ;;  %v1915_v58 = vpop.f32.mrb[43].mxu0 }
 0x14a   :  { %v1287_v41 = vadd.f32 %v1913_v49, %v2716_v55  ;;  %v1916_v59 = vadd.f32 %v1915_v58, %v1914_v52  ;;  %v1979_v60 = vpop.f32.mrb[43].mxu1 }
 0x14b   :  { %v1980_v61 = vadd.f32 %v1979_v60, %v1978_v56 }
 0x14c   :  { %v1290_v43 = vadd.f32 %v1916_v59, %v2718_v57  ;;  %v2754_v62 = vadd.f32 %v1977_v54, %v1287_v41 }
 0x14e   :  { %v1917_v63 = vpop.f32.mrb[44].mxu0  ;;  %v2756_v0 = vadd.f32 %v1980_v61, %v1290_v43 }
 0x14f   :  { %v1981_v1 = vpop.f32.mrb[44].mxu1  ;;  %v1918_v2 = vpop.f32.mrb[45].mxu0 }
 0x150   :  { %v1919_v4 = vadd.f32 %v1918_v2, %v1917_v63  ;;  %v1982_v8 = vpop.f32.mrb[45].mxu1  ;;  %v1920_v9 = vpop.f32.mrb[46].mxu0 }
 0x151   :  { %v1983_v10 = vadd.f32 %v1982_v8, %v1981_v1  ;;  %v1984_v11 = vpop.f32.mrb[46].mxu1  ;;  %v1921_v12 = vpop.f32.mrb[47].mxu0 }
 0x152   :  { %v1295_v55 = vadd.f32 %v1919_v4, %v2720_v5  ;;  %v1922_v13 = vadd.f32 %v1921_v12, %v1920_v9  ;;  %v1985_v14 = vpop.f32.mrb[47].mxu1 }
 0x153   :  { %v1986_v15 = vadd.f32 %v1985_v14, %v1984_v11 }
 0x154   :  { %v1298_v57 = vadd.f32 %v1922_v13, %v2722_v7  ;;  %v2760_v16 = vadd.f32 %v1983_v10, %v1295_v55 }
 0x156   :  { %v1923_v17 = vpop.f32.mrb[48].mxu0  ;;  %v2762_v18 = vadd.f32 %v1986_v15, %v1298_v57 }
 0x157   :  { %v1987_v20 = vpop.f32.mrb[48].mxu1  ;;  %v1924_v22 = vpop.f32.mrb[49].mxu0 }
 0x158   :  { %v1925_v23 = vadd.f32 %v1924_v22, %v1923_v17  ;;  %v1988_v25 = vpop.f32.mrb[49].mxu1  ;;  %v1926_v28 = vpop.f32.mrb[50].mxu0 }
 0x159   :  { %v1989_v30 = vadd.f32 %v1988_v25, %v1987_v20  ;;  %v1990_v31 = vpop.f32.mrb[50].mxu1  ;;  %v1927_v32 = vpop.f32.mrb[51].mxu0 }
 0x15a   :  { %v1303_v5 = vadd.f32 %v1925_v23, %v2724_v19  ;;  %v1928_v33 = vadd.f32 %v1927_v32, %v1926_v28  ;;  %v1991_v34 = vpop.f32.mrb[51].mxu1 }
 0x15b   :  { %v1992_v36 = vadd.f32 %v1991_v34, %v1990_v31 }
 0x15c   :  { %v1306_v7 = vadd.f32 %v1928_v33, %v2726_v21  ;;  %v2766_v38 = vadd.f32 %v1989_v30, %v1303_v5  ;;  %v2783_v33 = vld [vmem:[%s2887_s2] ss:$0 sm:$0xff] }
 0x15e   :  { %v1929_v27 = vpop.f32.mrb[52].mxu0  ;;  %v2768_v39 = vadd.f32 %v1992_v36, %v1306_v7 }
 0x15f   :  { %v1993_v40 = vpop.f32.mrb[52].mxu1  ;;  %v1930_v42 = vpop.f32.mrb[53].mxu0 }
 0x160   :  { %v1931_v29 = vadd.f32 %v1930_v42, %v1929_v27  ;;  %v1994_v45 = vpop.f32.mrb[53].mxu1  ;;  %v1932_v47 = vpop.f32.mrb[54].mxu0 }
 0x161   :  { %v1995_v48 = vadd.f32 %v1994_v45, %v1993_v40  ;;  %v1996_v49 = vpop.f32.mrb[54].mxu1  ;;  %v1933_v50 = vpop.f32.mrb[55].mxu0 }
 0x162   :  { %v1311_v19 = vadd.f32 %v1931_v29, %v2728_v35  ;;  %v1934_v52 = vadd.f32 %v1933_v50, %v1932_v47  ;;  %v1997_v54 = vpop.f32.mrb[55].mxu1 }
 0x163   :  { %v1998_v56 = vadd.f32 %v1997_v54, %v1996_v49 }
 0x164   :  { %v1314_v21 = vadd.f32 %v1934_v52, %v2730_v37  ;;  %v1408_v58 = vadd.f32 %v1995_v48, %v1311_v19 }
 0x166   :  { %v1935_v41 = vpop.f32.mrb[56].mxu0  ;;  %v1411_v59 = vadd.f32 %v1998_v56, %v1314_v21 }
 0x167   :  { %v1999_v60 = vpop.f32.mrb[56].mxu1  ;;  %v1936_v61 = vpop.f32.mrb[57].mxu0 }
 0x168   :  { %v1937_v43 = vadd.f32 %v1936_v61, %v1935_v41  ;;  %v2000_v63 = vpop.f32.mrb[57].mxu1  ;;  %v1938_v1 = vpop.f32.mrb[58].mxu0 }
 0x169   :  { %v2001_v2 = vadd.f32 %v2000_v63, %v1999_v60  ;;  %v2002_v4 = vpop.f32.mrb[58].mxu1  ;;  %v1939_v8 = vpop.f32.mrb[59].mxu0 }
 0x16a   :  { %v1319_v9 = vadd.f32 %v1937_v43, %v2732_v51  ;;  %v1940_v10 = vadd.f32 %v1939_v8, %v1938_v1  ;;  %v2003_v35 = vpop.f32.mrb[59].mxu1 }
 0x16b   :  { %v2004_v11 = vadd.f32 %v2003_v35, %v2002_v4 }
 0x16c   :  { %v1322_v12 = vadd.f32 %v1940_v10, %v2734_v53  ;;  %v2774_v55 = vadd.f32 %v2001_v2, %v1319_v9 }
 0x16e   :  { %v1941_v37 = vpop.f32.mrb[60].mxu0  ;;  %v2776_v13 = vadd.f32 %v2004_v11, %v1322_v12 }
 0x16f   :  { %v2005_v14 = vpop.f32.mrb[60].mxu1  ;;  %v1942_v15 = vpop.f32.mrb[61].mxu0 }
 0x170   :  { %v1943_v57 = vadd.f32 %v1942_v15, %v1941_v37  ;;  %v2006_v17 = vpop.f32.mrb[61].mxu1  ;;  %v1944_v20 = vpop.f32.mrb[62].mxu0 }
 0x171   :  { %v2007_v22 = vadd.f32 %v2006_v17, %v2005_v14  ;;  %v2008_v23 = vpop.f32.mrb[62].mxu1  ;;  %v1945_v25 = vpop.f32.mrb[63].mxu0 }
 0x172   :  { %v1327_v51 = vadd.f32 %v1943_v57, %v2736_v3  ;;  %v1946_v28 = vadd.f32 %v1945_v25, %v1944_v20  ;;  %v2009_v30 = vpop.f32.mrb[63].mxu1  ;;  %v2791_v3 = vld [vmem:[%s2888_s3] ss:$0 sm:$0xff] }
 0x173   :  { %v2010_v31 = vadd.f32 %v2009_v30, %v2008_v23 }
 0x174   :  { %v1330_v53 = vadd.f32 %v1946_v28, %v2738_v6  ;;  %v1424_v32 = vadd.f32 %v2007_v22, %v1327_v51 }
 0x176   :  { %v2045_v5 = vpop.f32.mrb[64].mxu0  ;;  %v2785_v34 = vadd.f32 %v2010_v31, %v1330_v53 }
 0x177   :  { %v1473_v36 = vadd.f32 %v2045_v5, %v2748_v44  ;;  %v2053_v7 = vpop.f32.mrb[64].mxu1  ;;  %v1464_v27 = vpop.f32.mrb[65].mxu0 }
 0x178   :  { %v1505_v40 = vadd.f32 %v2053_v7, %v1408_v58  ;;  %v1465_v6 = vadd.f32 %v1464_v27, %v2742_v24  ;;  %v1496_v42 = vpop.f32.mrb[65].mxu1  ;;  %v2046_v29 = vpop.f32.mrb[66].mxu0 }
 0x179   :  { %v1536_v45 = vmul.f32 %v2783_v33, %v1473_v36  ;;  %v1497_v47 = vadd.f32 %v1496_v42, %v2766_v38  ;;  %v1476_v48 = vadd.f32 %v2046_v29, %v2750_v46  ;;  %v2054_v49 = vpop.f32.mrb[66].mxu1  ;;  %v1467_v44 = vpop.f32.mrb[67].mxu0 }
 0x17a   :  { %v1544_v50 = vmul.f32 %v2783_v33, %v1505_v40  ;;  %v1534_v19 = vmul.f32 %v2783_v33, %v1465_v6  ;;  %v1508_v52 = vadd.f32 %v2054_v49, %v1411_v59  ;;  %v1468_v54 = vadd.f32 %v1467_v44, %v2744_v26  ;;  %v1499_v56 = vpop.f32.mrb[67].mxu1 }
 0x17b   :  { %v1559_v24 = vadd.f32 %v2791_v3, %v1536_v45  ;;  %v1542_v21 = vmul.f32 %v2783_v33, %v1497_v47  ;;  %v1537_v58 = vmul.f32 %v2783_v33, %v1476_v48  ;;  %v1500_v38 = vadd.f32 %v1499_v56, %v2768_v39 }
 0x17c   :  { %v1567_v46 = vadd.f32 %v2791_v3, %v1544_v50  ;;  %v1557_v41 = vadd.f32 %v2791_v3, %v1534_v19  ;;  %v1545_v60 = vmul.f32 %v2783_v33, %v1508_v52  ;;  %v1535_v61 = vmul.f32 %v2783_v33, %v1468_v54 }
 0x17d   :  { %v1575_v59 = vmax.f32 %v1559_v24, 0.0  ;;  %v1565_v26 = vadd.f32 %v2791_v3, %v1542_v21  ;;  %v1560_v43 = vadd.f32 %v2791_v3, %v1537_v58  ;;  %v1543_v63 = vmul.f32 %v2783_v33, %v1500_v38 }
 0x17e   :  { %v1583_v1 = vmax.f32 %v1567_v46, 0.0  ;;  %v1573_v2 = vmax.f32 %v1557_v41, 0.0  ;;  %v1568_v4 = vadd.f32 %v2791_v3, %v1545_v60  ;;  %v1558_v39 = vadd.f32 %v2791_v3, %v1535_v61  ;;  %v2049_v8 = vpop.f32.mrb[68].mxu0 }
 0x17f   :  { %1591 = vst [vmem:[%s2889_s4 + $0x10] sm:$0xff] %v1575_v59  ;;  %v1581_v9 = vmax.f32 %v1565_v26, 0.0  ;;  %v1576_v10 = vmax.f32 %v1560_v43, 0.0  ;;  %v1566_v35 = vadd.f32 %v2791_v3, %v1543_v63  ;;  %v1489_v11 = vadd.f32 %v2049_v8, %v2760_v16  ;;  %v2057_v12 = vpop.f32.mrb[68].mxu1  ;;  %v1480_v37 = vpop.f32.mrb[69].mxu0 }
 0x180   :  { %1599 = vst [vmem:[%s2889_s4 + $0x50] sm:$0xff] %v1583_v1  ;;  %1589 = vst [vmem:[%s2889_s4] sm:$0xff] %v1573_v2  ;;  %v1584_v14 = vmax.f32 %v1568_v4, 0.0  ;;  %v1574_v15 = vmax.f32 %v1558_v39, 0.0  ;;  %v1521_v57 = vadd.f32 %v2057_v12, %v1424_v32  ;;  %v1481_v17 = vadd.f32 %v1480_v37, %v2754_v62  ;;  %v1512_v20 = vpop.f32.mrb[69].mxu1  ;;  %v2050_v22 = vpop.f32.mrb[70].mxu0 }
 0x181   :  { %1597 = vst [vmem:[%s2889_s4 + $0x40] sm:$0xff] %v1581_v9  ;;  %1592 = vst [vmem:[%s2889_s4 + $0x18] sm:$0xff] %v1576_v10  ;;  %v1582_v16 = vmax.f32 %v1566_v35, 0.0  ;;  %v1540_v23 = vmul.f32 %v2783_v33, %v1489_v11  ;;  %v1513_v25 = vadd.f32 %v1512_v20, %v2774_v55  ;;  %v1492_v51 = vadd.f32 %v2050_v22, %v2762_v18  ;;  %v2058_v28 = vpop.f32.mrb[70].mxu1  ;;  %v1483_v30 = vpop.f32.mrb[71].mxu0 }
 0x182   :  { %1600 = vst [vmem:[%s2889_s4 + $0x58] sm:$0xff] %v1584_v14  ;;  %1590 = vst [vmem:[%s2889_s4 + $0x8] sm:$0xff] %v1574_v15  ;;  %v1548_v62 = vmul.f32 %v2783_v33, %v1521_v57  ;;  %v1538_v31 = vmul.f32 %v2783_v33, %v1481_v17  ;;  %v1524_v53 = vadd.f32 %v2058_v28, %v2785_v34  ;;  %v1515_v32 = vpop.f32.mrb[71].mxu1 }
 0x183   :  { %v1484_v55 = vadd.f32 %v1483_v30, %v2756_v0  ;;  %1598 = vst [vmem:[%s2889_s4 + $0x48] sm:$0xff] %v1582_v16  ;;  %v1563_v18 = vadd.f32 %v2791_v3, %v1540_v23  ;;  %v1546_v5 = vmul.f32 %v2783_v33, %v1513_v25  ;;  %v1541_v36 = vmul.f32 %v2783_v33, %v1492_v51 }
 0x184   :  { %v1516_v7 = vadd.f32 %v1515_v32, %v2776_v13  ;;  %v1571_v27 = vadd.f32 %v2791_v3, %v1548_v62  ;;  %v1561_v40 = vadd.f32 %v2791_v3, %v1538_v31  ;;  %v1549_v34 = vmul.f32 %v2783_v33, %v1524_v53 }
 0x185   :  { %v1539_v0 = vmul.f32 %v2783_v33, %v1484_v55  ;;  %v1579_v6 = vmax.f32 %v1563_v18, 0.0  ;;  %v1569_v42 = vadd.f32 %v2791_v3, %v1546_v5  ;;  %v1564_v29 = vadd.f32 %v2791_v3, %v1541_v36 }
 0x186   :  { %v1547_v45 = vmul.f32 %v2783_v33, %v1516_v7  ;;  %v1587_v47 = vmax.f32 %v1571_v27, 0.0  ;;  %v1577_v48 = vmax.f32 %v1561_v40, 0.0  ;;  %v1572_v49 = vadd.f32 %v2791_v3, %v1549_v34 }
 0x187   :  { %v1562_v13 = vadd.f32 %v2791_v3, %v1539_v0  ;;  %1595 = vst [vmem:[%s2889_s4 + $0x30] sm:$0xff] %v1579_v6  ;;  %v1585_v44 = vmax.f32 %v1569_v42, 0.0  ;;  %v1580_v50 = vmax.f32 %v1564_v29, 0.0 }
 0x188   :  { %v1570_v19 = vadd.f32 %v2791_v3, %v1547_v45  ;;  %1603 = vst [vmem:[%s2889_s4 + $0x70] sm:$0xff] %v1587_v47  ;;  %1593 = vst [vmem:[%s2889_s4 + $0x20] sm:$0xff] %v1577_v48  ;;  %v1588_v33 = vmax.f32 %v1572_v49, 0.0 }
 0x189   :  { %v1578_v52 = vmax.f32 %v1562_v13, 0.0  ;;  %1601 = vst [vmem:[%s2889_s4 + $0x60] sm:$0xff] %v1585_v44  ;;  %1596 = vst [vmem:[%s2889_s4 + $0x38] sm:$0xff] %v1580_v50 }
 0x18a   :  { %v1586_v54 = vmax.f32 %v1570_v19, 0.0  ;;  %1604 = vst [vmem:[%s2889_s4 + $0x78] sm:$0xff] %v1588_v33 }
 0x18b   :  { %1594 = vst [vmem:[%s2889_s4 + $0x28] sm:$0xff] %v1578_v52 }
 0x18c   :  { %1602 = vst [vmem:[%s2889_s4 + $0x68] sm:$0xff] %v1586_v54 }

// kernel: _lambda_.11
= control target key start
LH: loop header
LB: loop body
LE: loop exit
PB: predicated region body
PF: predicated region fallthrough
CT: control target
= control target key end

     0   :  { %s2314_s1 = inlined_call_operand.vmem [shape: bf16[1152,256], index: 1, kind: input, shape index: {}]   ;;  %s2315_s0 = inlined_call_operand.vmem [shape: bf16[32,1152], index: 0, kind: input, shape index: {}]   ;;  %s2316_s2 = inlined_call_operand.vmem [shape: f32[1,256], index: 2, kind: input, shape index: {}]   ;;  %s2317_s3 = inlined_call_operand.vmem [shape: f32[1,256], index: 3, kind: input, shape index: {}]   ;;  %s2318_s4 = inlined_call_operand.vmem [shape: f32[32,256], index: 4, kind: output, shape index: {}]  }
   0x1   :  { %v1530_v0 = vld [vmem:[%s2314_s1 + $0x4] ss:$8 sps:$4 sm:$0xff]   ;;  %v1534_v2 = vld [vmem:[%s2314_s1] ss:$8 sps:$4 sm:$0xff]   ;;  %v1536_v4 = vld [vmem:[%s2314_s1 + $0x14] ss:$8 sps:$4 sm:$0xff]  }
   0x2   :  { %v1532_v1 = vld [vmem:[%s2314_s1 + $0x204] ss:$8 sps:$4 sm:$0xff]   ;;  %994 = vmatprep.subr.bf16.mxu1 %v1530_v0  ;;  %v1535_v3 = vld [vmem:[%s2314_s1 + $0x200] ss:$8 sps:$4 sm:$0xff]   ;;  %v1538_v5 = vld [vmem:[%s2314_s1 + $0x214] ss:$8 sps:$4 sm:$0xff]  }
   0x3   :  { %1100 = vmatprep.subr.bf16.mxu0 %v1532_v1  ;;  %995 = vmatpush1.bf16.msra.mxu1 %v1534_v2  ;;  %v1540_v6 = vld [vmem:[%s2314_s1 + $0x10] ss:$8 sps:$4 sm:$0xff]   ;;  %v1542_v8 = vld [vmem:[%s2314_s1 + $0x24] ss:$8 sps:$4 sm:$0xff]   ;;  %v1546_v10 = vld [vmem:[%s2314_s1 + $0x20] ss:$8 sps:$4 sm:$0xff]  }
   0x4   :  { %1101 = vmatpush1.bf16.msra.mxu0 %v1535_v3  ;;  %996 = vmatprep.subr.bf16.mxu1 %v1536_v4  ;;  %v1541_v7 = vld [vmem:[%s2314_s1 + $0x210] ss:$8 sps:$4 sm:$0xff]   ;;  %v1544_v9 = vld [vmem:[%s2314_s1 + $0x224] ss:$8 sps:$4 sm:$0xff]   ;;  %v1547_v11 = vld [vmem:[%s2314_s1 + $0x220] ss:$8 sps:$4 sm:$0xff]  }
   0x5   :  { %1102 = vmatprep.subr.bf16.mxu0 %v1538_v5  ;;  %v1548_v12 = vld [vmem:[%s2314_s1 + $0x34] ss:$8 sps:$4 sm:$0xff]   ;;  %v1552_v14 = vld [vmem:[%s2314_s1 + $0x30] ss:$8 sps:$4 sm:$0xff]   ;;  %v1554_v16 = vld [vmem:[%s2314_s1 + $0x44] ss:$8 sps:$4 sm:$0xff]  }
   0x6   :  { %v1550_v13 = vld [vmem:[%s2314_s1 + $0x234] ss:$8 sps:$4 sm:$0xff]   ;;  %v1553_v15 = vld [vmem:[%s2314_s1 + $0x230] ss:$8 sps:$4 sm:$0xff]   ;;  %v1556_v17 = vld [vmem:[%s2314_s1 + $0x244] ss:$8 sps:$4 sm:$0xff]  }
   0x7   :  { %997 = vmatpush1.bf16.msra.mxu1 %v1540_v6  ;;  %v1558_v18 = vld [vmem:[%s2314_s1 + $0x40] ss:$8 sps:$4 sm:$0xff]   ;;  %v1560_v20 = vld [vmem:[%s2314_s1 + $0x54] ss:$8 sps:$4 sm:$0xff]   ;;  %v1564_v22 = vld [vmem:[%s2314_s1 + $0x50] ss:$8 sps:$4 sm:$0xff]  }
   0x8   :  { %1103 = vmatpush1.bf16.msra.mxu0 %v1541_v7  ;;  %998 = vmatprep.subr.bf16.mxu1 %v1542_v8  ;;  %v1559_v19 = vld [vmem:[%s2314_s1 + $0x240] ss:$8 sps:$4 sm:$0xff]   ;;  %v1562_v21 = vld [vmem:[%s2314_s1 + $0x254] ss:$8 sps:$4 sm:$0xff]   ;;  %v1565_v23 = vld [vmem:[%s2314_s1 + $0x250] ss:$8 sps:$4 sm:$0xff]  }
   0x9   :  { %1104 = vmatprep.subr.bf16.mxu0 %v1544_v9  ;;  %v1566_v24 = vld [vmem:[%s2314_s1 + $0x64] ss:$8 sps:$4 sm:$0xff]   ;;  %v1570_v26 = vld [vmem:[%s2314_s1 + $0x60] ss:$8 sps:$4 sm:$0xff]   ;;  %v1572_v28 = vld [vmem:[%s2314_s1 + $0x74] ss:$8 sps:$4 sm:$0xff]  }
   0xa   :  { %v1568_v25 = vld [vmem:[%s2314_s1 + $0x264] ss:$8 sps:$4 sm:$0xff]   ;;  %v1571_v27 = vld [vmem:[%s2314_s1 + $0x260] ss:$8 sps:$4 sm:$0xff]   ;;  %v1574_v29 = vld [vmem:[%s2314_s1 + $0x274] ss:$8 sps:$4 sm:$0xff]  }
   0xb   :  { %999 = vmatpush1.bf16.msra.mxu1 %v1546_v10  ;;  %v1576_v30 = vld [vmem:[%s2314_s1 + $0x70] ss:$8 sps:$4 sm:$0xff]   ;;  %v1578_v32 = vld [vmem:[%s2314_s1 + $0x84] ss:$8 sps:$4 sm:$0xff]   ;;  %v1582_v34 = vld [vmem:[%s2314_s1 + $0x80] ss:$8 sps:$4 sm:$0xff]  }
   0xc   :  { %1105 = vmatpush1.bf16.msra.mxu0 %v1547_v11  ;;  %1000 = vmatprep.subr.bf16.mxu1 %v1548_v12  ;;  %v1577_v31 = vld [vmem:[%s2314_s1 + $0x270] ss:$8 sps:$4 sm:$0xff]   ;;  %v1580_v33 = vld [vmem:[%s2314_s1 + $0x284] ss:$8 sps:$4 sm:$0xff]   ;;  %v1583_v35 = vld [vmem:[%s2314_s1 + $0x280] ss:$8 sps:$4 sm:$0xff]  }
   0xd   :  { %1106 = vmatprep.subr.bf16.mxu0 %v1550_v13  ;;  %v1584_v36 = vld [vmem:[%s2314_s1 + $0x94] ss:$8 sps:$4 sm:$0xff]   ;;  %v1588_v38 = vld [vmem:[%s2314_s1 + $0x90] ss:$8 sps:$4 sm:$0xff]   ;;  %v1590_v40 = vld [vmem:[%s2314_s1 + $0xa4] ss:$8 sps:$4 sm:$0xff]  }
   0xe   :  { %v1586_v37 = vld [vmem:[%s2314_s1 + $0x294] ss:$8 sps:$4 sm:$0xff]   ;;  %v1589_v39 = vld [vmem:[%s2314_s1 + $0x290] ss:$8 sps:$4 sm:$0xff]   ;;  %v1592_v41 = vld [vmem:[%s2314_s1 + $0x2a4] ss:$8 sps:$4 sm:$0xff]  }
   0xf   :  { %1001 = vmatpush1.bf16.msra.mxu1 %v1552_v14  ;;  %v1594_v42 = vld [vmem:[%s2314_s1 + $0xa0] ss:$8 sps:$4 sm:$0xff]   ;;  %v1596_v44 = vld [vmem:[%s2314_s1 + $0xb4] ss:$8 sps:$4 sm:$0xff]   ;;  %v1600_v46 = vld [vmem:[%s2314_s1 + $0xb0] ss:$8 sps:$4 sm:$0xff]  }
  0x10   :  { %1107 = vmatpush1.bf16.msra.mxu0 %v1553_v15  ;;  %1002 = vmatprep.subr.bf16.mxu1 %v1554_v16  ;;  %v1595_v43 = vld [vmem:[%s2314_s1 + $0x2a0] ss:$8 sps:$4 sm:$0xff]   ;;  %v1598_v45 = vld [vmem:[%s2314_s1 + $0x2b4] ss:$8 sps:$4 sm:$0xff]   ;;  %v1601_v47 = vld [vmem:[%s2314_s1 + $0x2b0] ss:$8 sps:$4 sm:$0xff]  }
  0x11   :  { %1108 = vmatprep.subr.bf16.mxu0 %v1556_v17  ;;  %v1628_v48 = vld [vmem:[%s2315_s0 + $0x4] ss:$36 sps:$4 sm:$0xff]   ;;  %v1634_v51 = vld [vmem:[%s2315_s0 + $0x14] ss:$36 sps:$4 sm:$0xff]  }
  0x12   :  { %v1602_v49 = vld [vmem:[%s2314_s1 + $0xc4] ss:$8 sps:$4 sm:$0xff]   ;;  %1026 = vmatprep.mubr.bf16.mxu1 %v1628_v48  ;;  %v1606_v52 = vld [vmem:[%s2314_s1 + $0xc0] ss:$8 sps:$4 sm:$0xff]   ;;  %v1608_v54 = vld [vmem:[%s2314_s1 + $0xd4] ss:$8 sps:$4 sm:$0xff]   ;;  %1132 = vmatprep.mubr.bf16.mxu0 %v1634_v51 }
  0x13   :  { %1003 = vmatpush1.bf16.msra.mxu1 %v1558_v18  ;;  %v1604_v50 = vld [vmem:[%s2314_s1 + $0x2c4] ss:$8 sps:$4 sm:$0xff]   ;;  %v1607_v53 = vld [vmem:[%s2314_s1 + $0x2c0] ss:$8 sps:$4 sm:$0xff]   ;;  %v1610_v55 = vld [vmem:[%s2314_s1 + $0x2d4] ss:$8 sps:$4 sm:$0xff]  }
  0x14   :  { %1109 = vmatpush1.bf16.msra.mxu0 %v1559_v19  ;;  %1004 = vmatprep.subr.bf16.mxu1 %v1560_v20  ;;  %v1612_v56 = vld [vmem:[%s2314_s1 + $0xd0] ss:$8 sps:$4 sm:$0xff]   ;;  %v1614_v58 = vld [vmem:[%s2314_s1 + $0xe4] ss:$8 sps:$4 sm:$0xff]   ;;  %v1618_v60 = vld [vmem:[%s2314_s1 + $0xe0] ss:$8 sps:$4 sm:$0xff]  }
  0x15   :  { %1110 = vmatprep.subr.bf16.mxu0 %v1562_v21  ;;  %v1613_v57 = vld [vmem:[%s2314_s1 + $0x2d0] ss:$8 sps:$4 sm:$0xff]   ;;  %v1616_v59 = vld [vmem:[%s2314_s1 + $0x2e4] ss:$8 sps:$4 sm:$0xff]   ;;  %v1619_v61 = vld [vmem:[%s2314_s1 + $0x2e0] ss:$8 sps:$4 sm:$0xff]  }
  0x16   :  { %v1620_v62 = vld [vmem:[%s2314_s1 + $0xf4] ss:$8 sps:$4 sm:$0xff]   ;;  %v1624_v0 = vld [vmem:[%s2314_s1 + $0xf0] ss:$8 sps:$4 sm:$0xff]   ;;  %v1631_v2 = vld [vmem:[%s2314_s1 + $0x104] ss:$8 sps:$4 sm:$0xff]  }
  0x17   :  { %1005 = vmatpush1.bf16.msra.mxu1 %v1564_v22  ;;  %v1622_v63 = vld [vmem:[%s2314_s1 + $0x2f4] ss:$8 sps:$4 sm:$0xff]   ;;  %v1625_v1 = vld [vmem:[%s2314_s1 + $0x2f0] ss:$8 sps:$4 sm:$0xff]   ;;  %v1637_v3 = vld [vmem:[%s2314_s1 + $0x304] ss:$8 sps:$4 sm:$0xff]  }
  0x18   :  { %1111 = vmatpush1.bf16.msra.mxu0 %v1565_v23  ;;  %1006 = vmatprep.subr.bf16.mxu1 %v1566_v24  ;;  %v1626_v4 = vld [vmem:[%s2315_s0] ss:$36 sps:$4 sm:$0xff]   ;;  %v1632_v6 = vld [vmem:[%s2315_s0 + $0x10] ss:$36 sps:$4 sm:$0xff]  }
  0x19   :  { %1112 = vmatprep.subr.bf16.mxu0 %v1568_v25  ;;  %v1629_v5 = vld [vmem:[%s2314_s1 + $0x100] ss:$8 sps:$4 sm:$0xff]   ;;  %v1640_v8 = vld [vmem:[%s2314_s1 + $0x114] ss:$8 sps:$4 sm:$0xff]   ;;  %v1638_v10 = vld [vmem:[%s2314_s1 + $0x110] ss:$8 sps:$4 sm:$0xff]  }
  0x1a   :  { %v1635_v7 = vld [vmem:[%s2314_s1 + $0x300] ss:$8 sps:$4 sm:$0xff]   ;;  %v1643_v9 = vld [vmem:[%s2314_s1 + $0x314] ss:$8 sps:$4 sm:$0xff]   ;;  %v1641_v11 = vld [vmem:[%s2314_s1 + $0x310] ss:$8 sps:$4 sm:$0xff]  }
  0x1b   :  { %1007 = vmatpush1.bf16.msra.mxu1 %v1570_v26  ;;  %v1646_v12 = vld [vmem:[%s2314_s1 + $0x124] ss:$8 sps:$4 sm:$0xff]   ;;  %v1644_v14 = vld [vmem:[%s2314_s1 + $0x120] ss:$8 sps:$4 sm:$0xff]   ;;  %v1652_v16 = vld [vmem:[%s2314_s1 + $0x134] ss:$8 sps:$4 sm:$0xff]  }
  0x1c   :  { %1113 = vmatpush1.bf16.msra.mxu0 %v1571_v27  ;;  %1008 = vmatprep.subr.bf16.mxu1 %v1572_v28  ;;  %v1649_v13 = vld [vmem:[%s2314_s1 + $0x324] ss:$8 sps:$4 sm:$0xff]   ;;  %v1647_v15 = vld [vmem:[%s2314_s1 + $0x320] ss:$8 sps:$4 sm:$0xff]   ;;  %v1655_v17 = vld [vmem:[%s2314_s1 + $0x334] ss:$8 sps:$4 sm:$0xff]  }
  0x1d   :  { %1114 = vmatprep.subr.bf16.mxu0 %v1574_v29  ;;  %v1650_v18 = vld [vmem:[%s2314_s1 + $0x130] ss:$8 sps:$4 sm:$0xff]   ;;  %v1658_v20 = vld [vmem:[%s2314_s1 + $0x144] ss:$8 sps:$4 sm:$0xff]   ;;  %v1656_v22 = vld [vmem:[%s2314_s1 + $0x140] ss:$8 sps:$4 sm:$0xff]  }
  0x1e   :  { %v1653_v19 = vld [vmem:[%s2314_s1 + $0x330] ss:$8 sps:$4 sm:$0xff]   ;;  %v1661_v21 = vld [vmem:[%s2314_s1 + $0x344] ss:$8 sps:$4 sm:$0xff]   ;;  %v1659_v23 = vld [vmem:[%s2314_s1 + $0x340] ss:$8 sps:$4 sm:$0xff]  }
  0x1f   :  { %1009 = vmatpush1.bf16.msra.mxu1 %v1576_v30  ;;  %v1664_v24 = vld [vmem:[%s2314_s1 + $0x154] ss:$8 sps:$4 sm:$0xff]   ;;  %v1662_v26 = vld [vmem:[%s2314_s1 + $0x150] ss:$8 sps:$4 sm:$0xff]   ;;  %v1670_v28 = vld [vmem:[%s2314_s1 + $0x164] ss:$8 sps:$4 sm:$0xff]  }
  0x20   :  { %1115 = vmatpush1.bf16.msra.mxu0 %v1577_v31  ;;  %1010 = vmatprep.subr.bf16.mxu1 %v1578_v32  ;;  %v1667_v25 = vld [vmem:[%s2314_s1 + $0x354] ss:$8 sps:$4 sm:$0xff]   ;;  %v1665_v27 = vld [vmem:[%s2314_s1 + $0x350] ss:$8 sps:$4 sm:$0xff]   ;;  %v1720_v31 = vld [vmem:[%s2315_s0 + $0x48] ss:$36 sps:$4 sm:$0xff]  }
  0x21   :  { %1116 = vmatprep.subr.bf16.mxu0 %v1580_v33  ;;  %v1716_v29 = vld [vmem:[%s2315_s0 + $0x4c] ss:$36 sps:$4 sm:$0xff]   ;;  %v1718_v30 = vld [vmem:[%s2315_s0 + $0x5c] ss:$36 sps:$4 sm:$0xff]  }
  0x22   :  { %v1673_v32 = vld [vmem:[%s2314_s1 + $0x364] ss:$8 sps:$4 sm:$0xff]   ;;  %v1724_v33 = vld [vmem:[%s2315_s0 + $0x58] ss:$36 sps:$4 sm:$0xff]  }
  0x23   :  { %1011 = vmatpush1.bf16.msra.mxu1 %v1582_v34  ;;  %v1668_v34 = vld [vmem:[%s2314_s1 + $0x160] ss:$8 sps:$4 sm:$0xff]   ;;  %v1686_v48 = vld [vmem:[%s2314_s1 + $0x190] ss:$8 sps:$4 sm:$0xff]   ;;  %v1697_v51 = vld [vmem:[%s2314_s1 + $0x3a4] ss:$8 sps:$4 sm:$0xff]  }
  0x24   :  { %1117 = vmatpush1.bf16.msra.mxu0 %v1583_v35  ;;  %1012 = vmatprep.subr.bf16.mxu1 %v1584_v36  ;;  %v1671_v35 = vld [vmem:[%s2314_s1 + $0x360] ss:$8 sps:$4 sm:$0xff]   ;;  %v1676_v36 = vld [vmem:[%s2314_s1 + $0x174] ss:$8 sps:$4 sm:$0xff]  }
  0x25   :  { %1118 = vmatprep.subr.bf16.mxu0 %v1586_v37  ;;  %v1679_v37 = vld [vmem:[%s2314_s1 + $0x374] ss:$8 sps:$4 sm:$0xff]  }
  0x27   :  { %1013 = vmatpush1.bf16.msra.mxu1 %v1588_v38  ;;  %v1674_v38 = vld [vmem:[%s2314_s1 + $0x170] ss:$8 sps:$4 sm:$0xff]  }
  0x28   :  { %1119 = vmatpush1.bf16.msra.mxu0 %v1589_v39  ;;  %1014 = vmatprep.subr.bf16.mxu1 %v1590_v40  ;;  %v1677_v39 = vld [vmem:[%s2314_s1 + $0x370] ss:$8 sps:$4 sm:$0xff]   ;;  %v1682_v40 = vld [vmem:[%s2314_s1 + $0x184] ss:$8 sps:$4 sm:$0xff]  }
  0x29   :  { %1120 = vmatprep.subr.bf16.mxu0 %v1592_v41  ;;  %v1736_v41 = vld [vmem:[%s2315_s0 + $0xc] ss:$36 sps:$4 sm:$0xff]  }
  0x2b   :  { %1015 = vmatpush1.bf16.msra.mxu1 %v1594_v42  ;;  %v1685_v42 = vld [vmem:[%s2314_s1 + $0x384] ss:$8 sps:$4 sm:$0xff]  }
  0x2c   :  { %1121 = vmatpush1.bf16.msra.mxu0 %v1595_v43  ;;  %1016 = vmatprep.subr.bf16.mxu1 %v1596_v44  ;;  %v1739_v43 = vld [vmem:[%s2315_s0 + $0x1c] ss:$36 sps:$4 sm:$0xff]  }
  0x2d   :  { %1122 = vmatprep.subr.bf16.mxu0 %v1598_v45  ;;  %v1680_v44 = vld [vmem:[%s2314_s1 + $0x180] ss:$8 sps:$4 sm:$0xff]  }
  0x2e   :  { %v1683_v45 = vld [vmem:[%s2314_s1 + $0x380] ss:$8 sps:$4 sm:$0xff]  }
  0x2f   :  { %1017 = vmatpush1.bf16.msra.mxu1 %v1600_v46  ;;  %v1688_v46 = vld [vmem:[%s2314_s1 + $0x194] ss:$8 sps:$4 sm:$0xff]  }
  0x30   :  { %1123 = vmatpush1.bf16.msra.mxu0 %v1601_v47  ;;  %1018 = vmatprep.subr.bf16.mxu1 %v1602_v49  ;;  %v1691_v47 = vld [vmem:[%s2314_s1 + $0x394] ss:$8 sps:$4 sm:$0xff]   ;;  %v1689_v49 = vld [vmem:[%s2314_s1 + $0x390] ss:$8 sps:$4 sm:$0xff]  }
  0x31   :  { %1124 = vmatprep.subr.bf16.mxu0 %v1604_v50  ;;  %v1694_v50 = vld [vmem:[%s2314_s1 + $0x1a4] ss:$8 sps:$4 sm:$0xff]  }
  0x33   :  { %1019 = vmatpush1.bf16.msra.mxu1 %v1606_v52  ;;  %v1692_v52 = vld [vmem:[%s2314_s1 + $0x1a0] ss:$8 sps:$4 sm:$0xff]  }
  0x34   :  { %1125 = vmatpush1.bf16.msra.mxu0 %v1607_v53  ;;  %1020 = vmatprep.subr.bf16.mxu1 %v1608_v54  ;;  %v1695_v53 = vld [vmem:[%s2314_s1 + $0x3a0] ss:$8 sps:$4 sm:$0xff]   ;;  %v1700_v54 = vld [vmem:[%s2314_s1 + $0x1b4] ss:$8 sps:$4 sm:$0xff]  }
  0x35   :  { %1126 = vmatprep.subr.bf16.mxu0 %v1610_v55  ;;  %v1703_v55 = vld [vmem:[%s2314_s1 + $0x3b4] ss:$8 sps:$4 sm:$0xff]  }
  0x37   :  { %1021 = vmatpush1.bf16.msra.mxu1 %v1612_v56  ;;  %v1698_v56 = vld [vmem:[%s2314_s1 + $0x1b0] ss:$8 sps:$4 sm:$0xff]  }
  0x38   :  { %1127 = vmatpush1.bf16.msra.mxu0 %v1613_v57  ;;  %1022 = vmatprep.subr.bf16.mxu1 %v1614_v58  ;;  %v1701_v57 = vld [vmem:[%s2314_s1 + $0x3b0] ss:$8 sps:$4 sm:$0xff]   ;;  %v1706_v58 = vld [vmem:[%s2314_s1 + $0x1c4] ss:$8 sps:$4 sm:$0xff]  }
  0x39   :  { %1128 = vmatprep.subr.bf16.mxu0 %v1616_v59  ;;  %v1709_v59 = vld [vmem:[%s2314_s1 + $0x3c4] ss:$8 sps:$4 sm:$0xff]  }
  0x3b   :  { %1023 = vmatpush1.bf16.msra.mxu1 %v1618_v60  ;;  %v1704_v60 = vld [vmem:[%s2314_s1 + $0x1c0] ss:$8 sps:$4 sm:$0xff]  }
  0x3c   :  { %1129 = vmatpush1.bf16.msra.mxu0 %v1619_v61  ;;  %1024 = vmatprep.subr.bf16.mxu1 %v1620_v62  ;;  %v1707_v61 = vld [vmem:[%s2314_s1 + $0x3c0] ss:$8 sps:$4 sm:$0xff]   ;;  %v1712_v62 = vld [vmem:[%s2314_s1 + $0x1d4] ss:$8 sps:$4 sm:$0xff]  }
  0x3d   :  { %1130 = vmatprep.subr.bf16.mxu0 %v1622_v63  ;;  %v1715_v63 = vld [vmem:[%s2314_s1 + $0x3d4] ss:$8 sps:$4 sm:$0xff]  }
  0x3f   :  { %1025 = vmatpush1.bf16.msra.mxu1 %v1624_v0  ;;  %v1710_v0 = vld [vmem:[%s2314_s1 + $0x1d0] ss:$8 sps:$4 sm:$0xff]  }
  0x40   :  { %1131 = vmatpush1.bf16.msra.mxu0 %v1625_v1  ;;  %1047 = vmatprep.subr.bf16.mxu1 %v1631_v2  ;;  %v1713_v1 = vld [vmem:[%s2314_s1 + $0x3d0] ss:$8 sps:$4 sm:$0xff]   ;;  %v1723_v2 = vld [vmem:[%s2314_s1 + $0x1e4] ss:$8 sps:$4 sm:$0xff]  }
  0x41   :  { %1153 = vmatprep.subr.bf16.mxu0 %v1637_v3  ;;  %v1727_v3 = vld [vmem:[%s2314_s1 + $0x3e4] ss:$8 sps:$4 sm:$0xff]  }
  0x42   :  { %1027 = vmatmul.mubr.bf16.vlgmr.msra.gmra.mrb[0].mxu1 %v1626_v4  ;;  %v1721_v4 = vld [vmem:[%s2314_s1 + $0x1e0] ss:$8 sps:$4 sm:$0xff]  }
  0x43   :  { %1133 = vmatmul.mubr.bf16.vlgmr.msra.gmra.mrb[0].mxu0 %v1632_v6  ;;  %1048 = vmatpush1.bf16.msra.mxu1 %v1629_v5  ;;  %v1725_v5 = vld [vmem:[%s2314_s1 + $0x3e0] ss:$8 sps:$4 sm:$0xff]   ;;  %v1730_v6 = vld [vmem:[%s2314_s1 + $0x1f4] ss:$8 sps:$4 sm:$0xff]  }
  0x44   :  { %1154 = vmatpush1.bf16.msra.mxu0 %v1635_v7  ;;  %1049 = vmatprep.subr.bf16.mxu1 %v1640_v8  ;;  %v1733_v7 = vld [vmem:[%s2314_s1 + $0x3f4] ss:$8 sps:$4 sm:$0xff]   ;;  %v1728_v8 = vld [vmem:[%s2314_s1 + $0x1f0] ss:$8 sps:$4 sm:$0xff]  }
  0x45   :  { %1155 = vmatprep.subr.bf16.mxu0 %v1643_v9  ;;  %1036 = vmatprep.mubr.bf16.mxu1 %v1716_v29  ;;  %v1731_v9 = vld [vmem:[%s2314_s1 + $0x3f0] ss:$8 sps:$4 sm:$0xff]   ;;  %v1766_v29 = vld [vmem:[%s2314_s1 + $0x464] ss:$8 sps:$4 sm:$0xff]  }
  0x46   :  { %1142 = vmatprep.mubr.bf16.mxu0 %v1718_v30  ;;  %v1764_v30 = vld [vmem:[%s2314_s1 + $0x460] ss:$8 sps:$4 sm:$0xff]  }
  0x47   :  { %1050 = vmatpush1.bf16.msra.mxu1 %v1638_v10  ;;  %v1742_v10 = vld [vmem:[%s2314_s1 + $0x404] ss:$8 sps:$4 sm:$0xff]  }
  0x48   :  { %1156 = vmatpush1.bf16.msra.mxu0 %v1641_v11  ;;  %1051 = vmatprep.subr.bf16.mxu1 %v1646_v12  ;;  %v1734_v11 = vld [vmem:[%s2315_s0 + $0x8] ss:$36 sps:$4 sm:$0xff]   ;;  %v1737_v12 = vld [vmem:[%s2315_s0 + $0x18] ss:$36 sps:$4 sm:$0xff]  }
  0x49   :  { %1157 = vmatprep.subr.bf16.mxu0 %v1649_v13  ;;  %v1740_v13 = vld [vmem:[%s2314_s1 + $0x400] ss:$8 sps:$4 sm:$0xff]  }
  0x4a   :  { %1037 = vmatmul.mubr.bf16.gmra.mrb[4].mxu1 %v1720_v31  ;;  %v1769_v31 = vld [vmem:[%s2314_s1 + $0x474] ss:$8 sps:$4 sm:$0xff]  }
  0x4b   :  { %1052 = vmatpush1.bf16.msra.mxu1 %v1644_v14  ;;  %1143 = vmatmul.mubr.bf16.gmra.mrb[4].mxu0 %v1724_v33  ;;  %v1745_v14 = vld [vmem:[%s2314_s1 + $0x414] ss:$8 sps:$4 sm:$0xff]   ;;  %v1770_v33 = vld [vmem:[%s2315_s0 + $0x20] ss:$36 sps:$4 sm:$0xff]  }
  0x4c   :  { %1158 = vmatpush1.bf16.msra.mxu0 %v1647_v15  ;;  %1053 = vmatprep.subr.bf16.mxu1 %v1652_v16  ;;  %v1746_v15 = vld [vmem:[%s2315_s0 + $0x54] ss:$36 sps:$4 sm:$0xff]   ;;  %v1748_v16 = vld [vmem:[%s2315_s0 + $0x64] ss:$36 sps:$4 sm:$0xff]  }
  0x4d   :  { %1159 = vmatprep.subr.bf16.mxu0 %v1655_v17  ;;  %1079 = vmatprep.mubr.bf16.mxu1 %v1736_v41  ;;  %v1743_v17 = vld [vmem:[%s2314_s1 + $0x410] ss:$8 sps:$4 sm:$0xff]  }
  0x4e   :  { %1185 = vmatprep.mubr.bf16.mxu0 %v1739_v43 }
  0x4f   :  { %1054 = vmatpush1.bf16.msra.mxu1 %v1650_v18  ;;  %v1754_v18 = vld [vmem:[%s2314_s1 + $0x424] ss:$8 sps:$4 sm:$0xff]  }
  0x50   :  { %1160 = vmatpush1.bf16.msra.mxu0 %v1653_v19  ;;  %1055 = vmatprep.subr.bf16.mxu1 %v1658_v20  ;;  %v1750_v19 = vld [vmem:[%s2315_s0 + $0x50] ss:$36 sps:$4 sm:$0xff]   ;;  %v1751_v20 = vld [vmem:[%s2315_s0 + $0x60] ss:$36 sps:$4 sm:$0xff]  }
  0x51   :  { %1161 = vmatprep.subr.bf16.mxu0 %v1661_v21  ;;  %v1752_v21 = vld [vmem:[%s2314_s1 + $0x420] ss:$8 sps:$4 sm:$0xff]  }
  0x53   :  { %1056 = vmatpush1.bf16.msra.mxu1 %v1656_v22  ;;  %v1757_v22 = vld [vmem:[%s2314_s1 + $0x434] ss:$8 sps:$4 sm:$0xff]  }
  0x54   :  { %1162 = vmatpush1.bf16.msra.mxu0 %v1659_v23  ;;  %1057 = vmatprep.subr.bf16.mxu1 %v1664_v24  ;;  %v1755_v23 = vld [vmem:[%s2314_s1 + $0x430] ss:$8 sps:$4 sm:$0xff]   ;;  %v1760_v24 = vld [vmem:[%s2314_s1 + $0x444] ss:$8 sps:$4 sm:$0xff]  }
  0x55   :  { %1163 = vmatprep.subr.bf16.mxu0 %v1667_v25  ;;  %v1772_v25 = vmov 0  }
  0x57   :  { %1058 = vmatpush1.bf16.msra.mxu1 %v1662_v26  ;;  %v1758_v26 = vld [vmem:[%s2314_s1 + $0x440] ss:$8 sps:$4 sm:$0xff]  }
  0x58   :  { %1164 = vmatpush1.bf16.msra.mxu0 %v1665_v27  ;;  %1059 = vmatprep.subr.bf16.mxu1 %v1670_v28  ;;  %v1763_v27 = vld [vmem:[%s2314_s1 + $0x454] ss:$8 sps:$4 sm:$0xff]   ;;  %v1761_v28 = vld [vmem:[%s2314_s1 + $0x450] ss:$8 sps:$4 sm:$0xff]  }
  0x59   :  { %1165 = vmatprep.subr.bf16.mxu0 %v1673_v32  ;;  %v1767_v32 = vld [vmem:[%s2314_s1 + $0x470] ss:$8 sps:$4 sm:$0xff]  }
  0x5b   :  { %1060 = vmatpush1.bf16.msra.mxu1 %v1668_v34  ;;  %v1771_v34 = vld [vmem:[%s2315_s0 + $0x68] ss:$36 sps:$4 sm:$0xff]  }
  0x5c   :  { %1166 = vmatpush1.bf16.msra.mxu0 %v1671_v35  ;;  %1061 = vmatprep.subr.bf16.mxu1 %v1676_v36 }
  0x5d   :  { %1167 = vmatprep.subr.bf16.mxu0 %v1679_v37 }
  0x5f   :  { %1062 = vmatpush1.bf16.msra.mxu1 %v1674_v38 }
  0x60   :  { %1168 = vmatpush1.bf16.msra.mxu0 %v1677_v39  ;;  %1063 = vmatprep.subr.bf16.mxu1 %v1682_v40 }
  0x61   :  { %1169 = vmatprep.subr.bf16.mxu0 %v1685_v42 }
  0x63   :  { %1064 = vmatpush1.bf16.msra.mxu1 %v1680_v44 }
  0x64   :  { %1170 = vmatpush1.bf16.msra.mxu0 %v1683_v45  ;;  %1065 = vmatprep.subr.bf16.mxu1 %v1688_v46 }
  0x65   :  { %1171 = vmatprep.subr.bf16.mxu0 %v1691_v47 }
  0x67   :  { %1066 = vmatpush1.bf16.msra.mxu1 %v1686_v48 }
  0x68   :  { %1172 = vmatpush1.bf16.msra.mxu0 %v1689_v49  ;;  %1067 = vmatprep.subr.bf16.mxu1 %v1694_v50 }
  0x69   :  { %1173 = vmatprep.subr.bf16.mxu0 %v1697_v51  ;;  %v1261_v51 = vlaneseq }
  0x6b   :  { %1068 = vmatpush1.bf16.msra.mxu1 %v1692_v52  ;;  %v1262_v52 = vshrl.u32 %v1261_v51, 7 }
  0x6c   :  { %1174 = vmatpush1.bf16.msra.mxu0 %v1695_v53  ;;  %1069 = vmatprep.subr.bf16.mxu1 %v1700_v54  ;;  %v1259_v54 = vld [vmem:[%s2316_s2] sm:$0x3] }
  0x6d   :  { %1175 = vmatprep.subr.bf16.mxu0 %v1703_v55  ;;  %v1263_v53 = vsub.s32 0, %v1262_v52  ;;  %v1267_v55 = vsub.s32 1, %v1262_v52 }
  0x6f   :  { %1070 = vmatpush1.bf16.msra.mxu1 %v1698_v56  ;;  %v1279_v56 = vld [vmem:[%s2317_s3] sm:$0x3] }
  0x70   :  { %1176 = vmatpush1.bf16.msra.mxu0 %v1701_v57  ;;  %1071 = vmatprep.subr.bf16.mxu1 %v1706_v58  ;;  %v1264_v57 = vrot.slane %v1259_v54, %v1263_v53 }
  0x71   :  { %1177 = vmatprep.subr.bf16.mxu0 %v1709_v59 }
  0x73   :  { %1072 = vmatpush1.bf16.msra.mxu1 %v1704_v60  ;;  %v1268_v60 = vrot.slane %v1259_v54, %v1267_v55 }
  0x74   :  { %1178 = vmatpush1.bf16.msra.mxu0 %v1707_v61  ;;  %1073 = vmatprep.subr.bf16.mxu1 %v1712_v62  ;;  %v1284_v62 = vrot.slane %v1279_v56, %v1263_v53 }
  0x75   :  { %1179 = vmatprep.subr.bf16.mxu0 %v1715_v63 }
  0x77   :  { %1074 = vmatpush1.bf16.msra.mxu1 %v1710_v0 }
  0x78   :  { %1180 = vmatpush1.bf16.msra.mxu0 %v1713_v1  ;;  %1075 = vmatprep.subr.bf16.mxu1 %v1723_v2 }
  0x79   :  { %1181 = vmatprep.subr.bf16.mxu0 %v1727_v3  ;;  %v1288_v3 = vrot.slane %v1279_v56, %v1267_v55 }
  0x7b   :  { %1076 = vmatpush1.bf16.msra.mxu1 %v1721_v4 }
  0x7c   :  { %1182 = vmatpush1.bf16.msra.mxu0 %v1725_v5  ;;  %1077 = vmatprep.subr.bf16.mxu1 %v1730_v6 }
  0x7d   :  { %1183 = vmatprep.subr.bf16.mxu0 %v1733_v7 }
  0x7f   :  { %1078 = vmatpush1.bf16.msra.mxu1 %v1728_v8 }
  0x80   :  { %1184 = vmatpush1.bf16.msra.mxu0 %v1731_v9  ;;  %1481 = vmatprep.subr.bf16.mxu1 %v1742_v10 }
  0x81   :  { %1206 = vmatprep.subr.bf16.mxu0 %v1742_v10 }
  0x82   :  { %1080 = vmatmul.mubr.bf16.vlgmr.msra.gmra.mrb[0].mxu1 %v1734_v11 }
  0x83   :  { %1186 = vmatmul.mubr.bf16.vlgmr.msra.gmra.mrb[0].mxu0 %v1737_v12  ;;  %1489 = vmatpush1.bf16.msra.mxu1 %v1740_v13 }
  0x84   :  { %1207 = vmatpush1.bf16.msra.mxu0 %v1740_v13  ;;  %1482 = vmatprep.subr.bf16.mxu1 %v1745_v14 }
  0x85   :  { %1208 = vmatprep.subr.bf16.mxu0 %v1745_v14  ;;  %1089 = vmatprep.mubr.bf16.mxu1 %v1746_v15 }
  0x86   :  { %1195 = vmatprep.mubr.bf16.mxu0 %v1748_v16 }
  0x87   :  { %1490 = vmatpush1.bf16.msra.mxu1 %v1743_v17 }
  0x88   :  { %1209 = vmatpush1.bf16.msra.mxu0 %v1743_v17  ;;  %1483 = vmatprep.subr.bf16.mxu1 %v1754_v18 }
  0x89   :  { %1210 = vmatprep.subr.bf16.mxu0 %v1754_v18 }
  0x8a   :  { %1090 = vmatmul.mubr.bf16.gmra.mrb[4].mxu1 %v1750_v19 }
  0x8b   :  { %1196 = vmatmul.mubr.bf16.gmra.mrb[4].mxu0 %v1751_v20  ;;  %1491 = vmatpush1.bf16.msra.mxu1 %v1752_v21 }
  0x8c   :  { %1211 = vmatpush1.bf16.msra.mxu0 %v1752_v21  ;;  %1484 = vmatprep.subr.bf16.mxu1 %v1757_v22 }
  0x8d   :  { %1212 = vmatprep.subr.bf16.mxu0 %v1757_v22  ;;  %1238 = vmatprep.mubr.bf16.mxu0 %v1772_v25 }
  0x8e   :  { %1248 = vmatprep.mubr.bf16.mxu1 %v1772_v25 }
  0x8f   :  { %1492 = vmatpush1.bf16.msra.mxu1 %v1755_v23 }
  0x90   :  { %1213 = vmatpush1.bf16.msra.mxu0 %v1755_v23  ;;  %1485 = vmatprep.subr.bf16.mxu1 %v1760_v24 }
  0x91   :  { %1214 = vmatprep.subr.bf16.mxu0 %v1760_v24 }
  0x93   :  { %1493 = vmatpush1.bf16.msra.mxu1 %v1758_v26 }
  0x94   :  { %1215 = vmatpush1.bf16.msra.mxu0 %v1758_v26  ;;  %1486 = vmatprep.subr.bf16.mxu1 %v1763_v27 }
  0x95   :  { %1216 = vmatprep.subr.bf16.mxu0 %v1763_v27 }
  0x97   :  { %1494 = vmatpush1.bf16.msra.mxu1 %v1761_v28 }
  0x98   :  { %1217 = vmatpush1.bf16.msra.mxu0 %v1761_v28  ;;  %1487 = vmatprep.subr.bf16.mxu1 %v1766_v29 }
  0x99   :  { %1218 = vmatprep.subr.bf16.mxu0 %v1766_v29 }
  0x9b   :  { %1495 = vmatpush1.bf16.msra.mxu1 %v1764_v30 }
  0x9c   :  { %1219 = vmatpush1.bf16.msra.mxu0 %v1764_v30  ;;  %1488 = vmatprep.subr.bf16.mxu1 %v1769_v31 }
  0x9d   :  { %1220 = vmatprep.subr.bf16.mxu0 %v1769_v31 }
  0x9f   :  { %1496 = vmatpush1.bf16.msra.mxu1 %v1767_v32 }
  0xa0   :  { %1221 = vmatpush1.bf16.msra.mxu0 %v1767_v32 }
  0xa2   :  { %1249 = vmatmul.mubr.bf16.vlgmr.msra.gmra.mrb[8].mxu1 %v1771_v34 }
  0xa3   :  { %1239 = vmatmul.mubr.bf16.vlgmr.msra.gmra.mrb[0].mxu0 %v1770_v33 }
 0x155   :  { %v1081_v35 = vpop.f32.mrb[0].mxu1 }
 0x156   :  { %v1083_v36 = vpop.f32.mrb[1].mxu1 }
 0x157   :  { %v1085_v37 = vpop.f32.mrb[2].mxu1 }
 0x158   :  { %v1087_v38 = vpop.f32.mrb[3].mxu1 }
 0x15d   :  { %v1091_v39 = vpop.f32.mrb[4].mxu1 }
 0x15e   :  { %v1197_v40 = vpop.f32.mrb[4].mxu0  ;;  %v1093_v42 = vpop.f32.mrb[5].mxu1 }
 0x15f   :  { %v1501_v41 = vadd.f32 %v1197_v40, %v1091_v39  ;;  %v1199_v43 = vpop.f32.mrb[5].mxu0  ;;  %v1095_v45 = vpop.f32.mrb[6].mxu1 }
 0x160   :  { %v1503_v44 = vadd.f32 %v1199_v43, %v1093_v42  ;;  %v1201_v46 = vpop.f32.mrb[6].mxu0  ;;  %v1097_v48 = vpop.f32.mrb[7].mxu1 }
 0x161   :  { %v1505_v47 = vadd.f32 %v1201_v46, %v1095_v45  ;;  %v1203_v49 = vpop.f32.mrb[7].mxu0 }
 0x162   :  { %v1507_v50 = vadd.f32 %v1203_v49, %v1097_v48 }
 0x175   :  { %v1250_v59 = vpop.f32.mrb[8].mxu1 }
 0x176   :  { %v1240_v58 = vpop.f32.mrb[0].mxu0  ;;  %v1502_v63 = vadd.f32 %v1501_v41, %v1250_v59  ;;  %v1252_v1 = vpop.f32.mrb[9].mxu1 }
 0x177   :  { %v1497_v61 = vadd.f32 %v1240_v58, %v1081_v35  ;;  %v1242_v0 = vpop.f32.mrb[1].mxu0  ;;  %v1504_v4 = vadd.f32 %v1503_v44, %v1252_v1  ;;  %v1254_v6 = vpop.f32.mrb[10].mxu1 }
 0x178   :  { %v1498_v2 = vadd.f32 %v1242_v0, %v1083_v36  ;;  %v1244_v5 = vpop.f32.mrb[2].mxu0  ;;  %v1275_v8 = vmul.f32 %v1502_v63, %v1264_v57  ;;  %v1506_v10 = vadd.f32 %v1505_v47, %v1254_v6  ;;  %v1256_v12 = vpop.f32.mrb[11].mxu1 }
 0x179   :  { %v1271_v7 = vmul.f32 %v1497_v61, %v1264_v57  ;;  %v1499_v9 = vadd.f32 %v1244_v5, %v1085_v37  ;;  %v1246_v11 = vpop.f32.mrb[3].mxu0  ;;  %v1276_v14 = vmul.f32 %v1504_v4, %v1268_v60  ;;  %v1508_v16 = vadd.f32 %v1507_v50, %v1256_v12 }
 0x17a   :  { %v1272_v13 = vmul.f32 %v1498_v2, %v1268_v60  ;;  %v1500_v15 = vadd.f32 %v1246_v11, %v1087_v38  ;;  %v1295_v18 = vadd.f32 %v1284_v62, %v1275_v8  ;;  %v1277_v20 = vmul.f32 %v1506_v10, %v1264_v57 }
 0x17b   :  { %v1291_v17 = vadd.f32 %v1284_v62, %v1271_v7  ;;  %v1273_v19 = vmul.f32 %v1499_v9, %v1264_v57  ;;  %v1296_v22 = vadd.f32 %v1288_v3, %v1276_v14  ;;  %v1278_v24 = vmul.f32 %v1508_v16, %v1268_v60 }
 0x17c   :  { %v1292_v21 = vadd.f32 %v1288_v3, %v1272_v13  ;;  %v1274_v23 = vmul.f32 %v1500_v15, %v1268_v60  ;;  %v1303_v26 = vmax.f32 %v1295_v18, 0.0  ;;  %v1297_v28 = vadd.f32 %v1284_v62, %v1277_v20 }
 0x17d   :  { %v1299_v25 = vmax.f32 %v1291_v17, 0.0  ;;  %v1293_v27 = vadd.f32 %v1284_v62, %v1273_v19  ;;  %v1304_v30 = vmax.f32 %v1296_v22, 0.0  ;;  %v1298_v32 = vadd.f32 %v1288_v3, %v1278_v24 }
 0x17e   :  { %v1300_v29 = vmax.f32 %v1292_v21, 0.0  ;;  %v1294_v31 = vadd.f32 %v1288_v3, %v1274_v23  ;;  %1311 = vst [vmem:[%s2318_s4 + $0x20] sm:$0xff] %v1303_v26  ;;  %v1305_v34 = vmax.f32 %v1297_v28, 0.0 }
 0x17f   :  { %1307 = vst [vmem:[%s2318_s4] sm:$0xff] %v1299_v25  ;;  %v1301_v33 = vmax.f32 %v1293_v27, 0.0  ;;  %1312 = vst [vmem:[%s2318_s4 + $0x28] sm:$0xff] %v1304_v30  ;;  %v1306_v36 = vmax.f32 %v1298_v32, 0.0 }
 0x180   :  { %1308 = vst [vmem:[%s2318_s4 + $0x8] sm:$0xff] %v1300_v29  ;;  %v1302_v35 = vmax.f32 %v1294_v31, 0.0  ;;  %1313 = vst [vmem:[%s2318_s4 + $0x30] sm:$0xff] %v1305_v34 }
 0x181   :  { %1309 = vst [vmem:[%s2318_s4 + $0x10] sm:$0xff] %v1301_v33  ;;  %1314 = vst [vmem:[%s2318_s4 + $0x38] sm:$0xff] %v1306_v36 }
 0x182   :  { %1310 = vst [vmem:[%s2318_s4 + $0x18] sm:$0xff] %v1302_v35 }

// kernel: _lambda_.12
= control target key start
LH: loop header
LB: loop body
LE: loop exit
PB: predicated region body
PF: predicated region fallthrough
CT: control target
= control target key end

     0   :  { %s4772_s1 = inlined_call_operand.vmem [shape: bf16[2304,256], index: 1, kind: input, shape index: {}]   ;;  %s4773_s0 = inlined_call_operand.vmem [shape: bf16[32,2304], index: 0, kind: input, shape index: {}]   ;;  %s4774_s5 = inlined_call_operand.vmem [shape: bf16[128,256], index: 5, kind: input, shape index: {}]   ;;  %s4775_s4 = inlined_call_operand.vmem [shape: bf16[32,128], index: 4, kind: input, shape index: {}]   ;;  %s4776_s6 = inlined_call_operand.vmem [shape: f32[1,256], index: 6, kind: input, shape index: {}]   ;;  %s4777_s7 = inlined_call_operand.vmem [shape: f32[1,256], index: 7, kind: input, shape index: {}]   ;;  %s4778_s2 = inlined_call_operand.vmem [shape: f32[1,256], index: 2, kind: input, shape index: {}]   ;;  %s4779_s3 = inlined_call_operand.vmem [shape: f32[1,256], index: 3, kind: input, shape index: {}]   ;;  %s4780_s8 = inlined_call_operand.vmem [shape: f32[32,256], index: 8, kind: output, shape index: {}]  }
   0x1   :  { %v3131_v0 = vld [vmem:[%s4772_s1 + $0x4] ss:$8 sps:$4 sm:$0xff]   ;;  %v3135_v2 = vld [vmem:[%s4772_s1] ss:$8 sps:$4 sm:$0xff]   ;;  %v3137_v4 = vld [vmem:[%s4772_s1 + $0x14] ss:$8 sps:$4 sm:$0xff]  }
   0x2   :  { %v3133_v1 = vld [vmem:[%s4772_s1 + $0x404] ss:$8 sps:$4 sm:$0xff]   ;;  %1974 = vmatprep.subr.bf16.mxu1 %v3131_v0  ;;  %v3136_v3 = vld [vmem:[%s4772_s1 + $0x400] ss:$8 sps:$4 sm:$0xff]   ;;  %v3139_v5 = vld [vmem:[%s4772_s1 + $0x414] ss:$8 sps:$4 sm:$0xff]  }
   0x3   :  { %2186 = vmatprep.subr.bf16.mxu0 %v3133_v1  ;;  %1975 = vmatpush1.bf16.msra.mxu1 %v3135_v2  ;;  %v3141_v6 = vld [vmem:[%s4772_s1 + $0x10] ss:$8 sps:$4 sm:$0xff]   ;;  %v3143_v8 = vld [vmem:[%s4772_s1 + $0x24] ss:$8 sps:$4 sm:$0xff]   ;;  %v3147_v10 = vld [vmem:[%s4772_s1 + $0x20] ss:$8 sps:$4 sm:$0xff]  }
   0x4   :  { %2187 = vmatpush1.bf16.msra.mxu0 %v3136_v3  ;;  %1976 = vmatprep.subr.bf16.mxu1 %v3137_v4  ;;  %v3142_v7 = vld [vmem:[%s4772_s1 + $0x410] ss:$8 sps:$4 sm:$0xff]   ;;  %v3145_v9 = vld [vmem:[%s4772_s1 + $0x424] ss:$8 sps:$4 sm:$0xff]   ;;  %v3148_v11 = vld [vmem:[%s4772_s1 + $0x420] ss:$8 sps:$4 sm:$0xff]  }
   0x5   :  { %2188 = vmatprep.subr.bf16.mxu0 %v3139_v5  ;;  %v3149_v12 = vld [vmem:[%s4772_s1 + $0x34] ss:$8 sps:$4 sm:$0xff]   ;;  %v3153_v14 = vld [vmem:[%s4772_s1 + $0x30] ss:$8 sps:$4 sm:$0xff]   ;;  %v3155_v16 = vld [vmem:[%s4772_s1 + $0x44] ss:$8 sps:$4 sm:$0xff]  }
   0x6   :  { %v3151_v13 = vld [vmem:[%s4772_s1 + $0x434] ss:$8 sps:$4 sm:$0xff]   ;;  %v3154_v15 = vld [vmem:[%s4772_s1 + $0x430] ss:$8 sps:$4 sm:$0xff]   ;;  %v3157_v17 = vld [vmem:[%s4772_s1 + $0x444] ss:$8 sps:$4 sm:$0xff]  }
   0x7   :  { %1977 = vmatpush1.bf16.msra.mxu1 %v3141_v6  ;;  %v3159_v18 = vld [vmem:[%s4772_s1 + $0x40] ss:$8 sps:$4 sm:$0xff]   ;;  %v3161_v20 = vld [vmem:[%s4772_s1 + $0x54] ss:$8 sps:$4 sm:$0xff]   ;;  %v3165_v22 = vld [vmem:[%s4772_s1 + $0x50] ss:$8 sps:$4 sm:$0xff]  }
   0x8   :  { %2189 = vmatpush1.bf16.msra.mxu0 %v3142_v7  ;;  %1978 = vmatprep.subr.bf16.mxu1 %v3143_v8  ;;  %v3160_v19 = vld [vmem:[%s4772_s1 + $0x440] ss:$8 sps:$4 sm:$0xff]   ;;  %v3163_v21 = vld [vmem:[%s4772_s1 + $0x454] ss:$8 sps:$4 sm:$0xff]   ;;  %v3166_v23 = vld [vmem:[%s4772_s1 + $0x450] ss:$8 sps:$4 sm:$0xff]  }
   0x9   :  { %2190 = vmatprep.subr.bf16.mxu0 %v3145_v9  ;;  %v3167_v24 = vld [vmem:[%s4772_s1 + $0x64] ss:$8 sps:$4 sm:$0xff]   ;;  %v3171_v26 = vld [vmem:[%s4772_s1 + $0x60] ss:$8 sps:$4 sm:$0xff]   ;;  %v3173_v28 = vld [vmem:[%s4772_s1 + $0x74] ss:$8 sps:$4 sm:$0xff]  }
   0xa   :  { %v3169_v25 = vld [vmem:[%s4772_s1 + $0x464] ss:$8 sps:$4 sm:$0xff]   ;;  %v3172_v27 = vld [vmem:[%s4772_s1 + $0x460] ss:$8 sps:$4 sm:$0xff]   ;;  %v3175_v29 = vld [vmem:[%s4772_s1 + $0x474] ss:$8 sps:$4 sm:$0xff]  }
   0xb   :  { %1979 = vmatpush1.bf16.msra.mxu1 %v3147_v10  ;;  %v3177_v30 = vld [vmem:[%s4772_s1 + $0x70] ss:$8 sps:$4 sm:$0xff]   ;;  %v3179_v32 = vld [vmem:[%s4772_s1 + $0x84] ss:$8 sps:$4 sm:$0xff]   ;;  %v3183_v34 = vld [vmem:[%s4772_s1 + $0x80] ss:$8 sps:$4 sm:$0xff]  }
   0xc   :  { %2191 = vmatpush1.bf16.msra.mxu0 %v3148_v11  ;;  %1980 = vmatprep.subr.bf16.mxu1 %v3149_v12  ;;  %v3178_v31 = vld [vmem:[%s4772_s1 + $0x470] ss:$8 sps:$4 sm:$0xff]   ;;  %v3181_v33 = vld [vmem:[%s4772_s1 + $0x484] ss:$8 sps:$4 sm:$0xff]   ;;  %v3184_v35 = vld [vmem:[%s4772_s1 + $0x480] ss:$8 sps:$4 sm:$0xff]  }
   0xd   :  { %2192 = vmatprep.subr.bf16.mxu0 %v3151_v13  ;;  %v3185_v36 = vld [vmem:[%s4772_s1 + $0x94] ss:$8 sps:$4 sm:$0xff]   ;;  %v3189_v38 = vld [vmem:[%s4772_s1 + $0x90] ss:$8 sps:$4 sm:$0xff]   ;;  %v3191_v40 = vld [vmem:[%s4772_s1 + $0xa4] ss:$8 sps:$4 sm:$0xff]  }
   0xe   :  { %v3187_v37 = vld [vmem:[%s4772_s1 + $0x494] ss:$8 sps:$4 sm:$0xff]   ;;  %v3190_v39 = vld [vmem:[%s4772_s1 + $0x490] ss:$8 sps:$4 sm:$0xff]   ;;  %v3193_v41 = vld [vmem:[%s4772_s1 + $0x4a4] ss:$8 sps:$4 sm:$0xff]  }
   0xf   :  { %1981 = vmatpush1.bf16.msra.mxu1 %v3153_v14  ;;  %v3195_v42 = vld [vmem:[%s4772_s1 + $0xa0] ss:$8 sps:$4 sm:$0xff]   ;;  %v3197_v44 = vld [vmem:[%s4772_s1 + $0xb4] ss:$8 sps:$4 sm:$0xff]   ;;  %v3201_v46 = vld [vmem:[%s4772_s1 + $0xb0] ss:$8 sps:$4 sm:$0xff]  }
  0x10   :  { %2193 = vmatpush1.bf16.msra.mxu0 %v3154_v15  ;;  %1982 = vmatprep.subr.bf16.mxu1 %v3155_v16  ;;  %v3196_v43 = vld [vmem:[%s4772_s1 + $0x4a0] ss:$8 sps:$4 sm:$0xff]   ;;  %v3199_v45 = vld [vmem:[%s4772_s1 + $0x4b4] ss:$8 sps:$4 sm:$0xff]   ;;  %v3202_v47 = vld [vmem:[%s4772_s1 + $0x4b0] ss:$8 sps:$4 sm:$0xff]  }
  0x11   :  { %2194 = vmatprep.subr.bf16.mxu0 %v3157_v17  ;;  %v3229_v48 = vld [vmem:[%s4773_s0 + $0x4] ss:$72 sps:$4 sm:$0xff]   ;;  %v3207_v52 = vld [vmem:[%s4772_s1 + $0xc0] ss:$8 sps:$4 sm:$0xff]   ;;  %v3209_v54 = vld [vmem:[%s4772_s1 + $0xd4] ss:$8 sps:$4 sm:$0xff]  }
  0x12   :  { %v3203_v49 = vld [vmem:[%s4772_s1 + $0xc4] ss:$8 sps:$4 sm:$0xff]   ;;  %2006 = vmatprep.mubr.bf16.mxu1 %v3229_v48  ;;  %v3208_v53 = vld [vmem:[%s4772_s1 + $0x4c0] ss:$8 sps:$4 sm:$0xff]   ;;  %v3211_v55 = vld [vmem:[%s4772_s1 + $0x4d4] ss:$8 sps:$4 sm:$0xff]  }
  0x13   :  { %1983 = vmatpush1.bf16.msra.mxu1 %v3159_v18  ;;  %v3205_v50 = vld [vmem:[%s4772_s1 + $0x4c4] ss:$8 sps:$4 sm:$0xff]   ;;  %v3213_v56 = vld [vmem:[%s4772_s1 + $0xd0] ss:$8 sps:$4 sm:$0xff]   ;;  %v3219_v60 = vld [vmem:[%s4772_s1 + $0xe0] ss:$8 sps:$4 sm:$0xff]  }
  0x14   :  { %2195 = vmatpush1.bf16.msra.mxu0 %v3160_v19  ;;  %1984 = vmatprep.subr.bf16.mxu1 %v3161_v20  ;;  %v3235_v51 = vld [vmem:[%s4773_s0 + $0x24] ss:$72 sps:$4 sm:$0xff]   ;;  %v3214_v57 = vld [vmem:[%s4772_s1 + $0x4d0] ss:$8 sps:$4 sm:$0xff]   ;;  %v3220_v61 = vld [vmem:[%s4772_s1 + $0x4e0] ss:$8 sps:$4 sm:$0xff]  }
  0x15   :  { %2196 = vmatprep.subr.bf16.mxu0 %v3163_v21  ;;  %2218 = vmatprep.mubr.bf16.mxu0 %v3235_v51  ;;  %v3215_v58 = vld [vmem:[%s4772_s1 + $0xe4] ss:$8 sps:$4 sm:$0xff]   ;;  %v3221_v62 = vld [vmem:[%s4772_s1 + $0xf4] ss:$8 sps:$4 sm:$0xff]   ;;  %v3225_v0 = vld [vmem:[%s4772_s1 + $0xf0] ss:$8 sps:$4 sm:$0xff]  }
  0x16   :  { %v3217_v59 = vld [vmem:[%s4772_s1 + $0x4e4] ss:$8 sps:$4 sm:$0xff]   ;;  %v3223_v63 = vld [vmem:[%s4772_s1 + $0x4f4] ss:$8 sps:$4 sm:$0xff]   ;;  %v3226_v1 = vld [vmem:[%s4772_s1 + $0x4f0] ss:$8 sps:$4 sm:$0xff]  }
  0x17   :  { %1985 = vmatpush1.bf16.msra.mxu1 %v3165_v22  ;;  %v3232_v2 = vld [vmem:[%s4772_s1 + $0x104] ss:$8 sps:$4 sm:$0xff]   ;;  %v3227_v4 = vld [vmem:[%s4773_s0] ss:$72 sps:$4 sm:$0xff]   ;;  %v3241_v8 = vld [vmem:[%s4772_s1 + $0x114] ss:$8 sps:$4 sm:$0xff]  }
  0x18   :  { %2197 = vmatpush1.bf16.msra.mxu0 %v3166_v23  ;;  %1986 = vmatprep.subr.bf16.mxu1 %v3167_v24  ;;  %v3238_v3 = vld [vmem:[%s4772_s1 + $0x504] ss:$8 sps:$4 sm:$0xff]   ;;  %v3230_v5 = vld [vmem:[%s4772_s1 + $0x100] ss:$8 sps:$4 sm:$0xff]   ;;  %v3244_v9 = vld [vmem:[%s4772_s1 + $0x514] ss:$8 sps:$4 sm:$0xff]  }
  0x19   :  { %2198 = vmatprep.subr.bf16.mxu0 %v3169_v25  ;;  %v3233_v6 = vld [vmem:[%s4773_s0 + $0x20] ss:$72 sps:$4 sm:$0xff]   ;;  %v3239_v10 = vld [vmem:[%s4772_s1 + $0x110] ss:$8 sps:$4 sm:$0xff]   ;;  %v3247_v12 = vld [vmem:[%s4772_s1 + $0x124] ss:$8 sps:$4 sm:$0xff]  }
  0x1a   :  { %v3236_v7 = vld [vmem:[%s4772_s1 + $0x500] ss:$8 sps:$4 sm:$0xff]   ;;  %v3242_v11 = vld [vmem:[%s4772_s1 + $0x510] ss:$8 sps:$4 sm:$0xff]   ;;  %v3250_v13 = vld [vmem:[%s4772_s1 + $0x524] ss:$8 sps:$4 sm:$0xff]  }
  0x1b   :  { %1987 = vmatpush1.bf16.msra.mxu1 %v3171_v26  ;;  %v3245_v14 = vld [vmem:[%s4772_s1 + $0x120] ss:$8 sps:$4 sm:$0xff]   ;;  %v3253_v16 = vld [vmem:[%s4772_s1 + $0x134] ss:$8 sps:$4 sm:$0xff]   ;;  %v3251_v18 = vld [vmem:[%s4772_s1 + $0x130] ss:$8 sps:$4 sm:$0xff]  }
  0x1c   :  { %2199 = vmatpush1.bf16.msra.mxu0 %v3172_v27  ;;  %1988 = vmatprep.subr.bf16.mxu1 %v3173_v28  ;;  %v3248_v15 = vld [vmem:[%s4772_s1 + $0x520] ss:$8 sps:$4 sm:$0xff]   ;;  %v3256_v17 = vld [vmem:[%s4772_s1 + $0x534] ss:$8 sps:$4 sm:$0xff]   ;;  %v3254_v19 = vld [vmem:[%s4772_s1 + $0x530] ss:$8 sps:$4 sm:$0xff]  }
  0x1d   :  { %2200 = vmatprep.subr.bf16.mxu0 %v3175_v29  ;;  %v3259_v20 = vld [vmem:[%s4772_s1 + $0x144] ss:$8 sps:$4 sm:$0xff]   ;;  %v3257_v22 = vld [vmem:[%s4772_s1 + $0x140] ss:$8 sps:$4 sm:$0xff]   ;;  %v3265_v24 = vld [vmem:[%s4772_s1 + $0x154] ss:$8 sps:$4 sm:$0xff]  }
  0x1e   :  { %v3262_v21 = vld [vmem:[%s4772_s1 + $0x544] ss:$8 sps:$4 sm:$0xff]   ;;  %v3260_v23 = vld [vmem:[%s4772_s1 + $0x540] ss:$8 sps:$4 sm:$0xff]   ;;  %v3268_v25 = vld [vmem:[%s4772_s1 + $0x554] ss:$8 sps:$4 sm:$0xff]  }
  0x1f   :  { %1989 = vmatpush1.bf16.msra.mxu1 %v3177_v30  ;;  %v3263_v26 = vld [vmem:[%s4772_s1 + $0x150] ss:$8 sps:$4 sm:$0xff]   ;;  %v3317_v28 = vld [vmem:[%s4773_s0 + $0x94] ss:$72 sps:$4 sm:$0xff]   ;;  %v3271_v29 = vld [vmem:[%s4772_s1 + $0x164] ss:$8 sps:$4 sm:$0xff]  }
  0x20   :  { %2201 = vmatpush1.bf16.msra.mxu0 %v3178_v31  ;;  %1990 = vmatprep.subr.bf16.mxu1 %v3179_v32  ;;  %v3266_v27 = vld [vmem:[%s4772_s1 + $0x550] ss:$8 sps:$4 sm:$0xff]   ;;  %v3274_v30 = vld [vmem:[%s4772_s1 + $0x564] ss:$8 sps:$4 sm:$0xff]   ;;  %v3322_v31 = vld [vmem:[%s4773_s0 + $0xb4] ss:$72 sps:$4 sm:$0xff]  }
  0x21   :  { %2202 = vmatprep.subr.bf16.mxu0 %v3181_v33  ;;  %v3269_v32 = vld [vmem:[%s4772_s1 + $0x160] ss:$8 sps:$4 sm:$0xff]   ;;  %v3287_v48 = vld [vmem:[%s4772_s1 + $0x190] ss:$8 sps:$4 sm:$0xff]   ;;  %v3298_v51 = vld [vmem:[%s4772_s1 + $0x5a4] ss:$8 sps:$4 sm:$0xff]  }
  0x22   :  { %v3272_v33 = vld [vmem:[%s4772_s1 + $0x560] ss:$8 sps:$4 sm:$0xff]  }
  0x23   :  { %1991 = vmatpush1.bf16.msra.mxu1 %v3183_v34  ;;  %v3327_v34 = vld [vmem:[%s4773_s0 + $0x90] ss:$72 sps:$4 sm:$0xff]  }
  0x24   :  { %2203 = vmatpush1.bf16.msra.mxu0 %v3184_v35  ;;  %1992 = vmatprep.subr.bf16.mxu1 %v3185_v36  ;;  %v3328_v35 = vld [vmem:[%s4773_s0 + $0xb0] ss:$72 sps:$4 sm:$0xff]   ;;  %v3277_v36 = vld [vmem:[%s4772_s1 + $0x174] ss:$8 sps:$4 sm:$0xff]  }
  0x25   :  { %2204 = vmatprep.subr.bf16.mxu0 %v3187_v37  ;;  %v3280_v37 = vld [vmem:[%s4772_s1 + $0x574] ss:$8 sps:$4 sm:$0xff]  }
  0x27   :  { %1993 = vmatpush1.bf16.msra.mxu1 %v3189_v38  ;;  %v3275_v38 = vld [vmem:[%s4772_s1 + $0x170] ss:$8 sps:$4 sm:$0xff]  }
  0x28   :  { %2205 = vmatpush1.bf16.msra.mxu0 %v3190_v39  ;;  %1994 = vmatprep.subr.bf16.mxu1 %v3191_v40  ;;  %v3278_v39 = vld [vmem:[%s4772_s1 + $0x570] ss:$8 sps:$4 sm:$0xff]   ;;  %v3337_v40 = vld [vmem:[%s4773_s0 + $0xc] ss:$72 sps:$4 sm:$0xff]  }
  0x29   :  { %2206 = vmatprep.subr.bf16.mxu0 %v3193_v41  ;;  %v3283_v41 = vld [vmem:[%s4772_s1 + $0x184] ss:$8 sps:$4 sm:$0xff]  }
  0x2b   :  { %1995 = vmatpush1.bf16.msra.mxu1 %v3195_v42  ;;  %v3286_v42 = vld [vmem:[%s4772_s1 + $0x584] ss:$8 sps:$4 sm:$0xff]  }
  0x2c   :  { %2207 = vmatpush1.bf16.msra.mxu0 %v3196_v43  ;;  %1996 = vmatprep.subr.bf16.mxu1 %v3197_v44  ;;  %v3343_v43 = vld [vmem:[%s4773_s0 + $0x2c] ss:$72 sps:$4 sm:$0xff]   ;;  %v3281_v44 = vld [vmem:[%s4772_s1 + $0x180] ss:$8 sps:$4 sm:$0xff]  }
  0x2d   :  { %2208 = vmatprep.subr.bf16.mxu0 %v3199_v45  ;;  %v3284_v45 = vld [vmem:[%s4772_s1 + $0x580] ss:$8 sps:$4 sm:$0xff]  }
  0x2f   :  { %1997 = vmatpush1.bf16.msra.mxu1 %v3201_v46  ;;  %v3289_v46 = vld [vmem:[%s4772_s1 + $0x194] ss:$8 sps:$4 sm:$0xff]  }
  0x30   :  { %2209 = vmatpush1.bf16.msra.mxu0 %v3202_v47  ;;  %1998 = vmatprep.subr.bf16.mxu1 %v3203_v49  ;;  %v3292_v47 = vld [vmem:[%s4772_s1 + $0x594] ss:$8 sps:$4 sm:$0xff]   ;;  %v3290_v49 = vld [vmem:[%s4772_s1 + $0x590] ss:$8 sps:$4 sm:$0xff]  }
  0x31   :  { %2210 = vmatprep.subr.bf16.mxu0 %v3205_v50  ;;  %v3295_v50 = vld [vmem:[%s4772_s1 + $0x1a4] ss:$8 sps:$4 sm:$0xff]  }
  0x33   :  { %1999 = vmatpush1.bf16.msra.mxu1 %v3207_v52  ;;  %v3293_v52 = vld [vmem:[%s4772_s1 + $0x1a0] ss:$8 sps:$4 sm:$0xff]  }
  0x34   :  { %2211 = vmatpush1.bf16.msra.mxu0 %v3208_v53  ;;  %2000 = vmatprep.subr.bf16.mxu1 %v3209_v54  ;;  %v3296_v53 = vld [vmem:[%s4772_s1 + $0x5a0] ss:$8 sps:$4 sm:$0xff]   ;;  %v3301_v54 = vld [vmem:[%s4772_s1 + $0x1b4] ss:$8 sps:$4 sm:$0xff]  }
  0x35   :  { %2212 = vmatprep.subr.bf16.mxu0 %v3211_v55  ;;  %v3304_v55 = vld [vmem:[%s4772_s1 + $0x5b4] ss:$8 sps:$4 sm:$0xff]  }
  0x37   :  { %2001 = vmatpush1.bf16.msra.mxu1 %v3213_v56  ;;  %v3299_v56 = vld [vmem:[%s4772_s1 + $0x1b0] ss:$8 sps:$4 sm:$0xff]  }
  0x38   :  { %2213 = vmatpush1.bf16.msra.mxu0 %v3214_v57  ;;  %2002 = vmatprep.subr.bf16.mxu1 %v3215_v58  ;;  %v3302_v57 = vld [vmem:[%s4772_s1 + $0x5b0] ss:$8 sps:$4 sm:$0xff]   ;;  %v3307_v58 = vld [vmem:[%s4772_s1 + $0x1c4] ss:$8 sps:$4 sm:$0xff]  }
  0x39   :  { %2214 = vmatprep.subr.bf16.mxu0 %v3217_v59  ;;  %v3310_v59 = vld [vmem:[%s4772_s1 + $0x5c4] ss:$8 sps:$4 sm:$0xff]  }
  0x3b   :  { %2003 = vmatpush1.bf16.msra.mxu1 %v3219_v60  ;;  %v3305_v60 = vld [vmem:[%s4772_s1 + $0x1c0] ss:$8 sps:$4 sm:$0xff]  }
  0x3c   :  { %2215 = vmatpush1.bf16.msra.mxu0 %v3220_v61  ;;  %2004 = vmatprep.subr.bf16.mxu1 %v3221_v62  ;;  %v3308_v61 = vld [vmem:[%s4772_s1 + $0x5c0] ss:$8 sps:$4 sm:$0xff]   ;;  %v3313_v62 = vld [vmem:[%s4772_s1 + $0x1d4] ss:$8 sps:$4 sm:$0xff]  }
  0x3d   :  { %2216 = vmatprep.subr.bf16.mxu0 %v3223_v63  ;;  %v3316_v63 = vld [vmem:[%s4772_s1 + $0x5d4] ss:$8 sps:$4 sm:$0xff]  }
  0x3f   :  { %2005 = vmatpush1.bf16.msra.mxu1 %v3225_v0  ;;  %v3311_v0 = vld [vmem:[%s4772_s1 + $0x1d0] ss:$8 sps:$4 sm:$0xff]  }
  0x40   :  { %2217 = vmatpush1.bf16.msra.mxu0 %v3226_v1  ;;  %2027 = vmatprep.subr.bf16.mxu1 %v3232_v2  ;;  %v3314_v1 = vld [vmem:[%s4772_s1 + $0x5d0] ss:$8 sps:$4 sm:$0xff]   ;;  %v3321_v2 = vld [vmem:[%s4772_s1 + $0x1e4] ss:$8 sps:$4 sm:$0xff]  }
  0x41   :  { %2239 = vmatprep.subr.bf16.mxu0 %v3238_v3  ;;  %v3326_v3 = vld [vmem:[%s4772_s1 + $0x5e4] ss:$8 sps:$4 sm:$0xff]  }
  0x42   :  { %2007 = vmatmul.mubr.bf16.vlgmr.msra.gmra.mrb[0].mxu1 %v3227_v4  ;;  %v3319_v4 = vld [vmem:[%s4772_s1 + $0x1e0] ss:$8 sps:$4 sm:$0xff]  }
  0x43   :  { %2219 = vmatmul.mubr.bf16.vlgmr.msra.gmra.mrb[0].mxu0 %v3233_v6  ;;  %2028 = vmatpush1.bf16.msra.mxu1 %v3230_v5  ;;  %v3324_v5 = vld [vmem:[%s4772_s1 + $0x5e0] ss:$8 sps:$4 sm:$0xff]   ;;  %v3331_v6 = vld [vmem:[%s4772_s1 + $0x1f4] ss:$8 sps:$4 sm:$0xff]  }
  0x44   :  { %2240 = vmatpush1.bf16.msra.mxu0 %v3236_v7  ;;  %2029 = vmatprep.subr.bf16.mxu1 %v3241_v8  ;;  %v3334_v7 = vld [vmem:[%s4772_s1 + $0x5f4] ss:$8 sps:$4 sm:$0xff]   ;;  %v3329_v8 = vld [vmem:[%s4772_s1 + $0x1f0] ss:$8 sps:$4 sm:$0xff]  }
  0x45   :  { %2241 = vmatprep.subr.bf16.mxu0 %v3244_v9  ;;  %2016 = vmatprep.mubr.bf16.mxu1 %v3317_v28  ;;  %v3332_v9 = vld [vmem:[%s4772_s1 + $0x5f0] ss:$8 sps:$4 sm:$0xff]   ;;  %v3361_v28 = vld [vmem:[%s4772_s1 + $0x234] ss:$8 sps:$4 sm:$0xff]  }
  0x46   :  { %2228 = vmatprep.mubr.bf16.mxu0 %v3322_v31  ;;  %v3362_v31 = vld [vmem:[%s4772_s1 + $0x630] ss:$8 sps:$4 sm:$0xff]  }
  0x47   :  { %2030 = vmatpush1.bf16.msra.mxu1 %v3239_v10  ;;  %v3340_v10 = vld [vmem:[%s4772_s1 + $0x204] ss:$8 sps:$4 sm:$0xff]  }
  0x48   :  { %2242 = vmatpush1.bf16.msra.mxu0 %v3242_v11  ;;  %2031 = vmatprep.subr.bf16.mxu1 %v3247_v12  ;;  %v3346_v11 = vld [vmem:[%s4772_s1 + $0x604] ss:$8 sps:$4 sm:$0xff]   ;;  %v3335_v12 = vld [vmem:[%s4773_s0 + $0x8] ss:$72 sps:$4 sm:$0xff]  }
  0x49   :  { %2243 = vmatprep.subr.bf16.mxu0 %v3250_v13  ;;  %v3338_v13 = vld [vmem:[%s4772_s1 + $0x200] ss:$8 sps:$4 sm:$0xff]  }
  0x4a   :  { %2017 = vmatmul.mubr.bf16.gmra.mrb[4].mxu1 %v3327_v34  ;;  %v3370_v34 = vld [vmem:[%s4772_s1 + $0x644] ss:$8 sps:$4 sm:$0xff]  }
  0x4b   :  { %2032 = vmatpush1.bf16.msra.mxu1 %v3245_v14  ;;  %2229 = vmatmul.mubr.bf16.gmra.mrb[4].mxu0 %v3328_v35  ;;  %v3341_v14 = vld [vmem:[%s4773_s0 + $0x28] ss:$72 sps:$4 sm:$0xff]   ;;  %v3451_v35 = vld [vmem:[%s4773_s0 + $0x34] ss:$72 sps:$4 sm:$0xff]  }
  0x4c   :  { %2244 = vmatpush1.bf16.msra.mxu0 %v3248_v15  ;;  %2033 = vmatprep.subr.bf16.mxu1 %v3253_v16  ;;  %v3344_v15 = vld [vmem:[%s4772_s1 + $0x600] ss:$8 sps:$4 sm:$0xff]   ;;  %v3349_v16 = vld [vmem:[%s4772_s1 + $0x214] ss:$8 sps:$4 sm:$0xff]  }
  0x4d   :  { %2245 = vmatprep.subr.bf16.mxu0 %v3256_v17  ;;  %2059 = vmatprep.mubr.bf16.mxu1 %v3337_v40  ;;  %v3352_v17 = vld [vmem:[%s4772_s1 + $0x614] ss:$8 sps:$4 sm:$0xff]   ;;  %v3371_v40 = vld [vmem:[%s4772_s1 + $0x250] ss:$8 sps:$4 sm:$0xff]  }
  0x4e   :  { %2271 = vmatprep.mubr.bf16.mxu0 %v3343_v43  ;;  %v3382_v43 = vld [vmem:[%s4772_s1 + $0x664] ss:$8 sps:$4 sm:$0xff]  }
  0x4f   :  { %2034 = vmatpush1.bf16.msra.mxu1 %v3251_v18  ;;  %v3347_v18 = vld [vmem:[%s4772_s1 + $0x210] ss:$8 sps:$4 sm:$0xff]  }
  0x50   :  { %2246 = vmatpush1.bf16.msra.mxu0 %v3254_v19  ;;  %2035 = vmatprep.subr.bf16.mxu1 %v3259_v20  ;;  %v3350_v19 = vld [vmem:[%s4772_s1 + $0x610] ss:$8 sps:$4 sm:$0xff]   ;;  %v3425_v20 = vld [vmem:[%s4773_s0 + $0x9c] ss:$72 sps:$4 sm:$0xff]  }
  0x51   :  { %2247 = vmatprep.subr.bf16.mxu0 %v3262_v21  ;;  %v3355_v21 = vld [vmem:[%s4772_s1 + $0x224] ss:$8 sps:$4 sm:$0xff]  }
  0x53   :  { %2036 = vmatpush1.bf16.msra.mxu1 %v3257_v22  ;;  %v3358_v22 = vld [vmem:[%s4772_s1 + $0x624] ss:$8 sps:$4 sm:$0xff]  }
  0x54   :  { %2248 = vmatpush1.bf16.msra.mxu0 %v3260_v23  ;;  %2037 = vmatprep.subr.bf16.mxu1 %v3265_v24  ;;  %v3430_v23 = vld [vmem:[%s4773_s0 + $0xbc] ss:$72 sps:$4 sm:$0xff]   ;;  %v3353_v24 = vld [vmem:[%s4772_s1 + $0x220] ss:$8 sps:$4 sm:$0xff]  }
  0x55   :  { %2249 = vmatprep.subr.bf16.mxu0 %v3268_v25  ;;  %v3356_v25 = vld [vmem:[%s4772_s1 + $0x620] ss:$8 sps:$4 sm:$0xff]  }
  0x57   :  { %2038 = vmatpush1.bf16.msra.mxu1 %v3263_v26  ;;  %v3435_v26 = vld [vmem:[%s4773_s0 + $0x98] ss:$72 sps:$4 sm:$0xff]  }
  0x58   :  { %2250 = vmatpush1.bf16.msra.mxu0 %v3266_v27  ;;  %2039 = vmatprep.subr.bf16.mxu1 %v3271_v29  ;;  %v3436_v27 = vld [vmem:[%s4773_s0 + $0xb8] ss:$72 sps:$4 sm:$0xff]   ;;  %v3364_v29 = vld [vmem:[%s4772_s1 + $0x634] ss:$8 sps:$4 sm:$0xff]  }
  0x59   :  { %2251 = vmatprep.subr.bf16.mxu0 %v3274_v30  ;;  %v3359_v30 = vld [vmem:[%s4772_s1 + $0x230] ss:$8 sps:$4 sm:$0xff]  }
  0x5b   :  { %2040 = vmatpush1.bf16.msra.mxu1 %v3269_v32  ;;  %v3445_v32 = vld [vmem:[%s4773_s0 + $0x14] ss:$72 sps:$4 sm:$0xff]  }
  0x5c   :  { %2252 = vmatpush1.bf16.msra.mxu0 %v3272_v33  ;;  %2041 = vmatprep.subr.bf16.mxu1 %v3277_v36  ;;  %v3367_v33 = vld [vmem:[%s4772_s1 + $0x244] ss:$8 sps:$4 sm:$0xff]   ;;  %v3365_v36 = vld [vmem:[%s4772_s1 + $0x240] ss:$8 sps:$4 sm:$0xff]  }
  0x5d   :  { %2253 = vmatprep.subr.bf16.mxu0 %v3280_v37  ;;  %v3368_v37 = vld [vmem:[%s4772_s1 + $0x640] ss:$8 sps:$4 sm:$0xff]  }
  0x5f   :  { %2042 = vmatpush1.bf16.msra.mxu1 %v3275_v38  ;;  %v3373_v38 = vld [vmem:[%s4772_s1 + $0x254] ss:$8 sps:$4 sm:$0xff]  }
  0x60   :  { %2254 = vmatpush1.bf16.msra.mxu0 %v3278_v39  ;;  %2043 = vmatprep.subr.bf16.mxu1 %v3283_v41  ;;  %v3376_v39 = vld [vmem:[%s4772_s1 + $0x654] ss:$8 sps:$4 sm:$0xff]   ;;  %v3374_v41 = vld [vmem:[%s4772_s1 + $0x650] ss:$8 sps:$4 sm:$0xff]  }
  0x61   :  { %2255 = vmatprep.subr.bf16.mxu0 %v3286_v42  ;;  %v3379_v42 = vld [vmem:[%s4772_s1 + $0x264] ss:$8 sps:$4 sm:$0xff]  }
  0x63   :  { %2044 = vmatpush1.bf16.msra.mxu1 %v3281_v44  ;;  %v3377_v44 = vld [vmem:[%s4772_s1 + $0x260] ss:$8 sps:$4 sm:$0xff]  }
  0x64   :  { %2256 = vmatpush1.bf16.msra.mxu0 %v3284_v45  ;;  %2045 = vmatprep.subr.bf16.mxu1 %v3289_v46  ;;  %v3380_v45 = vld [vmem:[%s4772_s1 + $0x660] ss:$8 sps:$4 sm:$0xff]   ;;  %v3385_v46 = vld [vmem:[%s4772_s1 + $0x274] ss:$8 sps:$4 sm:$0xff]  }
  0x65   :  { %2257 = vmatprep.subr.bf16.mxu0 %v3292_v47  ;;  %v3388_v47 = vld [vmem:[%s4772_s1 + $0x674] ss:$8 sps:$4 sm:$0xff]  }
  0x67   :  { %2046 = vmatpush1.bf16.msra.mxu1 %v3287_v48  ;;  %v3383_v48 = vld [vmem:[%s4772_s1 + $0x270] ss:$8 sps:$4 sm:$0xff]  }
  0x68   :  { %2258 = vmatpush1.bf16.msra.mxu0 %v3290_v49  ;;  %2047 = vmatprep.subr.bf16.mxu1 %v3295_v50  ;;  %v3386_v49 = vld [vmem:[%s4772_s1 + $0x670] ss:$8 sps:$4 sm:$0xff]   ;;  %v3391_v50 = vld [vmem:[%s4772_s1 + $0x284] ss:$8 sps:$4 sm:$0xff]  }
  0x69   :  { %2259 = vmatprep.subr.bf16.mxu0 %v3298_v51  ;;  %v3394_v51 = vld [vmem:[%s4772_s1 + $0x684] ss:$8 sps:$4 sm:$0xff]  }
  0x6b   :  { %2048 = vmatpush1.bf16.msra.mxu1 %v3293_v52  ;;  %v3389_v52 = vld [vmem:[%s4772_s1 + $0x280] ss:$8 sps:$4 sm:$0xff]  }
  0x6c   :  { %2260 = vmatpush1.bf16.msra.mxu0 %v3296_v53  ;;  %2049 = vmatprep.subr.bf16.mxu1 %v3301_v54  ;;  %v3392_v53 = vld [vmem:[%s4772_s1 + $0x680] ss:$8 sps:$4 sm:$0xff]   ;;  %v3397_v54 = vld [vmem:[%s4772_s1 + $0x294] ss:$8 sps:$4 sm:$0xff]  }
  0x6d   :  { %2261 = vmatprep.subr.bf16.mxu0 %v3304_v55  ;;  %v3400_v55 = vld [vmem:[%s4772_s1 + $0x694] ss:$8 sps:$4 sm:$0xff]  }
  0x6f   :  { %2050 = vmatpush1.bf16.msra.mxu1 %v3299_v56  ;;  %v3395_v56 = vld [vmem:[%s4772_s1 + $0x290] ss:$8 sps:$4 sm:$0xff]  }
  0x70   :  { %2262 = vmatpush1.bf16.msra.mxu0 %v3302_v57  ;;  %2051 = vmatprep.subr.bf16.mxu1 %v3307_v58  ;;  %v3398_v57 = vld [vmem:[%s4772_s1 + $0x690] ss:$8 sps:$4 sm:$0xff]   ;;  %v3403_v58 = vld [vmem:[%s4772_s1 + $0x2a4] ss:$8 sps:$4 sm:$0xff]  }
  0x71   :  { %2263 = vmatprep.subr.bf16.mxu0 %v3310_v59  ;;  %v3406_v59 = vld [vmem:[%s4772_s1 + $0x6a4] ss:$8 sps:$4 sm:$0xff]  }
  0x73   :  { %2052 = vmatpush1.bf16.msra.mxu1 %v3305_v60  ;;  %v3401_v60 = vld [vmem:[%s4772_s1 + $0x2a0] ss:$8 sps:$4 sm:$0xff]  }
  0x74   :  { %2264 = vmatpush1.bf16.msra.mxu0 %v3308_v61  ;;  %2053 = vmatprep.subr.bf16.mxu1 %v3313_v62  ;;  %v3404_v61 = vld [vmem:[%s4772_s1 + $0x6a0] ss:$8 sps:$4 sm:$0xff]   ;;  %v3409_v62 = vld [vmem:[%s4772_s1 + $0x2b4] ss:$8 sps:$4 sm:$0xff]  }
  0x75   :  { %2265 = vmatprep.subr.bf16.mxu0 %v3316_v63  ;;  %v3412_v63 = vld [vmem:[%s4772_s1 + $0x6b4] ss:$8 sps:$4 sm:$0xff]  }
  0x77   :  { %2054 = vmatpush1.bf16.msra.mxu1 %v3311_v0  ;;  %v3407_v0 = vld [vmem:[%s4772_s1 + $0x2b0] ss:$8 sps:$4 sm:$0xff]  }
  0x78   :  { %2266 = vmatpush1.bf16.msra.mxu0 %v3314_v1  ;;  %2055 = vmatprep.subr.bf16.mxu1 %v3321_v2  ;;  %v3410_v1 = vld [vmem:[%s4772_s1 + $0x6b0] ss:$8 sps:$4 sm:$0xff]   ;;  %v3415_v2 = vld [vmem:[%s4772_s1 + $0x2c4] ss:$8 sps:$4 sm:$0xff]  }
  0x79   :  { %2267 = vmatprep.subr.bf16.mxu0 %v3326_v3  ;;  %v3418_v3 = vld [vmem:[%s4772_s1 + $0x6c4] ss:$8 sps:$4 sm:$0xff]  }
  0x7b   :  { %2056 = vmatpush1.bf16.msra.mxu1 %v3319_v4  ;;  %v3413_v4 = vld [vmem:[%s4772_s1 + $0x2c0] ss:$8 sps:$4 sm:$0xff]  }
  0x7c   :  { %2268 = vmatpush1.bf16.msra.mxu0 %v3324_v5  ;;  %2057 = vmatprep.subr.bf16.mxu1 %v3331_v6  ;;  %v3416_v5 = vld [vmem:[%s4772_s1 + $0x6c0] ss:$8 sps:$4 sm:$0xff]   ;;  %v3421_v6 = vld [vmem:[%s4772_s1 + $0x2d4] ss:$8 sps:$4 sm:$0xff]  }
  0x7d   :  { %2269 = vmatprep.subr.bf16.mxu0 %v3334_v7  ;;  %v3424_v7 = vld [vmem:[%s4772_s1 + $0x6d4] ss:$8 sps:$4 sm:$0xff]  }
  0x7f   :  { %2058 = vmatpush1.bf16.msra.mxu1 %v3329_v8  ;;  %v3419_v8 = vld [vmem:[%s4772_s1 + $0x2d0] ss:$8 sps:$4 sm:$0xff]  }
  0x80   :  { %2270 = vmatpush1.bf16.msra.mxu0 %v3332_v9  ;;  %2080 = vmatprep.subr.bf16.mxu1 %v3340_v10  ;;  %v3422_v9 = vld [vmem:[%s4772_s1 + $0x6d0] ss:$8 sps:$4 sm:$0xff]   ;;  %v3429_v10 = vld [vmem:[%s4772_s1 + $0x2e4] ss:$8 sps:$4 sm:$0xff]  }
  0x81   :  { %2292 = vmatprep.subr.bf16.mxu0 %v3346_v11  ;;  %v3434_v11 = vld [vmem:[%s4772_s1 + $0x6e4] ss:$8 sps:$4 sm:$0xff]  }
  0x82   :  { %2060 = vmatmul.mubr.bf16.vlgmr.msra.gmra.mrb[0].mxu1 %v3335_v12  ;;  %v3427_v12 = vld [vmem:[%s4772_s1 + $0x2e0] ss:$8 sps:$4 sm:$0xff]  }
  0x83   :  { %2272 = vmatmul.mubr.bf16.vlgmr.msra.gmra.mrb[0].mxu0 %v3341_v14  ;;  %2081 = vmatpush1.bf16.msra.mxu1 %v3338_v13  ;;  %v3432_v13 = vld [vmem:[%s4772_s1 + $0x6e0] ss:$8 sps:$4 sm:$0xff]   ;;  %v3439_v14 = vld [vmem:[%s4772_s1 + $0x2f4] ss:$8 sps:$4 sm:$0xff]  }
  0x84   :  { %2293 = vmatpush1.bf16.msra.mxu0 %v3344_v15  ;;  %2082 = vmatprep.subr.bf16.mxu1 %v3349_v16  ;;  %v3442_v15 = vld [vmem:[%s4772_s1 + $0x6f4] ss:$8 sps:$4 sm:$0xff]   ;;  %v3437_v16 = vld [vmem:[%s4772_s1 + $0x2f0] ss:$8 sps:$4 sm:$0xff]  }
  0x85   :  { %2294 = vmatprep.subr.bf16.mxu0 %v3352_v17  ;;  %2069 = vmatprep.mubr.bf16.mxu1 %v3425_v20  ;;  %v3440_v17 = vld [vmem:[%s4772_s1 + $0x6f0] ss:$8 sps:$4 sm:$0xff]  }
  0x86   :  { %2281 = vmatprep.mubr.bf16.mxu0 %v3430_v23  ;;  %v3443_v20 = vld [vmem:[%s4773_s0 + $0x10] ss:$72 sps:$4 sm:$0xff]   ;;  %v3452_v23 = vld [vmem:[%s4772_s1 + $0x700] ss:$8 sps:$4 sm:$0xff]  }
  0x87   :  { %2083 = vmatpush1.bf16.msra.mxu1 %v3347_v18  ;;  %v3448_v18 = vld [vmem:[%s4772_s1 + $0x304] ss:$8 sps:$4 sm:$0xff]  }
  0x88   :  { %2295 = vmatpush1.bf16.msra.mxu0 %v3350_v19  ;;  %2084 = vmatprep.subr.bf16.mxu1 %v3355_v21  ;;  %v3454_v19 = vld [vmem:[%s4772_s1 + $0x704] ss:$8 sps:$4 sm:$0xff]   ;;  %v3446_v21 = vld [vmem:[%s4772_s1 + $0x300] ss:$8 sps:$4 sm:$0xff]  }
  0x89   :  { %2296 = vmatprep.subr.bf16.mxu0 %v3358_v22  ;;  %v3449_v22 = vld [vmem:[%s4773_s0 + $0x30] ss:$72 sps:$4 sm:$0xff]  }
  0x8a   :  { %2070 = vmatmul.mubr.bf16.gmra.mrb[4].mxu1 %v3435_v26  ;;  %v3533_v26 = vld [vmem:[%s4773_s0 + $0xa4] ss:$72 sps:$4 sm:$0xff]  }
  0x8b   :  { %2282 = vmatmul.mubr.bf16.gmra.mrb[4].mxu0 %v3436_v27  ;;  %2085 = vmatpush1.bf16.msra.mxu1 %v3353_v24  ;;  %v3457_v24 = vld [vmem:[%s4772_s1 + $0x314] ss:$8 sps:$4 sm:$0xff]   ;;  %v3539_v27 = vld [vmem:[%s4773_s0 + $0xc4] ss:$72 sps:$4 sm:$0xff]  }
  0x8c   :  { %2297 = vmatpush1.bf16.msra.mxu0 %v3356_v25  ;;  %2086 = vmatprep.subr.bf16.mxu1 %v3361_v28  ;;  %v3460_v25 = vld [vmem:[%s4772_s1 + $0x714] ss:$8 sps:$4 sm:$0xff]   ;;  %v3455_v28 = vld [vmem:[%s4772_s1 + $0x310] ss:$8 sps:$4 sm:$0xff]  }
  0x8d   :  { %2298 = vmatprep.subr.bf16.mxu0 %v3364_v29  ;;  %2112 = vmatprep.mubr.bf16.mxu1 %v3445_v32  ;;  %v3458_v29 = vld [vmem:[%s4772_s1 + $0x710] ss:$8 sps:$4 sm:$0xff]   ;;  %v3461_v32 = vld [vmem:[%s4772_s1 + $0x320] ss:$8 sps:$4 sm:$0xff]  }
  0x8e   :  { %2324 = vmatprep.mubr.bf16.mxu0 %v3451_v35  ;;  %v3544_v35 = vld [vmem:[%s4773_s0 + $0xc0] ss:$72 sps:$4 sm:$0xff]  }
  0x8f   :  { %2087 = vmatpush1.bf16.msra.mxu1 %v3359_v30  ;;  %v3463_v30 = vld [vmem:[%s4772_s1 + $0x324] ss:$8 sps:$4 sm:$0xff]  }
  0x90   :  { %2299 = vmatpush1.bf16.msra.mxu0 %v3362_v31  ;;  %2088 = vmatprep.subr.bf16.mxu1 %v3367_v33  ;;  %v3466_v31 = vld [vmem:[%s4772_s1 + $0x724] ss:$8 sps:$4 sm:$0xff]   ;;  %v3464_v33 = vld [vmem:[%s4772_s1 + $0x720] ss:$8 sps:$4 sm:$0xff]  }
  0x91   :  { %2300 = vmatprep.subr.bf16.mxu0 %v3370_v34  ;;  %v3535_v34 = vld [vmem:[%s4773_s0 + $0xa0] ss:$72 sps:$4 sm:$0xff]  }
  0x93   :  { %2089 = vmatpush1.bf16.msra.mxu1 %v3365_v36  ;;  %v3469_v36 = vld [vmem:[%s4772_s1 + $0x334] ss:$8 sps:$4 sm:$0xff]  }
  0x94   :  { %2301 = vmatpush1.bf16.msra.mxu0 %v3368_v37  ;;  %2090 = vmatprep.subr.bf16.mxu1 %v3373_v38  ;;  %v3472_v37 = vld [vmem:[%s4772_s1 + $0x734] ss:$8 sps:$4 sm:$0xff]  }
  0x95   :  { %2302 = vmatprep.subr.bf16.mxu0 %v3376_v39  ;;  %v3553_v38 = vld [vmem:[%s4773_s0 + $0x1c] ss:$72 sps:$4 sm:$0xff]  }
  0x96   :  { %v3556_v39 = vld [vmem:[%s4773_s0 + $0x3c] ss:$72 sps:$4 sm:$0xff]  }
  0x97   :  { %2091 = vmatpush1.bf16.msra.mxu1 %v3371_v40  ;;  %v3467_v40 = vld [vmem:[%s4772_s1 + $0x330] ss:$8 sps:$4 sm:$0xff]  }
  0x98   :  { %2303 = vmatpush1.bf16.msra.mxu0 %v3374_v41  ;;  %2092 = vmatprep.subr.bf16.mxu1 %v3379_v42  ;;  %v3470_v41 = vld [vmem:[%s4772_s1 + $0x730] ss:$8 sps:$4 sm:$0xff]   ;;  %v3475_v42 = vld [vmem:[%s4772_s1 + $0x344] ss:$8 sps:$4 sm:$0xff]  }
  0x99   :  { %2304 = vmatprep.subr.bf16.mxu0 %v3382_v43  ;;  %v3478_v43 = vld [vmem:[%s4772_s1 + $0x744] ss:$8 sps:$4 sm:$0xff]  }
  0x9b   :  { %2093 = vmatpush1.bf16.msra.mxu1 %v3377_v44  ;;  %v3473_v44 = vld [vmem:[%s4772_s1 + $0x340] ss:$8 sps:$4 sm:$0xff]  }
  0x9c   :  { %2305 = vmatpush1.bf16.msra.mxu0 %v3380_v45  ;;  %2094 = vmatprep.subr.bf16.mxu1 %v3385_v46  ;;  %v3476_v45 = vld [vmem:[%s4772_s1 + $0x740] ss:$8 sps:$4 sm:$0xff]   ;;  %v3481_v46 = vld [vmem:[%s4772_s1 + $0x354] ss:$8 sps:$4 sm:$0xff]  }
  0x9d   :  { %2306 = vmatprep.subr.bf16.mxu0 %v3388_v47  ;;  %v3484_v47 = vld [vmem:[%s4772_s1 + $0x754] ss:$8 sps:$4 sm:$0xff]  }
  0x9f   :  { %2095 = vmatpush1.bf16.msra.mxu1 %v3383_v48  ;;  %v3479_v48 = vld [vmem:[%s4772_s1 + $0x350] ss:$8 sps:$4 sm:$0xff]  }
  0xa0   :  { %2307 = vmatpush1.bf16.msra.mxu0 %v3386_v49  ;;  %2096 = vmatprep.subr.bf16.mxu1 %v3391_v50  ;;  %v3482_v49 = vld [vmem:[%s4772_s1 + $0x750] ss:$8 sps:$4 sm:$0xff]   ;;  %v3487_v50 = vld [vmem:[%s4772_s1 + $0x364] ss:$8 sps:$4 sm:$0xff]  }
  0xa1   :  { %2308 = vmatprep.subr.bf16.mxu0 %v3394_v51  ;;  %v3490_v51 = vld [vmem:[%s4772_s1 + $0x764] ss:$8 sps:$4 sm:$0xff]  }
  0xa3   :  { %2097 = vmatpush1.bf16.msra.mxu1 %v3389_v52  ;;  %v3485_v52 = vld [vmem:[%s4772_s1 + $0x360] ss:$8 sps:$4 sm:$0xff]  }
  0xa4   :  { %2309 = vmatpush1.bf16.msra.mxu0 %v3392_v53  ;;  %2098 = vmatprep.subr.bf16.mxu1 %v3397_v54  ;;  %v3488_v53 = vld [vmem:[%s4772_s1 + $0x760] ss:$8 sps:$4 sm:$0xff]   ;;  %v3493_v54 = vld [vmem:[%s4772_s1 + $0x374] ss:$8 sps:$4 sm:$0xff]  }
  0xa5   :  { %2310 = vmatprep.subr.bf16.mxu0 %v3400_v55  ;;  %v3496_v55 = vld [vmem:[%s4772_s1 + $0x774] ss:$8 sps:$4 sm:$0xff]  }
  0xa7   :  { %2099 = vmatpush1.bf16.msra.mxu1 %v3395_v56  ;;  %v3491_v56 = vld [vmem:[%s4772_s1 + $0x370] ss:$8 sps:$4 sm:$0xff]  }
  0xa8   :  { %2311 = vmatpush1.bf16.msra.mxu0 %v3398_v57  ;;  %2100 = vmatprep.subr.bf16.mxu1 %v3403_v58  ;;  %v3494_v57 = vld [vmem:[%s4772_s1 + $0x770] ss:$8 sps:$4 sm:$0xff]   ;;  %v3499_v58 = vld [vmem:[%s4772_s1 + $0x384] ss:$8 sps:$4 sm:$0xff]  }
  0xa9   :  { %2312 = vmatprep.subr.bf16.mxu0 %v3406_v59  ;;  %v3502_v59 = vld [vmem:[%s4772_s1 + $0x784] ss:$8 sps:$4 sm:$0xff]  }
  0xab   :  { %2101 = vmatpush1.bf16.msra.mxu1 %v3401_v60  ;;  %v3497_v60 = vld [vmem:[%s4772_s1 + $0x380] ss:$8 sps:$4 sm:$0xff]  }
  0xac   :  { %2313 = vmatpush1.bf16.msra.mxu0 %v3404_v61  ;;  %2102 = vmatprep.subr.bf16.mxu1 %v3409_v62  ;;  %v3500_v61 = vld [vmem:[%s4772_s1 + $0x780] ss:$8 sps:$4 sm:$0xff]   ;;  %v3505_v62 = vld [vmem:[%s4772_s1 + $0x394] ss:$8 sps:$4 sm:$0xff]  }
  0xad   :  { %2314 = vmatprep.subr.bf16.mxu0 %v3412_v63  ;;  %v3508_v63 = vld [vmem:[%s4772_s1 + $0x794] ss:$8 sps:$4 sm:$0xff]  }
  0xaf   :  { %2103 = vmatpush1.bf16.msra.mxu1 %v3407_v0  ;;  %v3503_v0 = vld [vmem:[%s4772_s1 + $0x390] ss:$8 sps:$4 sm:$0xff]  }
  0xb0   :  { %2315 = vmatpush1.bf16.msra.mxu0 %v3410_v1  ;;  %2104 = vmatprep.subr.bf16.mxu1 %v3415_v2  ;;  %v3506_v1 = vld [vmem:[%s4772_s1 + $0x790] ss:$8 sps:$4 sm:$0xff]   ;;  %v3511_v2 = vld [vmem:[%s4772_s1 + $0x3a4] ss:$8 sps:$4 sm:$0xff]  }
  0xb1   :  { %2316 = vmatprep.subr.bf16.mxu0 %v3418_v3  ;;  %v3514_v3 = vld [vmem:[%s4772_s1 + $0x7a4] ss:$8 sps:$4 sm:$0xff]  }
  0xb3   :  { %2105 = vmatpush1.bf16.msra.mxu1 %v3413_v4  ;;  %v3509_v4 = vld [vmem:[%s4772_s1 + $0x3a0] ss:$8 sps:$4 sm:$0xff]  }
  0xb4   :  { %2317 = vmatpush1.bf16.msra.mxu0 %v3416_v5  ;;  %2106 = vmatprep.subr.bf16.mxu1 %v3421_v6  ;;  %v3512_v5 = vld [vmem:[%s4772_s1 + $0x7a0] ss:$8 sps:$4 sm:$0xff]   ;;  %v3517_v6 = vld [vmem:[%s4772_s1 + $0x3b4] ss:$8 sps:$4 sm:$0xff]  }
  0xb5   :  { %2318 = vmatprep.subr.bf16.mxu0 %v3424_v7  ;;  %v3520_v7 = vld [vmem:[%s4772_s1 + $0x7b4] ss:$8 sps:$4 sm:$0xff]  }
  0xb7   :  { %2107 = vmatpush1.bf16.msra.mxu1 %v3419_v8  ;;  %v3515_v8 = vld [vmem:[%s4772_s1 + $0x3b0] ss:$8 sps:$4 sm:$0xff]  }
  0xb8   :  { %2319 = vmatpush1.bf16.msra.mxu0 %v3422_v9  ;;  %2108 = vmatprep.subr.bf16.mxu1 %v3429_v10  ;;  %v3518_v9 = vld [vmem:[%s4772_s1 + $0x7b0] ss:$8 sps:$4 sm:$0xff]   ;;  %v3523_v10 = vld [vmem:[%s4772_s1 + $0x3c4] ss:$8 sps:$4 sm:$0xff]  }
  0xb9   :  { %2320 = vmatprep.subr.bf16.mxu0 %v3434_v11  ;;  %v3526_v11 = vld [vmem:[%s4772_s1 + $0x7c4] ss:$8 sps:$4 sm:$0xff]  }
  0xbb   :  { %2109 = vmatpush1.bf16.msra.mxu1 %v3427_v12  ;;  %v3521_v12 = vld [vmem:[%s4772_s1 + $0x3c0] ss:$8 sps:$4 sm:$0xff]  }
  0xbc   :  { %2321 = vmatpush1.bf16.msra.mxu0 %v3432_v13  ;;  %2110 = vmatprep.subr.bf16.mxu1 %v3439_v14  ;;  %v3524_v13 = vld [vmem:[%s4772_s1 + $0x7c0] ss:$8 sps:$4 sm:$0xff]   ;;  %v3529_v14 = vld [vmem:[%s4772_s1 + $0x3d4] ss:$8 sps:$4 sm:$0xff]  }
  0xbd   :  { %2322 = vmatprep.subr.bf16.mxu0 %v3442_v15  ;;  %v3532_v15 = vld [vmem:[%s4772_s1 + $0x7d4] ss:$8 sps:$4 sm:$0xff]  }
  0xbf   :  { %2111 = vmatpush1.bf16.msra.mxu1 %v3437_v16  ;;  %v3527_v16 = vld [vmem:[%s4772_s1 + $0x3d0] ss:$8 sps:$4 sm:$0xff]  }
  0xc0   :  { %2323 = vmatpush1.bf16.msra.mxu0 %v3440_v17  ;;  %2133 = vmatprep.subr.bf16.mxu1 %v3448_v18  ;;  %v3530_v17 = vld [vmem:[%s4772_s1 + $0x7d0] ss:$8 sps:$4 sm:$0xff]   ;;  %v3538_v18 = vld [vmem:[%s4772_s1 + $0x3e4] ss:$8 sps:$4 sm:$0xff]  }
  0xc1   :  { %2345 = vmatprep.subr.bf16.mxu0 %v3454_v19  ;;  %v3543_v19 = vld [vmem:[%s4772_s1 + $0x7e4] ss:$8 sps:$4 sm:$0xff]  }
  0xc2   :  { %2113 = vmatmul.mubr.bf16.vlgmr.msra.gmra.mrb[0].mxu1 %v3443_v20  ;;  %v3536_v20 = vld [vmem:[%s4772_s1 + $0x3e0] ss:$8 sps:$4 sm:$0xff]  }
  0xc3   :  { %2325 = vmatmul.mubr.bf16.vlgmr.msra.gmra.mrb[0].mxu0 %v3449_v22  ;;  %2134 = vmatpush1.bf16.msra.mxu1 %v3446_v21  ;;  %v3541_v21 = vld [vmem:[%s4772_s1 + $0x7e0] ss:$8 sps:$4 sm:$0xff]   ;;  %v3547_v22 = vld [vmem:[%s4772_s1 + $0x3f4] ss:$8 sps:$4 sm:$0xff]  }
  0xc4   :  { %2346 = vmatpush1.bf16.msra.mxu0 %v3452_v23  ;;  %2135 = vmatprep.subr.bf16.mxu1 %v3457_v24  ;;  %v3550_v23 = vld [vmem:[%s4772_s1 + $0x7f4] ss:$8 sps:$4 sm:$0xff]   ;;  %v3545_v24 = vld [vmem:[%s4772_s1 + $0x3f0] ss:$8 sps:$4 sm:$0xff]  }
  0xc5   :  { %2347 = vmatprep.subr.bf16.mxu0 %v3460_v25  ;;  %2122 = vmatprep.mubr.bf16.mxu1 %v3533_v26  ;;  %v3548_v25 = vld [vmem:[%s4772_s1 + $0x7f0] ss:$8 sps:$4 sm:$0xff]   ;;  %v3559_v26 = vld [vmem:[%s4772_s1 + $0x804] ss:$8 sps:$4 sm:$0xff]  }
  0xc6   :  { %2334 = vmatprep.mubr.bf16.mxu0 %v3539_v27  ;;  %v3586_v27 = vld [vmem:[%s4774_s5 + $0x4] ss:$8 sps:$4 sm:$0xff]  }
  0xc7   :  { %2136 = vmatpush1.bf16.msra.mxu1 %v3455_v28  ;;  %v3551_v28 = vld [vmem:[%s4773_s0 + $0x18] ss:$72 sps:$4 sm:$0xff]  }
  0xc8   :  { %2348 = vmatpush1.bf16.msra.mxu0 %v3458_v29  ;;  %2137 = vmatprep.subr.bf16.mxu1 %v3463_v30  ;;  %v3554_v29 = vld [vmem:[%s4773_s0 + $0x38] ss:$72 sps:$4 sm:$0xff]  }
  0xc9   :  { %2349 = vmatprep.subr.bf16.mxu0 %v3466_v31  ;;  %v3557_v30 = vld [vmem:[%s4772_s1 + $0x800] ss:$8 sps:$4 sm:$0xff]   ;;  %v3563_v31 = vld [vmem:[%s4773_s0 + $0xac] ss:$72 sps:$4 sm:$0xff]  }
  0xca   :  { %2123 = vmatmul.mubr.bf16.gmra.mrb[4].mxu1 %v3535_v34  ;;  %v3592_v34 = vld [vmem:[%s4774_s5 + $0x14] ss:$8 sps:$4 sm:$0xff]  }
  0xcb   :  { %2335 = vmatmul.mubr.bf16.gmra.mrb[4].mxu0 %v3544_v35  ;;  %2138 = vmatpush1.bf16.msra.mxu1 %v3461_v32  ;;  %v3562_v32 = vld [vmem:[%s4772_s1 + $0x814] ss:$8 sps:$4 sm:$0xff]  }
  0xcc   :  { %2350 = vmatpush1.bf16.msra.mxu0 %v3464_v33  ;;  %2139 = vmatprep.subr.bf16.mxu1 %v3469_v36  ;;  %v3584_v33 = vld [vmem:[%s4774_s5] ss:$8 sps:$4 sm:$0xff]   ;;  %v3620_v35 = vld [vmem:[%s4773_s0 + $0xcc] ss:$72 sps:$4 sm:$0xff]   ;;  %v3560_v36 = vld [vmem:[%s4772_s1 + $0x810] ss:$8 sps:$4 sm:$0xff]  }
  0xcd   :  { %2351 = vmatprep.subr.bf16.mxu0 %v3472_v37  ;;  %2165 = vmatprep.mubr.bf16.mxu1 %v3553_v38  ;;  %v3568_v37 = vld [vmem:[%s4772_s1 + $0x824] ss:$8 sps:$4 sm:$0xff]   ;;  %v3590_v38 = vld [vmem:[%s4774_s5 + $0x10] ss:$8 sps:$4 sm:$0xff]  }
  0xce   :  { %2377 = vmatprep.mubr.bf16.mxu0 %v3556_v39  ;;  %v3598_v39 = vld [vmem:[%s4774_s5 + $0x24] ss:$8 sps:$4 sm:$0xff]  }
  0xcf   :  { %2140 = vmatpush1.bf16.msra.mxu1 %v3467_v40  ;;  %v3565_v40 = vld [vmem:[%s4773_s0 + $0xa8] ss:$72 sps:$4 sm:$0xff]  }
  0xd0   :  { %2352 = vmatpush1.bf16.msra.mxu0 %v3470_v41  ;;  %2141 = vmatprep.subr.bf16.mxu1 %v3475_v42  ;;  %v3625_v41 = vld [vmem:[%s4773_s0 + $0xc8] ss:$72 sps:$4 sm:$0xff]  }
  0xd1   :  { %2353 = vmatprep.subr.bf16.mxu0 %v3478_v43  ;;  %v3566_v42 = vld [vmem:[%s4772_s1 + $0x820] ss:$8 sps:$4 sm:$0xff]   ;;  %v3571_v43 = vld [vmem:[%s4772_s1 + $0x834] ss:$8 sps:$4 sm:$0xff]  }
  0xd3   :  { %2142 = vmatpush1.bf16.msra.mxu1 %v3473_v44  ;;  %v3596_v44 = vld [vmem:[%s4774_s5 + $0x20] ss:$8 sps:$4 sm:$0xff]  }
  0xd4   :  { %2354 = vmatpush1.bf16.msra.mxu0 %v3476_v45  ;;  %2143 = vmatprep.subr.bf16.mxu1 %v3481_v46  ;;  %v3604_v45 = vld [vmem:[%s4774_s5 + $0x34] ss:$8 sps:$4 sm:$0xff]   ;;  %v3637_v46 = vld [vmem:[%s4773_s0 + $0x44] ss:$72 sps:$4 sm:$0xff]  }
  0xd5   :  { %2355 = vmatprep.subr.bf16.mxu0 %v3484_v47  ;;  %v3569_v47 = vld [vmem:[%s4772_s1 + $0x830] ss:$8 sps:$4 sm:$0xff]  }
  0xd7   :  { %2144 = vmatpush1.bf16.msra.mxu1 %v3479_v48  ;;  %v3643_v48 = vmov 0  }
  0xd8   :  { %2356 = vmatpush1.bf16.msra.mxu0 %v3482_v49  ;;  %2145 = vmatprep.subr.bf16.mxu1 %v3487_v50  ;;  %v3574_v49 = vld [vmem:[%s4772_s1 + $0x844] ss:$8 sps:$4 sm:$0xff]   ;;  %v3602_v50 = vld [vmem:[%s4774_s5 + $0x30] ss:$8 sps:$4 sm:$0xff]  }
  0xd9   :  { %2357 = vmatprep.subr.bf16.mxu0 %v3490_v51  ;;  %v3610_v51 = vld [vmem:[%s4774_s5 + $0x44] ss:$8 sps:$4 sm:$0xff]  }
  0xdb   :  { %2146 = vmatpush1.bf16.msra.mxu1 %v3485_v52  ;;  %v3572_v52 = vld [vmem:[%s4772_s1 + $0x840] ss:$8 sps:$4 sm:$0xff]  }
  0xdc   :  { %2358 = vmatpush1.bf16.msra.mxu0 %v3488_v53  ;;  %2147 = vmatprep.subr.bf16.mxu1 %v3493_v54  ;;  %v3577_v53 = vld [vmem:[%s4772_s1 + $0x854] ss:$8 sps:$4 sm:$0xff]   ;;  %v3608_v54 = vld [vmem:[%s4774_s5 + $0x40] ss:$8 sps:$4 sm:$0xff]  }
  0xdd   :  { %2359 = vmatprep.subr.bf16.mxu0 %v3496_v55  ;;  %v3616_v55 = vld [vmem:[%s4774_s5 + $0x54] ss:$8 sps:$4 sm:$0xff]  }
  0xdf   :  { %2148 = vmatpush1.bf16.msra.mxu1 %v3491_v56  ;;  %v3575_v56 = vld [vmem:[%s4772_s1 + $0x850] ss:$8 sps:$4 sm:$0xff]  }
  0xe0   :  { %2360 = vmatpush1.bf16.msra.mxu0 %v3494_v57  ;;  %2149 = vmatprep.subr.bf16.mxu1 %v3499_v58  ;;  %v3580_v57 = vld [vmem:[%s4772_s1 + $0x864] ss:$8 sps:$4 sm:$0xff]   ;;  %v3614_v58 = vld [vmem:[%s4774_s5 + $0x50] ss:$8 sps:$4 sm:$0xff]  }
  0xe1   :  { %2361 = vmatprep.subr.bf16.mxu0 %v3502_v59  ;;  %v3624_v59 = vld [vmem:[%s4774_s5 + $0x64] ss:$8 sps:$4 sm:$0xff]  }
  0xe3   :  { %2150 = vmatpush1.bf16.msra.mxu1 %v3497_v60  ;;  %v3578_v60 = vld [vmem:[%s4772_s1 + $0x860] ss:$8 sps:$4 sm:$0xff]  }
  0xe4   :  { %2362 = vmatpush1.bf16.msra.mxu0 %v3500_v61  ;;  %2151 = vmatprep.subr.bf16.mxu1 %v3505_v62  ;;  %v3583_v61 = vld [vmem:[%s4772_s1 + $0x874] ss:$8 sps:$4 sm:$0xff]   ;;  %v3622_v62 = vld [vmem:[%s4774_s5 + $0x60] ss:$8 sps:$4 sm:$0xff]  }
  0xe5   :  { %2363 = vmatprep.subr.bf16.mxu0 %v3508_v63  ;;  %v3631_v63 = vld [vmem:[%s4774_s5 + $0x74] ss:$8 sps:$4 sm:$0xff]  }
  0xe7   :  { %2152 = vmatpush1.bf16.msra.mxu1 %v3503_v0  ;;  %v3581_v0 = vld [vmem:[%s4772_s1 + $0x870] ss:$8 sps:$4 sm:$0xff]  }
  0xe8   :  { %2364 = vmatpush1.bf16.msra.mxu0 %v3506_v1  ;;  %2153 = vmatprep.subr.bf16.mxu1 %v3511_v2  ;;  %v3589_v1 = vld [vmem:[%s4772_s1 + $0x884] ss:$8 sps:$4 sm:$0xff]   ;;  %v3629_v2 = vld [vmem:[%s4774_s5 + $0x70] ss:$8 sps:$4 sm:$0xff]  }
  0xe9   :  { %2365 = vmatprep.subr.bf16.mxu0 %v3514_v3  ;;  %v3587_v3 = vld [vmem:[%s4772_s1 + $0x880] ss:$8 sps:$4 sm:$0xff]  }
  0xeb   :  { %2154 = vmatpush1.bf16.msra.mxu1 %v3509_v4  ;;  %v3638_v4 = vld [vmem:[%s4775_s4] sm:$0xff]  }
  0xec   :  { %2366 = vmatpush1.bf16.msra.mxu0 %v3512_v5  ;;  %2155 = vmatprep.subr.bf16.mxu1 %v3517_v6  ;;  %v3595_v5 = vld [vmem:[%s4772_s1 + $0x894] ss:$8 sps:$4 sm:$0xff]   ;;  %v3593_v6 = vld [vmem:[%s4772_s1 + $0x890] ss:$8 sps:$4 sm:$0xff]  }
  0xed   :  { %2367 = vmatprep.subr.bf16.mxu0 %v3520_v7  ;;  %v3601_v7 = vld [vmem:[%s4772_s1 + $0x8a4] ss:$8 sps:$4 sm:$0xff]  }
  0xef   :  { %2156 = vmatpush1.bf16.msra.mxu1 %v3515_v8  ;;  %v3599_v8 = vld [vmem:[%s4772_s1 + $0x8a0] ss:$8 sps:$4 sm:$0xff]  }
  0xf0   :  { %2368 = vmatpush1.bf16.msra.mxu0 %v3518_v9  ;;  %2157 = vmatprep.subr.bf16.mxu1 %v3523_v10  ;;  %v3641_v9 = vld [vmem:[%s4775_s4 + $0x8] sm:$0xff]   ;;  %v3607_v10 = vld [vmem:[%s4772_s1 + $0x8b4] ss:$8 sps:$4 sm:$0xff]  }
  0xf1   :  { %2369 = vmatprep.subr.bf16.mxu0 %v3526_v11  ;;  %v3605_v11 = vld [vmem:[%s4772_s1 + $0x8b0] ss:$8 sps:$4 sm:$0xff]  }
  0xf3   :  { %2158 = vmatpush1.bf16.msra.mxu1 %v3521_v12  ;;  %v3613_v12 = vld [vmem:[%s4772_s1 + $0x8c4] ss:$8 sps:$4 sm:$0xff]  }
  0xf4   :  { %2370 = vmatpush1.bf16.msra.mxu0 %v3524_v13  ;;  %2159 = vmatprep.subr.bf16.mxu1 %v3529_v14  ;;  %v3611_v13 = vld [vmem:[%s4772_s1 + $0x8c0] ss:$8 sps:$4 sm:$0xff]   ;;  %v3619_v14 = vld [vmem:[%s4772_s1 + $0x8d4] ss:$8 sps:$4 sm:$0xff]  }
  0xf5   :  { %2371 = vmatprep.subr.bf16.mxu0 %v3532_v15  ;;  %v3617_v15 = vld [vmem:[%s4772_s1 + $0x8d0] ss:$8 sps:$4 sm:$0xff]  }
  0xf7   :  { %2160 = vmatpush1.bf16.msra.mxu1 %v3527_v16  ;;  %v3628_v16 = vld [vmem:[%s4772_s1 + $0x8e4] ss:$8 sps:$4 sm:$0xff]  }
  0xf8   :  { %2372 = vmatpush1.bf16.msra.mxu0 %v3530_v17  ;;  %2161 = vmatprep.subr.bf16.mxu1 %v3538_v18  ;;  %v3626_v17 = vld [vmem:[%s4772_s1 + $0x8e0] ss:$8 sps:$4 sm:$0xff]   ;;  %v3634_v18 = vld [vmem:[%s4772_s1 + $0x8f4] ss:$8 sps:$4 sm:$0xff]  }
  0xf9   :  { %2373 = vmatprep.subr.bf16.mxu0 %v3543_v19  ;;  %v3632_v19 = vld [vmem:[%s4772_s1 + $0x8f0] ss:$8 sps:$4 sm:$0xff]  }
  0xfb   :  { %2162 = vmatpush1.bf16.msra.mxu1 %v3536_v20  ;;  %v3635_v20 = vld [vmem:[%s4773_s0 + $0x40] ss:$72 sps:$4 sm:$0xff]  }
  0xfc   :  { %2374 = vmatpush1.bf16.msra.mxu0 %v3541_v21  ;;  %2163 = vmatprep.subr.bf16.mxu1 %v3547_v22  ;;  %v3639_v21 = vld [vmem:[%s4773_s0 + $0xd4] ss:$72 sps:$4 sm:$0xff]   ;;  %v3642_v22 = vld [vmem:[%s4773_s0 + $0xd0] ss:$72 sps:$4 sm:$0xff]  }
  0xfd   :  { %2375 = vmatprep.subr.bf16.mxu0 %v3550_v23 }
  0xff   :  { %2164 = vmatpush1.bf16.msra.mxu1 %v3545_v24 }
 0x100   :  { %2376 = vmatpush1.bf16.msra.mxu0 %v3548_v25  ;;  %2603 = vmatprep.subr.bf16.mxu1 %v3586_v27 }
 0x101   :  { %2398 = vmatprep.subr.bf16.mxu0 %v3559_v26 }
 0x102   :  { %2166 = vmatmul.mubr.bf16.vlgmr.msra.gmra.mrb[0].mxu1 %v3551_v28 }
 0x103   :  { %2378 = vmatmul.mubr.bf16.vlgmr.msra.gmra.mrb[0].mxu0 %v3554_v29  ;;  %2175 = vmatprep.mubr.bf16.mxu1 %v3563_v31 }
 0x104   :  { %2399 = vmatpush1.bf16.msra.mxu0 %v3557_v30  ;;  %2604 = vmatpush1.bf16.msra.mxu1 %v3584_v33 }
 0x105   :  { %2400 = vmatprep.subr.bf16.mxu0 %v3562_v32  ;;  %2605 = vmatprep.subr.bf16.mxu1 %v3592_v34 }
 0x106   :  { %2387 = vmatprep.mubr.bf16.mxu0 %v3620_v35 }
 0x108   :  { %2401 = vmatpush1.bf16.msra.mxu0 %v3560_v36  ;;  %2606 = vmatpush1.bf16.msra.mxu1 %v3590_v38 }
 0x109   :  { %2402 = vmatprep.subr.bf16.mxu0 %v3568_v37  ;;  %2607 = vmatprep.subr.bf16.mxu1 %v3598_v39  ;;  %v2453_v39 = vlaneseq }
 0x10a   :  { %2176 = vmatmul.mubr.bf16.gmra.mrb[4].mxu1 %v3565_v40 }
 0x10b   :  { %2388 = vmatmul.mubr.bf16.gmra.mrb[4].mxu0 %v3625_v41  ;;  %2635 = vmatprep.mubr.bf16.mxu1 %v3643_v48  ;;  %v2454_v40 = vshrl.u32 %v2453_v39, 7 }
 0x10c   :  { %2403 = vmatpush1.bf16.msra.mxu0 %v3566_v42  ;;  %2608 = vmatpush1.bf16.msra.mxu1 %v3596_v44  ;;  %v2656_v42 = vld [vmem:[%s4776_s6] sm:$0x3] }
 0x10d   :  { %2404 = vmatprep.subr.bf16.mxu0 %v3571_v43  ;;  %2609 = vmatprep.subr.bf16.mxu1 %v3604_v45  ;;  %v2455_v41 = vsub.s32 0, %v2454_v40  ;;  %v2459_v43 = vsub.s32 1, %v2454_v40  ;;  %v2676_v45 = vld [vmem:[%s4777_s7] sm:$0x3] }
 0x10e   :  { %2430 = vmatprep.mubr.bf16.mxu0 %v3637_v46  ;;  %v2451_v46 = vld [vmem:[%s4778_s2] sm:$0x3] }
 0x10f   :  { %v2661_v44 = vrot.slane %v2656_v42, %v2455_v41 }
 0x110   :  { %2405 = vmatpush1.bf16.msra.mxu0 %v3569_v47  ;;  %2610 = vmatpush1.bf16.msra.mxu1 %v3602_v50  ;;  %v2665_v47 = vrot.slane %v2656_v42, %v2459_v43  ;;  %v4737_v50 = vrot.slane %v2676_v45, %v2455_v41 }
 0x111   :  { %2406 = vmatprep.subr.bf16.mxu0 %v3574_v49  ;;  %2611 = vmatprep.subr.bf16.mxu1 %v3610_v51  ;;  %v2456_v51 = vrot.slane %v2451_v46, %v2455_v41 }
 0x114   :  { %2407 = vmatpush1.bf16.msra.mxu0 %v3572_v52  ;;  %2612 = vmatpush1.bf16.msra.mxu1 %v3608_v54  ;;  %v2685_v54 = vrot.slane %v2676_v45, %v2459_v43 }
 0x115   :  { %2408 = vmatprep.subr.bf16.mxu0 %v3577_v53  ;;  %2613 = vmatprep.subr.bf16.mxu1 %v3616_v55  ;;  %v2460_v55 = vrot.slane %v2451_v46, %v2459_v43 }
 0x118   :  { %2409 = vmatpush1.bf16.msra.mxu0 %v3575_v56  ;;  %2614 = vmatpush1.bf16.msra.mxu1 %v3614_v58 }
 0x119   :  { %2410 = vmatprep.subr.bf16.mxu0 %v3580_v57  ;;  %2615 = vmatprep.subr.bf16.mxu1 %v3624_v59 }
 0x11c   :  { %2411 = vmatpush1.bf16.msra.mxu0 %v3578_v60  ;;  %2616 = vmatpush1.bf16.msra.mxu1 %v3622_v62 }
 0x11d   :  { %2412 = vmatprep.subr.bf16.mxu0 %v3583_v61  ;;  %2617 = vmatprep.subr.bf16.mxu1 %v3631_v63 }
 0x120   :  { %2413 = vmatpush1.bf16.msra.mxu0 %v3581_v0  ;;  %2618 = vmatpush1.bf16.msra.mxu1 %v3629_v2 }
 0x121   :  { %2414 = vmatprep.subr.bf16.mxu0 %v3589_v1 }
 0x123   :  { %2636 = vmatmul.mubr.bf16.vlgmr.msra.gmra.mrb[8].mxu1 %v3638_v4 }
 0x124   :  { %2415 = vmatpush1.bf16.msra.mxu0 %v3587_v3  ;;  %2645 = vmatprep.mubr.bf16.mxu1 %v3643_v48  ;;  %v2471_v48 = vld [vmem:[%s4779_s3] sm:$0x3] }
 0x125   :  { %2416 = vmatprep.subr.bf16.mxu0 %v3595_v5  ;;  %v2476_v57 = vrot.slane %v2471_v48, %v2455_v41  ;;  %v2480_v60 = vrot.slane %v2471_v48, %v2459_v43 }
 0x128   :  { %2417 = vmatpush1.bf16.msra.mxu0 %v3593_v6 }
 0x129   :  { %2418 = vmatprep.subr.bf16.mxu0 %v3601_v7 }
 0x12b   :  { %2646 = vmatmul.mubr.bf16.gmra.mrb[12].mxu1 %v3641_v9 }
 0x12c   :  { %2419 = vmatpush1.bf16.msra.mxu0 %v3599_v8 }
 0x12d   :  { %2420 = vmatprep.subr.bf16.mxu0 %v3607_v10 }
 0x130   :  { %2421 = vmatpush1.bf16.msra.mxu0 %v3605_v11 }
 0x131   :  { %2422 = vmatprep.subr.bf16.mxu0 %v3613_v12 }
 0x134   :  { %2423 = vmatpush1.bf16.msra.mxu0 %v3611_v13 }
 0x135   :  { %2424 = vmatprep.subr.bf16.mxu0 %v3619_v14 }
 0x138   :  { %2425 = vmatpush1.bf16.msra.mxu0 %v3617_v15 }
 0x139   :  { %2426 = vmatprep.subr.bf16.mxu0 %v3628_v16 }
 0x13c   :  { %2427 = vmatpush1.bf16.msra.mxu0 %v3626_v17 }
 0x13d   :  { %2428 = vmatprep.subr.bf16.mxu0 %v3634_v18 }
 0x140   :  { %2429 = vmatpush1.bf16.msra.mxu0 %v3632_v19 }
 0x143   :  { %2431 = vmatmul.mubr.bf16.vlgmr.msra.gmra.mrb[0].mxu0 %v3635_v20 }
 0x144   :  { %2440 = vmatprep.mubr.bf16.mxu0 %v3639_v21 }
 0x14b   :  { %2441 = vmatmul.mubr.bf16.gmra.mrb[4].mxu0 %v3642_v22 }
 0x1d5   :  { %v2167_v23 = vpop.f32.mrb[0].mxu1 }
 0x1d6   :  { %v2169_v24 = vpop.f32.mrb[1].mxu1 }
 0x1d7   :  { %v2171_v25 = vpop.f32.mrb[2].mxu1 }
 0x1d8   :  { %v2173_v26 = vpop.f32.mrb[3].mxu1 }
 0x1dd   :  { %v4715_v27 = vpop.f32.mrb[4].mxu1 }
 0x1de   :  { %v4717_v28 = vpop.f32.mrb[5].mxu1 }
 0x1df   :  { %v4719_v29 = vpop.f32.mrb[6].mxu1 }
 0x1e0   :  { %v4721_v30 = vpop.f32.mrb[7].mxu1 }
 0x1f6   :  { %v2637_v31 = vpop.f32.mrb[8].mxu1 }
 0x1f7   :  { %v2639_v32 = vpop.f32.mrb[9].mxu1  ;;  %v2668_v49 = vmul.f32 %v2661_v44, %v2637_v31 }
 0x1f8   :  { %v2641_v33 = vpop.f32.mrb[10].mxu1  ;;  %v2669_v53 = vmul.f32 %v2665_v47, %v2639_v32 }
 0x1f9   :  { %v2643_v34 = vpop.f32.mrb[11].mxu1  ;;  %v2688_v62 = vadd.f32 %v4737_v50, %v2668_v49  ;;  %v2670_v0 = vmul.f32 %v2661_v44, %v2641_v33 }
 0x1fa   :  { %v2689_v3 = vadd.f32 %v2685_v54, %v2669_v53  ;;  %v2671_v5 = vmul.f32 %v2665_v47, %v2643_v34 }
 0x1fb   :  { %v2690_v13 = vadd.f32 %v4737_v50, %v2670_v0 }
 0x1fc   :  { %v2691_v17 = vadd.f32 %v2685_v54, %v2671_v5 }
 0x1fe   :  { %v2647_v35 = vpop.f32.mrb[12].mxu1 }
 0x1ff   :  { %v2649_v36 = vpop.f32.mrb[13].mxu1  ;;  %v2672_v9 = vmul.f32 %v2661_v44, %v2647_v35 }
 0x200   :  { %v2651_v37 = vpop.f32.mrb[14].mxu1  ;;  %v2673_v15 = vmul.f32 %v2665_v47, %v2649_v36 }
 0x201   :  { %v4723_v38 = vpop.f32.mrb[15].mxu1  ;;  %v2692_v22 = vadd.f32 %v4737_v50, %v2672_v9  ;;  %v2674_v32 = vmul.f32 %v2661_v44, %v2651_v37 }
 0x202   :  { %v2693_v36 = vadd.f32 %v2685_v54, %v2673_v15 }
 0x203   :  { %v2694_v46 = vadd.f32 %v4737_v50, %v2674_v32 }
 0x216   :  { %v2432_v52 = vpop.f32.mrb[0].mxu0 }
 0x217   :  { %v3066_v56 = vadd.f32 %v2432_v52, %v2167_v23  ;;  %v2434_v58 = vpop.f32.mrb[1].mxu0 }
 0x218   :  { %v3067_v59 = vadd.f32 %v2434_v58, %v2169_v24  ;;  %v2436_v61 = vpop.f32.mrb[2].mxu0 }
 0x219   :  { %v2463_v63 = vmul.f32 %v3066_v56, %v2456_v51  ;;  %v3068_v1 = vadd.f32 %v2436_v61, %v2171_v25  ;;  %v2438_v2 = vpop.f32.mrb[3].mxu0 }
 0x21a   :  { %v2464_v4 = vmul.f32 %v3067_v59, %v2460_v55  ;;  %v3069_v6 = vadd.f32 %v2438_v2, %v2173_v26 }
 0x21b   :  { %v2483_v7 = vadd.f32 %v2476_v57, %v2463_v63  ;;  %v2465_v8 = vmul.f32 %v3068_v1, %v2456_v51 }
 0x21c   :  { %v2484_v10 = vadd.f32 %v2480_v60, %v2464_v4  ;;  %v2466_v11 = vmul.f32 %v3069_v6, %v2460_v55 }
 0x21d   :  { %v2696_v12 = vadd.f32 %v2688_v62, %v2483_v7  ;;  %v2485_v14 = vadd.f32 %v2476_v57, %v2465_v8 }
 0x21e   :  { %v2697_v16 = vadd.f32 %v2689_v3, %v2484_v10  ;;  %v2486_v18 = vadd.f32 %v2480_v60, %v2466_v11  ;;  %v2442_v19 = vpop.f32.mrb[4].mxu0 }
 0x21f   :  { %v2704_v20 = vmax.f32 %v2696_v12, 0.0  ;;  %v2698_v21 = vadd.f32 %v2690_v13, %v2485_v14  ;;  %v3070_v23 = vadd.f32 %v2442_v19, %v4715_v27  ;;  %v2444_v24 = vpop.f32.mrb[5].mxu0 }
 0x220   :  { %v2705_v25 = vmax.f32 %v2697_v16, 0.0  ;;  %v2699_v26 = vadd.f32 %v2691_v17, %v2486_v18  ;;  %v3071_v31 = vadd.f32 %v2444_v24, %v4717_v28  ;;  %v2446_v33 = vpop.f32.mrb[6].mxu0  ;;  %v2675_v28 = vmul.f32 %v2665_v47, %v4723_v38 }
 0x221   :  { %2712 = vst [vmem:[%s4780_s8] sm:$0xff] %v2704_v20  ;;  %v2706_v34 = vmax.f32 %v2698_v21, 0.0  ;;  %v2467_v35 = vmul.f32 %v3070_v23, %v2456_v51  ;;  %v3072_v39 = vadd.f32 %v2446_v33, %v4719_v29  ;;  %v2448_v40 = vpop.f32.mrb[7].mxu0 }
 0x222   :  { %2713 = vst [vmem:[%s4780_s8 + $0x8] sm:$0xff] %v2705_v25  ;;  %v2707_v27 = vmax.f32 %v2699_v26, 0.0  ;;  %v2468_v41 = vmul.f32 %v3071_v31, %v2460_v55  ;;  %v3073_v37 = vadd.f32 %v2448_v40, %v4721_v30  ;;  %v2695_v38 = vadd.f32 %v2685_v54, %v2675_v28 }
 0x223   :  { %2714 = vst [vmem:[%s4780_s8 + $0x10] sm:$0xff] %v2706_v34  ;;  %v2487_v42 = vadd.f32 %v2476_v57, %v2467_v35  ;;  %v2469_v43 = vmul.f32 %v3072_v39, %v2456_v51 }
 0x224   :  { %2715 = vst [vmem:[%s4780_s8 + $0x18] sm:$0xff] %v2707_v27  ;;  %v2488_v29 = vadd.f32 %v2480_v60, %v2468_v41  ;;  %v2470_v44 = vmul.f32 %v3073_v37, %v2460_v55 }
 0x225   :  { %v2700_v45 = vadd.f32 %v2692_v22, %v2487_v42  ;;  %v2489_v48 = vadd.f32 %v2476_v57, %v2469_v43 }
 0x226   :  { %v2701_v49 = vadd.f32 %v2693_v36, %v2488_v29  ;;  %v2490_v47 = vadd.f32 %v2480_v60, %v2470_v44 }
 0x227   :  { %v2708_v30 = vmax.f32 %v2700_v45, 0.0  ;;  %v2702_v52 = vadd.f32 %v2694_v46, %v2489_v48 }
 0x228   :  { %v2709_v53 = vmax.f32 %v2701_v49, 0.0  ;;  %v2703_v56 = vadd.f32 %v2695_v38, %v2490_v47 }
 0x229   :  { %2716 = vst [vmem:[%s4780_s8 + $0x20] sm:$0xff] %v2708_v30  ;;  %v2710_v51 = vmax.f32 %v2702_v52, 0.0 }
 0x22a   :  { %2717 = vst [vmem:[%s4780_s8 + $0x28] sm:$0xff] %v2709_v53  ;;  %v2711_v55 = vmax.f32 %v2703_v56, 0.0 }
 0x22b   :  { %2718 = vst [vmem:[%s4780_s8 + $0x30] sm:$0xff] %v2710_v51 }
 0x22c   :  { %2719 = vst [vmem:[%s4780_s8 + $0x38] sm:$0xff] %v2711_v55 }

// kernel: _lambda_.15
= control target key start
LH: loop header
LB: loop body
LE: loop exit
PB: predicated region body
PF: predicated region fallthrough
CT: control target
= control target key end

     0   :  { %s454_s0 = inlined_call_operand.vmem [shape: f32[2,16,256], index: 0, kind: input, shape index: {}]   ;;  %s455_s1 = inlined_call_operand.vmem [shape: bf16[256,128], index: 1, kind: input, shape index: {}]   ;;  %s456_s2 = inlined_call_operand.vmem [shape: f32[1,128], index: 2, kind: input, shape index: {}]   ;;  %s457_s3 = inlined_call_operand.hbm [shape: f32[2,128], index: 3, kind: output, shape index: {}]  }
   0x1   :  { %v306_v0 = vld [vmem:[%s455_s1 + $0x40] sm:$0xff]   ;;  %v308_v2 = vld [vmem:[%s455_s1 + $0x48] sm:$0xff]   ;;  %v310_v4 = vld [vmem:[%s455_s1 + $0x50] sm:$0xff]  }
   0x2   :  { %v307_v1 = vld [vmem:[%s455_s1] sm:$0xff]   ;;  %283 = vmatprep.subr.bf16.mxu0 %v306_v0  ;;  %v309_v3 = vld [vmem:[%s455_s1 + $0x8] sm:$0xff]   ;;  %v311_v5 = vld [vmem:[%s455_s1 + $0x10] sm:$0xff]  }
   0x3   :  { %284 = vmatpush3.bf16.msra.mxu0 %v307_v1  ;;  %v312_v6 = vld [vmem:[%s455_s1 + $0x58] sm:$0xff]   ;;  %v314_v8 = vld [vmem:[%s455_s1 + $0x60] sm:$0xff]   ;;  %v316_v10 = vld [vmem:[%s455_s1 + $0x68] sm:$0xff]  }
   0x4   :  { %285 = vmatprep.subr.bf16.mxu0 %v308_v2  ;;  %v313_v7 = vld [vmem:[%s455_s1 + $0x18] sm:$0xff]   ;;  %v315_v9 = vld [vmem:[%s455_s1 + $0x20] sm:$0xff]   ;;  %v17_v11 = vld [vmem:[%s454_s0 + $0x8] sm:$0xff] }
   0x5   :  { %v19_v12 = vld [vmem:[%s454_s0 + $0x18] sm:$0xff]  ;;  %v21_v13 = vld [vmem:[%s454_s0 + $0x28] sm:$0xff]  ;;  %v16_v16 = vld [vmem:[%s454_s0] sm:$0xff] }
   0x6   :  { %v23_v14 = vld [vmem:[%s454_s0 + $0x38] sm:$0xff]  ;;  %v31_v15 = vadd.f32 %v19_v12, %v17_v11  ;;  %v18_v17 = vld [vmem:[%s454_s0 + $0x10] sm:$0xff]  ;;  %v20_v19 = vld [vmem:[%s454_s0 + $0x20] sm:$0xff] }
   0x7   :  { %286 = vmatpush3.bf16.msra.mxu0 %v309_v3  ;;  %v45_v18 = vadd.f32 %v23_v14, %v21_v13  ;;  %v22_v20 = vld [vmem:[%s454_s0 + $0x30] sm:$0xff]  ;;  %v24_v21 = vadd.f32 %v18_v17, %v16_v16 }
   0x8   :  { %287 = vmatprep.subr.bf16.mxu0 %v310_v4 }
   0xb   :  { %288 = vmatpush3.bf16.msra.mxu0 %v311_v5 }
   0xc   :  { %289 = vmatprep.subr.bf16.mxu0 %v312_v6 }
   0xf   :  { %290 = vmatpush3.bf16.msra.mxu0 %v313_v7 }
  0x10   :  { %291 = vmatprep.subr.bf16.mxu0 %v314_v8 }
  0x11   :  { %8 = vsyncpa [#allocation3], 0  ;;  %v317_v22 = vld [vmem:[%s455_s1 + $0x28] sm:$0xff]   ;;  %v32_v23 = vrot.slane %v31_v15, 4  ;;  %v38_v24 = vadd.f32 %v22_v20, %v20_v19  ;;  %v318_v25 = vld [vmem:[%s455_s1 + $0x70] sm:$0xff]   ;;  %v46_v26 = vrot.slane %v45_v18, 4 }
  0x12   :  { %v25_v27 = vrot.slane %v24_v21, 4  ;;  %v319_v32 = vld [vmem:[%s455_s1 + $0x30] sm:$0xff]   ;;  %v320_v35 = vld [vmem:[%s455_s1 + $0x78] sm:$0xff]   ;;  %vm108_vm0 = vcmask 1041409   ;;  %v266_v6 = vld [vmem:[%s456_s2] ss:$0 sm:$0xff] }
  0x13   :  { %292 = vmatpush3.bf16.msra.mxu0 %v315_v9  ;;  %v33_v28 = vadd.f32 %v32_v23, %v31_v15  ;;  %v39_v29 = vrot.slane %v38_v24, 4  ;;  %v47_v30 = vadd.f32 %v46_v26, %v45_v18  ;;  %v321_v42 = vld [vmem:[%s455_s1 + $0x38] sm:$0xff]   ;;  %s346_s6 = smov [#allocation2]  }
  0x14   :  { %293 = vmatprep.subr.bf16.mxu0 %v316_v10  ;;  %v26_v31 = vadd.f32 %v25_v27, %v24_v21  ;;  %s258_s7 = sshll.u32 %s346_s6, 4  ;;  %s259_s7 = int_to_ptr.vmem [resolvable:$true] %s258_s7 }
  0x15   :  { %v34_v33 = vrot.slane %v33_v28, 2  ;;  %v40_v34 = vadd.f32 %v39_v29, %v38_v24  ;;  %v48_v36 = vrot.slane %v47_v30, 2  ;;  %s322_s8 = scalar_lea.vmem %s259_s7, 32  ;;  %p327_p1 = scmp.lt.s32.totalorder %s259_s7, %s259_s7 }
  0x16   :  { %v27_v37 = vrot.slane %v26_v31, 2  ;;  %p323_p0 = scmp.ne.s32.totalorder %s259_s7, %s322_s8  ;;  %p328_p2 = scmp.lt.s32.totalorder %s322_s8, %s322_s8 }
  0x17   :  { %294 = vmatpush3.bf16.msra.mxu0 %v317_v22  ;;  %v35_v38 = vadd.f32 %v34_v33, %v33_v28  ;;  %v41_v39 = vrot.slane %v40_v34, 2  ;;  %v49_v40 = vadd.f32 %v48_v36, %v47_v30 }
  0x18   :  { %295 = vmatprep.subr.bf16.mxu0 %v318_v25  ;;  %v28_v41 = vadd.f32 %v27_v37, %v26_v31  ;;  %p329_p3 = por %p328_p2, %p327_p1 }
  0x19   :  { %v36_v43 = vrot.slane %v35_v38, 1  ;;  %v42_v44 = vadd.f32 %v41_v39, %v40_v34  ;;  %v50_v45 = vrot.slane %v49_v40, 1 }
  0x1a   :  { %v29_v46 = vrot.slane %v28_v41, 1  ;;  %p330_p4 = pnand %p329_p3, %p323_p0 }
  0x1b   :  { %296 = vmatpush3.bf16.msra.mxu0 %v319_v32  ;;  %v37_v47 = vadd.f32 %v36_v43, %v35_v38  ;;  %v43_v48 = vrot.slane %v42_v44, 1  ;;  %v51_v49 = vadd.f32 %v50_v45, %v49_v40 }
  0x1c   :  { %297 = vmatprep.subr.bf16.mxu0 %v320_v35  ;;  %v30_v50 = vadd.f32 %v29_v46, %v28_v41 }
  0x1d   :  { %v54_v51 = vmul.f32 0.0625, %v37_v47  ;;  %v44_v52 = vadd.f32 %v43_v48, %v42_v44  ;;  %v56_v53 = vmul.f32 0.0625, %v51_v49 }
  0x1e   :  { %v53_v54 = vmul.f32 0.0625, %v30_v50 }
  0x1f   :  { %298 = vmatpush3.bf16.msra.mxu0 %v321_v42  ;;  %v58_v55 = vpack.c.bf16 %v54_v51, %v54_v51  ;;  %v55_v56 = vmul.f32 0.0625, %v44_v52  ;;  %v60_v57 = vpack.c.bf16 %v56_v53, %v56_v53 }
  0x20   :  { %v57_v58 = vpack.c.bf16 %v53_v54, %v53_v54 }
  0x21   :  { %v105_v59 = vunpack.c.l.b16 %v58_v55  ;;  %v59_v60 = vpack.c.bf16 %v55_v56, %v55_v56  ;;  %v107_v61 = vunpack.c.l.b16 %v60_v57 }
  0x22   :  { %v104_v62 = vunpack.c.l.b16 %v57_v58 }
  0x23   :  { %v106_v63 = vunpack.c.l.b16 %v59_v60  ;;  %v110_v0 = vsel %vm108_vm0, %v107_v61, %v105_v59 }
  0x24   :  { %v112_v1 = vpack.c.b16 %v110_v0, %v110_v0 }
  0x25   :  { %v109_v2 = vsel %vm108_vm0, %v106_v63, %v104_v62 }
  0x26   :  { %v111_v3 = vpack.c.b16 %v109_v2, %v109_v2  ;;  %243 = vmatprep.mubr.bf16.mxu0 %v112_v1 }
  0x28   :  { %244 = vmatmul.mubr.bf16.vlgmr.msra.gmra.mrb[0].mxu0 %v111_v3 }
  0xfb   :  { %v299_v4 = vpop.f32.mrb[0].mxu0 }
  0xfc   :  { %v300_v5 = vpop.f32.mrb[1].mxu0 }
  0xfd   :  { %v301_v7 = vadd.f32 %v300_v5, %v299_v4  ;;  %v302_v8 = vpop.f32.mrb[2].mxu0 }
  0xfe   :  { %v303_v9 = vpop.f32.mrb[3].mxu0 }
  0xff   :  { %v246_v10 = vadd.f32 %v301_v7, %v266_v6 }
 0x101   :  { %251 = vst [vmem:[#allocation2] sm:$0x3] %v246_v10 }
 0x102   :  { %333 = shalt.err (!%p330_p4)
}
 0x103   :  { %s334_s11 = scalar_lea.hbm %s457_s3, 32 }
 0x104   :  { %p335_p5 = scmp.ne.s32.totalorder %s457_s3, %s334_s11  ;;  %p338_p6 = scmp.lt.u32.totalorder %s334_s11, %s457_s3 }
 0x106   :  { %p340_p7 = pnand %p338_p6, %p335_p5 }
 0x108   :  { %343 = shalt.err (!%p340_p7)
}
 0x109   :  { %261 = dma.vmem_to_hbm [thread:$0]  %s259_s7, 32, %s457_s3, [#allocation3]  }
 0x10a   :  { %344 = dma.done.wait [#allocation3], 32  }
 0x10b   :  { %345 = vsyncadd [#allocation3], 4294967264 }
 0x10c   :  { %265 = vsyncpa [#allocation3], 1 }

// kernel: _lambda_.13
= control target key start
LH: loop header
LB: loop body
LE: loop exit
PB: predicated region body
PF: predicated region fallthrough
CT: control target
= control target key end

     0   :  { %s4431_s1 = inlined_call_operand.vmem [shape: bf16[2304,256], index: 1, kind: input, shape index: {}]   ;;  %s4432_s0 = inlined_call_operand.vmem [shape: bf16[32,2304], index: 0, kind: input, shape index: {}]   ;;  %s4433_s2 = inlined_call_operand.vmem [shape: f32[1,256], index: 2, kind: input, shape index: {}]   ;;  %s4434_s3 = inlined_call_operand.vmem [shape: f32[1,256], index: 3, kind: input, shape index: {}]   ;;  %s4435_s4 = inlined_call_operand.vmem [shape: f32[32,256], index: 4, kind: output, shape index: {}]  }
   0x1   :  { %v2918_v0 = vld [vmem:[%s4431_s1 + $0x4] ss:$8 sps:$4 sm:$0xff]   ;;  %v2922_v2 = vld [vmem:[%s4431_s1] ss:$8 sps:$4 sm:$0xff]   ;;  %v2924_v4 = vld [vmem:[%s4431_s1 + $0x14] ss:$8 sps:$4 sm:$0xff]  }
   0x2   :  { %v2920_v1 = vld [vmem:[%s4431_s1 + $0x404] ss:$8 sps:$4 sm:$0xff]   ;;  %1961 = vmatprep.subr.bf16.mxu1 %v2918_v0  ;;  %v2923_v3 = vld [vmem:[%s4431_s1 + $0x400] ss:$8 sps:$4 sm:$0xff]   ;;  %v2926_v5 = vld [vmem:[%s4431_s1 + $0x414] ss:$8 sps:$4 sm:$0xff]  }
   0x3   :  { %2173 = vmatprep.subr.bf16.mxu0 %v2920_v1  ;;  %1962 = vmatpush1.bf16.msra.mxu1 %v2922_v2  ;;  %v2928_v6 = vld [vmem:[%s4431_s1 + $0x10] ss:$8 sps:$4 sm:$0xff]   ;;  %v2930_v8 = vld [vmem:[%s4431_s1 + $0x24] ss:$8 sps:$4 sm:$0xff]   ;;  %v2934_v10 = vld [vmem:[%s4431_s1 + $0x20] ss:$8 sps:$4 sm:$0xff]  }
   0x4   :  { %2174 = vmatpush1.bf16.msra.mxu0 %v2923_v3  ;;  %1963 = vmatprep.subr.bf16.mxu1 %v2924_v4  ;;  %v2929_v7 = vld [vmem:[%s4431_s1 + $0x410] ss:$8 sps:$4 sm:$0xff]   ;;  %v2932_v9 = vld [vmem:[%s4431_s1 + $0x424] ss:$8 sps:$4 sm:$0xff]   ;;  %v2935_v11 = vld [vmem:[%s4431_s1 + $0x420] ss:$8 sps:$4 sm:$0xff]  }
   0x5   :  { %2175 = vmatprep.subr.bf16.mxu0 %v2926_v5  ;;  %v2936_v12 = vld [vmem:[%s4431_s1 + $0x34] ss:$8 sps:$4 sm:$0xff]   ;;  %v2940_v14 = vld [vmem:[%s4431_s1 + $0x30] ss:$8 sps:$4 sm:$0xff]   ;;  %v2942_v16 = vld [vmem:[%s4431_s1 + $0x44] ss:$8 sps:$4 sm:$0xff]  }
   0x6   :  { %v2938_v13 = vld [vmem:[%s4431_s1 + $0x434] ss:$8 sps:$4 sm:$0xff]   ;;  %v2941_v15 = vld [vmem:[%s4431_s1 + $0x430] ss:$8 sps:$4 sm:$0xff]   ;;  %v2944_v17 = vld [vmem:[%s4431_s1 + $0x444] ss:$8 sps:$4 sm:$0xff]  }
   0x7   :  { %1964 = vmatpush1.bf16.msra.mxu1 %v2928_v6  ;;  %v2946_v18 = vld [vmem:[%s4431_s1 + $0x40] ss:$8 sps:$4 sm:$0xff]   ;;  %v2948_v20 = vld [vmem:[%s4431_s1 + $0x54] ss:$8 sps:$4 sm:$0xff]   ;;  %v2952_v22 = vld [vmem:[%s4431_s1 + $0x50] ss:$8 sps:$4 sm:$0xff]  }
   0x8   :  { %2176 = vmatpush1.bf16.msra.mxu0 %v2929_v7  ;;  %1965 = vmatprep.subr.bf16.mxu1 %v2930_v8  ;;  %v2947_v19 = vld [vmem:[%s4431_s1 + $0x440] ss:$8 sps:$4 sm:$0xff]   ;;  %v2950_v21 = vld [vmem:[%s4431_s1 + $0x454] ss:$8 sps:$4 sm:$0xff]   ;;  %v2953_v23 = vld [vmem:[%s4431_s1 + $0x450] ss:$8 sps:$4 sm:$0xff]  }
   0x9   :  { %2177 = vmatprep.subr.bf16.mxu0 %v2932_v9  ;;  %v2954_v24 = vld [vmem:[%s4431_s1 + $0x64] ss:$8 sps:$4 sm:$0xff]   ;;  %v2958_v26 = vld [vmem:[%s4431_s1 + $0x60] ss:$8 sps:$4 sm:$0xff]   ;;  %v2960_v28 = vld [vmem:[%s4431_s1 + $0x74] ss:$8 sps:$4 sm:$0xff]  }
   0xa   :  { %v2956_v25 = vld [vmem:[%s4431_s1 + $0x464] ss:$8 sps:$4 sm:$0xff]   ;;  %v2959_v27 = vld [vmem:[%s4431_s1 + $0x460] ss:$8 sps:$4 sm:$0xff]   ;;  %v2962_v29 = vld [vmem:[%s4431_s1 + $0x474] ss:$8 sps:$4 sm:$0xff]  }
   0xb   :  { %1966 = vmatpush1.bf16.msra.mxu1 %v2934_v10  ;;  %v2964_v30 = vld [vmem:[%s4431_s1 + $0x70] ss:$8 sps:$4 sm:$0xff]   ;;  %v2966_v32 = vld [vmem:[%s4431_s1 + $0x84] ss:$8 sps:$4 sm:$0xff]   ;;  %v2970_v34 = vld [vmem:[%s4431_s1 + $0x80] ss:$8 sps:$4 sm:$0xff]  }
   0xc   :  { %2178 = vmatpush1.bf16.msra.mxu0 %v2935_v11  ;;  %1967 = vmatprep.subr.bf16.mxu1 %v2936_v12  ;;  %v2965_v31 = vld [vmem:[%s4431_s1 + $0x470] ss:$8 sps:$4 sm:$0xff]   ;;  %v2968_v33 = vld [vmem:[%s4431_s1 + $0x484] ss:$8 sps:$4 sm:$0xff]   ;;  %v2971_v35 = vld [vmem:[%s4431_s1 + $0x480] ss:$8 sps:$4 sm:$0xff]  }
   0xd   :  { %2179 = vmatprep.subr.bf16.mxu0 %v2938_v13  ;;  %v2972_v36 = vld [vmem:[%s4431_s1 + $0x94] ss:$8 sps:$4 sm:$0xff]   ;;  %v2976_v38 = vld [vmem:[%s4431_s1 + $0x90] ss:$8 sps:$4 sm:$0xff]   ;;  %v2978_v40 = vld [vmem:[%s4431_s1 + $0xa4] ss:$8 sps:$4 sm:$0xff]  }
   0xe   :  { %v2974_v37 = vld [vmem:[%s4431_s1 + $0x494] ss:$8 sps:$4 sm:$0xff]   ;;  %v2977_v39 = vld [vmem:[%s4431_s1 + $0x490] ss:$8 sps:$4 sm:$0xff]   ;;  %v2980_v41 = vld [vmem:[%s4431_s1 + $0x4a4] ss:$8 sps:$4 sm:$0xff]  }
   0xf   :  { %1968 = vmatpush1.bf16.msra.mxu1 %v2940_v14  ;;  %v2982_v42 = vld [vmem:[%s4431_s1 + $0xa0] ss:$8 sps:$4 sm:$0xff]   ;;  %v2984_v44 = vld [vmem:[%s4431_s1 + $0xb4] ss:$8 sps:$4 sm:$0xff]   ;;  %v2988_v46 = vld [vmem:[%s4431_s1 + $0xb0] ss:$8 sps:$4 sm:$0xff]  }
  0x10   :  { %2180 = vmatpush1.bf16.msra.mxu0 %v2941_v15  ;;  %1969 = vmatprep.subr.bf16.mxu1 %v2942_v16  ;;  %v2983_v43 = vld [vmem:[%s4431_s1 + $0x4a0] ss:$8 sps:$4 sm:$0xff]   ;;  %v2986_v45 = vld [vmem:[%s4431_s1 + $0x4b4] ss:$8 sps:$4 sm:$0xff]   ;;  %v2989_v47 = vld [vmem:[%s4431_s1 + $0x4b0] ss:$8 sps:$4 sm:$0xff]  }
  0x11   :  { %2181 = vmatprep.subr.bf16.mxu0 %v2944_v17  ;;  %v3016_v48 = vld [vmem:[%s4432_s0 + $0x4] ss:$72 sps:$4 sm:$0xff]   ;;  %v2994_v52 = vld [vmem:[%s4431_s1 + $0xc0] ss:$8 sps:$4 sm:$0xff]   ;;  %v2996_v54 = vld [vmem:[%s4431_s1 + $0xd4] ss:$8 sps:$4 sm:$0xff]  }
  0x12   :  { %v2990_v49 = vld [vmem:[%s4431_s1 + $0xc4] ss:$8 sps:$4 sm:$0xff]   ;;  %1993 = vmatprep.mubr.bf16.mxu1 %v3016_v48  ;;  %v2995_v53 = vld [vmem:[%s4431_s1 + $0x4c0] ss:$8 sps:$4 sm:$0xff]   ;;  %v2998_v55 = vld [vmem:[%s4431_s1 + $0x4d4] ss:$8 sps:$4 sm:$0xff]  }
  0x13   :  { %1970 = vmatpush1.bf16.msra.mxu1 %v2946_v18  ;;  %v2992_v50 = vld [vmem:[%s4431_s1 + $0x4c4] ss:$8 sps:$4 sm:$0xff]   ;;  %v3000_v56 = vld [vmem:[%s4431_s1 + $0xd0] ss:$8 sps:$4 sm:$0xff]   ;;  %v3006_v60 = vld [vmem:[%s4431_s1 + $0xe0] ss:$8 sps:$4 sm:$0xff]  }
  0x14   :  { %2182 = vmatpush1.bf16.msra.mxu0 %v2947_v19  ;;  %1971 = vmatprep.subr.bf16.mxu1 %v2948_v20  ;;  %v3022_v51 = vld [vmem:[%s4432_s0 + $0x24] ss:$72 sps:$4 sm:$0xff]   ;;  %v3001_v57 = vld [vmem:[%s4431_s1 + $0x4d0] ss:$8 sps:$4 sm:$0xff]   ;;  %v3007_v61 = vld [vmem:[%s4431_s1 + $0x4e0] ss:$8 sps:$4 sm:$0xff]  }
  0x15   :  { %2183 = vmatprep.subr.bf16.mxu0 %v2950_v21  ;;  %2205 = vmatprep.mubr.bf16.mxu0 %v3022_v51  ;;  %v3002_v58 = vld [vmem:[%s4431_s1 + $0xe4] ss:$8 sps:$4 sm:$0xff]   ;;  %v3008_v62 = vld [vmem:[%s4431_s1 + $0xf4] ss:$8 sps:$4 sm:$0xff]   ;;  %v3012_v0 = vld [vmem:[%s4431_s1 + $0xf0] ss:$8 sps:$4 sm:$0xff]  }
  0x16   :  { %v3004_v59 = vld [vmem:[%s4431_s1 + $0x4e4] ss:$8 sps:$4 sm:$0xff]   ;;  %v3010_v63 = vld [vmem:[%s4431_s1 + $0x4f4] ss:$8 sps:$4 sm:$0xff]   ;;  %v3013_v1 = vld [vmem:[%s4431_s1 + $0x4f0] ss:$8 sps:$4 sm:$0xff]  }
  0x17   :  { %1972 = vmatpush1.bf16.msra.mxu1 %v2952_v22  ;;  %v3019_v2 = vld [vmem:[%s4431_s1 + $0x104] ss:$8 sps:$4 sm:$0xff]   ;;  %v3014_v4 = vld [vmem:[%s4432_s0] ss:$72 sps:$4 sm:$0xff]   ;;  %v3028_v8 = vld [vmem:[%s4431_s1 + $0x114] ss:$8 sps:$4 sm:$0xff]  }
  0x18   :  { %2184 = vmatpush1.bf16.msra.mxu0 %v2953_v23  ;;  %1973 = vmatprep.subr.bf16.mxu1 %v2954_v24  ;;  %v3025_v3 = vld [vmem:[%s4431_s1 + $0x504] ss:$8 sps:$4 sm:$0xff]   ;;  %v3017_v5 = vld [vmem:[%s4431_s1 + $0x100] ss:$8 sps:$4 sm:$0xff]   ;;  %v3031_v9 = vld [vmem:[%s4431_s1 + $0x514] ss:$8 sps:$4 sm:$0xff]  }
  0x19   :  { %2185 = vmatprep.subr.bf16.mxu0 %v2956_v25  ;;  %v3020_v6 = vld [vmem:[%s4432_s0 + $0x20] ss:$72 sps:$4 sm:$0xff]   ;;  %v3026_v10 = vld [vmem:[%s4431_s1 + $0x110] ss:$8 sps:$4 sm:$0xff]   ;;  %v3034_v12 = vld [vmem:[%s4431_s1 + $0x124] ss:$8 sps:$4 sm:$0xff]  }
  0x1a   :  { %v3023_v7 = vld [vmem:[%s4431_s1 + $0x500] ss:$8 sps:$4 sm:$0xff]   ;;  %v3029_v11 = vld [vmem:[%s4431_s1 + $0x510] ss:$8 sps:$4 sm:$0xff]   ;;  %v3037_v13 = vld [vmem:[%s4431_s1 + $0x524] ss:$8 sps:$4 sm:$0xff]  }
  0x1b   :  { %1974 = vmatpush1.bf16.msra.mxu1 %v2958_v26  ;;  %v3032_v14 = vld [vmem:[%s4431_s1 + $0x120] ss:$8 sps:$4 sm:$0xff]   ;;  %v3040_v16 = vld [vmem:[%s4431_s1 + $0x134] ss:$8 sps:$4 sm:$0xff]   ;;  %v3038_v18 = vld [vmem:[%s4431_s1 + $0x130] ss:$8 sps:$4 sm:$0xff]  }
  0x1c   :  { %2186 = vmatpush1.bf16.msra.mxu0 %v2959_v27  ;;  %1975 = vmatprep.subr.bf16.mxu1 %v2960_v28  ;;  %v3035_v15 = vld [vmem:[%s4431_s1 + $0x520] ss:$8 sps:$4 sm:$0xff]   ;;  %v3043_v17 = vld [vmem:[%s4431_s1 + $0x534] ss:$8 sps:$4 sm:$0xff]   ;;  %v3041_v19 = vld [vmem:[%s4431_s1 + $0x530] ss:$8 sps:$4 sm:$0xff]  }
  0x1d   :  { %2187 = vmatprep.subr.bf16.mxu0 %v2962_v29  ;;  %v3046_v20 = vld [vmem:[%s4431_s1 + $0x144] ss:$8 sps:$4 sm:$0xff]   ;;  %v3044_v22 = vld [vmem:[%s4431_s1 + $0x140] ss:$8 sps:$4 sm:$0xff]   ;;  %v3052_v24 = vld [vmem:[%s4431_s1 + $0x154] ss:$8 sps:$4 sm:$0xff]  }
  0x1e   :  { %v3049_v21 = vld [vmem:[%s4431_s1 + $0x544] ss:$8 sps:$4 sm:$0xff]   ;;  %v3047_v23 = vld [vmem:[%s4431_s1 + $0x540] ss:$8 sps:$4 sm:$0xff]   ;;  %v3055_v25 = vld [vmem:[%s4431_s1 + $0x554] ss:$8 sps:$4 sm:$0xff]  }
  0x1f   :  { %1976 = vmatpush1.bf16.msra.mxu1 %v2964_v30  ;;  %v3050_v26 = vld [vmem:[%s4431_s1 + $0x150] ss:$8 sps:$4 sm:$0xff]   ;;  %v3104_v28 = vld [vmem:[%s4432_s0 + $0x94] ss:$72 sps:$4 sm:$0xff]   ;;  %v3058_v29 = vld [vmem:[%s4431_s1 + $0x164] ss:$8 sps:$4 sm:$0xff]  }
  0x20   :  { %2188 = vmatpush1.bf16.msra.mxu0 %v2965_v31  ;;  %1977 = vmatprep.subr.bf16.mxu1 %v2966_v32  ;;  %v3053_v27 = vld [vmem:[%s4431_s1 + $0x550] ss:$8 sps:$4 sm:$0xff]   ;;  %v3061_v30 = vld [vmem:[%s4431_s1 + $0x564] ss:$8 sps:$4 sm:$0xff]   ;;  %v3109_v31 = vld [vmem:[%s4432_s0 + $0xb4] ss:$72 sps:$4 sm:$0xff]  }
  0x21   :  { %2189 = vmatprep.subr.bf16.mxu0 %v2968_v33  ;;  %v3056_v32 = vld [vmem:[%s4431_s1 + $0x160] ss:$8 sps:$4 sm:$0xff]   ;;  %v3074_v48 = vld [vmem:[%s4431_s1 + $0x190] ss:$8 sps:$4 sm:$0xff]   ;;  %v3085_v51 = vld [vmem:[%s4431_s1 + $0x5a4] ss:$8 sps:$4 sm:$0xff]  }
  0x22   :  { %v3059_v33 = vld [vmem:[%s4431_s1 + $0x560] ss:$8 sps:$4 sm:$0xff]  }
  0x23   :  { %1978 = vmatpush1.bf16.msra.mxu1 %v2970_v34  ;;  %v3114_v34 = vld [vmem:[%s4432_s0 + $0x90] ss:$72 sps:$4 sm:$0xff]  }
  0x24   :  { %2190 = vmatpush1.bf16.msra.mxu0 %v2971_v35  ;;  %1979 = vmatprep.subr.bf16.mxu1 %v2972_v36  ;;  %v3115_v35 = vld [vmem:[%s4432_s0 + $0xb0] ss:$72 sps:$4 sm:$0xff]   ;;  %v3064_v36 = vld [vmem:[%s4431_s1 + $0x174] ss:$8 sps:$4 sm:$0xff]  }
  0x25   :  { %2191 = vmatprep.subr.bf16.mxu0 %v2974_v37  ;;  %v3067_v37 = vld [vmem:[%s4431_s1 + $0x574] ss:$8 sps:$4 sm:$0xff]  }
  0x27   :  { %1980 = vmatpush1.bf16.msra.mxu1 %v2976_v38  ;;  %v3062_v38 = vld [vmem:[%s4431_s1 + $0x170] ss:$8 sps:$4 sm:$0xff]  }
  0x28   :  { %2192 = vmatpush1.bf16.msra.mxu0 %v2977_v39  ;;  %1981 = vmatprep.subr.bf16.mxu1 %v2978_v40  ;;  %v3065_v39 = vld [vmem:[%s4431_s1 + $0x570] ss:$8 sps:$4 sm:$0xff]   ;;  %v3124_v40 = vld [vmem:[%s4432_s0 + $0xc] ss:$72 sps:$4 sm:$0xff]  }
  0x29   :  { %2193 = vmatprep.subr.bf16.mxu0 %v2980_v41  ;;  %v3070_v41 = vld [vmem:[%s4431_s1 + $0x184] ss:$8 sps:$4 sm:$0xff]  }
  0x2b   :  { %1982 = vmatpush1.bf16.msra.mxu1 %v2982_v42  ;;  %v3073_v42 = vld [vmem:[%s4431_s1 + $0x584] ss:$8 sps:$4 sm:$0xff]  }
  0x2c   :  { %2194 = vmatpush1.bf16.msra.mxu0 %v2983_v43  ;;  %1983 = vmatprep.subr.bf16.mxu1 %v2984_v44  ;;  %v3130_v43 = vld [vmem:[%s4432_s0 + $0x2c] ss:$72 sps:$4 sm:$0xff]   ;;  %v3068_v44 = vld [vmem:[%s4431_s1 + $0x180] ss:$8 sps:$4 sm:$0xff]  }
  0x2d   :  { %2195 = vmatprep.subr.bf16.mxu0 %v2986_v45  ;;  %v3071_v45 = vld [vmem:[%s4431_s1 + $0x580] ss:$8 sps:$4 sm:$0xff]  }
  0x2f   :  { %1984 = vmatpush1.bf16.msra.mxu1 %v2988_v46  ;;  %v3076_v46 = vld [vmem:[%s4431_s1 + $0x194] ss:$8 sps:$4 sm:$0xff]  }
  0x30   :  { %2196 = vmatpush1.bf16.msra.mxu0 %v2989_v47  ;;  %1985 = vmatprep.subr.bf16.mxu1 %v2990_v49  ;;  %v3079_v47 = vld [vmem:[%s4431_s1 + $0x594] ss:$8 sps:$4 sm:$0xff]   ;;  %v3077_v49 = vld [vmem:[%s4431_s1 + $0x590] ss:$8 sps:$4 sm:$0xff]  }
  0x31   :  { %2197 = vmatprep.subr.bf16.mxu0 %v2992_v50  ;;  %v3082_v50 = vld [vmem:[%s4431_s1 + $0x1a4] ss:$8 sps:$4 sm:$0xff]  }
  0x33   :  { %1986 = vmatpush1.bf16.msra.mxu1 %v2994_v52  ;;  %v3080_v52 = vld [vmem:[%s4431_s1 + $0x1a0] ss:$8 sps:$4 sm:$0xff]  }
  0x34   :  { %2198 = vmatpush1.bf16.msra.mxu0 %v2995_v53  ;;  %1987 = vmatprep.subr.bf16.mxu1 %v2996_v54  ;;  %v3083_v53 = vld [vmem:[%s4431_s1 + $0x5a0] ss:$8 sps:$4 sm:$0xff]   ;;  %v3088_v54 = vld [vmem:[%s4431_s1 + $0x1b4] ss:$8 sps:$4 sm:$0xff]  }
  0x35   :  { %2199 = vmatprep.subr.bf16.mxu0 %v2998_v55  ;;  %v3091_v55 = vld [vmem:[%s4431_s1 + $0x5b4] ss:$8 sps:$4 sm:$0xff]  }
  0x37   :  { %1988 = vmatpush1.bf16.msra.mxu1 %v3000_v56  ;;  %v3086_v56 = vld [vmem:[%s4431_s1 + $0x1b0] ss:$8 sps:$4 sm:$0xff]  }
  0x38   :  { %2200 = vmatpush1.bf16.msra.mxu0 %v3001_v57  ;;  %1989 = vmatprep.subr.bf16.mxu1 %v3002_v58  ;;  %v3089_v57 = vld [vmem:[%s4431_s1 + $0x5b0] ss:$8 sps:$4 sm:$0xff]   ;;  %v3094_v58 = vld [vmem:[%s4431_s1 + $0x1c4] ss:$8 sps:$4 sm:$0xff]  }
  0x39   :  { %2201 = vmatprep.subr.bf16.mxu0 %v3004_v59  ;;  %v3097_v59 = vld [vmem:[%s4431_s1 + $0x5c4] ss:$8 sps:$4 sm:$0xff]  }
  0x3b   :  { %1990 = vmatpush1.bf16.msra.mxu1 %v3006_v60  ;;  %v3092_v60 = vld [vmem:[%s4431_s1 + $0x1c0] ss:$8 sps:$4 sm:$0xff]  }
  0x3c   :  { %2202 = vmatpush1.bf16.msra.mxu0 %v3007_v61  ;;  %1991 = vmatprep.subr.bf16.mxu1 %v3008_v62  ;;  %v3095_v61 = vld [vmem:[%s4431_s1 + $0x5c0] ss:$8 sps:$4 sm:$0xff]   ;;  %v3100_v62 = vld [vmem:[%s4431_s1 + $0x1d4] ss:$8 sps:$4 sm:$0xff]  }
  0x3d   :  { %2203 = vmatprep.subr.bf16.mxu0 %v3010_v63  ;;  %v3103_v63 = vld [vmem:[%s4431_s1 + $0x5d4] ss:$8 sps:$4 sm:$0xff]  }
  0x3f   :  { %1992 = vmatpush1.bf16.msra.mxu1 %v3012_v0  ;;  %v3098_v0 = vld [vmem:[%s4431_s1 + $0x1d0] ss:$8 sps:$4 sm:$0xff]  }
  0x40   :  { %2204 = vmatpush1.bf16.msra.mxu0 %v3013_v1  ;;  %2014 = vmatprep.subr.bf16.mxu1 %v3019_v2  ;;  %v3101_v1 = vld [vmem:[%s4431_s1 + $0x5d0] ss:$8 sps:$4 sm:$0xff]   ;;  %v3108_v2 = vld [vmem:[%s4431_s1 + $0x1e4] ss:$8 sps:$4 sm:$0xff]  }
  0x41   :  { %2226 = vmatprep.subr.bf16.mxu0 %v3025_v3  ;;  %v3113_v3 = vld [vmem:[%s4431_s1 + $0x5e4] ss:$8 sps:$4 sm:$0xff]  }
  0x42   :  { %1994 = vmatmul.mubr.bf16.vlgmr.msra.gmra.mrb[0].mxu1 %v3014_v4  ;;  %v3106_v4 = vld [vmem:[%s4431_s1 + $0x1e0] ss:$8 sps:$4 sm:$0xff]  }
  0x43   :  { %2206 = vmatmul.mubr.bf16.vlgmr.msra.gmra.mrb[0].mxu0 %v3020_v6  ;;  %2015 = vmatpush1.bf16.msra.mxu1 %v3017_v5  ;;  %v3111_v5 = vld [vmem:[%s4431_s1 + $0x5e0] ss:$8 sps:$4 sm:$0xff]   ;;  %v3118_v6 = vld [vmem:[%s4431_s1 + $0x1f4] ss:$8 sps:$4 sm:$0xff]  }
  0x44   :  { %2227 = vmatpush1.bf16.msra.mxu0 %v3023_v7  ;;  %2016 = vmatprep.subr.bf16.mxu1 %v3028_v8  ;;  %v3121_v7 = vld [vmem:[%s4431_s1 + $0x5f4] ss:$8 sps:$4 sm:$0xff]   ;;  %v3116_v8 = vld [vmem:[%s4431_s1 + $0x1f0] ss:$8 sps:$4 sm:$0xff]  }
  0x45   :  { %2228 = vmatprep.subr.bf16.mxu0 %v3031_v9  ;;  %2003 = vmatprep.mubr.bf16.mxu1 %v3104_v28  ;;  %v3119_v9 = vld [vmem:[%s4431_s1 + $0x5f0] ss:$8 sps:$4 sm:$0xff]   ;;  %v3148_v28 = vld [vmem:[%s4431_s1 + $0x234] ss:$8 sps:$4 sm:$0xff]  }
  0x46   :  { %2215 = vmatprep.mubr.bf16.mxu0 %v3109_v31  ;;  %v3149_v31 = vld [vmem:[%s4431_s1 + $0x630] ss:$8 sps:$4 sm:$0xff]  }
  0x47   :  { %2017 = vmatpush1.bf16.msra.mxu1 %v3026_v10  ;;  %v3127_v10 = vld [vmem:[%s4431_s1 + $0x204] ss:$8 sps:$4 sm:$0xff]  }
  0x48   :  { %2229 = vmatpush1.bf16.msra.mxu0 %v3029_v11  ;;  %2018 = vmatprep.subr.bf16.mxu1 %v3034_v12  ;;  %v3133_v11 = vld [vmem:[%s4431_s1 + $0x604] ss:$8 sps:$4 sm:$0xff]   ;;  %v3122_v12 = vld [vmem:[%s4432_s0 + $0x8] ss:$72 sps:$4 sm:$0xff]  }
  0x49   :  { %2230 = vmatprep.subr.bf16.mxu0 %v3037_v13  ;;  %v3125_v13 = vld [vmem:[%s4431_s1 + $0x200] ss:$8 sps:$4 sm:$0xff]  }
  0x4a   :  { %2004 = vmatmul.mubr.bf16.gmra.mrb[4].mxu1 %v3114_v34  ;;  %v3157_v34 = vld [vmem:[%s4431_s1 + $0x644] ss:$8 sps:$4 sm:$0xff]  }
  0x4b   :  { %2019 = vmatpush1.bf16.msra.mxu1 %v3032_v14  ;;  %2216 = vmatmul.mubr.bf16.gmra.mrb[4].mxu0 %v3115_v35  ;;  %v3128_v14 = vld [vmem:[%s4432_s0 + $0x28] ss:$72 sps:$4 sm:$0xff]   ;;  %v3238_v35 = vld [vmem:[%s4432_s0 + $0x34] ss:$72 sps:$4 sm:$0xff]  }
  0x4c   :  { %2231 = vmatpush1.bf16.msra.mxu0 %v3035_v15  ;;  %2020 = vmatprep.subr.bf16.mxu1 %v3040_v16  ;;  %v3131_v15 = vld [vmem:[%s4431_s1 + $0x600] ss:$8 sps:$4 sm:$0xff]   ;;  %v3136_v16 = vld [vmem:[%s4431_s1 + $0x214] ss:$8 sps:$4 sm:$0xff]  }
  0x4d   :  { %2232 = vmatprep.subr.bf16.mxu0 %v3043_v17  ;;  %2046 = vmatprep.mubr.bf16.mxu1 %v3124_v40  ;;  %v3139_v17 = vld [vmem:[%s4431_s1 + $0x614] ss:$8 sps:$4 sm:$0xff]   ;;  %v3158_v40 = vld [vmem:[%s4431_s1 + $0x250] ss:$8 sps:$4 sm:$0xff]  }
  0x4e   :  { %2258 = vmatprep.mubr.bf16.mxu0 %v3130_v43  ;;  %v3169_v43 = vld [vmem:[%s4431_s1 + $0x664] ss:$8 sps:$4 sm:$0xff]  }
  0x4f   :  { %2021 = vmatpush1.bf16.msra.mxu1 %v3038_v18  ;;  %v3134_v18 = vld [vmem:[%s4431_s1 + $0x210] ss:$8 sps:$4 sm:$0xff]  }
  0x50   :  { %2233 = vmatpush1.bf16.msra.mxu0 %v3041_v19  ;;  %2022 = vmatprep.subr.bf16.mxu1 %v3046_v20  ;;  %v3137_v19 = vld [vmem:[%s4431_s1 + $0x610] ss:$8 sps:$4 sm:$0xff]   ;;  %v3212_v20 = vld [vmem:[%s4432_s0 + $0x9c] ss:$72 sps:$4 sm:$0xff]  }
  0x51   :  { %2234 = vmatprep.subr.bf16.mxu0 %v3049_v21  ;;  %v3142_v21 = vld [vmem:[%s4431_s1 + $0x224] ss:$8 sps:$4 sm:$0xff]  }
  0x53   :  { %2023 = vmatpush1.bf16.msra.mxu1 %v3044_v22  ;;  %v3145_v22 = vld [vmem:[%s4431_s1 + $0x624] ss:$8 sps:$4 sm:$0xff]  }
  0x54   :  { %2235 = vmatpush1.bf16.msra.mxu0 %v3047_v23  ;;  %2024 = vmatprep.subr.bf16.mxu1 %v3052_v24  ;;  %v3217_v23 = vld [vmem:[%s4432_s0 + $0xbc] ss:$72 sps:$4 sm:$0xff]   ;;  %v3140_v24 = vld [vmem:[%s4431_s1 + $0x220] ss:$8 sps:$4 sm:$0xff]  }
  0x55   :  { %2236 = vmatprep.subr.bf16.mxu0 %v3055_v25  ;;  %v3143_v25 = vld [vmem:[%s4431_s1 + $0x620] ss:$8 sps:$4 sm:$0xff]  }
  0x57   :  { %2025 = vmatpush1.bf16.msra.mxu1 %v3050_v26  ;;  %v3222_v26 = vld [vmem:[%s4432_s0 + $0x98] ss:$72 sps:$4 sm:$0xff]  }
  0x58   :  { %2237 = vmatpush1.bf16.msra.mxu0 %v3053_v27  ;;  %2026 = vmatprep.subr.bf16.mxu1 %v3058_v29  ;;  %v3223_v27 = vld [vmem:[%s4432_s0 + $0xb8] ss:$72 sps:$4 sm:$0xff]   ;;  %v3151_v29 = vld [vmem:[%s4431_s1 + $0x634] ss:$8 sps:$4 sm:$0xff]  }
  0x59   :  { %2238 = vmatprep.subr.bf16.mxu0 %v3061_v30  ;;  %v3146_v30 = vld [vmem:[%s4431_s1 + $0x230] ss:$8 sps:$4 sm:$0xff]  }
  0x5b   :  { %2027 = vmatpush1.bf16.msra.mxu1 %v3056_v32  ;;  %v3232_v32 = vld [vmem:[%s4432_s0 + $0x14] ss:$72 sps:$4 sm:$0xff]  }
  0x5c   :  { %2239 = vmatpush1.bf16.msra.mxu0 %v3059_v33  ;;  %2028 = vmatprep.subr.bf16.mxu1 %v3064_v36  ;;  %v3154_v33 = vld [vmem:[%s4431_s1 + $0x244] ss:$8 sps:$4 sm:$0xff]   ;;  %v3152_v36 = vld [vmem:[%s4431_s1 + $0x240] ss:$8 sps:$4 sm:$0xff]  }
  0x5d   :  { %2240 = vmatprep.subr.bf16.mxu0 %v3067_v37  ;;  %v3155_v37 = vld [vmem:[%s4431_s1 + $0x640] ss:$8 sps:$4 sm:$0xff]  }
  0x5f   :  { %2029 = vmatpush1.bf16.msra.mxu1 %v3062_v38  ;;  %v3160_v38 = vld [vmem:[%s4431_s1 + $0x254] ss:$8 sps:$4 sm:$0xff]  }
  0x60   :  { %2241 = vmatpush1.bf16.msra.mxu0 %v3065_v39  ;;  %2030 = vmatprep.subr.bf16.mxu1 %v3070_v41  ;;  %v3163_v39 = vld [vmem:[%s4431_s1 + $0x654] ss:$8 sps:$4 sm:$0xff]   ;;  %v3161_v41 = vld [vmem:[%s4431_s1 + $0x650] ss:$8 sps:$4 sm:$0xff]  }
  0x61   :  { %2242 = vmatprep.subr.bf16.mxu0 %v3073_v42  ;;  %v3166_v42 = vld [vmem:[%s4431_s1 + $0x264] ss:$8 sps:$4 sm:$0xff]  }
  0x63   :  { %2031 = vmatpush1.bf16.msra.mxu1 %v3068_v44  ;;  %v3164_v44 = vld [vmem:[%s4431_s1 + $0x260] ss:$8 sps:$4 sm:$0xff]  }
  0x64   :  { %2243 = vmatpush1.bf16.msra.mxu0 %v3071_v45  ;;  %2032 = vmatprep.subr.bf16.mxu1 %v3076_v46  ;;  %v3167_v45 = vld [vmem:[%s4431_s1 + $0x660] ss:$8 sps:$4 sm:$0xff]   ;;  %v3172_v46 = vld [vmem:[%s4431_s1 + $0x274] ss:$8 sps:$4 sm:$0xff]  }
  0x65   :  { %2244 = vmatprep.subr.bf16.mxu0 %v3079_v47  ;;  %v3175_v47 = vld [vmem:[%s4431_s1 + $0x674] ss:$8 sps:$4 sm:$0xff]  }
  0x67   :  { %2033 = vmatpush1.bf16.msra.mxu1 %v3074_v48  ;;  %v3170_v48 = vld [vmem:[%s4431_s1 + $0x270] ss:$8 sps:$4 sm:$0xff]  }
  0x68   :  { %2245 = vmatpush1.bf16.msra.mxu0 %v3077_v49  ;;  %2034 = vmatprep.subr.bf16.mxu1 %v3082_v50  ;;  %v3173_v49 = vld [vmem:[%s4431_s1 + $0x670] ss:$8 sps:$4 sm:$0xff]   ;;  %v3178_v50 = vld [vmem:[%s4431_s1 + $0x284] ss:$8 sps:$4 sm:$0xff]  }
  0x69   :  { %2246 = vmatprep.subr.bf16.mxu0 %v3085_v51  ;;  %v3181_v51 = vld [vmem:[%s4431_s1 + $0x684] ss:$8 sps:$4 sm:$0xff]  }
  0x6b   :  { %2035 = vmatpush1.bf16.msra.mxu1 %v3080_v52  ;;  %v3176_v52 = vld [vmem:[%s4431_s1 + $0x280] ss:$8 sps:$4 sm:$0xff]  }
  0x6c   :  { %2247 = vmatpush1.bf16.msra.mxu0 %v3083_v53  ;;  %2036 = vmatprep.subr.bf16.mxu1 %v3088_v54  ;;  %v3179_v53 = vld [vmem:[%s4431_s1 + $0x680] ss:$8 sps:$4 sm:$0xff]   ;;  %v3184_v54 = vld [vmem:[%s4431_s1 + $0x294] ss:$8 sps:$4 sm:$0xff]  }
  0x6d   :  { %2248 = vmatprep.subr.bf16.mxu0 %v3091_v55  ;;  %v3187_v55 = vld [vmem:[%s4431_s1 + $0x694] ss:$8 sps:$4 sm:$0xff]  }
  0x6f   :  { %2037 = vmatpush1.bf16.msra.mxu1 %v3086_v56  ;;  %v3182_v56 = vld [vmem:[%s4431_s1 + $0x290] ss:$8 sps:$4 sm:$0xff]  }
  0x70   :  { %2249 = vmatpush1.bf16.msra.mxu0 %v3089_v57  ;;  %2038 = vmatprep.subr.bf16.mxu1 %v3094_v58  ;;  %v3185_v57 = vld [vmem:[%s4431_s1 + $0x690] ss:$8 sps:$4 sm:$0xff]   ;;  %v3190_v58 = vld [vmem:[%s4431_s1 + $0x2a4] ss:$8 sps:$4 sm:$0xff]  }
  0x71   :  { %2250 = vmatprep.subr.bf16.mxu0 %v3097_v59  ;;  %v3193_v59 = vld [vmem:[%s4431_s1 + $0x6a4] ss:$8 sps:$4 sm:$0xff]  }
  0x73   :  { %2039 = vmatpush1.bf16.msra.mxu1 %v3092_v60  ;;  %v3188_v60 = vld [vmem:[%s4431_s1 + $0x2a0] ss:$8 sps:$4 sm:$0xff]  }
  0x74   :  { %2251 = vmatpush1.bf16.msra.mxu0 %v3095_v61  ;;  %2040 = vmatprep.subr.bf16.mxu1 %v3100_v62  ;;  %v3191_v61 = vld [vmem:[%s4431_s1 + $0x6a0] ss:$8 sps:$4 sm:$0xff]   ;;  %v3196_v62 = vld [vmem:[%s4431_s1 + $0x2b4] ss:$8 sps:$4 sm:$0xff]  }
  0x75   :  { %2252 = vmatprep.subr.bf16.mxu0 %v3103_v63  ;;  %v3199_v63 = vld [vmem:[%s4431_s1 + $0x6b4] ss:$8 sps:$4 sm:$0xff]  }
  0x77   :  { %2041 = vmatpush1.bf16.msra.mxu1 %v3098_v0  ;;  %v3194_v0 = vld [vmem:[%s4431_s1 + $0x2b0] ss:$8 sps:$4 sm:$0xff]  }
  0x78   :  { %2253 = vmatpush1.bf16.msra.mxu0 %v3101_v1  ;;  %2042 = vmatprep.subr.bf16.mxu1 %v3108_v2  ;;  %v3197_v1 = vld [vmem:[%s4431_s1 + $0x6b0] ss:$8 sps:$4 sm:$0xff]   ;;  %v3202_v2 = vld [vmem:[%s4431_s1 + $0x2c4] ss:$8 sps:$4 sm:$0xff]  }
  0x79   :  { %2254 = vmatprep.subr.bf16.mxu0 %v3113_v3  ;;  %v3205_v3 = vld [vmem:[%s4431_s1 + $0x6c4] ss:$8 sps:$4 sm:$0xff]  }
  0x7b   :  { %2043 = vmatpush1.bf16.msra.mxu1 %v3106_v4  ;;  %v3200_v4 = vld [vmem:[%s4431_s1 + $0x2c0] ss:$8 sps:$4 sm:$0xff]  }
  0x7c   :  { %2255 = vmatpush1.bf16.msra.mxu0 %v3111_v5  ;;  %2044 = vmatprep.subr.bf16.mxu1 %v3118_v6  ;;  %v3203_v5 = vld [vmem:[%s4431_s1 + $0x6c0] ss:$8 sps:$4 sm:$0xff]   ;;  %v3208_v6 = vld [vmem:[%s4431_s1 + $0x2d4] ss:$8 sps:$4 sm:$0xff]  }
  0x7d   :  { %2256 = vmatprep.subr.bf16.mxu0 %v3121_v7  ;;  %v3211_v7 = vld [vmem:[%s4431_s1 + $0x6d4] ss:$8 sps:$4 sm:$0xff]  }
  0x7f   :  { %2045 = vmatpush1.bf16.msra.mxu1 %v3116_v8  ;;  %v3206_v8 = vld [vmem:[%s4431_s1 + $0x2d0] ss:$8 sps:$4 sm:$0xff]  }
  0x80   :  { %2257 = vmatpush1.bf16.msra.mxu0 %v3119_v9  ;;  %2067 = vmatprep.subr.bf16.mxu1 %v3127_v10  ;;  %v3209_v9 = vld [vmem:[%s4431_s1 + $0x6d0] ss:$8 sps:$4 sm:$0xff]   ;;  %v3216_v10 = vld [vmem:[%s4431_s1 + $0x2e4] ss:$8 sps:$4 sm:$0xff]  }
  0x81   :  { %2279 = vmatprep.subr.bf16.mxu0 %v3133_v11  ;;  %v3221_v11 = vld [vmem:[%s4431_s1 + $0x6e4] ss:$8 sps:$4 sm:$0xff]  }
  0x82   :  { %2047 = vmatmul.mubr.bf16.vlgmr.msra.gmra.mrb[0].mxu1 %v3122_v12  ;;  %v3214_v12 = vld [vmem:[%s4431_s1 + $0x2e0] ss:$8 sps:$4 sm:$0xff]  }
  0x83   :  { %2259 = vmatmul.mubr.bf16.vlgmr.msra.gmra.mrb[0].mxu0 %v3128_v14  ;;  %2068 = vmatpush1.bf16.msra.mxu1 %v3125_v13  ;;  %v3219_v13 = vld [vmem:[%s4431_s1 + $0x6e0] ss:$8 sps:$4 sm:$0xff]   ;;  %v3226_v14 = vld [vmem:[%s4431_s1 + $0x2f4] ss:$8 sps:$4 sm:$0xff]  }
  0x84   :  { %2280 = vmatpush1.bf16.msra.mxu0 %v3131_v15  ;;  %2069 = vmatprep.subr.bf16.mxu1 %v3136_v16  ;;  %v3229_v15 = vld [vmem:[%s4431_s1 + $0x6f4] ss:$8 sps:$4 sm:$0xff]   ;;  %v3224_v16 = vld [vmem:[%s4431_s1 + $0x2f0] ss:$8 sps:$4 sm:$0xff]  }
  0x85   :  { %2281 = vmatprep.subr.bf16.mxu0 %v3139_v17  ;;  %2056 = vmatprep.mubr.bf16.mxu1 %v3212_v20  ;;  %v3227_v17 = vld [vmem:[%s4431_s1 + $0x6f0] ss:$8 sps:$4 sm:$0xff]  }
  0x86   :  { %2268 = vmatprep.mubr.bf16.mxu0 %v3217_v23  ;;  %v3230_v20 = vld [vmem:[%s4432_s0 + $0x10] ss:$72 sps:$4 sm:$0xff]   ;;  %v3239_v23 = vld [vmem:[%s4431_s1 + $0x700] ss:$8 sps:$4 sm:$0xff]  }
  0x87   :  { %2070 = vmatpush1.bf16.msra.mxu1 %v3134_v18  ;;  %v3235_v18 = vld [vmem:[%s4431_s1 + $0x304] ss:$8 sps:$4 sm:$0xff]  }
  0x88   :  { %2282 = vmatpush1.bf16.msra.mxu0 %v3137_v19  ;;  %2071 = vmatprep.subr.bf16.mxu1 %v3142_v21  ;;  %v3241_v19 = vld [vmem:[%s4431_s1 + $0x704] ss:$8 sps:$4 sm:$0xff]   ;;  %v3233_v21 = vld [vmem:[%s4431_s1 + $0x300] ss:$8 sps:$4 sm:$0xff]  }
  0x89   :  { %2283 = vmatprep.subr.bf16.mxu0 %v3145_v22  ;;  %v3236_v22 = vld [vmem:[%s4432_s0 + $0x30] ss:$72 sps:$4 sm:$0xff]  }
  0x8a   :  { %2057 = vmatmul.mubr.bf16.gmra.mrb[4].mxu1 %v3222_v26  ;;  %v3320_v26 = vld [vmem:[%s4432_s0 + $0xa4] ss:$72 sps:$4 sm:$0xff]  }
  0x8b   :  { %2269 = vmatmul.mubr.bf16.gmra.mrb[4].mxu0 %v3223_v27  ;;  %2072 = vmatpush1.bf16.msra.mxu1 %v3140_v24  ;;  %v3244_v24 = vld [vmem:[%s4431_s1 + $0x314] ss:$8 sps:$4 sm:$0xff]   ;;  %v3322_v27 = vld [vmem:[%s4432_s0 + $0xc4] ss:$72 sps:$4 sm:$0xff]  }
  0x8c   :  { %2284 = vmatpush1.bf16.msra.mxu0 %v3143_v25  ;;  %2073 = vmatprep.subr.bf16.mxu1 %v3148_v28  ;;  %v3247_v25 = vld [vmem:[%s4431_s1 + $0x714] ss:$8 sps:$4 sm:$0xff]   ;;  %v3242_v28 = vld [vmem:[%s4431_s1 + $0x310] ss:$8 sps:$4 sm:$0xff]  }
  0x8d   :  { %2285 = vmatprep.subr.bf16.mxu0 %v3151_v29  ;;  %2099 = vmatprep.mubr.bf16.mxu1 %v3232_v32  ;;  %v3245_v29 = vld [vmem:[%s4431_s1 + $0x710] ss:$8 sps:$4 sm:$0xff]   ;;  %v3248_v32 = vld [vmem:[%s4431_s1 + $0x320] ss:$8 sps:$4 sm:$0xff]  }
  0x8e   :  { %2311 = vmatprep.mubr.bf16.mxu0 %v3238_v35  ;;  %v3328_v35 = vld [vmem:[%s4432_s0 + $0xc0] ss:$72 sps:$4 sm:$0xff]  }
  0x8f   :  { %2074 = vmatpush1.bf16.msra.mxu1 %v3146_v30  ;;  %v3250_v30 = vld [vmem:[%s4431_s1 + $0x324] ss:$8 sps:$4 sm:$0xff]  }
  0x90   :  { %2286 = vmatpush1.bf16.msra.mxu0 %v3149_v31  ;;  %2075 = vmatprep.subr.bf16.mxu1 %v3154_v33  ;;  %v3253_v31 = vld [vmem:[%s4431_s1 + $0x724] ss:$8 sps:$4 sm:$0xff]   ;;  %v3251_v33 = vld [vmem:[%s4431_s1 + $0x720] ss:$8 sps:$4 sm:$0xff]  }
  0x91   :  { %2287 = vmatprep.subr.bf16.mxu0 %v3157_v34  ;;  %v3324_v34 = vld [vmem:[%s4432_s0 + $0xa0] ss:$72 sps:$4 sm:$0xff]  }
  0x93   :  { %2076 = vmatpush1.bf16.msra.mxu1 %v3152_v36  ;;  %v3256_v36 = vld [vmem:[%s4431_s1 + $0x334] ss:$8 sps:$4 sm:$0xff]  }
  0x94   :  { %2288 = vmatpush1.bf16.msra.mxu0 %v3155_v37  ;;  %2077 = vmatprep.subr.bf16.mxu1 %v3160_v38  ;;  %v3259_v37 = vld [vmem:[%s4431_s1 + $0x734] ss:$8 sps:$4 sm:$0xff]  }
  0x95   :  { %2289 = vmatprep.subr.bf16.mxu0 %v3163_v39  ;;  %v3340_v38 = vld [vmem:[%s4432_s0 + $0x1c] ss:$72 sps:$4 sm:$0xff]  }
  0x96   :  { %v3343_v39 = vld [vmem:[%s4432_s0 + $0x3c] ss:$72 sps:$4 sm:$0xff]  }
  0x97   :  { %2078 = vmatpush1.bf16.msra.mxu1 %v3158_v40  ;;  %v3254_v40 = vld [vmem:[%s4431_s1 + $0x330] ss:$8 sps:$4 sm:$0xff]  }
  0x98   :  { %2290 = vmatpush1.bf16.msra.mxu0 %v3161_v41  ;;  %2079 = vmatprep.subr.bf16.mxu1 %v3166_v42  ;;  %v3257_v41 = vld [vmem:[%s4431_s1 + $0x730] ss:$8 sps:$4 sm:$0xff]   ;;  %v3262_v42 = vld [vmem:[%s4431_s1 + $0x344] ss:$8 sps:$4 sm:$0xff]  }
  0x99   :  { %2291 = vmatprep.subr.bf16.mxu0 %v3169_v43  ;;  %v3265_v43 = vld [vmem:[%s4431_s1 + $0x744] ss:$8 sps:$4 sm:$0xff]  }
  0x9b   :  { %2080 = vmatpush1.bf16.msra.mxu1 %v3164_v44  ;;  %v3260_v44 = vld [vmem:[%s4431_s1 + $0x340] ss:$8 sps:$4 sm:$0xff]  }
  0x9c   :  { %2292 = vmatpush1.bf16.msra.mxu0 %v3167_v45  ;;  %2081 = vmatprep.subr.bf16.mxu1 %v3172_v46  ;;  %v3263_v45 = vld [vmem:[%s4431_s1 + $0x740] ss:$8 sps:$4 sm:$0xff]   ;;  %v3268_v46 = vld [vmem:[%s4431_s1 + $0x354] ss:$8 sps:$4 sm:$0xff]  }
  0x9d   :  { %2293 = vmatprep.subr.bf16.mxu0 %v3175_v47  ;;  %v3271_v47 = vld [vmem:[%s4431_s1 + $0x754] ss:$8 sps:$4 sm:$0xff]  }
  0x9f   :  { %2082 = vmatpush1.bf16.msra.mxu1 %v3170_v48  ;;  %v3266_v48 = vld [vmem:[%s4431_s1 + $0x350] ss:$8 sps:$4 sm:$0xff]  }
  0xa0   :  { %2294 = vmatpush1.bf16.msra.mxu0 %v3173_v49  ;;  %2083 = vmatprep.subr.bf16.mxu1 %v3178_v50  ;;  %v3269_v49 = vld [vmem:[%s4431_s1 + $0x750] ss:$8 sps:$4 sm:$0xff]   ;;  %v3274_v50 = vld [vmem:[%s4431_s1 + $0x364] ss:$8 sps:$4 sm:$0xff]  }
  0xa1   :  { %2295 = vmatprep.subr.bf16.mxu0 %v3181_v51  ;;  %v3277_v51 = vld [vmem:[%s4431_s1 + $0x764] ss:$8 sps:$4 sm:$0xff]  }
  0xa3   :  { %2084 = vmatpush1.bf16.msra.mxu1 %v3176_v52  ;;  %v3272_v52 = vld [vmem:[%s4431_s1 + $0x360] ss:$8 sps:$4 sm:$0xff]  }
  0xa4   :  { %2296 = vmatpush1.bf16.msra.mxu0 %v3179_v53  ;;  %2085 = vmatprep.subr.bf16.mxu1 %v3184_v54  ;;  %v3275_v53 = vld [vmem:[%s4431_s1 + $0x760] ss:$8 sps:$4 sm:$0xff]   ;;  %v3280_v54 = vld [vmem:[%s4431_s1 + $0x374] ss:$8 sps:$4 sm:$0xff]  }
  0xa5   :  { %2297 = vmatprep.subr.bf16.mxu0 %v3187_v55  ;;  %v3283_v55 = vld [vmem:[%s4431_s1 + $0x774] ss:$8 sps:$4 sm:$0xff]  }
  0xa7   :  { %2086 = vmatpush1.bf16.msra.mxu1 %v3182_v56  ;;  %v3278_v56 = vld [vmem:[%s4431_s1 + $0x370] ss:$8 sps:$4 sm:$0xff]  }
  0xa8   :  { %2298 = vmatpush1.bf16.msra.mxu0 %v3185_v57  ;;  %2087 = vmatprep.subr.bf16.mxu1 %v3190_v58  ;;  %v3281_v57 = vld [vmem:[%s4431_s1 + $0x770] ss:$8 sps:$4 sm:$0xff]   ;;  %v3286_v58 = vld [vmem:[%s4431_s1 + $0x384] ss:$8 sps:$4 sm:$0xff]  }
  0xa9   :  { %2299 = vmatprep.subr.bf16.mxu0 %v3193_v59  ;;  %v3289_v59 = vld [vmem:[%s4431_s1 + $0x784] ss:$8 sps:$4 sm:$0xff]  }
  0xab   :  { %2088 = vmatpush1.bf16.msra.mxu1 %v3188_v60  ;;  %v3284_v60 = vld [vmem:[%s4431_s1 + $0x380] ss:$8 sps:$4 sm:$0xff]  }
  0xac   :  { %2300 = vmatpush1.bf16.msra.mxu0 %v3191_v61  ;;  %2089 = vmatprep.subr.bf16.mxu1 %v3196_v62  ;;  %v3287_v61 = vld [vmem:[%s4431_s1 + $0x780] ss:$8 sps:$4 sm:$0xff]   ;;  %v3292_v62 = vld [vmem:[%s4431_s1 + $0x394] ss:$8 sps:$4 sm:$0xff]  }
  0xad   :  { %2301 = vmatprep.subr.bf16.mxu0 %v3199_v63  ;;  %v3295_v63 = vld [vmem:[%s4431_s1 + $0x794] ss:$8 sps:$4 sm:$0xff]  }
  0xaf   :  { %2090 = vmatpush1.bf16.msra.mxu1 %v3194_v0  ;;  %v3290_v0 = vld [vmem:[%s4431_s1 + $0x390] ss:$8 sps:$4 sm:$0xff]  }
  0xb0   :  { %2302 = vmatpush1.bf16.msra.mxu0 %v3197_v1  ;;  %2091 = vmatprep.subr.bf16.mxu1 %v3202_v2  ;;  %v3293_v1 = vld [vmem:[%s4431_s1 + $0x790] ss:$8 sps:$4 sm:$0xff]   ;;  %v3298_v2 = vld [vmem:[%s4431_s1 + $0x3a4] ss:$8 sps:$4 sm:$0xff]  }
  0xb1   :  { %2303 = vmatprep.subr.bf16.mxu0 %v3205_v3  ;;  %v3301_v3 = vld [vmem:[%s4431_s1 + $0x7a4] ss:$8 sps:$4 sm:$0xff]  }
  0xb3   :  { %2092 = vmatpush1.bf16.msra.mxu1 %v3200_v4  ;;  %v3296_v4 = vld [vmem:[%s4431_s1 + $0x3a0] ss:$8 sps:$4 sm:$0xff]  }
  0xb4   :  { %2304 = vmatpush1.bf16.msra.mxu0 %v3203_v5  ;;  %2093 = vmatprep.subr.bf16.mxu1 %v3208_v6  ;;  %v3299_v5 = vld [vmem:[%s4431_s1 + $0x7a0] ss:$8 sps:$4 sm:$0xff]   ;;  %v3304_v6 = vld [vmem:[%s4431_s1 + $0x3b4] ss:$8 sps:$4 sm:$0xff]  }
  0xb5   :  { %2305 = vmatprep.subr.bf16.mxu0 %v3211_v7  ;;  %v3307_v7 = vld [vmem:[%s4431_s1 + $0x7b4] ss:$8 sps:$4 sm:$0xff]  }
  0xb7   :  { %2094 = vmatpush1.bf16.msra.mxu1 %v3206_v8  ;;  %v3302_v8 = vld [vmem:[%s4431_s1 + $0x3b0] ss:$8 sps:$4 sm:$0xff]  }
  0xb8   :  { %2306 = vmatpush1.bf16.msra.mxu0 %v3209_v9  ;;  %2095 = vmatprep.subr.bf16.mxu1 %v3216_v10  ;;  %v3305_v9 = vld [vmem:[%s4431_s1 + $0x7b0] ss:$8 sps:$4 sm:$0xff]   ;;  %v3310_v10 = vld [vmem:[%s4431_s1 + $0x3c4] ss:$8 sps:$4 sm:$0xff]  }
  0xb9   :  { %2307 = vmatprep.subr.bf16.mxu0 %v3221_v11  ;;  %v3313_v11 = vld [vmem:[%s4431_s1 + $0x7c4] ss:$8 sps:$4 sm:$0xff]  }
  0xbb   :  { %2096 = vmatpush1.bf16.msra.mxu1 %v3214_v12  ;;  %v3308_v12 = vld [vmem:[%s4431_s1 + $0x3c0] ss:$8 sps:$4 sm:$0xff]  }
  0xbc   :  { %2308 = vmatpush1.bf16.msra.mxu0 %v3219_v13  ;;  %2097 = vmatprep.subr.bf16.mxu1 %v3226_v14  ;;  %v3311_v13 = vld [vmem:[%s4431_s1 + $0x7c0] ss:$8 sps:$4 sm:$0xff]   ;;  %v3316_v14 = vld [vmem:[%s4431_s1 + $0x3d4] ss:$8 sps:$4 sm:$0xff]  }
  0xbd   :  { %2309 = vmatprep.subr.bf16.mxu0 %v3229_v15  ;;  %v3319_v15 = vld [vmem:[%s4431_s1 + $0x7d4] ss:$8 sps:$4 sm:$0xff]  }
  0xbf   :  { %2098 = vmatpush1.bf16.msra.mxu1 %v3224_v16  ;;  %v3314_v16 = vld [vmem:[%s4431_s1 + $0x3d0] ss:$8 sps:$4 sm:$0xff]  }
  0xc0   :  { %2310 = vmatpush1.bf16.msra.mxu0 %v3227_v17  ;;  %2120 = vmatprep.subr.bf16.mxu1 %v3235_v18  ;;  %v3317_v17 = vld [vmem:[%s4431_s1 + $0x7d0] ss:$8 sps:$4 sm:$0xff]   ;;  %v3327_v18 = vld [vmem:[%s4431_s1 + $0x3e4] ss:$8 sps:$4 sm:$0xff]  }
  0xc1   :  { %2332 = vmatprep.subr.bf16.mxu0 %v3241_v19  ;;  %v3331_v19 = vld [vmem:[%s4431_s1 + $0x7e4] ss:$8 sps:$4 sm:$0xff]  }
  0xc2   :  { %2100 = vmatmul.mubr.bf16.vlgmr.msra.gmra.mrb[0].mxu1 %v3230_v20  ;;  %v3325_v20 = vld [vmem:[%s4431_s1 + $0x3e0] ss:$8 sps:$4 sm:$0xff]  }
  0xc3   :  { %2312 = vmatmul.mubr.bf16.vlgmr.msra.gmra.mrb[0].mxu0 %v3236_v22  ;;  %2121 = vmatpush1.bf16.msra.mxu1 %v3233_v21  ;;  %v3329_v21 = vld [vmem:[%s4431_s1 + $0x7e0] ss:$8 sps:$4 sm:$0xff]   ;;  %v3334_v22 = vld [vmem:[%s4431_s1 + $0x3f4] ss:$8 sps:$4 sm:$0xff]  }
  0xc4   :  { %2333 = vmatpush1.bf16.msra.mxu0 %v3239_v23  ;;  %2122 = vmatprep.subr.bf16.mxu1 %v3244_v24  ;;  %v3337_v23 = vld [vmem:[%s4431_s1 + $0x7f4] ss:$8 sps:$4 sm:$0xff]   ;;  %v3332_v24 = vld [vmem:[%s4431_s1 + $0x3f0] ss:$8 sps:$4 sm:$0xff]  }
  0xc5   :  { %2334 = vmatprep.subr.bf16.mxu0 %v3247_v25  ;;  %2109 = vmatprep.mubr.bf16.mxu1 %v3320_v26  ;;  %v3335_v25 = vld [vmem:[%s4431_s1 + $0x7f0] ss:$8 sps:$4 sm:$0xff]   ;;  %v3346_v26 = vld [vmem:[%s4431_s1 + $0x804] ss:$8 sps:$4 sm:$0xff]  }
  0xc6   :  { %2321 = vmatprep.mubr.bf16.mxu0 %v3322_v27  ;;  %v3338_v27 = vld [vmem:[%s4432_s0 + $0x18] ss:$72 sps:$4 sm:$0xff]  }
  0xc7   :  { %2123 = vmatpush1.bf16.msra.mxu1 %v3242_v28  ;;  %v3341_v28 = vld [vmem:[%s4432_s0 + $0x38] ss:$72 sps:$4 sm:$0xff]  }
  0xc8   :  { %2335 = vmatpush1.bf16.msra.mxu0 %v3245_v29  ;;  %2124 = vmatprep.subr.bf16.mxu1 %v3250_v30  ;;  %v3344_v29 = vld [vmem:[%s4431_s1 + $0x800] ss:$8 sps:$4 sm:$0xff]   ;;  %v3349_v30 = vld [vmem:[%s4431_s1 + $0x814] ss:$8 sps:$4 sm:$0xff]  }
  0xc9   :  { %2336 = vmatprep.subr.bf16.mxu0 %v3253_v31  ;;  %v3350_v31 = vld [vmem:[%s4432_s0 + $0xac] ss:$72 sps:$4 sm:$0xff]  }
  0xca   :  { %2110 = vmatmul.mubr.bf16.gmra.mrb[4].mxu1 %v3324_v34  ;;  %v3358_v34 = vld [vmem:[%s4431_s1 + $0x824] ss:$8 sps:$4 sm:$0xff]  }
  0xcb   :  { %2322 = vmatmul.mubr.bf16.gmra.mrb[4].mxu0 %v3328_v35  ;;  %2125 = vmatpush1.bf16.msra.mxu1 %v3248_v32  ;;  %v3352_v32 = vld [vmem:[%s4432_s0 + $0xcc] ss:$72 sps:$4 sm:$0xff]   ;;  %v3354_v35 = vld [vmem:[%s4432_s0 + $0xa8] ss:$72 sps:$4 sm:$0xff]  }
  0xcc   :  { %2337 = vmatpush1.bf16.msra.mxu0 %v3251_v33  ;;  %2126 = vmatprep.subr.bf16.mxu1 %v3256_v36  ;;  %v3347_v33 = vld [vmem:[%s4431_s1 + $0x810] ss:$8 sps:$4 sm:$0xff]  }
  0xcd   :  { %2338 = vmatprep.subr.bf16.mxu0 %v3259_v37  ;;  %2152 = vmatprep.mubr.bf16.mxu1 %v3340_v38  ;;  %v3355_v36 = vld [vmem:[%s4432_s0 + $0xc8] ss:$72 sps:$4 sm:$0xff]   ;;  %v3361_v38 = vld [vmem:[%s4431_s1 + $0x834] ss:$8 sps:$4 sm:$0xff]  }
  0xce   :  { %2364 = vmatprep.mubr.bf16.mxu0 %v3343_v39  ;;  %v3356_v37 = vld [vmem:[%s4431_s1 + $0x820] ss:$8 sps:$4 sm:$0xff]   ;;  %v3400_v39 = vld [vmem:[%s4432_s0 + $0x44] ss:$72 sps:$4 sm:$0xff]  }
  0xcf   :  { %2127 = vmatpush1.bf16.msra.mxu1 %v3254_v40  ;;  %v3403_v40 = vld [vmem:[%s4432_s0 + $0xd4] ss:$72 sps:$4 sm:$0xff]  }
  0xd0   :  { %2339 = vmatpush1.bf16.msra.mxu0 %v3257_v41  ;;  %2128 = vmatprep.subr.bf16.mxu1 %v3262_v42  ;;  %v3359_v41 = vld [vmem:[%s4431_s1 + $0x830] ss:$8 sps:$4 sm:$0xff]   ;;  %v3364_v42 = vld [vmem:[%s4431_s1 + $0x844] ss:$8 sps:$4 sm:$0xff]  }
  0xd1   :  { %2340 = vmatprep.subr.bf16.mxu0 %v3265_v43  ;;  %v3362_v43 = vld [vmem:[%s4431_s1 + $0x840] ss:$8 sps:$4 sm:$0xff]  }
  0xd3   :  { %2129 = vmatpush1.bf16.msra.mxu1 %v3260_v44  ;;  %v3367_v44 = vld [vmem:[%s4431_s1 + $0x854] ss:$8 sps:$4 sm:$0xff]  }
  0xd4   :  { %2341 = vmatpush1.bf16.msra.mxu0 %v3263_v45  ;;  %2130 = vmatprep.subr.bf16.mxu1 %v3268_v46  ;;  %v3365_v45 = vld [vmem:[%s4431_s1 + $0x850] ss:$8 sps:$4 sm:$0xff]   ;;  %v3370_v46 = vld [vmem:[%s4431_s1 + $0x864] ss:$8 sps:$4 sm:$0xff]  }
  0xd5   :  { %2342 = vmatprep.subr.bf16.mxu0 %v3271_v47  ;;  %v3368_v47 = vld [vmem:[%s4431_s1 + $0x860] ss:$8 sps:$4 sm:$0xff]  }
  0xd7   :  { %2131 = vmatpush1.bf16.msra.mxu1 %v3266_v48  ;;  %v3373_v48 = vld [vmem:[%s4431_s1 + $0x874] ss:$8 sps:$4 sm:$0xff]  }
  0xd8   :  { %2343 = vmatpush1.bf16.msra.mxu0 %v3269_v49  ;;  %2132 = vmatprep.subr.bf16.mxu1 %v3274_v50  ;;  %v3371_v49 = vld [vmem:[%s4431_s1 + $0x870] ss:$8 sps:$4 sm:$0xff]   ;;  %v3376_v50 = vld [vmem:[%s4431_s1 + $0x884] ss:$8 sps:$4 sm:$0xff]  }
  0xd9   :  { %2344 = vmatprep.subr.bf16.mxu0 %v3277_v51  ;;  %v3374_v51 = vld [vmem:[%s4431_s1 + $0x880] ss:$8 sps:$4 sm:$0xff]  }
  0xdb   :  { %2133 = vmatpush1.bf16.msra.mxu1 %v3272_v52  ;;  %v3379_v52 = vld [vmem:[%s4431_s1 + $0x894] ss:$8 sps:$4 sm:$0xff]  }
  0xdc   :  { %2345 = vmatpush1.bf16.msra.mxu0 %v3275_v53  ;;  %2134 = vmatprep.subr.bf16.mxu1 %v3280_v54  ;;  %v3377_v53 = vld [vmem:[%s4431_s1 + $0x890] ss:$8 sps:$4 sm:$0xff]   ;;  %v3382_v54 = vld [vmem:[%s4431_s1 + $0x8a4] ss:$8 sps:$4 sm:$0xff]  }
  0xdd   :  { %2346 = vmatprep.subr.bf16.mxu0 %v3283_v55  ;;  %v3380_v55 = vld [vmem:[%s4431_s1 + $0x8a0] ss:$8 sps:$4 sm:$0xff]  }
  0xdf   :  { %2135 = vmatpush1.bf16.msra.mxu1 %v3278_v56  ;;  %v3385_v56 = vld [vmem:[%s4431_s1 + $0x8b4] ss:$8 sps:$4 sm:$0xff]  }
  0xe0   :  { %2347 = vmatpush1.bf16.msra.mxu0 %v3281_v57  ;;  %2136 = vmatprep.subr.bf16.mxu1 %v3286_v58  ;;  %v3383_v57 = vld [vmem:[%s4431_s1 + $0x8b0] ss:$8 sps:$4 sm:$0xff]   ;;  %v3388_v58 = vld [vmem:[%s4431_s1 + $0x8c4] ss:$8 sps:$4 sm:$0xff]  }
  0xe1   :  { %2348 = vmatprep.subr.bf16.mxu0 %v3289_v59  ;;  %v3386_v59 = vld [vmem:[%s4431_s1 + $0x8c0] ss:$8 sps:$4 sm:$0xff]  }
  0xe3   :  { %2137 = vmatpush1.bf16.msra.mxu1 %v3284_v60  ;;  %v3391_v60 = vld [vmem:[%s4431_s1 + $0x8d4] ss:$8 sps:$4 sm:$0xff]  }
  0xe4   :  { %2349 = vmatpush1.bf16.msra.mxu0 %v3287_v61  ;;  %2138 = vmatprep.subr.bf16.mxu1 %v3292_v62  ;;  %v3389_v61 = vld [vmem:[%s4431_s1 + $0x8d0] ss:$8 sps:$4 sm:$0xff]   ;;  %v3394_v62 = vld [vmem:[%s4431_s1 + $0x8e4] ss:$8 sps:$4 sm:$0xff]  }
  0xe5   :  { %2350 = vmatprep.subr.bf16.mxu0 %v3295_v63  ;;  %v3392_v63 = vld [vmem:[%s4431_s1 + $0x8e0] ss:$8 sps:$4 sm:$0xff]  }
  0xe7   :  { %2139 = vmatpush1.bf16.msra.mxu1 %v3290_v0  ;;  %v3397_v0 = vld [vmem:[%s4431_s1 + $0x8f4] ss:$8 sps:$4 sm:$0xff]  }
  0xe8   :  { %2351 = vmatpush1.bf16.msra.mxu0 %v3293_v1  ;;  %2140 = vmatprep.subr.bf16.mxu1 %v3298_v2  ;;  %v3395_v1 = vld [vmem:[%s4431_s1 + $0x8f0] ss:$8 sps:$4 sm:$0xff]   ;;  %v3398_v2 = vld [vmem:[%s4432_s0 + $0x40] ss:$72 sps:$4 sm:$0xff]  }
  0xe9   :  { %2352 = vmatprep.subr.bf16.mxu0 %v3301_v3  ;;  %v3401_v3 = vld [vmem:[%s4432_s0 + $0xd0] ss:$72 sps:$4 sm:$0xff]  }
  0xeb   :  { %2141 = vmatpush1.bf16.msra.mxu1 %v3296_v4 }
  0xec   :  { %2353 = vmatpush1.bf16.msra.mxu0 %v3299_v5  ;;  %2142 = vmatprep.subr.bf16.mxu1 %v3304_v6 }
  0xed   :  { %2354 = vmatprep.subr.bf16.mxu0 %v3307_v7 }
  0xef   :  { %2143 = vmatpush1.bf16.msra.mxu1 %v3302_v8 }
  0xf0   :  { %2355 = vmatpush1.bf16.msra.mxu0 %v3305_v9  ;;  %2144 = vmatprep.subr.bf16.mxu1 %v3310_v10 }
  0xf1   :  { %2356 = vmatprep.subr.bf16.mxu0 %v3313_v11 }
  0xf3   :  { %2145 = vmatpush1.bf16.msra.mxu1 %v3308_v12 }
  0xf4   :  { %2357 = vmatpush1.bf16.msra.mxu0 %v3311_v13  ;;  %2146 = vmatprep.subr.bf16.mxu1 %v3316_v14 }
  0xf5   :  { %2358 = vmatprep.subr.bf16.mxu0 %v3319_v15 }
  0xf7   :  { %2147 = vmatpush1.bf16.msra.mxu1 %v3314_v16 }
  0xf8   :  { %2359 = vmatpush1.bf16.msra.mxu0 %v3317_v17  ;;  %2148 = vmatprep.subr.bf16.mxu1 %v3327_v18 }
  0xf9   :  { %2360 = vmatprep.subr.bf16.mxu0 %v3331_v19 }
  0xfb   :  { %2149 = vmatpush1.bf16.msra.mxu1 %v3325_v20  ;;  %v2440_v20 = vlaneseq }
  0xfc   :  { %2361 = vmatpush1.bf16.msra.mxu0 %v3329_v21  ;;  %2150 = vmatprep.subr.bf16.mxu1 %v3334_v22 }
  0xfd   :  { %2362 = vmatprep.subr.bf16.mxu0 %v3337_v23  ;;  %v2441_v21 = vshrl.u32 %v2440_v20, 7  ;;  %v2438_v23 = vld [vmem:[%s4433_s2] sm:$0x3] }
  0xff   :  { %2151 = vmatpush1.bf16.msra.mxu1 %v3332_v24  ;;  %v2442_v22 = vsub.s32 0, %v2441_v21  ;;  %v2446_v24 = vsub.s32 1, %v2441_v21 }
 0x100   :  { %2363 = vmatpush1.bf16.msra.mxu0 %v3335_v25  ;;  %2822 = vmatprep.subr.bf16.mxu1 %v3346_v26  ;;  %v2458_v25 = vld [vmem:[%s4434_s3] sm:$0x3] }
 0x101   :  { %2385 = vmatprep.subr.bf16.mxu0 %v3346_v26  ;;  %v2443_v26 = vrot.slane %v2438_v23, %v2442_v22 }
 0x102   :  { %2153 = vmatmul.mubr.bf16.vlgmr.msra.gmra.mrb[0].mxu1 %v3338_v27 }
 0x103   :  { %2365 = vmatmul.mubr.bf16.vlgmr.msra.gmra.mrb[0].mxu0 %v3341_v28  ;;  %2838 = vmatpush1.bf16.msra.mxu1 %v3344_v29 }
 0x104   :  { %2386 = vmatpush1.bf16.msra.mxu0 %v3344_v29  ;;  %2823 = vmatprep.subr.bf16.mxu1 %v3349_v30  ;;  %v2447_v29 = vrot.slane %v2438_v23, %v2446_v24 }
 0x105   :  { %2387 = vmatprep.subr.bf16.mxu0 %v3349_v30  ;;  %2162 = vmatprep.mubr.bf16.mxu1 %v3350_v31  ;;  %v2463_v31 = vrot.slane %v2458_v25, %v2442_v22 }
 0x106   :  { %2374 = vmatprep.mubr.bf16.mxu0 %v3352_v32 }
 0x107   :  { %2839 = vmatpush1.bf16.msra.mxu1 %v3347_v33 }
 0x108   :  { %2388 = vmatpush1.bf16.msra.mxu0 %v3347_v33  ;;  %2824 = vmatprep.subr.bf16.mxu1 %v3358_v34 }
 0x109   :  { %2389 = vmatprep.subr.bf16.mxu0 %v3358_v34 }
 0x10a   :  { %2163 = vmatmul.mubr.bf16.gmra.mrb[4].mxu1 %v3354_v35 }
 0x10b   :  { %2375 = vmatmul.mubr.bf16.gmra.mrb[4].mxu0 %v3355_v36  ;;  %2840 = vmatpush1.bf16.msra.mxu1 %v3356_v37  ;;  %v2467_v36 = vrot.slane %v2458_v25, %v2446_v24 }
 0x10c   :  { %2390 = vmatpush1.bf16.msra.mxu0 %v3356_v37  ;;  %2825 = vmatprep.subr.bf16.mxu1 %v3361_v38 }
 0x10d   :  { %2391 = vmatprep.subr.bf16.mxu0 %v3361_v38  ;;  %2417 = vmatprep.mubr.bf16.mxu0 %v3400_v39 }
 0x10e   :  { %2427 = vmatprep.mubr.bf16.mxu1 %v3403_v40 }
 0x10f   :  { %2841 = vmatpush1.bf16.msra.mxu1 %v3359_v41 }
 0x110   :  { %2392 = vmatpush1.bf16.msra.mxu0 %v3359_v41  ;;  %2826 = vmatprep.subr.bf16.mxu1 %v3364_v42 }
 0x111   :  { %2393 = vmatprep.subr.bf16.mxu0 %v3364_v42 }
 0x113   :  { %2842 = vmatpush1.bf16.msra.mxu1 %v3362_v43 }
 0x114   :  { %2394 = vmatpush1.bf16.msra.mxu0 %v3362_v43  ;;  %2827 = vmatprep.subr.bf16.mxu1 %v3367_v44 }
 0x115   :  { %2395 = vmatprep.subr.bf16.mxu0 %v3367_v44 }
 0x117   :  { %2843 = vmatpush1.bf16.msra.mxu1 %v3365_v45 }
 0x118   :  { %2396 = vmatpush1.bf16.msra.mxu0 %v3365_v45  ;;  %2828 = vmatprep.subr.bf16.mxu1 %v3370_v46 }
 0x119   :  { %2397 = vmatprep.subr.bf16.mxu0 %v3370_v46 }
 0x11b   :  { %2844 = vmatpush1.bf16.msra.mxu1 %v3368_v47 }
 0x11c   :  { %2398 = vmatpush1.bf16.msra.mxu0 %v3368_v47  ;;  %2829 = vmatprep.subr.bf16.mxu1 %v3373_v48 }
 0x11d   :  { %2399 = vmatprep.subr.bf16.mxu0 %v3373_v48 }
 0x11f   :  { %2845 = vmatpush1.bf16.msra.mxu1 %v3371_v49 }
 0x120   :  { %2400 = vmatpush1.bf16.msra.mxu0 %v3371_v49  ;;  %2830 = vmatprep.subr.bf16.mxu1 %v3376_v50 }
 0x121   :  { %2401 = vmatprep.subr.bf16.mxu0 %v3376_v50 }
 0x123   :  { %2846 = vmatpush1.bf16.msra.mxu1 %v3374_v51 }
 0x124   :  { %2402 = vmatpush1.bf16.msra.mxu0 %v3374_v51  ;;  %2831 = vmatprep.subr.bf16.mxu1 %v3379_v52 }
 0x125   :  { %2403 = vmatprep.subr.bf16.mxu0 %v3379_v52 }
 0x127   :  { %2847 = vmatpush1.bf16.msra.mxu1 %v3377_v53 }
 0x128   :  { %2404 = vmatpush1.bf16.msra.mxu0 %v3377_v53  ;;  %2832 = vmatprep.subr.bf16.mxu1 %v3382_v54 }
 0x129   :  { %2405 = vmatprep.subr.bf16.mxu0 %v3382_v54 }
 0x12b   :  { %2848 = vmatpush1.bf16.msra.mxu1 %v3380_v55 }
 0x12c   :  { %2406 = vmatpush1.bf16.msra.mxu0 %v3380_v55  ;;  %2833 = vmatprep.subr.bf16.mxu1 %v3385_v56 }
 0x12d   :  { %2407 = vmatprep.subr.bf16.mxu0 %v3385_v56 }
 0x12f   :  { %2849 = vmatpush1.bf16.msra.mxu1 %v3383_v57 }
 0x130   :  { %2408 = vmatpush1.bf16.msra.mxu0 %v3383_v57  ;;  %2834 = vmatprep.subr.bf16.mxu1 %v3388_v58 }
 0x131   :  { %2409 = vmatprep.subr.bf16.mxu0 %v3388_v58 }
 0x133   :  { %2850 = vmatpush1.bf16.msra.mxu1 %v3386_v59 }
 0x134   :  { %2410 = vmatpush1.bf16.msra.mxu0 %v3386_v59  ;;  %2835 = vmatprep.subr.bf16.mxu1 %v3391_v60 }
 0x135   :  { %2411 = vmatprep.subr.bf16.mxu0 %v3391_v60 }
 0x137   :  { %2851 = vmatpush1.bf16.msra.mxu1 %v3389_v61 }
 0x138   :  { %2412 = vmatpush1.bf16.msra.mxu0 %v3389_v61  ;;  %2836 = vmatprep.subr.bf16.mxu1 %v3394_v62 }
 0x139   :  { %2413 = vmatprep.subr.bf16.mxu0 %v3394_v62 }
 0x13b   :  { %2852 = vmatpush1.bf16.msra.mxu1 %v3392_v63 }
 0x13c   :  { %2414 = vmatpush1.bf16.msra.mxu0 %v3392_v63  ;;  %2837 = vmatprep.subr.bf16.mxu1 %v3397_v0 }
 0x13d   :  { %2415 = vmatprep.subr.bf16.mxu0 %v3397_v0 }
 0x13f   :  { %2853 = vmatpush1.bf16.msra.mxu1 %v3395_v1 }
 0x140   :  { %2416 = vmatpush1.bf16.msra.mxu0 %v3395_v1 }
 0x142   :  { %2428 = vmatmul.mubr.bf16.vlgmr.msra.gmra.mrb[8].mxu1 %v3401_v3 }
 0x143   :  { %2418 = vmatmul.mubr.bf16.vlgmr.msra.gmra.mrb[0].mxu0 %v3398_v2 }
 0x1d5   :  { %v2154_v4 = vpop.f32.mrb[0].mxu1 }
 0x1d6   :  { %v2156_v5 = vpop.f32.mrb[1].mxu1 }
 0x1d7   :  { %v2158_v6 = vpop.f32.mrb[2].mxu1 }
 0x1d8   :  { %v2160_v7 = vpop.f32.mrb[3].mxu1 }
 0x1dd   :  { %v2164_v8 = vpop.f32.mrb[4].mxu1 }
 0x1de   :  { %v2376_v9 = vpop.f32.mrb[4].mxu0  ;;  %v2166_v11 = vpop.f32.mrb[5].mxu1 }
 0x1df   :  { %v2858_v10 = vadd.f32 %v2376_v9, %v2164_v8  ;;  %v2378_v12 = vpop.f32.mrb[5].mxu0  ;;  %v2168_v14 = vpop.f32.mrb[6].mxu1 }
 0x1e0   :  { %v2860_v13 = vadd.f32 %v2378_v12, %v2166_v11  ;;  %v2380_v15 = vpop.f32.mrb[6].mxu0  ;;  %v2170_v17 = vpop.f32.mrb[7].mxu1 }
 0x1e1   :  { %v2862_v16 = vadd.f32 %v2380_v15, %v2168_v14  ;;  %v2382_v18 = vpop.f32.mrb[7].mxu0 }
 0x1e2   :  { %v2864_v19 = vadd.f32 %v2382_v18, %v2170_v17 }
 0x215   :  { %v2429_v28 = vpop.f32.mrb[8].mxu1 }
 0x216   :  { %v2419_v27 = vpop.f32.mrb[0].mxu0  ;;  %v2859_v32 = vadd.f32 %v2858_v10, %v2429_v28  ;;  %v2431_v34 = vpop.f32.mrb[9].mxu1 }
 0x217   :  { %v2854_v30 = vadd.f32 %v2419_v27, %v2154_v4  ;;  %v2421_v33 = vpop.f32.mrb[1].mxu0  ;;  %v2861_v37 = vadd.f32 %v2860_v13, %v2431_v34  ;;  %v2433_v39 = vpop.f32.mrb[10].mxu1 }
 0x218   :  { %v2855_v35 = vadd.f32 %v2421_v33, %v2156_v5  ;;  %v2423_v38 = vpop.f32.mrb[2].mxu0  ;;  %v2454_v41 = vmul.f32 %v2859_v32, %v2443_v26  ;;  %v2863_v43 = vadd.f32 %v2862_v16, %v2433_v39  ;;  %v2435_v45 = vpop.f32.mrb[11].mxu1 }
 0x219   :  { %v2450_v40 = vmul.f32 %v2854_v30, %v2443_v26  ;;  %v2856_v42 = vadd.f32 %v2423_v38, %v2158_v6  ;;  %v2425_v44 = vpop.f32.mrb[3].mxu0  ;;  %v2455_v47 = vmul.f32 %v2861_v37, %v2447_v29  ;;  %v2865_v49 = vadd.f32 %v2864_v19, %v2435_v45 }
 0x21a   :  { %v2451_v46 = vmul.f32 %v2855_v35, %v2447_v29  ;;  %v2857_v48 = vadd.f32 %v2425_v44, %v2160_v7  ;;  %v2474_v51 = vadd.f32 %v2463_v31, %v2454_v41  ;;  %v2456_v53 = vmul.f32 %v2863_v43, %v2443_v26 }
 0x21b   :  { %v2470_v50 = vadd.f32 %v2463_v31, %v2450_v40  ;;  %v2452_v52 = vmul.f32 %v2856_v42, %v2443_v26  ;;  %v2475_v55 = vadd.f32 %v2467_v36, %v2455_v47  ;;  %v2457_v57 = vmul.f32 %v2865_v49, %v2447_v29 }
 0x21c   :  { %v2471_v54 = vadd.f32 %v2467_v36, %v2451_v46  ;;  %v2453_v56 = vmul.f32 %v2857_v48, %v2447_v29  ;;  %v2482_v59 = vmax.f32 %v2474_v51, 0.0  ;;  %v2476_v61 = vadd.f32 %v2463_v31, %v2456_v53 }
 0x21d   :  { %v2478_v58 = vmax.f32 %v2470_v50, 0.0  ;;  %v2472_v60 = vadd.f32 %v2463_v31, %v2452_v52  ;;  %v2483_v63 = vmax.f32 %v2475_v55, 0.0  ;;  %v2477_v1 = vadd.f32 %v2467_v36, %v2457_v57 }
 0x21e   :  { %v2479_v62 = vmax.f32 %v2471_v54, 0.0  ;;  %v2473_v0 = vadd.f32 %v2467_v36, %v2453_v56  ;;  %2490 = vst [vmem:[%s4435_s4 + $0x20] sm:$0xff] %v2482_v59  ;;  %v2484_v3 = vmax.f32 %v2476_v61, 0.0 }
 0x21f   :  { %2486 = vst [vmem:[%s4435_s4] sm:$0xff] %v2478_v58  ;;  %v2480_v2 = vmax.f32 %v2472_v60, 0.0  ;;  %2491 = vst [vmem:[%s4435_s4 + $0x28] sm:$0xff] %v2483_v63  ;;  %v2485_v5 = vmax.f32 %v2477_v1, 0.0 }
 0x220   :  { %2487 = vst [vmem:[%s4435_s4 + $0x8] sm:$0xff] %v2479_v62  ;;  %v2481_v4 = vmax.f32 %v2473_v0, 0.0  ;;  %2492 = vst [vmem:[%s4435_s4 + $0x30] sm:$0xff] %v2484_v3 }
 0x221   :  { %2488 = vst [vmem:[%s4435_s4 + $0x10] sm:$0xff] %v2480_v2  ;;  %2493 = vst [vmem:[%s4435_s4 + $0x38] sm:$0xff] %v2485_v5 }
 0x222   :  { %2489 = vst [vmem:[%s4435_s4 + $0x18] sm:$0xff] %v2481_v4 }

// kernel: _lambda_.14
= control target key start
LH: loop header
LB: loop body
LE: loop exit
PB: predicated region body
PF: predicated region fallthrough
CT: control target
= control target key end

     0   :  { %s4479_s1 = inlined_call_operand.vmem [shape: bf16[2304,256], index: 1, kind: input, shape index: {}]   ;;  %s4480_s0 = inlined_call_operand.vmem [shape: bf16[32,2304], index: 0, kind: input, shape index: {}]   ;;  %s4481_s2 = inlined_call_operand.vmem [shape: f32[1,256], index: 2, kind: input, shape index: {}]   ;;  %s4482_s3 = inlined_call_operand.vmem [shape: f32[1,256], index: 3, kind: input, shape index: {}]   ;;  %s4483_s4 = inlined_call_operand.vmem [shape: f32[32,256], index: 4, kind: input, shape index: {}]   ;;  %s4484_s5 = inlined_call_operand.vmem [shape: f32[32,256], index: 5, kind: output, shape index: {}]  }
   0x1   :  { %v2937_v0 = vld [vmem:[%s4479_s1 + $0x4] ss:$8 sps:$4 sm:$0xff]   ;;  %v2941_v2 = vld [vmem:[%s4479_s1] ss:$8 sps:$4 sm:$0xff]   ;;  %v2943_v4 = vld [vmem:[%s4479_s1 + $0x14] ss:$8 sps:$4 sm:$0xff]  }
   0x2   :  { %v2939_v1 = vld [vmem:[%s4479_s1 + $0x404] ss:$8 sps:$4 sm:$0xff]   ;;  %1964 = vmatprep.subr.bf16.mxu1 %v2937_v0  ;;  %v2942_v3 = vld [vmem:[%s4479_s1 + $0x400] ss:$8 sps:$4 sm:$0xff]   ;;  %v2945_v5 = vld [vmem:[%s4479_s1 + $0x414] ss:$8 sps:$4 sm:$0xff]  }
   0x3   :  { %2176 = vmatprep.subr.bf16.mxu0 %v2939_v1  ;;  %1965 = vmatpush1.bf16.msra.mxu1 %v2941_v2  ;;  %v2947_v6 = vld [vmem:[%s4479_s1 + $0x10] ss:$8 sps:$4 sm:$0xff]   ;;  %v2949_v8 = vld [vmem:[%s4479_s1 + $0x24] ss:$8 sps:$4 sm:$0xff]   ;;  %v2953_v10 = vld [vmem:[%s4479_s1 + $0x20] ss:$8 sps:$4 sm:$0xff]  }
   0x4   :  { %2177 = vmatpush1.bf16.msra.mxu0 %v2942_v3  ;;  %1966 = vmatprep.subr.bf16.mxu1 %v2943_v4  ;;  %v2948_v7 = vld [vmem:[%s4479_s1 + $0x410] ss:$8 sps:$4 sm:$0xff]   ;;  %v2951_v9 = vld [vmem:[%s4479_s1 + $0x424] ss:$8 sps:$4 sm:$0xff]   ;;  %v2954_v11 = vld [vmem:[%s4479_s1 + $0x420] ss:$8 sps:$4 sm:$0xff]  }
   0x5   :  { %2178 = vmatprep.subr.bf16.mxu0 %v2945_v5  ;;  %v2955_v12 = vld [vmem:[%s4479_s1 + $0x34] ss:$8 sps:$4 sm:$0xff]   ;;  %v2959_v14 = vld [vmem:[%s4479_s1 + $0x30] ss:$8 sps:$4 sm:$0xff]   ;;  %v2961_v16 = vld [vmem:[%s4479_s1 + $0x44] ss:$8 sps:$4 sm:$0xff]  }
   0x6   :  { %v2957_v13 = vld [vmem:[%s4479_s1 + $0x434] ss:$8 sps:$4 sm:$0xff]   ;;  %v2960_v15 = vld [vmem:[%s4479_s1 + $0x430] ss:$8 sps:$4 sm:$0xff]   ;;  %v2963_v17 = vld [vmem:[%s4479_s1 + $0x444] ss:$8 sps:$4 sm:$0xff]  }
   0x7   :  { %1967 = vmatpush1.bf16.msra.mxu1 %v2947_v6  ;;  %v2965_v18 = vld [vmem:[%s4479_s1 + $0x40] ss:$8 sps:$4 sm:$0xff]   ;;  %v2967_v20 = vld [vmem:[%s4479_s1 + $0x54] ss:$8 sps:$4 sm:$0xff]   ;;  %v2971_v22 = vld [vmem:[%s4479_s1 + $0x50] ss:$8 sps:$4 sm:$0xff]  }
   0x8   :  { %2179 = vmatpush1.bf16.msra.mxu0 %v2948_v7  ;;  %1968 = vmatprep.subr.bf16.mxu1 %v2949_v8  ;;  %v2966_v19 = vld [vmem:[%s4479_s1 + $0x440] ss:$8 sps:$4 sm:$0xff]   ;;  %v2969_v21 = vld [vmem:[%s4479_s1 + $0x454] ss:$8 sps:$4 sm:$0xff]   ;;  %v2972_v23 = vld [vmem:[%s4479_s1 + $0x450] ss:$8 sps:$4 sm:$0xff]  }
   0x9   :  { %2180 = vmatprep.subr.bf16.mxu0 %v2951_v9  ;;  %v2973_v24 = vld [vmem:[%s4479_s1 + $0x64] ss:$8 sps:$4 sm:$0xff]   ;;  %v2977_v26 = vld [vmem:[%s4479_s1 + $0x60] ss:$8 sps:$4 sm:$0xff]   ;;  %v2979_v28 = vld [vmem:[%s4479_s1 + $0x74] ss:$8 sps:$4 sm:$0xff]  }
   0xa   :  { %v2975_v25 = vld [vmem:[%s4479_s1 + $0x464] ss:$8 sps:$4 sm:$0xff]   ;;  %v2978_v27 = vld [vmem:[%s4479_s1 + $0x460] ss:$8 sps:$4 sm:$0xff]   ;;  %v2981_v29 = vld [vmem:[%s4479_s1 + $0x474] ss:$8 sps:$4 sm:$0xff]  }
   0xb   :  { %1969 = vmatpush1.bf16.msra.mxu1 %v2953_v10  ;;  %v2983_v30 = vld [vmem:[%s4479_s1 + $0x70] ss:$8 sps:$4 sm:$0xff]   ;;  %v2985_v32 = vld [vmem:[%s4479_s1 + $0x84] ss:$8 sps:$4 sm:$0xff]   ;;  %v2989_v34 = vld [vmem:[%s4479_s1 + $0x80] ss:$8 sps:$4 sm:$0xff]  }
   0xc   :  { %2181 = vmatpush1.bf16.msra.mxu0 %v2954_v11  ;;  %1970 = vmatprep.subr.bf16.mxu1 %v2955_v12  ;;  %v2984_v31 = vld [vmem:[%s4479_s1 + $0x470] ss:$8 sps:$4 sm:$0xff]   ;;  %v2987_v33 = vld [vmem:[%s4479_s1 + $0x484] ss:$8 sps:$4 sm:$0xff]   ;;  %v2990_v35 = vld [vmem:[%s4479_s1 + $0x480] ss:$8 sps:$4 sm:$0xff]  }
   0xd   :  { %2182 = vmatprep.subr.bf16.mxu0 %v2957_v13  ;;  %v2991_v36 = vld [vmem:[%s4479_s1 + $0x94] ss:$8 sps:$4 sm:$0xff]   ;;  %v2995_v38 = vld [vmem:[%s4479_s1 + $0x90] ss:$8 sps:$4 sm:$0xff]   ;;  %v2997_v40 = vld [vmem:[%s4479_s1 + $0xa4] ss:$8 sps:$4 sm:$0xff]  }
   0xe   :  { %v2993_v37 = vld [vmem:[%s4479_s1 + $0x494] ss:$8 sps:$4 sm:$0xff]   ;;  %v2996_v39 = vld [vmem:[%s4479_s1 + $0x490] ss:$8 sps:$4 sm:$0xff]   ;;  %v2999_v41 = vld [vmem:[%s4479_s1 + $0x4a4] ss:$8 sps:$4 sm:$0xff]  }
   0xf   :  { %1971 = vmatpush1.bf16.msra.mxu1 %v2959_v14  ;;  %v3001_v42 = vld [vmem:[%s4479_s1 + $0xa0] ss:$8 sps:$4 sm:$0xff]   ;;  %v3003_v44 = vld [vmem:[%s4479_s1 + $0xb4] ss:$8 sps:$4 sm:$0xff]   ;;  %v3007_v46 = vld [vmem:[%s4479_s1 + $0xb0] ss:$8 sps:$4 sm:$0xff]  }
  0x10   :  { %2183 = vmatpush1.bf16.msra.mxu0 %v2960_v15  ;;  %1972 = vmatprep.subr.bf16.mxu1 %v2961_v16  ;;  %v3002_v43 = vld [vmem:[%s4479_s1 + $0x4a0] ss:$8 sps:$4 sm:$0xff]   ;;  %v3005_v45 = vld [vmem:[%s4479_s1 + $0x4b4] ss:$8 sps:$4 sm:$0xff]   ;;  %v3008_v47 = vld [vmem:[%s4479_s1 + $0x4b0] ss:$8 sps:$4 sm:$0xff]  }
  0x11   :  { %2184 = vmatprep.subr.bf16.mxu0 %v2963_v17  ;;  %v3035_v48 = vld [vmem:[%s4480_s0 + $0x4] ss:$72 sps:$4 sm:$0xff]   ;;  %v3013_v52 = vld [vmem:[%s4479_s1 + $0xc0] ss:$8 sps:$4 sm:$0xff]   ;;  %v3015_v54 = vld [vmem:[%s4479_s1 + $0xd4] ss:$8 sps:$4 sm:$0xff]  }
  0x12   :  { %v3009_v49 = vld [vmem:[%s4479_s1 + $0xc4] ss:$8 sps:$4 sm:$0xff]   ;;  %1996 = vmatprep.mubr.bf16.mxu1 %v3035_v48  ;;  %v3014_v53 = vld [vmem:[%s4479_s1 + $0x4c0] ss:$8 sps:$4 sm:$0xff]   ;;  %v3017_v55 = vld [vmem:[%s4479_s1 + $0x4d4] ss:$8 sps:$4 sm:$0xff]  }
  0x13   :  { %1973 = vmatpush1.bf16.msra.mxu1 %v2965_v18  ;;  %v3011_v50 = vld [vmem:[%s4479_s1 + $0x4c4] ss:$8 sps:$4 sm:$0xff]   ;;  %v3019_v56 = vld [vmem:[%s4479_s1 + $0xd0] ss:$8 sps:$4 sm:$0xff]   ;;  %v3025_v60 = vld [vmem:[%s4479_s1 + $0xe0] ss:$8 sps:$4 sm:$0xff]  }
  0x14   :  { %2185 = vmatpush1.bf16.msra.mxu0 %v2966_v19  ;;  %1974 = vmatprep.subr.bf16.mxu1 %v2967_v20  ;;  %v3041_v51 = vld [vmem:[%s4480_s0 + $0x24] ss:$72 sps:$4 sm:$0xff]   ;;  %v3020_v57 = vld [vmem:[%s4479_s1 + $0x4d0] ss:$8 sps:$4 sm:$0xff]   ;;  %v3026_v61 = vld [vmem:[%s4479_s1 + $0x4e0] ss:$8 sps:$4 sm:$0xff]  }
  0x15   :  { %2186 = vmatprep.subr.bf16.mxu0 %v2969_v21  ;;  %2208 = vmatprep.mubr.bf16.mxu0 %v3041_v51  ;;  %v3021_v58 = vld [vmem:[%s4479_s1 + $0xe4] ss:$8 sps:$4 sm:$0xff]   ;;  %v3027_v62 = vld [vmem:[%s4479_s1 + $0xf4] ss:$8 sps:$4 sm:$0xff]   ;;  %v3031_v0 = vld [vmem:[%s4479_s1 + $0xf0] ss:$8 sps:$4 sm:$0xff]  }
  0x16   :  { %v3023_v59 = vld [vmem:[%s4479_s1 + $0x4e4] ss:$8 sps:$4 sm:$0xff]   ;;  %v3029_v63 = vld [vmem:[%s4479_s1 + $0x4f4] ss:$8 sps:$4 sm:$0xff]   ;;  %v3032_v1 = vld [vmem:[%s4479_s1 + $0x4f0] ss:$8 sps:$4 sm:$0xff]  }
  0x17   :  { %1975 = vmatpush1.bf16.msra.mxu1 %v2971_v22  ;;  %v3038_v2 = vld [vmem:[%s4479_s1 + $0x104] ss:$8 sps:$4 sm:$0xff]   ;;  %v3033_v4 = vld [vmem:[%s4480_s0] ss:$72 sps:$4 sm:$0xff]   ;;  %v3047_v8 = vld [vmem:[%s4479_s1 + $0x114] ss:$8 sps:$4 sm:$0xff]  }
  0x18   :  { %2187 = vmatpush1.bf16.msra.mxu0 %v2972_v23  ;;  %1976 = vmatprep.subr.bf16.mxu1 %v2973_v24  ;;  %v3044_v3 = vld [vmem:[%s4479_s1 + $0x504] ss:$8 sps:$4 sm:$0xff]   ;;  %v3036_v5 = vld [vmem:[%s4479_s1 + $0x100] ss:$8 sps:$4 sm:$0xff]   ;;  %v3050_v9 = vld [vmem:[%s4479_s1 + $0x514] ss:$8 sps:$4 sm:$0xff]  }
  0x19   :  { %2188 = vmatprep.subr.bf16.mxu0 %v2975_v25  ;;  %v3039_v6 = vld [vmem:[%s4480_s0 + $0x20] ss:$72 sps:$4 sm:$0xff]   ;;  %v3045_v10 = vld [vmem:[%s4479_s1 + $0x110] ss:$8 sps:$4 sm:$0xff]   ;;  %v3053_v12 = vld [vmem:[%s4479_s1 + $0x124] ss:$8 sps:$4 sm:$0xff]  }
  0x1a   :  { %v3042_v7 = vld [vmem:[%s4479_s1 + $0x500] ss:$8 sps:$4 sm:$0xff]   ;;  %v3048_v11 = vld [vmem:[%s4479_s1 + $0x510] ss:$8 sps:$4 sm:$0xff]   ;;  %v3056_v13 = vld [vmem:[%s4479_s1 + $0x524] ss:$8 sps:$4 sm:$0xff]  }
  0x1b   :  { %1977 = vmatpush1.bf16.msra.mxu1 %v2977_v26  ;;  %v3051_v14 = vld [vmem:[%s4479_s1 + $0x120] ss:$8 sps:$4 sm:$0xff]   ;;  %v3059_v16 = vld [vmem:[%s4479_s1 + $0x134] ss:$8 sps:$4 sm:$0xff]   ;;  %v3057_v18 = vld [vmem:[%s4479_s1 + $0x130] ss:$8 sps:$4 sm:$0xff]  }
  0x1c   :  { %2189 = vmatpush1.bf16.msra.mxu0 %v2978_v27  ;;  %1978 = vmatprep.subr.bf16.mxu1 %v2979_v28  ;;  %v3054_v15 = vld [vmem:[%s4479_s1 + $0x520] ss:$8 sps:$4 sm:$0xff]   ;;  %v3062_v17 = vld [vmem:[%s4479_s1 + $0x534] ss:$8 sps:$4 sm:$0xff]   ;;  %v3060_v19 = vld [vmem:[%s4479_s1 + $0x530] ss:$8 sps:$4 sm:$0xff]  }
  0x1d   :  { %2190 = vmatprep.subr.bf16.mxu0 %v2981_v29  ;;  %v3065_v20 = vld [vmem:[%s4479_s1 + $0x144] ss:$8 sps:$4 sm:$0xff]   ;;  %v3063_v22 = vld [vmem:[%s4479_s1 + $0x140] ss:$8 sps:$4 sm:$0xff]   ;;  %v3071_v24 = vld [vmem:[%s4479_s1 + $0x154] ss:$8 sps:$4 sm:$0xff]  }
  0x1e   :  { %v3068_v21 = vld [vmem:[%s4479_s1 + $0x544] ss:$8 sps:$4 sm:$0xff]   ;;  %v3066_v23 = vld [vmem:[%s4479_s1 + $0x540] ss:$8 sps:$4 sm:$0xff]   ;;  %v3074_v25 = vld [vmem:[%s4479_s1 + $0x554] ss:$8 sps:$4 sm:$0xff]  }
  0x1f   :  { %1979 = vmatpush1.bf16.msra.mxu1 %v2983_v30  ;;  %v3069_v26 = vld [vmem:[%s4479_s1 + $0x150] ss:$8 sps:$4 sm:$0xff]   ;;  %v3123_v28 = vld [vmem:[%s4480_s0 + $0x94] ss:$72 sps:$4 sm:$0xff]   ;;  %v3077_v29 = vld [vmem:[%s4479_s1 + $0x164] ss:$8 sps:$4 sm:$0xff]  }
  0x20   :  { %2191 = vmatpush1.bf16.msra.mxu0 %v2984_v31  ;;  %1980 = vmatprep.subr.bf16.mxu1 %v2985_v32  ;;  %v3072_v27 = vld [vmem:[%s4479_s1 + $0x550] ss:$8 sps:$4 sm:$0xff]   ;;  %v3080_v30 = vld [vmem:[%s4479_s1 + $0x564] ss:$8 sps:$4 sm:$0xff]   ;;  %v3128_v31 = vld [vmem:[%s4480_s0 + $0xb4] ss:$72 sps:$4 sm:$0xff]  }
  0x21   :  { %2192 = vmatprep.subr.bf16.mxu0 %v2987_v33  ;;  %v3075_v32 = vld [vmem:[%s4479_s1 + $0x160] ss:$8 sps:$4 sm:$0xff]   ;;  %v3093_v48 = vld [vmem:[%s4479_s1 + $0x190] ss:$8 sps:$4 sm:$0xff]   ;;  %v3104_v51 = vld [vmem:[%s4479_s1 + $0x5a4] ss:$8 sps:$4 sm:$0xff]  }
  0x22   :  { %v3078_v33 = vld [vmem:[%s4479_s1 + $0x560] ss:$8 sps:$4 sm:$0xff]  }
  0x23   :  { %1981 = vmatpush1.bf16.msra.mxu1 %v2989_v34  ;;  %v3133_v34 = vld [vmem:[%s4480_s0 + $0x90] ss:$72 sps:$4 sm:$0xff]  }
  0x24   :  { %2193 = vmatpush1.bf16.msra.mxu0 %v2990_v35  ;;  %1982 = vmatprep.subr.bf16.mxu1 %v2991_v36  ;;  %v3134_v35 = vld [vmem:[%s4480_s0 + $0xb0] ss:$72 sps:$4 sm:$0xff]   ;;  %v3083_v36 = vld [vmem:[%s4479_s1 + $0x174] ss:$8 sps:$4 sm:$0xff]  }
  0x25   :  { %2194 = vmatprep.subr.bf16.mxu0 %v2993_v37  ;;  %v3086_v37 = vld [vmem:[%s4479_s1 + $0x574] ss:$8 sps:$4 sm:$0xff]  }
  0x27   :  { %1983 = vmatpush1.bf16.msra.mxu1 %v2995_v38  ;;  %v3081_v38 = vld [vmem:[%s4479_s1 + $0x170] ss:$8 sps:$4 sm:$0xff]  }
  0x28   :  { %2195 = vmatpush1.bf16.msra.mxu0 %v2996_v39  ;;  %1984 = vmatprep.subr.bf16.mxu1 %v2997_v40  ;;  %v3084_v39 = vld [vmem:[%s4479_s1 + $0x570] ss:$8 sps:$4 sm:$0xff]   ;;  %v3143_v40 = vld [vmem:[%s4480_s0 + $0xc] ss:$72 sps:$4 sm:$0xff]  }
  0x29   :  { %2196 = vmatprep.subr.bf16.mxu0 %v2999_v41  ;;  %v3089_v41 = vld [vmem:[%s4479_s1 + $0x184] ss:$8 sps:$4 sm:$0xff]  }
  0x2b   :  { %1985 = vmatpush1.bf16.msra.mxu1 %v3001_v42  ;;  %v3092_v42 = vld [vmem:[%s4479_s1 + $0x584] ss:$8 sps:$4 sm:$0xff]  }
  0x2c   :  { %2197 = vmatpush1.bf16.msra.mxu0 %v3002_v43  ;;  %1986 = vmatprep.subr.bf16.mxu1 %v3003_v44  ;;  %v3149_v43 = vld [vmem:[%s4480_s0 + $0x2c] ss:$72 sps:$4 sm:$0xff]   ;;  %v3087_v44 = vld [vmem:[%s4479_s1 + $0x180] ss:$8 sps:$4 sm:$0xff]  }
  0x2d   :  { %2198 = vmatprep.subr.bf16.mxu0 %v3005_v45  ;;  %v3090_v45 = vld [vmem:[%s4479_s1 + $0x580] ss:$8 sps:$4 sm:$0xff]  }
  0x2f   :  { %1987 = vmatpush1.bf16.msra.mxu1 %v3007_v46  ;;  %v3095_v46 = vld [vmem:[%s4479_s1 + $0x194] ss:$8 sps:$4 sm:$0xff]  }
  0x30   :  { %2199 = vmatpush1.bf16.msra.mxu0 %v3008_v47  ;;  %1988 = vmatprep.subr.bf16.mxu1 %v3009_v49  ;;  %v3098_v47 = vld [vmem:[%s4479_s1 + $0x594] ss:$8 sps:$4 sm:$0xff]   ;;  %v3096_v49 = vld [vmem:[%s4479_s1 + $0x590] ss:$8 sps:$4 sm:$0xff]  }
  0x31   :  { %2200 = vmatprep.subr.bf16.mxu0 %v3011_v50  ;;  %v3101_v50 = vld [vmem:[%s4479_s1 + $0x1a4] ss:$8 sps:$4 sm:$0xff]  }
  0x33   :  { %1989 = vmatpush1.bf16.msra.mxu1 %v3013_v52  ;;  %v3099_v52 = vld [vmem:[%s4479_s1 + $0x1a0] ss:$8 sps:$4 sm:$0xff]  }
  0x34   :  { %2201 = vmatpush1.bf16.msra.mxu0 %v3014_v53  ;;  %1990 = vmatprep.subr.bf16.mxu1 %v3015_v54  ;;  %v3102_v53 = vld [vmem:[%s4479_s1 + $0x5a0] ss:$8 sps:$4 sm:$0xff]   ;;  %v3107_v54 = vld [vmem:[%s4479_s1 + $0x1b4] ss:$8 sps:$4 sm:$0xff]  }
  0x35   :  { %2202 = vmatprep.subr.bf16.mxu0 %v3017_v55  ;;  %v3110_v55 = vld [vmem:[%s4479_s1 + $0x5b4] ss:$8 sps:$4 sm:$0xff]  }
  0x37   :  { %1991 = vmatpush1.bf16.msra.mxu1 %v3019_v56  ;;  %v3105_v56 = vld [vmem:[%s4479_s1 + $0x1b0] ss:$8 sps:$4 sm:$0xff]  }
  0x38   :  { %2203 = vmatpush1.bf16.msra.mxu0 %v3020_v57  ;;  %1992 = vmatprep.subr.bf16.mxu1 %v3021_v58  ;;  %v3108_v57 = vld [vmem:[%s4479_s1 + $0x5b0] ss:$8 sps:$4 sm:$0xff]   ;;  %v3113_v58 = vld [vmem:[%s4479_s1 + $0x1c4] ss:$8 sps:$4 sm:$0xff]  }
  0x39   :  { %2204 = vmatprep.subr.bf16.mxu0 %v3023_v59  ;;  %v3116_v59 = vld [vmem:[%s4479_s1 + $0x5c4] ss:$8 sps:$4 sm:$0xff]  }
  0x3b   :  { %1993 = vmatpush1.bf16.msra.mxu1 %v3025_v60  ;;  %v3111_v60 = vld [vmem:[%s4479_s1 + $0x1c0] ss:$8 sps:$4 sm:$0xff]  }
  0x3c   :  { %2205 = vmatpush1.bf16.msra.mxu0 %v3026_v61  ;;  %1994 = vmatprep.subr.bf16.mxu1 %v3027_v62  ;;  %v3114_v61 = vld [vmem:[%s4479_s1 + $0x5c0] ss:$8 sps:$4 sm:$0xff]   ;;  %v3119_v62 = vld [vmem:[%s4479_s1 + $0x1d4] ss:$8 sps:$4 sm:$0xff]  }
  0x3d   :  { %2206 = vmatprep.subr.bf16.mxu0 %v3029_v63  ;;  %v3122_v63 = vld [vmem:[%s4479_s1 + $0x5d4] ss:$8 sps:$4 sm:$0xff]  }
  0x3f   :  { %1995 = vmatpush1.bf16.msra.mxu1 %v3031_v0  ;;  %v3117_v0 = vld [vmem:[%s4479_s1 + $0x1d0] ss:$8 sps:$4 sm:$0xff]  }
  0x40   :  { %2207 = vmatpush1.bf16.msra.mxu0 %v3032_v1  ;;  %2017 = vmatprep.subr.bf16.mxu1 %v3038_v2  ;;  %v3120_v1 = vld [vmem:[%s4479_s1 + $0x5d0] ss:$8 sps:$4 sm:$0xff]   ;;  %v3127_v2 = vld [vmem:[%s4479_s1 + $0x1e4] ss:$8 sps:$4 sm:$0xff]  }
  0x41   :  { %2229 = vmatprep.subr.bf16.mxu0 %v3044_v3  ;;  %v3132_v3 = vld [vmem:[%s4479_s1 + $0x5e4] ss:$8 sps:$4 sm:$0xff]  }
  0x42   :  { %1997 = vmatmul.mubr.bf16.vlgmr.msra.gmra.mrb[0].mxu1 %v3033_v4  ;;  %v3125_v4 = vld [vmem:[%s4479_s1 + $0x1e0] ss:$8 sps:$4 sm:$0xff]  }
  0x43   :  { %2209 = vmatmul.mubr.bf16.vlgmr.msra.gmra.mrb[0].mxu0 %v3039_v6  ;;  %2018 = vmatpush1.bf16.msra.mxu1 %v3036_v5  ;;  %v3130_v5 = vld [vmem:[%s4479_s1 + $0x5e0] ss:$8 sps:$4 sm:$0xff]   ;;  %v3137_v6 = vld [vmem:[%s4479_s1 + $0x1f4] ss:$8 sps:$4 sm:$0xff]  }
  0x44   :  { %2230 = vmatpush1.bf16.msra.mxu0 %v3042_v7  ;;  %2019 = vmatprep.subr.bf16.mxu1 %v3047_v8  ;;  %v3140_v7 = vld [vmem:[%s4479_s1 + $0x5f4] ss:$8 sps:$4 sm:$0xff]   ;;  %v3135_v8 = vld [vmem:[%s4479_s1 + $0x1f0] ss:$8 sps:$4 sm:$0xff]  }
  0x45   :  { %2231 = vmatprep.subr.bf16.mxu0 %v3050_v9  ;;  %2006 = vmatprep.mubr.bf16.mxu1 %v3123_v28  ;;  %v3138_v9 = vld [vmem:[%s4479_s1 + $0x5f0] ss:$8 sps:$4 sm:$0xff]   ;;  %v3167_v28 = vld [vmem:[%s4479_s1 + $0x234] ss:$8 sps:$4 sm:$0xff]  }
  0x46   :  { %2218 = vmatprep.mubr.bf16.mxu0 %v3128_v31  ;;  %v3168_v31 = vld [vmem:[%s4479_s1 + $0x630] ss:$8 sps:$4 sm:$0xff]  }
  0x47   :  { %2020 = vmatpush1.bf16.msra.mxu1 %v3045_v10  ;;  %v3146_v10 = vld [vmem:[%s4479_s1 + $0x204] ss:$8 sps:$4 sm:$0xff]  }
  0x48   :  { %2232 = vmatpush1.bf16.msra.mxu0 %v3048_v11  ;;  %2021 = vmatprep.subr.bf16.mxu1 %v3053_v12  ;;  %v3152_v11 = vld [vmem:[%s4479_s1 + $0x604] ss:$8 sps:$4 sm:$0xff]   ;;  %v3141_v12 = vld [vmem:[%s4480_s0 + $0x8] ss:$72 sps:$4 sm:$0xff]  }
  0x49   :  { %2233 = vmatprep.subr.bf16.mxu0 %v3056_v13  ;;  %v3144_v13 = vld [vmem:[%s4479_s1 + $0x200] ss:$8 sps:$4 sm:$0xff]  }
  0x4a   :  { %2007 = vmatmul.mubr.bf16.gmra.mrb[4].mxu1 %v3133_v34  ;;  %v3176_v34 = vld [vmem:[%s4479_s1 + $0x644] ss:$8 sps:$4 sm:$0xff]  }
  0x4b   :  { %2022 = vmatpush1.bf16.msra.mxu1 %v3051_v14  ;;  %2219 = vmatmul.mubr.bf16.gmra.mrb[4].mxu0 %v3134_v35  ;;  %v3147_v14 = vld [vmem:[%s4480_s0 + $0x28] ss:$72 sps:$4 sm:$0xff]   ;;  %v3257_v35 = vld [vmem:[%s4480_s0 + $0x34] ss:$72 sps:$4 sm:$0xff]  }
  0x4c   :  { %2234 = vmatpush1.bf16.msra.mxu0 %v3054_v15  ;;  %2023 = vmatprep.subr.bf16.mxu1 %v3059_v16  ;;  %v3150_v15 = vld [vmem:[%s4479_s1 + $0x600] ss:$8 sps:$4 sm:$0xff]   ;;  %v3155_v16 = vld [vmem:[%s4479_s1 + $0x214] ss:$8 sps:$4 sm:$0xff]  }
  0x4d   :  { %2235 = vmatprep.subr.bf16.mxu0 %v3062_v17  ;;  %2049 = vmatprep.mubr.bf16.mxu1 %v3143_v40  ;;  %v3158_v17 = vld [vmem:[%s4479_s1 + $0x614] ss:$8 sps:$4 sm:$0xff]   ;;  %v3177_v40 = vld [vmem:[%s4479_s1 + $0x250] ss:$8 sps:$4 sm:$0xff]  }
  0x4e   :  { %2261 = vmatprep.mubr.bf16.mxu0 %v3149_v43  ;;  %v3188_v43 = vld [vmem:[%s4479_s1 + $0x664] ss:$8 sps:$4 sm:$0xff]  }
  0x4f   :  { %2024 = vmatpush1.bf16.msra.mxu1 %v3057_v18  ;;  %v3153_v18 = vld [vmem:[%s4479_s1 + $0x210] ss:$8 sps:$4 sm:$0xff]  }
  0x50   :  { %2236 = vmatpush1.bf16.msra.mxu0 %v3060_v19  ;;  %2025 = vmatprep.subr.bf16.mxu1 %v3065_v20  ;;  %v3156_v19 = vld [vmem:[%s4479_s1 + $0x610] ss:$8 sps:$4 sm:$0xff]   ;;  %v3231_v20 = vld [vmem:[%s4480_s0 + $0x9c] ss:$72 sps:$4 sm:$0xff]  }
  0x51   :  { %2237 = vmatprep.subr.bf16.mxu0 %v3068_v21  ;;  %v3161_v21 = vld [vmem:[%s4479_s1 + $0x224] ss:$8 sps:$4 sm:$0xff]  }
  0x53   :  { %2026 = vmatpush1.bf16.msra.mxu1 %v3063_v22  ;;  %v3164_v22 = vld [vmem:[%s4479_s1 + $0x624] ss:$8 sps:$4 sm:$0xff]  }
  0x54   :  { %2238 = vmatpush1.bf16.msra.mxu0 %v3066_v23  ;;  %2027 = vmatprep.subr.bf16.mxu1 %v3071_v24  ;;  %v3236_v23 = vld [vmem:[%s4480_s0 + $0xbc] ss:$72 sps:$4 sm:$0xff]   ;;  %v3159_v24 = vld [vmem:[%s4479_s1 + $0x220] ss:$8 sps:$4 sm:$0xff]  }
  0x55   :  { %2239 = vmatprep.subr.bf16.mxu0 %v3074_v25  ;;  %v3162_v25 = vld [vmem:[%s4479_s1 + $0x620] ss:$8 sps:$4 sm:$0xff]  }
  0x57   :  { %2028 = vmatpush1.bf16.msra.mxu1 %v3069_v26  ;;  %v3241_v26 = vld [vmem:[%s4480_s0 + $0x98] ss:$72 sps:$4 sm:$0xff]  }
  0x58   :  { %2240 = vmatpush1.bf16.msra.mxu0 %v3072_v27  ;;  %2029 = vmatprep.subr.bf16.mxu1 %v3077_v29  ;;  %v3242_v27 = vld [vmem:[%s4480_s0 + $0xb8] ss:$72 sps:$4 sm:$0xff]   ;;  %v3170_v29 = vld [vmem:[%s4479_s1 + $0x634] ss:$8 sps:$4 sm:$0xff]  }
  0x59   :  { %2241 = vmatprep.subr.bf16.mxu0 %v3080_v30  ;;  %v3165_v30 = vld [vmem:[%s4479_s1 + $0x230] ss:$8 sps:$4 sm:$0xff]  }
  0x5b   :  { %2030 = vmatpush1.bf16.msra.mxu1 %v3075_v32  ;;  %v3251_v32 = vld [vmem:[%s4480_s0 + $0x14] ss:$72 sps:$4 sm:$0xff]  }
  0x5c   :  { %2242 = vmatpush1.bf16.msra.mxu0 %v3078_v33  ;;  %2031 = vmatprep.subr.bf16.mxu1 %v3083_v36  ;;  %v3173_v33 = vld [vmem:[%s4479_s1 + $0x244] ss:$8 sps:$4 sm:$0xff]   ;;  %v3171_v36 = vld [vmem:[%s4479_s1 + $0x240] ss:$8 sps:$4 sm:$0xff]  }
  0x5d   :  { %2243 = vmatprep.subr.bf16.mxu0 %v3086_v37  ;;  %v3174_v37 = vld [vmem:[%s4479_s1 + $0x640] ss:$8 sps:$4 sm:$0xff]  }
  0x5f   :  { %2032 = vmatpush1.bf16.msra.mxu1 %v3081_v38  ;;  %v3179_v38 = vld [vmem:[%s4479_s1 + $0x254] ss:$8 sps:$4 sm:$0xff]  }
  0x60   :  { %2244 = vmatpush1.bf16.msra.mxu0 %v3084_v39  ;;  %2033 = vmatprep.subr.bf16.mxu1 %v3089_v41  ;;  %v3182_v39 = vld [vmem:[%s4479_s1 + $0x654] ss:$8 sps:$4 sm:$0xff]   ;;  %v3180_v41 = vld [vmem:[%s4479_s1 + $0x650] ss:$8 sps:$4 sm:$0xff]  }
  0x61   :  { %2245 = vmatprep.subr.bf16.mxu0 %v3092_v42  ;;  %v3185_v42 = vld [vmem:[%s4479_s1 + $0x264] ss:$8 sps:$4 sm:$0xff]  }
  0x63   :  { %2034 = vmatpush1.bf16.msra.mxu1 %v3087_v44  ;;  %v3183_v44 = vld [vmem:[%s4479_s1 + $0x260] ss:$8 sps:$4 sm:$0xff]  }
  0x64   :  { %2246 = vmatpush1.bf16.msra.mxu0 %v3090_v45  ;;  %2035 = vmatprep.subr.bf16.mxu1 %v3095_v46  ;;  %v3186_v45 = vld [vmem:[%s4479_s1 + $0x660] ss:$8 sps:$4 sm:$0xff]   ;;  %v3191_v46 = vld [vmem:[%s4479_s1 + $0x274] ss:$8 sps:$4 sm:$0xff]  }
  0x65   :  { %2247 = vmatprep.subr.bf16.mxu0 %v3098_v47  ;;  %v3194_v47 = vld [vmem:[%s4479_s1 + $0x674] ss:$8 sps:$4 sm:$0xff]  }
  0x67   :  { %2036 = vmatpush1.bf16.msra.mxu1 %v3093_v48  ;;  %v3189_v48 = vld [vmem:[%s4479_s1 + $0x270] ss:$8 sps:$4 sm:$0xff]  }
  0x68   :  { %2248 = vmatpush1.bf16.msra.mxu0 %v3096_v49  ;;  %2037 = vmatprep.subr.bf16.mxu1 %v3101_v50  ;;  %v3192_v49 = vld [vmem:[%s4479_s1 + $0x670] ss:$8 sps:$4 sm:$0xff]   ;;  %v3197_v50 = vld [vmem:[%s4479_s1 + $0x284] ss:$8 sps:$4 sm:$0xff]  }
  0x69   :  { %2249 = vmatprep.subr.bf16.mxu0 %v3104_v51  ;;  %v3200_v51 = vld [vmem:[%s4479_s1 + $0x684] ss:$8 sps:$4 sm:$0xff]  }
  0x6b   :  { %2038 = vmatpush1.bf16.msra.mxu1 %v3099_v52  ;;  %v3195_v52 = vld [vmem:[%s4479_s1 + $0x280] ss:$8 sps:$4 sm:$0xff]  }
  0x6c   :  { %2250 = vmatpush1.bf16.msra.mxu0 %v3102_v53  ;;  %2039 = vmatprep.subr.bf16.mxu1 %v3107_v54  ;;  %v3198_v53 = vld [vmem:[%s4479_s1 + $0x680] ss:$8 sps:$4 sm:$0xff]   ;;  %v3203_v54 = vld [vmem:[%s4479_s1 + $0x294] ss:$8 sps:$4 sm:$0xff]  }
  0x6d   :  { %2251 = vmatprep.subr.bf16.mxu0 %v3110_v55  ;;  %v3206_v55 = vld [vmem:[%s4479_s1 + $0x694] ss:$8 sps:$4 sm:$0xff]  }
  0x6f   :  { %2040 = vmatpush1.bf16.msra.mxu1 %v3105_v56  ;;  %v3201_v56 = vld [vmem:[%s4479_s1 + $0x290] ss:$8 sps:$4 sm:$0xff]  }
  0x70   :  { %2252 = vmatpush1.bf16.msra.mxu0 %v3108_v57  ;;  %2041 = vmatprep.subr.bf16.mxu1 %v3113_v58  ;;  %v3204_v57 = vld [vmem:[%s4479_s1 + $0x690] ss:$8 sps:$4 sm:$0xff]   ;;  %v3209_v58 = vld [vmem:[%s4479_s1 + $0x2a4] ss:$8 sps:$4 sm:$0xff]  }
  0x71   :  { %2253 = vmatprep.subr.bf16.mxu0 %v3116_v59  ;;  %v3212_v59 = vld [vmem:[%s4479_s1 + $0x6a4] ss:$8 sps:$4 sm:$0xff]  }
  0x73   :  { %2042 = vmatpush1.bf16.msra.mxu1 %v3111_v60  ;;  %v3207_v60 = vld [vmem:[%s4479_s1 + $0x2a0] ss:$8 sps:$4 sm:$0xff]  }
  0x74   :  { %2254 = vmatpush1.bf16.msra.mxu0 %v3114_v61  ;;  %2043 = vmatprep.subr.bf16.mxu1 %v3119_v62  ;;  %v3210_v61 = vld [vmem:[%s4479_s1 + $0x6a0] ss:$8 sps:$4 sm:$0xff]   ;;  %v3215_v62 = vld [vmem:[%s4479_s1 + $0x2b4] ss:$8 sps:$4 sm:$0xff]  }
  0x75   :  { %2255 = vmatprep.subr.bf16.mxu0 %v3122_v63  ;;  %v3218_v63 = vld [vmem:[%s4479_s1 + $0x6b4] ss:$8 sps:$4 sm:$0xff]  }
  0x77   :  { %2044 = vmatpush1.bf16.msra.mxu1 %v3117_v0  ;;  %v3213_v0 = vld [vmem:[%s4479_s1 + $0x2b0] ss:$8 sps:$4 sm:$0xff]  }
  0x78   :  { %2256 = vmatpush1.bf16.msra.mxu0 %v3120_v1  ;;  %2045 = vmatprep.subr.bf16.mxu1 %v3127_v2  ;;  %v3216_v1 = vld [vmem:[%s4479_s1 + $0x6b0] ss:$8 sps:$4 sm:$0xff]   ;;  %v3221_v2 = vld [vmem:[%s4479_s1 + $0x2c4] ss:$8 sps:$4 sm:$0xff]  }
  0x79   :  { %2257 = vmatprep.subr.bf16.mxu0 %v3132_v3  ;;  %v3224_v3 = vld [vmem:[%s4479_s1 + $0x6c4] ss:$8 sps:$4 sm:$0xff]  }
  0x7b   :  { %2046 = vmatpush1.bf16.msra.mxu1 %v3125_v4  ;;  %v3219_v4 = vld [vmem:[%s4479_s1 + $0x2c0] ss:$8 sps:$4 sm:$0xff]  }
  0x7c   :  { %2258 = vmatpush1.bf16.msra.mxu0 %v3130_v5  ;;  %2047 = vmatprep.subr.bf16.mxu1 %v3137_v6  ;;  %v3222_v5 = vld [vmem:[%s4479_s1 + $0x6c0] ss:$8 sps:$4 sm:$0xff]   ;;  %v3227_v6 = vld [vmem:[%s4479_s1 + $0x2d4] ss:$8 sps:$4 sm:$0xff]  }
  0x7d   :  { %2259 = vmatprep.subr.bf16.mxu0 %v3140_v7  ;;  %v3230_v7 = vld [vmem:[%s4479_s1 + $0x6d4] ss:$8 sps:$4 sm:$0xff]  }
  0x7f   :  { %2048 = vmatpush1.bf16.msra.mxu1 %v3135_v8  ;;  %v3225_v8 = vld [vmem:[%s4479_s1 + $0x2d0] ss:$8 sps:$4 sm:$0xff]  }
  0x80   :  { %2260 = vmatpush1.bf16.msra.mxu0 %v3138_v9  ;;  %2070 = vmatprep.subr.bf16.mxu1 %v3146_v10  ;;  %v3228_v9 = vld [vmem:[%s4479_s1 + $0x6d0] ss:$8 sps:$4 sm:$0xff]   ;;  %v3235_v10 = vld [vmem:[%s4479_s1 + $0x2e4] ss:$8 sps:$4 sm:$0xff]  }
  0x81   :  { %2282 = vmatprep.subr.bf16.mxu0 %v3152_v11  ;;  %v3240_v11 = vld [vmem:[%s4479_s1 + $0x6e4] ss:$8 sps:$4 sm:$0xff]  }
  0x82   :  { %2050 = vmatmul.mubr.bf16.vlgmr.msra.gmra.mrb[0].mxu1 %v3141_v12  ;;  %v3233_v12 = vld [vmem:[%s4479_s1 + $0x2e0] ss:$8 sps:$4 sm:$0xff]  }
  0x83   :  { %2262 = vmatmul.mubr.bf16.vlgmr.msra.gmra.mrb[0].mxu0 %v3147_v14  ;;  %2071 = vmatpush1.bf16.msra.mxu1 %v3144_v13  ;;  %v3238_v13 = vld [vmem:[%s4479_s1 + $0x6e0] ss:$8 sps:$4 sm:$0xff]   ;;  %v3245_v14 = vld [vmem:[%s4479_s1 + $0x2f4] ss:$8 sps:$4 sm:$0xff]  }
  0x84   :  { %2283 = vmatpush1.bf16.msra.mxu0 %v3150_v15  ;;  %2072 = vmatprep.subr.bf16.mxu1 %v3155_v16  ;;  %v3248_v15 = vld [vmem:[%s4479_s1 + $0x6f4] ss:$8 sps:$4 sm:$0xff]   ;;  %v3243_v16 = vld [vmem:[%s4479_s1 + $0x2f0] ss:$8 sps:$4 sm:$0xff]  }
  0x85   :  { %2284 = vmatprep.subr.bf16.mxu0 %v3158_v17  ;;  %2059 = vmatprep.mubr.bf16.mxu1 %v3231_v20  ;;  %v3246_v17 = vld [vmem:[%s4479_s1 + $0x6f0] ss:$8 sps:$4 sm:$0xff]  }
  0x86   :  { %2271 = vmatprep.mubr.bf16.mxu0 %v3236_v23  ;;  %v3249_v20 = vld [vmem:[%s4480_s0 + $0x10] ss:$72 sps:$4 sm:$0xff]   ;;  %v3258_v23 = vld [vmem:[%s4479_s1 + $0x700] ss:$8 sps:$4 sm:$0xff]  }
  0x87   :  { %2073 = vmatpush1.bf16.msra.mxu1 %v3153_v18  ;;  %v3254_v18 = vld [vmem:[%s4479_s1 + $0x304] ss:$8 sps:$4 sm:$0xff]  }
  0x88   :  { %2285 = vmatpush1.bf16.msra.mxu0 %v3156_v19  ;;  %2074 = vmatprep.subr.bf16.mxu1 %v3161_v21  ;;  %v3260_v19 = vld [vmem:[%s4479_s1 + $0x704] ss:$8 sps:$4 sm:$0xff]   ;;  %v3252_v21 = vld [vmem:[%s4479_s1 + $0x300] ss:$8 sps:$4 sm:$0xff]  }
  0x89   :  { %2286 = vmatprep.subr.bf16.mxu0 %v3164_v22  ;;  %v3255_v22 = vld [vmem:[%s4480_s0 + $0x30] ss:$72 sps:$4 sm:$0xff]  }
  0x8a   :  { %2060 = vmatmul.mubr.bf16.gmra.mrb[4].mxu1 %v3241_v26  ;;  %v3339_v26 = vld [vmem:[%s4480_s0 + $0xa4] ss:$72 sps:$4 sm:$0xff]  }
  0x8b   :  { %2272 = vmatmul.mubr.bf16.gmra.mrb[4].mxu0 %v3242_v27  ;;  %2075 = vmatpush1.bf16.msra.mxu1 %v3159_v24  ;;  %v3263_v24 = vld [vmem:[%s4479_s1 + $0x314] ss:$8 sps:$4 sm:$0xff]   ;;  %v3341_v27 = vld [vmem:[%s4480_s0 + $0xc4] ss:$72 sps:$4 sm:$0xff]  }
  0x8c   :  { %2287 = vmatpush1.bf16.msra.mxu0 %v3162_v25  ;;  %2076 = vmatprep.subr.bf16.mxu1 %v3167_v28  ;;  %v3266_v25 = vld [vmem:[%s4479_s1 + $0x714] ss:$8 sps:$4 sm:$0xff]   ;;  %v3261_v28 = vld [vmem:[%s4479_s1 + $0x310] ss:$8 sps:$4 sm:$0xff]  }
  0x8d   :  { %2288 = vmatprep.subr.bf16.mxu0 %v3170_v29  ;;  %2102 = vmatprep.mubr.bf16.mxu1 %v3251_v32  ;;  %v3264_v29 = vld [vmem:[%s4479_s1 + $0x710] ss:$8 sps:$4 sm:$0xff]   ;;  %v3267_v32 = vld [vmem:[%s4479_s1 + $0x320] ss:$8 sps:$4 sm:$0xff]  }
  0x8e   :  { %2314 = vmatprep.mubr.bf16.mxu0 %v3257_v35  ;;  %v3347_v35 = vld [vmem:[%s4480_s0 + $0xc0] ss:$72 sps:$4 sm:$0xff]  }
  0x8f   :  { %2077 = vmatpush1.bf16.msra.mxu1 %v3165_v30  ;;  %v3269_v30 = vld [vmem:[%s4479_s1 + $0x324] ss:$8 sps:$4 sm:$0xff]  }
  0x90   :  { %2289 = vmatpush1.bf16.msra.mxu0 %v3168_v31  ;;  %2078 = vmatprep.subr.bf16.mxu1 %v3173_v33  ;;  %v3272_v31 = vld [vmem:[%s4479_s1 + $0x724] ss:$8 sps:$4 sm:$0xff]   ;;  %v3270_v33 = vld [vmem:[%s4479_s1 + $0x720] ss:$8 sps:$4 sm:$0xff]  }
  0x91   :  { %2290 = vmatprep.subr.bf16.mxu0 %v3176_v34  ;;  %v3343_v34 = vld [vmem:[%s4480_s0 + $0xa0] ss:$72 sps:$4 sm:$0xff]  }
  0x93   :  { %2079 = vmatpush1.bf16.msra.mxu1 %v3171_v36  ;;  %v3275_v36 = vld [vmem:[%s4479_s1 + $0x334] ss:$8 sps:$4 sm:$0xff]  }
  0x94   :  { %2291 = vmatpush1.bf16.msra.mxu0 %v3174_v37  ;;  %2080 = vmatprep.subr.bf16.mxu1 %v3179_v38  ;;  %v3278_v37 = vld [vmem:[%s4479_s1 + $0x734] ss:$8 sps:$4 sm:$0xff]  }
  0x95   :  { %2292 = vmatprep.subr.bf16.mxu0 %v3182_v39  ;;  %v3359_v38 = vld [vmem:[%s4480_s0 + $0x1c] ss:$72 sps:$4 sm:$0xff]  }
  0x96   :  { %v3362_v39 = vld [vmem:[%s4480_s0 + $0x3c] ss:$72 sps:$4 sm:$0xff]  }
  0x97   :  { %2081 = vmatpush1.bf16.msra.mxu1 %v3177_v40  ;;  %v3273_v40 = vld [vmem:[%s4479_s1 + $0x330] ss:$8 sps:$4 sm:$0xff]  }
  0x98   :  { %2293 = vmatpush1.bf16.msra.mxu0 %v3180_v41  ;;  %2082 = vmatprep.subr.bf16.mxu1 %v3185_v42  ;;  %v3276_v41 = vld [vmem:[%s4479_s1 + $0x730] ss:$8 sps:$4 sm:$0xff]   ;;  %v3281_v42 = vld [vmem:[%s4479_s1 + $0x344] ss:$8 sps:$4 sm:$0xff]  }
  0x99   :  { %2294 = vmatprep.subr.bf16.mxu0 %v3188_v43  ;;  %v3284_v43 = vld [vmem:[%s4479_s1 + $0x744] ss:$8 sps:$4 sm:$0xff]  }
  0x9b   :  { %2083 = vmatpush1.bf16.msra.mxu1 %v3183_v44  ;;  %v3279_v44 = vld [vmem:[%s4479_s1 + $0x340] ss:$8 sps:$4 sm:$0xff]  }
  0x9c   :  { %2295 = vmatpush1.bf16.msra.mxu0 %v3186_v45  ;;  %2084 = vmatprep.subr.bf16.mxu1 %v3191_v46  ;;  %v3282_v45 = vld [vmem:[%s4479_s1 + $0x740] ss:$8 sps:$4 sm:$0xff]   ;;  %v3287_v46 = vld [vmem:[%s4479_s1 + $0x354] ss:$8 sps:$4 sm:$0xff]  }
  0x9d   :  { %2296 = vmatprep.subr.bf16.mxu0 %v3194_v47  ;;  %v3290_v47 = vld [vmem:[%s4479_s1 + $0x754] ss:$8 sps:$4 sm:$0xff]  }
  0x9f   :  { %2085 = vmatpush1.bf16.msra.mxu1 %v3189_v48  ;;  %v3285_v48 = vld [vmem:[%s4479_s1 + $0x350] ss:$8 sps:$4 sm:$0xff]  }
  0xa0   :  { %2297 = vmatpush1.bf16.msra.mxu0 %v3192_v49  ;;  %2086 = vmatprep.subr.bf16.mxu1 %v3197_v50  ;;  %v3288_v49 = vld [vmem:[%s4479_s1 + $0x750] ss:$8 sps:$4 sm:$0xff]   ;;  %v3293_v50 = vld [vmem:[%s4479_s1 + $0x364] ss:$8 sps:$4 sm:$0xff]  }
  0xa1   :  { %2298 = vmatprep.subr.bf16.mxu0 %v3200_v51  ;;  %v3296_v51 = vld [vmem:[%s4479_s1 + $0x764] ss:$8 sps:$4 sm:$0xff]  }
  0xa3   :  { %2087 = vmatpush1.bf16.msra.mxu1 %v3195_v52  ;;  %v3291_v52 = vld [vmem:[%s4479_s1 + $0x360] ss:$8 sps:$4 sm:$0xff]  }
  0xa4   :  { %2299 = vmatpush1.bf16.msra.mxu0 %v3198_v53  ;;  %2088 = vmatprep.subr.bf16.mxu1 %v3203_v54  ;;  %v3294_v53 = vld [vmem:[%s4479_s1 + $0x760] ss:$8 sps:$4 sm:$0xff]   ;;  %v3299_v54 = vld [vmem:[%s4479_s1 + $0x374] ss:$8 sps:$4 sm:$0xff]  }
  0xa5   :  { %2300 = vmatprep.subr.bf16.mxu0 %v3206_v55  ;;  %v3302_v55 = vld [vmem:[%s4479_s1 + $0x774] ss:$8 sps:$4 sm:$0xff]  }
  0xa7   :  { %2089 = vmatpush1.bf16.msra.mxu1 %v3201_v56  ;;  %v3297_v56 = vld [vmem:[%s4479_s1 + $0x370] ss:$8 sps:$4 sm:$0xff]  }
  0xa8   :  { %2301 = vmatpush1.bf16.msra.mxu0 %v3204_v57  ;;  %2090 = vmatprep.subr.bf16.mxu1 %v3209_v58  ;;  %v3300_v57 = vld [vmem:[%s4479_s1 + $0x770] ss:$8 sps:$4 sm:$0xff]   ;;  %v3305_v58 = vld [vmem:[%s4479_s1 + $0x384] ss:$8 sps:$4 sm:$0xff]  }
  0xa9   :  { %2302 = vmatprep.subr.bf16.mxu0 %v3212_v59  ;;  %v3308_v59 = vld [vmem:[%s4479_s1 + $0x784] ss:$8 sps:$4 sm:$0xff]  }
  0xab   :  { %2091 = vmatpush1.bf16.msra.mxu1 %v3207_v60  ;;  %v3303_v60 = vld [vmem:[%s4479_s1 + $0x380] ss:$8 sps:$4 sm:$0xff]  }
  0xac   :  { %2303 = vmatpush1.bf16.msra.mxu0 %v3210_v61  ;;  %2092 = vmatprep.subr.bf16.mxu1 %v3215_v62  ;;  %v3306_v61 = vld [vmem:[%s4479_s1 + $0x780] ss:$8 sps:$4 sm:$0xff]   ;;  %v3311_v62 = vld [vmem:[%s4479_s1 + $0x394] ss:$8 sps:$4 sm:$0xff]  }
  0xad   :  { %2304 = vmatprep.subr.bf16.mxu0 %v3218_v63  ;;  %v3314_v63 = vld [vmem:[%s4479_s1 + $0x794] ss:$8 sps:$4 sm:$0xff]  }
  0xaf   :  { %2093 = vmatpush1.bf16.msra.mxu1 %v3213_v0  ;;  %v3309_v0 = vld [vmem:[%s4479_s1 + $0x390] ss:$8 sps:$4 sm:$0xff]  }
  0xb0   :  { %2305 = vmatpush1.bf16.msra.mxu0 %v3216_v1  ;;  %2094 = vmatprep.subr.bf16.mxu1 %v3221_v2  ;;  %v3312_v1 = vld [vmem:[%s4479_s1 + $0x790] ss:$8 sps:$4 sm:$0xff]   ;;  %v3317_v2 = vld [vmem:[%s4479_s1 + $0x3a4] ss:$8 sps:$4 sm:$0xff]  }
  0xb1   :  { %2306 = vmatprep.subr.bf16.mxu0 %v3224_v3  ;;  %v3320_v3 = vld [vmem:[%s4479_s1 + $0x7a4] ss:$8 sps:$4 sm:$0xff]  }
  0xb3   :  { %2095 = vmatpush1.bf16.msra.mxu1 %v3219_v4  ;;  %v3315_v4 = vld [vmem:[%s4479_s1 + $0x3a0] ss:$8 sps:$4 sm:$0xff]  }
  0xb4   :  { %2307 = vmatpush1.bf16.msra.mxu0 %v3222_v5  ;;  %2096 = vmatprep.subr.bf16.mxu1 %v3227_v6  ;;  %v3318_v5 = vld [vmem:[%s4479_s1 + $0x7a0] ss:$8 sps:$4 sm:$0xff]   ;;  %v3323_v6 = vld [vmem:[%s4479_s1 + $0x3b4] ss:$8 sps:$4 sm:$0xff]  }
  0xb5   :  { %2308 = vmatprep.subr.bf16.mxu0 %v3230_v7  ;;  %v3326_v7 = vld [vmem:[%s4479_s1 + $0x7b4] ss:$8 sps:$4 sm:$0xff]  }
  0xb7   :  { %2097 = vmatpush1.bf16.msra.mxu1 %v3225_v8  ;;  %v3321_v8 = vld [vmem:[%s4479_s1 + $0x3b0] ss:$8 sps:$4 sm:$0xff]  }
  0xb8   :  { %2309 = vmatpush1.bf16.msra.mxu0 %v3228_v9  ;;  %2098 = vmatprep.subr.bf16.mxu1 %v3235_v10  ;;  %v3324_v9 = vld [vmem:[%s4479_s1 + $0x7b0] ss:$8 sps:$4 sm:$0xff]   ;;  %v3329_v10 = vld [vmem:[%s4479_s1 + $0x3c4] ss:$8 sps:$4 sm:$0xff]  }
  0xb9   :  { %2310 = vmatprep.subr.bf16.mxu0 %v3240_v11  ;;  %v3332_v11 = vld [vmem:[%s4479_s1 + $0x7c4] ss:$8 sps:$4 sm:$0xff]  }
  0xbb   :  { %2099 = vmatpush1.bf16.msra.mxu1 %v3233_v12  ;;  %v3327_v12 = vld [vmem:[%s4479_s1 + $0x3c0] ss:$8 sps:$4 sm:$0xff]  }
  0xbc   :  { %2311 = vmatpush1.bf16.msra.mxu0 %v3238_v13  ;;  %2100 = vmatprep.subr.bf16.mxu1 %v3245_v14  ;;  %v3330_v13 = vld [vmem:[%s4479_s1 + $0x7c0] ss:$8 sps:$4 sm:$0xff]   ;;  %v3335_v14 = vld [vmem:[%s4479_s1 + $0x3d4] ss:$8 sps:$4 sm:$0xff]  }
  0xbd   :  { %2312 = vmatprep.subr.bf16.mxu0 %v3248_v15  ;;  %v3338_v15 = vld [vmem:[%s4479_s1 + $0x7d4] ss:$8 sps:$4 sm:$0xff]  }
  0xbf   :  { %2101 = vmatpush1.bf16.msra.mxu1 %v3243_v16  ;;  %v3333_v16 = vld [vmem:[%s4479_s1 + $0x3d0] ss:$8 sps:$4 sm:$0xff]  }
  0xc0   :  { %2313 = vmatpush1.bf16.msra.mxu0 %v3246_v17  ;;  %2123 = vmatprep.subr.bf16.mxu1 %v3254_v18  ;;  %v3336_v17 = vld [vmem:[%s4479_s1 + $0x7d0] ss:$8 sps:$4 sm:$0xff]   ;;  %v3346_v18 = vld [vmem:[%s4479_s1 + $0x3e4] ss:$8 sps:$4 sm:$0xff]  }
  0xc1   :  { %2335 = vmatprep.subr.bf16.mxu0 %v3260_v19  ;;  %v3350_v19 = vld [vmem:[%s4479_s1 + $0x7e4] ss:$8 sps:$4 sm:$0xff]  }
  0xc2   :  { %2103 = vmatmul.mubr.bf16.vlgmr.msra.gmra.mrb[0].mxu1 %v3249_v20  ;;  %v3344_v20 = vld [vmem:[%s4479_s1 + $0x3e0] ss:$8 sps:$4 sm:$0xff]  }
  0xc3   :  { %2315 = vmatmul.mubr.bf16.vlgmr.msra.gmra.mrb[0].mxu0 %v3255_v22  ;;  %2124 = vmatpush1.bf16.msra.mxu1 %v3252_v21  ;;  %v3348_v21 = vld [vmem:[%s4479_s1 + $0x7e0] ss:$8 sps:$4 sm:$0xff]   ;;  %v3353_v22 = vld [vmem:[%s4479_s1 + $0x3f4] ss:$8 sps:$4 sm:$0xff]  }
  0xc4   :  { %2336 = vmatpush1.bf16.msra.mxu0 %v3258_v23  ;;  %2125 = vmatprep.subr.bf16.mxu1 %v3263_v24  ;;  %v3356_v23 = vld [vmem:[%s4479_s1 + $0x7f4] ss:$8 sps:$4 sm:$0xff]   ;;  %v3351_v24 = vld [vmem:[%s4479_s1 + $0x3f0] ss:$8 sps:$4 sm:$0xff]  }
  0xc5   :  { %2337 = vmatprep.subr.bf16.mxu0 %v3266_v25  ;;  %2112 = vmatprep.mubr.bf16.mxu1 %v3339_v26  ;;  %v3354_v25 = vld [vmem:[%s4479_s1 + $0x7f0] ss:$8 sps:$4 sm:$0xff]   ;;  %v3365_v26 = vld [vmem:[%s4479_s1 + $0x804] ss:$8 sps:$4 sm:$0xff]  }
  0xc6   :  { %2324 = vmatprep.mubr.bf16.mxu0 %v3341_v27  ;;  %v3357_v27 = vld [vmem:[%s4480_s0 + $0x18] ss:$72 sps:$4 sm:$0xff]  }
  0xc7   :  { %2126 = vmatpush1.bf16.msra.mxu1 %v3261_v28  ;;  %v3360_v28 = vld [vmem:[%s4480_s0 + $0x38] ss:$72 sps:$4 sm:$0xff]  }
  0xc8   :  { %2338 = vmatpush1.bf16.msra.mxu0 %v3264_v29  ;;  %2127 = vmatprep.subr.bf16.mxu1 %v3269_v30  ;;  %v3363_v29 = vld [vmem:[%s4479_s1 + $0x800] ss:$8 sps:$4 sm:$0xff]   ;;  %v3368_v30 = vld [vmem:[%s4479_s1 + $0x814] ss:$8 sps:$4 sm:$0xff]  }
  0xc9   :  { %2339 = vmatprep.subr.bf16.mxu0 %v3272_v31  ;;  %v3369_v31 = vld [vmem:[%s4480_s0 + $0xac] ss:$72 sps:$4 sm:$0xff]  }
  0xca   :  { %2113 = vmatmul.mubr.bf16.gmra.mrb[4].mxu1 %v3343_v34  ;;  %v3377_v34 = vld [vmem:[%s4479_s1 + $0x824] ss:$8 sps:$4 sm:$0xff]  }
  0xcb   :  { %2325 = vmatmul.mubr.bf16.gmra.mrb[4].mxu0 %v3347_v35  ;;  %2128 = vmatpush1.bf16.msra.mxu1 %v3267_v32  ;;  %v3371_v32 = vld [vmem:[%s4480_s0 + $0xcc] ss:$72 sps:$4 sm:$0xff]   ;;  %v3373_v35 = vld [vmem:[%s4480_s0 + $0xa8] ss:$72 sps:$4 sm:$0xff]  }
  0xcc   :  { %2340 = vmatpush1.bf16.msra.mxu0 %v3270_v33  ;;  %2129 = vmatprep.subr.bf16.mxu1 %v3275_v36  ;;  %v3366_v33 = vld [vmem:[%s4479_s1 + $0x810] ss:$8 sps:$4 sm:$0xff]  }
  0xcd   :  { %2341 = vmatprep.subr.bf16.mxu0 %v3278_v37  ;;  %2155 = vmatprep.mubr.bf16.mxu1 %v3359_v38  ;;  %v3374_v36 = vld [vmem:[%s4480_s0 + $0xc8] ss:$72 sps:$4 sm:$0xff]   ;;  %v3380_v38 = vld [vmem:[%s4479_s1 + $0x834] ss:$8 sps:$4 sm:$0xff]  }
  0xce   :  { %2367 = vmatprep.mubr.bf16.mxu0 %v3362_v39  ;;  %v3375_v37 = vld [vmem:[%s4479_s1 + $0x820] ss:$8 sps:$4 sm:$0xff]   ;;  %v3419_v39 = vld [vmem:[%s4480_s0 + $0x44] ss:$72 sps:$4 sm:$0xff]  }
  0xcf   :  { %2130 = vmatpush1.bf16.msra.mxu1 %v3273_v40  ;;  %v3422_v40 = vld [vmem:[%s4480_s0 + $0xd4] ss:$72 sps:$4 sm:$0xff]  }
  0xd0   :  { %2342 = vmatpush1.bf16.msra.mxu0 %v3276_v41  ;;  %2131 = vmatprep.subr.bf16.mxu1 %v3281_v42  ;;  %v3378_v41 = vld [vmem:[%s4479_s1 + $0x830] ss:$8 sps:$4 sm:$0xff]   ;;  %v3383_v42 = vld [vmem:[%s4479_s1 + $0x844] ss:$8 sps:$4 sm:$0xff]  }
  0xd1   :  { %2343 = vmatprep.subr.bf16.mxu0 %v3284_v43  ;;  %v3381_v43 = vld [vmem:[%s4479_s1 + $0x840] ss:$8 sps:$4 sm:$0xff]  }
  0xd3   :  { %2132 = vmatpush1.bf16.msra.mxu1 %v3279_v44  ;;  %v3386_v44 = vld [vmem:[%s4479_s1 + $0x854] ss:$8 sps:$4 sm:$0xff]  }
  0xd4   :  { %2344 = vmatpush1.bf16.msra.mxu0 %v3282_v45  ;;  %2133 = vmatprep.subr.bf16.mxu1 %v3287_v46  ;;  %v3384_v45 = vld [vmem:[%s4479_s1 + $0x850] ss:$8 sps:$4 sm:$0xff]   ;;  %v3389_v46 = vld [vmem:[%s4479_s1 + $0x864] ss:$8 sps:$4 sm:$0xff]  }
  0xd5   :  { %2345 = vmatprep.subr.bf16.mxu0 %v3290_v47  ;;  %v3387_v47 = vld [vmem:[%s4479_s1 + $0x860] ss:$8 sps:$4 sm:$0xff]  }
  0xd7   :  { %2134 = vmatpush1.bf16.msra.mxu1 %v3285_v48  ;;  %v3392_v48 = vld [vmem:[%s4479_s1 + $0x874] ss:$8 sps:$4 sm:$0xff]  }
  0xd8   :  { %2346 = vmatpush1.bf16.msra.mxu0 %v3288_v49  ;;  %2135 = vmatprep.subr.bf16.mxu1 %v3293_v50  ;;  %v3390_v49 = vld [vmem:[%s4479_s1 + $0x870] ss:$8 sps:$4 sm:$0xff]   ;;  %v3395_v50 = vld [vmem:[%s4479_s1 + $0x884] ss:$8 sps:$4 sm:$0xff]  }
  0xd9   :  { %2347 = vmatprep.subr.bf16.mxu0 %v3296_v51  ;;  %v3393_v51 = vld [vmem:[%s4479_s1 + $0x880] ss:$8 sps:$4 sm:$0xff]  }
  0xdb   :  { %2136 = vmatpush1.bf16.msra.mxu1 %v3291_v52  ;;  %v3398_v52 = vld [vmem:[%s4479_s1 + $0x894] ss:$8 sps:$4 sm:$0xff]  }
  0xdc   :  { %2348 = vmatpush1.bf16.msra.mxu0 %v3294_v53  ;;  %2137 = vmatprep.subr.bf16.mxu1 %v3299_v54  ;;  %v3396_v53 = vld [vmem:[%s4479_s1 + $0x890] ss:$8 sps:$4 sm:$0xff]   ;;  %v3401_v54 = vld [vmem:[%s4479_s1 + $0x8a4] ss:$8 sps:$4 sm:$0xff]  }
  0xdd   :  { %2349 = vmatprep.subr.bf16.mxu0 %v3302_v55  ;;  %v3399_v55 = vld [vmem:[%s4479_s1 + $0x8a0] ss:$8 sps:$4 sm:$0xff]  }
  0xdf   :  { %2138 = vmatpush1.bf16.msra.mxu1 %v3297_v56  ;;  %v3404_v56 = vld [vmem:[%s4479_s1 + $0x8b4] ss:$8 sps:$4 sm:$0xff]  }
  0xe0   :  { %2350 = vmatpush1.bf16.msra.mxu0 %v3300_v57  ;;  %2139 = vmatprep.subr.bf16.mxu1 %v3305_v58  ;;  %v3402_v57 = vld [vmem:[%s4479_s1 + $0x8b0] ss:$8 sps:$4 sm:$0xff]   ;;  %v3407_v58 = vld [vmem:[%s4479_s1 + $0x8c4] ss:$8 sps:$4 sm:$0xff]  }
  0xe1   :  { %2351 = vmatprep.subr.bf16.mxu0 %v3308_v59  ;;  %v3405_v59 = vld [vmem:[%s4479_s1 + $0x8c0] ss:$8 sps:$4 sm:$0xff]  }
  0xe3   :  { %2140 = vmatpush1.bf16.msra.mxu1 %v3303_v60  ;;  %v3410_v60 = vld [vmem:[%s4479_s1 + $0x8d4] ss:$8 sps:$4 sm:$0xff]  }
  0xe4   :  { %2352 = vmatpush1.bf16.msra.mxu0 %v3306_v61  ;;  %2141 = vmatprep.subr.bf16.mxu1 %v3311_v62  ;;  %v3408_v61 = vld [vmem:[%s4479_s1 + $0x8d0] ss:$8 sps:$4 sm:$0xff]   ;;  %v3413_v62 = vld [vmem:[%s4479_s1 + $0x8e4] ss:$8 sps:$4 sm:$0xff]  }
  0xe5   :  { %2353 = vmatprep.subr.bf16.mxu0 %v3314_v63  ;;  %v3411_v63 = vld [vmem:[%s4479_s1 + $0x8e0] ss:$8 sps:$4 sm:$0xff]  }
  0xe7   :  { %2142 = vmatpush1.bf16.msra.mxu1 %v3309_v0  ;;  %v3416_v0 = vld [vmem:[%s4479_s1 + $0x8f4] ss:$8 sps:$4 sm:$0xff]  }
  0xe8   :  { %2354 = vmatpush1.bf16.msra.mxu0 %v3312_v1  ;;  %2143 = vmatprep.subr.bf16.mxu1 %v3317_v2  ;;  %v3414_v1 = vld [vmem:[%s4479_s1 + $0x8f0] ss:$8 sps:$4 sm:$0xff]   ;;  %v3417_v2 = vld [vmem:[%s4480_s0 + $0x40] ss:$72 sps:$4 sm:$0xff]  }
  0xe9   :  { %2355 = vmatprep.subr.bf16.mxu0 %v3320_v3  ;;  %v3420_v3 = vld [vmem:[%s4480_s0 + $0xd0] ss:$72 sps:$4 sm:$0xff]  }
  0xeb   :  { %2144 = vmatpush1.bf16.msra.mxu1 %v3315_v4 }
  0xec   :  { %2356 = vmatpush1.bf16.msra.mxu0 %v3318_v5  ;;  %2145 = vmatprep.subr.bf16.mxu1 %v3323_v6 }
  0xed   :  { %2357 = vmatprep.subr.bf16.mxu0 %v3326_v7 }
  0xef   :  { %2146 = vmatpush1.bf16.msra.mxu1 %v3321_v8 }
  0xf0   :  { %2358 = vmatpush1.bf16.msra.mxu0 %v3324_v9  ;;  %2147 = vmatprep.subr.bf16.mxu1 %v3329_v10 }
  0xf1   :  { %2359 = vmatprep.subr.bf16.mxu0 %v3332_v11 }
  0xf3   :  { %2148 = vmatpush1.bf16.msra.mxu1 %v3327_v12 }
  0xf4   :  { %2360 = vmatpush1.bf16.msra.mxu0 %v3330_v13  ;;  %2149 = vmatprep.subr.bf16.mxu1 %v3335_v14 }
  0xf5   :  { %2361 = vmatprep.subr.bf16.mxu0 %v3338_v15 }
  0xf7   :  { %2150 = vmatpush1.bf16.msra.mxu1 %v3333_v16 }
  0xf8   :  { %2362 = vmatpush1.bf16.msra.mxu0 %v3336_v17  ;;  %2151 = vmatprep.subr.bf16.mxu1 %v3346_v18 }
  0xf9   :  { %2363 = vmatprep.subr.bf16.mxu0 %v3350_v19 }
  0xfb   :  { %2152 = vmatpush1.bf16.msra.mxu1 %v3344_v20  ;;  %v2443_v20 = vlaneseq }
  0xfc   :  { %2364 = vmatpush1.bf16.msra.mxu0 %v3348_v21  ;;  %2153 = vmatprep.subr.bf16.mxu1 %v3353_v22 }
  0xfd   :  { %2365 = vmatprep.subr.bf16.mxu0 %v3356_v23  ;;  %v2444_v21 = vshrl.u32 %v2443_v20, 7  ;;  %v2441_v23 = vld [vmem:[%s4481_s2] sm:$0x3] }
  0xff   :  { %2154 = vmatpush1.bf16.msra.mxu1 %v3351_v24  ;;  %v2445_v22 = vsub.s32 0, %v2444_v21  ;;  %v2449_v24 = vsub.s32 1, %v2444_v21 }
 0x100   :  { %2366 = vmatpush1.bf16.msra.mxu0 %v3354_v25  ;;  %2841 = vmatprep.subr.bf16.mxu1 %v3365_v26  ;;  %v2461_v25 = vld [vmem:[%s4482_s3] sm:$0x3] }
 0x101   :  { %2388 = vmatprep.subr.bf16.mxu0 %v3365_v26  ;;  %v2446_v26 = vrot.slane %v2441_v23, %v2445_v22 }
 0x102   :  { %2156 = vmatmul.mubr.bf16.vlgmr.msra.gmra.mrb[0].mxu1 %v3357_v27 }
 0x103   :  { %2368 = vmatmul.mubr.bf16.vlgmr.msra.gmra.mrb[0].mxu0 %v3360_v28  ;;  %2857 = vmatpush1.bf16.msra.mxu1 %v3363_v29 }
 0x104   :  { %2389 = vmatpush1.bf16.msra.mxu0 %v3363_v29  ;;  %2842 = vmatprep.subr.bf16.mxu1 %v3368_v30  ;;  %v2450_v29 = vrot.slane %v2441_v23, %v2449_v24 }
 0x105   :  { %2390 = vmatprep.subr.bf16.mxu0 %v3368_v30  ;;  %2165 = vmatprep.mubr.bf16.mxu1 %v3369_v31  ;;  %v2466_v31 = vrot.slane %v2461_v25, %v2445_v22 }
 0x106   :  { %2377 = vmatprep.mubr.bf16.mxu0 %v3371_v32 }
 0x107   :  { %2858 = vmatpush1.bf16.msra.mxu1 %v3366_v33 }
 0x108   :  { %2391 = vmatpush1.bf16.msra.mxu0 %v3366_v33  ;;  %2843 = vmatprep.subr.bf16.mxu1 %v3377_v34 }
 0x109   :  { %2392 = vmatprep.subr.bf16.mxu0 %v3377_v34 }
 0x10a   :  { %2166 = vmatmul.mubr.bf16.gmra.mrb[4].mxu1 %v3373_v35 }
 0x10b   :  { %2378 = vmatmul.mubr.bf16.gmra.mrb[4].mxu0 %v3374_v36  ;;  %2859 = vmatpush1.bf16.msra.mxu1 %v3375_v37  ;;  %v2470_v36 = vrot.slane %v2461_v25, %v2449_v24 }
 0x10c   :  { %2393 = vmatpush1.bf16.msra.mxu0 %v3375_v37  ;;  %2844 = vmatprep.subr.bf16.mxu1 %v3380_v38 }
 0x10d   :  { %2394 = vmatprep.subr.bf16.mxu0 %v3380_v38  ;;  %2420 = vmatprep.mubr.bf16.mxu0 %v3419_v39 }
 0x10e   :  { %2430 = vmatprep.mubr.bf16.mxu1 %v3422_v40 }
 0x10f   :  { %2860 = vmatpush1.bf16.msra.mxu1 %v3378_v41 }
 0x110   :  { %2395 = vmatpush1.bf16.msra.mxu0 %v3378_v41  ;;  %2845 = vmatprep.subr.bf16.mxu1 %v3383_v42 }
 0x111   :  { %2396 = vmatprep.subr.bf16.mxu0 %v3383_v42 }
 0x113   :  { %2861 = vmatpush1.bf16.msra.mxu1 %v3381_v43 }
 0x114   :  { %2397 = vmatpush1.bf16.msra.mxu0 %v3381_v43  ;;  %2846 = vmatprep.subr.bf16.mxu1 %v3386_v44 }
 0x115   :  { %2398 = vmatprep.subr.bf16.mxu0 %v3386_v44 }
 0x117   :  { %2862 = vmatpush1.bf16.msra.mxu1 %v3384_v45 }
 0x118   :  { %2399 = vmatpush1.bf16.msra.mxu0 %v3384_v45  ;;  %2847 = vmatprep.subr.bf16.mxu1 %v3389_v46 }
 0x119   :  { %2400 = vmatprep.subr.bf16.mxu0 %v3389_v46  ;;  %v2481_v46 = vld [vmem:[%s4483_s4] sm:$0xff] }
 0x11b   :  { %2863 = vmatpush1.bf16.msra.mxu1 %v3387_v47 }
 0x11c   :  { %2401 = vmatpush1.bf16.msra.mxu0 %v3387_v47  ;;  %2848 = vmatprep.subr.bf16.mxu1 %v3392_v48  ;;  %v2485_v47 = vld [vmem:[%s4483_s4 + $0x20] sm:$0xff] }
 0x11d   :  { %2402 = vmatprep.subr.bf16.mxu0 %v3392_v48 }
 0x11f   :  { %2864 = vmatpush1.bf16.msra.mxu1 %v3390_v49 }
 0x120   :  { %2403 = vmatpush1.bf16.msra.mxu0 %v3390_v49  ;;  %2849 = vmatprep.subr.bf16.mxu1 %v3395_v50 }
 0x121   :  { %2404 = vmatprep.subr.bf16.mxu0 %v3395_v50 }
 0x123   :  { %2865 = vmatpush1.bf16.msra.mxu1 %v3393_v51 }
 0x124   :  { %2405 = vmatpush1.bf16.msra.mxu0 %v3393_v51  ;;  %2850 = vmatprep.subr.bf16.mxu1 %v3398_v52 }
 0x125   :  { %2406 = vmatprep.subr.bf16.mxu0 %v3398_v52 }
 0x127   :  { %2866 = vmatpush1.bf16.msra.mxu1 %v3396_v53 }
 0x128   :  { %2407 = vmatpush1.bf16.msra.mxu0 %v3396_v53  ;;  %2851 = vmatprep.subr.bf16.mxu1 %v3401_v54 }
 0x129   :  { %2408 = vmatprep.subr.bf16.mxu0 %v3401_v54  ;;  %v2482_v54 = vld [vmem:[%s4483_s4 + $0x8] sm:$0xff] }
 0x12b   :  { %2867 = vmatpush1.bf16.msra.mxu1 %v3399_v55 }
 0x12c   :  { %2409 = vmatpush1.bf16.msra.mxu0 %v3399_v55  ;;  %2852 = vmatprep.subr.bf16.mxu1 %v3404_v56  ;;  %v2486_v55 = vld [vmem:[%s4483_s4 + $0x28] sm:$0xff] }
 0x12d   :  { %2410 = vmatprep.subr.bf16.mxu0 %v3404_v56 }
 0x12f   :  { %2868 = vmatpush1.bf16.msra.mxu1 %v3402_v57 }
 0x130   :  { %2411 = vmatpush1.bf16.msra.mxu0 %v3402_v57  ;;  %2853 = vmatprep.subr.bf16.mxu1 %v3407_v58 }
 0x131   :  { %2412 = vmatprep.subr.bf16.mxu0 %v3407_v58 }
 0x133   :  { %2869 = vmatpush1.bf16.msra.mxu1 %v3405_v59 }
 0x134   :  { %2413 = vmatpush1.bf16.msra.mxu0 %v3405_v59  ;;  %2854 = vmatprep.subr.bf16.mxu1 %v3410_v60 }
 0x135   :  { %2414 = vmatprep.subr.bf16.mxu0 %v3410_v60  ;;  %v2483_v60 = vld [vmem:[%s4483_s4 + $0x10] sm:$0xff] }
 0x137   :  { %2870 = vmatpush1.bf16.msra.mxu1 %v3408_v61 }
 0x138   :  { %2415 = vmatpush1.bf16.msra.mxu0 %v3408_v61  ;;  %2855 = vmatprep.subr.bf16.mxu1 %v3413_v62  ;;  %v2487_v61 = vld [vmem:[%s4483_s4 + $0x30] sm:$0xff] }
 0x139   :  { %2416 = vmatprep.subr.bf16.mxu0 %v3413_v62 }
 0x13b   :  { %2871 = vmatpush1.bf16.msra.mxu1 %v3411_v63 }
 0x13c   :  { %2417 = vmatpush1.bf16.msra.mxu0 %v3411_v63  ;;  %2856 = vmatprep.subr.bf16.mxu1 %v3416_v0 }
 0x13d   :  { %2418 = vmatprep.subr.bf16.mxu0 %v3416_v0 }
 0x13f   :  { %2872 = vmatpush1.bf16.msra.mxu1 %v3414_v1 }
 0x140   :  { %2419 = vmatpush1.bf16.msra.mxu0 %v3414_v1 }
 0x142   :  { %2431 = vmatmul.mubr.bf16.vlgmr.msra.gmra.mrb[8].mxu1 %v3420_v3 }
 0x143   :  { %2421 = vmatmul.mubr.bf16.vlgmr.msra.gmra.mrb[0].mxu0 %v3417_v2 }
 0x1d5   :  { %v2157_v4 = vpop.f32.mrb[0].mxu1 }
 0x1d6   :  { %v2159_v5 = vpop.f32.mrb[1].mxu1 }
 0x1d7   :  { %v2161_v6 = vpop.f32.mrb[2].mxu1 }
 0x1d8   :  { %v2163_v7 = vpop.f32.mrb[3].mxu1 }
 0x1dd   :  { %v2167_v8 = vpop.f32.mrb[4].mxu1 }
 0x1de   :  { %v2379_v9 = vpop.f32.mrb[4].mxu0  ;;  %v2169_v11 = vpop.f32.mrb[5].mxu1 }
 0x1df   :  { %v2877_v10 = vadd.f32 %v2379_v9, %v2167_v8  ;;  %v2381_v12 = vpop.f32.mrb[5].mxu0  ;;  %v2171_v14 = vpop.f32.mrb[6].mxu1 }
 0x1e0   :  { %v2879_v13 = vadd.f32 %v2381_v12, %v2169_v11  ;;  %v2383_v15 = vpop.f32.mrb[6].mxu0  ;;  %v2173_v17 = vpop.f32.mrb[7].mxu1 }
 0x1e1   :  { %v2881_v16 = vadd.f32 %v2383_v15, %v2171_v14  ;;  %v2385_v18 = vpop.f32.mrb[7].mxu0 }
 0x1e2   :  { %v2883_v19 = vadd.f32 %v2385_v18, %v2173_v17 }
 0x215   :  { %v2432_v28 = vpop.f32.mrb[8].mxu1 }
 0x216   :  { %v2422_v27 = vpop.f32.mrb[0].mxu0  ;;  %v2878_v32 = vadd.f32 %v2877_v10, %v2432_v28  ;;  %v2434_v34 = vpop.f32.mrb[9].mxu1 }
 0x217   :  { %v2873_v30 = vadd.f32 %v2422_v27, %v2157_v4  ;;  %v2424_v33 = vpop.f32.mrb[1].mxu0  ;;  %v2880_v37 = vadd.f32 %v2879_v13, %v2434_v34  ;;  %v2436_v39 = vpop.f32.mrb[10].mxu1  ;;  %v2484_v4 = vld [vmem:[%s4483_s4 + $0x18] sm:$0xff] }
 0x218   :  { %v2874_v35 = vadd.f32 %v2424_v33, %v2159_v5  ;;  %v2426_v38 = vpop.f32.mrb[2].mxu0  ;;  %v2457_v41 = vmul.f32 %v2878_v32, %v2446_v26  ;;  %v2882_v43 = vadd.f32 %v2881_v16, %v2436_v39  ;;  %v2438_v45 = vpop.f32.mrb[11].mxu1  ;;  %v2488_v5 = vld [vmem:[%s4483_s4 + $0x38] sm:$0xff] }
 0x219   :  { %v2453_v40 = vmul.f32 %v2873_v30, %v2446_v26  ;;  %v2875_v42 = vadd.f32 %v2426_v38, %v2161_v6  ;;  %v2428_v44 = vpop.f32.mrb[3].mxu0  ;;  %v2458_v49 = vmul.f32 %v2880_v37, %v2450_v29  ;;  %v2884_v51 = vadd.f32 %v2883_v19, %v2438_v45 }
 0x21a   :  { %v2454_v48 = vmul.f32 %v2874_v35, %v2450_v29  ;;  %v2876_v50 = vadd.f32 %v2428_v44, %v2163_v7  ;;  %v2477_v53 = vadd.f32 %v2466_v31, %v2457_v41  ;;  %v2459_v57 = vmul.f32 %v2882_v43, %v2446_v26 }
 0x21b   :  { %v2473_v52 = vadd.f32 %v2466_v31, %v2453_v40  ;;  %v2455_v56 = vmul.f32 %v2875_v42, %v2446_v26  ;;  %v2478_v59 = vadd.f32 %v2470_v36, %v2458_v49  ;;  %v2460_v63 = vmul.f32 %v2884_v51, %v2450_v29 }
 0x21c   :  { %v2474_v58 = vadd.f32 %v2470_v36, %v2454_v48  ;;  %v2456_v62 = vmul.f32 %v2876_v50, %v2450_v29  ;;  %v2493_v1 = vadd.f32 %v2485_v47, %v2477_v53  ;;  %v2479_v3 = vadd.f32 %v2466_v31, %v2459_v57 }
 0x21d   :  { %v2489_v0 = vadd.f32 %v2481_v46, %v2473_v52  ;;  %v2475_v2 = vadd.f32 %v2466_v31, %v2455_v56  ;;  %v2494_v7 = vadd.f32 %v2486_v55, %v2478_v59  ;;  %v2480_v9 = vadd.f32 %v2470_v36, %v2460_v63 }
 0x21e   :  { %v2490_v6 = vadd.f32 %v2482_v54, %v2474_v58  ;;  %v2476_v8 = vadd.f32 %v2470_v36, %v2456_v62  ;;  %v2501_v11 = vmax.f32 %v2493_v1, 0.0  ;;  %v2495_v13 = vadd.f32 %v2487_v61, %v2479_v3 }
 0x21f   :  { %v2497_v10 = vmax.f32 %v2489_v0, 0.0  ;;  %v2491_v12 = vadd.f32 %v2483_v60, %v2475_v2  ;;  %v2502_v15 = vmax.f32 %v2494_v7, 0.0  ;;  %v2496_v17 = vadd.f32 %v2488_v5, %v2480_v9 }
 0x220   :  { %v2498_v14 = vmax.f32 %v2490_v6, 0.0  ;;  %v2492_v16 = vadd.f32 %v2484_v4, %v2476_v8  ;;  %2509 = vst [vmem:[%s4484_s5 + $0x20] sm:$0xff] %v2501_v11  ;;  %v2503_v19 = vmax.f32 %v2495_v13, 0.0 }
 0x221   :  { %2505 = vst [vmem:[%s4484_s5] sm:$0xff] %v2497_v10  ;;  %v2499_v18 = vmax.f32 %v2491_v12, 0.0  ;;  %2510 = vst [vmem:[%s4484_s5 + $0x28] sm:$0xff] %v2502_v15  ;;  %v2504_v21 = vmax.f32 %v2496_v17, 0.0 }
 0x222   :  { %2506 = vst [vmem:[%s4484_s5 + $0x8] sm:$0xff] %v2498_v14  ;;  %v2500_v20 = vmax.f32 %v2492_v16, 0.0  ;;  %2511 = vst [vmem:[%s4484_s5 + $0x30] sm:$0xff] %v2503_v19 }
 0x223   :  { %2507 = vst [vmem:[%s4484_s5 + $0x10] sm:$0xff] %v2499_v18  ;;  %2512 = vst [vmem:[%s4484_s5 + $0x38] sm:$0xff] %v2504_v21 }
 0x224   :  { %2508 = vst [vmem:[%s4484_s5 + $0x18] sm:$0xff] %v2500_v20 }

</bundles_post_ra>
